<compile_context>
chip_gen: v6e
topology: v6e:2x2x1
jax: 0.10.0
libtpu: 0.0.40
codegen_flags: <defaults>
</compile_context>

<pallas_src>
import functools

import jax
import jax.numpy as jnp
from jax.experimental import pallas as pl
from jax.experimental.pallas import tpu as pltpu


# ---------------------------------------------------------------------------
# Generator definition (gen_type='conv')
# ---------------------------------------------------------------------------
def gen_layer_configs(input_dim, im_chan, hidden_dim):
    hd = hidden_dim
    # (in_ch, out_ch, kernel_size, stride, has_bn_and_relu)
    return [
        (input_dim, hd * 16, 3, 1, True),
        (hd * 16,   hd * 8,  7, 2, True),
        (hd * 8,    hd * 8,  5, 1, True),
        (hd * 8,    hd * 4,  5, 1, True),   # dropout block (identity in eval)
        (hd * 4,    hd * 4,  5, 1, True),
        (hd * 4,    hd * 4,  7, 1, True),
        (hd * 4,    hd * 2,  7, 1, True),
        (hd * 2,    hd * 2,  7, 1, True),   # dropout block (identity in eval)
        (hd * 2,    hd * 2,  7, 2, True),
        (hd * 2,    hd * 2,  7, 2, True),
        (hd * 2,    hd * 2,  7, 2, True),   # dropout block (identity in eval)
        (hd * 2,    hd * 1, 10, 2, True),
        (hd * 1,    hd * 1,  5, 1, True),
        (hd,        im_chan, 3, 2, False),  # final layer: conv only
    ]
    # TODO(synk): training-mode Dropout2d / batch-statistics BatchNorm are
    # stochastic / mode-dependent; eval-mode semantics are implemented here.


def layer_lengths(cfgs):
    """Input length of each layer (starting from L=1) and the final length."""
    lens, l = [], 1
    for (_, _, k, s, _) in cfgs:
        lens.append(l)
        l = (l - 1) * s + k
    return tuple(lens), l


def init_params(key, cfgs):
    params = []
    for (cin, cout, k, s, has_bn) in cfgs:
        key, k1, k2, k3, k4, k5, k6 = jax.random.split(key, 7)
        bound = 1.0 / float(cin * k) ** 0.5
        p = {
            'w': jax.random.uniform(k1, (cin, cout, k), jnp.float32, -bound, bound),
            'b': jax.random.uniform(k2, (cout,), jnp.float32, -bound, bound),
        }
        if has_bn:
            p['gamma'] = 1.0 + 0.1 * jax.random.normal(k3, (cout,), jnp.float32)
            p['beta']  = 0.1 * jax.random.normal(k4, (cout,), jnp.float32)
            p['rmean'] = 0.05 * jax.random.normal(k5, (cout,), jnp.float32)
            p['rvar']  = 1.0 + 0.1 * jax.random.uniform(k6, (cout,), jnp.float32)
        else:
            p['gamma'] = p['beta'] = p['rmean'] = p['rvar'] = None
        params.append(p)
    return params


# ---------------------------------------------------------------------------
# One-time (hoisted) parameter preparation
# ---------------------------------------------------------------------------
def prepare_params(params, cfgs, lens):
    """Flip/transpose weights to per-tap (K, C_out, C_in) bf16, fold conv bias
    + eval-mode BatchNorm into one per-channel affine (f32), and build the
    one-hot dilation+padding matrices used inside the fused kernel."""
    prepared = []
    for p, (cin, cout, kk, s, has_bn), l_in in zip(params, cfgs, lens):
        # PyTorch ConvTranspose1d weight is (C_in, C_out, K); flip K and move
        # it to the front so the transposed conv becomes a plain correlation.
        wflip = p['w'][:, :, ::-1]                    # (C_in, C_out, K)
        w3 = jnp.transpose(wflip, (2, 1, 0))          # (K, C_out, C_in)

        if has_bn:
            eps = 1e-5
            scale = p['gamma'] / jnp.sqrt(p['rvar'] + eps)
            shift = (p['b'] - p['rmean']) * scale + p['beta']
        else:
            scale = jnp.ones((cout,), jnp.float32)
            shift = p['b']

        # One-hot "dilate by stride + pad by K-1" matrix:  xp = x @ D
        #   D[l, K-1 + l*s] = 1        (shape (L_in, L_pad))
        l_pad = (l_in - 1) * s + 1 + 2 * (kk - 1)
        cols = (kk - 1) + s * jnp.arange(l_in)
        d = jax.nn.one_hot(cols, l_pad, dtype=jnp.bfloat16)

        prepared.append({
            'w': w3.astype(jnp.bfloat16),
            'scale': scale.reshape(cout, 1).astype(jnp.float32),
            'shift': shift.reshape(cout, 1).astype(jnp.float32),
            'd': d,
        })
    return prepared


# ---------------------------------------------------------------------------
# Fused Pallas kernel: the whole 14-block generator for one batch element
# ---------------------------------------------------------------------------
def make_fused_kernel(cfgs, lens):
    def kernel(*refs):
        # refs = [noise_ref, (w, scale, shift, d) x 14, o_ref]
        noise_ref, o_ref = refs[0], refs[-1]
        layer_refs = refs[1:-1]

        x = noise_ref[0]                               # (input_dim, 1) f32, NCL
        for li, ((cin, cout, kk, s, has_bn), l_in) in enumerate(zip(cfgs, lens)):
            w_ref, sc_ref, sh_ref, d_ref = layer_refs[4 * li:4 * li + 4]
            l_out = (l_in - 1) * s + kk

            # Dilate-by-stride + pad-by-(K-1) as a one-hot matmul on the MXU
            # (no scatter / concatenate needed inside the kernel).
            xp = jnp.dot(x.astype(jnp.bfloat16), d_ref[...],
                         preferred_element_type=jnp.float32)   # (C_in, L_pad)
            xpb = xp.astype(jnp.bfloat16)              # exact: D is one-hot

            # Correlation with the flipped kernel: K per-tap matmuls,
            # bf16 operands, f32 accumulation, L in the lane dimension.
            acc = jnp.zeros((cout, l_out), jnp.float32)
            for k in range(kk):                        # static unrolled taps
                acc = acc + jnp.dot(w_ref[k], xpb[:, k:k + l_out],
                                    preferred_element_type=jnp.float32)

            # Folded conv-bias + eval BatchNorm affine (f32) and ReLU.
            y = acc * sc_ref[...] + sh_ref[...]
            if has_bn:
                y = jnp.maximum(y, 0.0)
            x = y                                      # stays resident in VMEM

        o_ref[0] = x.astype(o_ref.dtype)               # (im_chan, L_final), NCL
    return kernel


def _const_map(ndim):
    return lambda i: (0,) * ndim


def generator_forward(noise, prepared, *, cfgs, lens, im_chan, l_final):
    """noise: (N, input_dim) -> output (N, im_chan, L_final) in NCL, one fused
    pallas_call for the entire generator."""
    n, input_dim = noise.shape
    noise_col = noise.reshape(n, input_dim, 1)         # PyTorch .view -> NCL

    inputs = [noise_col]
    in_specs = [pl.BlockSpec((1, input_dim, 1), lambda i: (i, 0, 0))]
    for entry in prepared:
        for name in ('w', 'scale', 'shift', 'd'):
            arr = entry[name]
            inputs.append(arr)
            in_specs.append(pl.BlockSpec(arr.shape, _const_map(arr.ndim)))

    kernel = make_fused_kernel(tuple(cfgs), tuple(lens))
    return pl.pallas_call(
        kernel,
        out_shape=jax.ShapeDtypeStruct((n, im_chan, l_final), jnp.float32),
        grid=(n,),
        in_specs=in_specs,
        out_specs=pl.BlockSpec((1, im_chan, l_final), lambda i: (i, 0, 0)),
        compiler_params=pltpu.CompilerParams(
            dimension_semantics=("parallel",)),        # 2 TCs on v7x
    )(*inputs)


# ---------------------------------------------------------------------------
# Pure-JAX reference (same eval-mode semantics, same bf16 operand rounding)
# ---------------------------------------------------------------------------
def reference_forward(noise, params, cfgs):
    n = noise.shape[0]
    x = noise.reshape(n, cfgs[0][0], 1).astype(jnp.float32)     # NCL
    for p, (cin, cout, kk, s, has_bn) in zip(params, cfgs):
        l_in = x.shape[-1]
        l_out = (l_in - 1) * s + kk
        l_dil = (l_in - 1) * s + 1
        xd = jnp.zeros((n, cin, l_dil), jnp.float32).at[:, :, ::s].set(x)
        xp = jnp.pad(xd, ((0, 0), (0, 0), (kk - 1, kk - 1)))
        xpb = xp.astype(jnp.bfloat16).astype(jnp.float32)
        wfb = p['w'][:, :, ::-1].astype(jnp.bfloat16).astype(jnp.float32)
        acc = jnp.zeros((n, cout, l_out), jnp.float32)
        for k in range(kk):
            acc = acc + jnp.einsum('io,nil->nol', wfb[:, :, k],
                                   xpb[:, :, k:k + l_out])
        if has_bn:
            scale = p['gamma'] / jnp.sqrt(p['rvar'] + 1e-5)
            shift = (p['b'] - p['rmean']) * scale + p['beta']
            x = jnp.maximum(acc * scale[None, :, None] + shift[None, :, None], 0.0)
        else:
            x = acc + p['b'][None, :, None]
    return x


# ---------------------------------------------------------------------------
if __name__ == "__main__":
    batch = 2
    input_dim = 16
    hidden_dim = 4
    im_chan = 6

    key = jax.random.PRNGKey(0)
    key_noise, key_params = jax.random.split(key)

    cfgs = gen_layer_configs(input_dim, im_chan, hidden_dim)
    lens, l_final = layer_lengths(cfgs)
    params = init_params(key_params, cfgs)
    noise = jax.random.normal(key_noise, (batch, input_dim), jnp.float32)

    # One-time, hoisted parameter preparation (not part of the forward pass).
    prepared = prepare_params(params, cfgs, lens)

    fwd = jax.jit(functools.partial(
        generator_forward, cfgs=tuple(cfgs), lens=lens,
        im_chan=im_chan, l_final=l_final))
    out = jax.block_until_ready(fwd(noise, prepared))

    ref = jax.block_until_ready(reference_forward(noise, params, cfgs))

    assert out.shape == (batch, im_chan, l_final), out.shape
    assert bool(jnp.all(jnp.isfinite(out)))
    max_err = float(jnp.max(jnp.abs(out - ref)))
    ref_scale = float(jnp.max(jnp.abs(ref)))
    assert max_err <= 1e-2 * max(1.0, ref_scale), (max_err, ref_scale)

    print("KERNEL_OK")
</pallas_src>

<mosaic_0001>
module attributes {stable_mosaic.version = 11 : i64} {
  func.func @kernel(%arg0: i32, %arg1: memref<1x16x1xf32, #tpu.memory_space<vmem>>, %arg2: memref<3x64x16xbf16, #tpu.memory_space<vmem>>, %arg3: memref<64x1xf32, #tpu.memory_space<vmem>>, %arg4: memref<64x1xf32, #tpu.memory_space<vmem>>, %arg5: memref<1x5xbf16, #tpu.memory_space<vmem>>, %arg6: memref<7x32x64xbf16, #tpu.memory_space<vmem>>, %arg7: memref<32x1xf32, #tpu.memory_space<vmem>>, %arg8: memref<32x1xf32, #tpu.memory_space<vmem>>, %arg9: memref<3x17xbf16, #tpu.memory_space<vmem>>, %arg10: memref<5x32x32xbf16, #tpu.memory_space<vmem>>, %arg11: memref<32x1xf32, #tpu.memory_space<vmem>>, %arg12: memref<32x1xf32, #tpu.memory_space<vmem>>, %arg13: memref<11x19xbf16, #tpu.memory_space<vmem>>, %arg14: memref<5x16x32xbf16, #tpu.memory_space<vmem>>, %arg15: memref<16x1xf32, #tpu.memory_space<vmem>>, %arg16: memref<16x1xf32, #tpu.memory_space<vmem>>, %arg17: memref<15x23xbf16, #tpu.memory_space<vmem>>, %arg18: memref<5x16x16xbf16, #tpu.memory_space<vmem>>, %arg19: memref<16x1xf32, #tpu.memory_space<vmem>>, %arg20: memref<16x1xf32, #tpu.memory_space<vmem>>, %arg21: memref<19x27xbf16, #tpu.memory_space<vmem>>, %arg22: memref<7x16x16xbf16, #tpu.memory_space<vmem>>, %arg23: memref<16x1xf32, #tpu.memory_space<vmem>>, %arg24: memref<16x1xf32, #tpu.memory_space<vmem>>, %arg25: memref<23x35xbf16, #tpu.memory_space<vmem>>, %arg26: memref<7x8x16xbf16, #tpu.memory_space<vmem>>, %arg27: memref<8x1xf32, #tpu.memory_space<vmem>>, %arg28: memref<8x1xf32, #tpu.memory_space<vmem>>, %arg29: memref<29x41xbf16, #tpu.memory_space<vmem>>, %arg30: memref<7x8x8xbf16, #tpu.memory_space<vmem>>, %arg31: memref<8x1xf32, #tpu.memory_space<vmem>>, %arg32: memref<8x1xf32, #tpu.memory_space<vmem>>, %arg33: memref<35x47xbf16, #tpu.memory_space<vmem>>, %arg34: memref<7x8x8xbf16, #tpu.memory_space<vmem>>, %arg35: memref<8x1xf32, #tpu.memory_space<vmem>>, %arg36: memref<8x1xf32, #tpu.memory_space<vmem>>, %arg37: memref<41x93xbf16, #tpu.memory_space<vmem>>, %arg38: memref<7x8x8xbf16, #tpu.memory_space<vmem>>, %arg39: memref<8x1xf32, #tpu.memory_space<vmem>>, %arg40: memref<8x1xf32, #tpu.memory_space<vmem>>, %arg41: memref<87x185xbf16, #tpu.memory_space<vmem>>, %arg42: memref<7x8x8xbf16, #tpu.memory_space<vmem>>, %arg43: memref<8x1xf32, #tpu.memory_space<vmem>>, %arg44: memref<8x1xf32, #tpu.memory_space<vmem>>, %arg45: memref<179x369xbf16, #tpu.memory_space<vmem>>, %arg46: memref<10x4x8xbf16, #tpu.memory_space<vmem>>, %arg47: memref<4x1xf32, #tpu.memory_space<vmem>>, %arg48: memref<4x1xf32, #tpu.memory_space<vmem>>, %arg49: memref<363x743xbf16, #tpu.memory_space<vmem>>, %arg50: memref<5x4x4xbf16, #tpu.memory_space<vmem>>, %arg51: memref<4x1xf32, #tpu.memory_space<vmem>>, %arg52: memref<4x1xf32, #tpu.memory_space<vmem>>, %arg53: memref<734x742xbf16, #tpu.memory_space<vmem>>, %arg54: memref<3x6x4xbf16, #tpu.memory_space<vmem>>, %arg55: memref<6x1xf32, #tpu.memory_space<vmem>>, %arg56: memref<6x1xf32, #tpu.memory_space<vmem>>, %arg57: memref<738x1479xbf16, #tpu.memory_space<vmem>>, %arg58: memref<1x6x1477xf32, #tpu.memory_space<vmem>>) attributes {dimension_semantics = [#tpu.dimension_semantics<parallel>], iteration_bounds = array<i64: 2>, scalar_prefetch = 0 : i64, scratch_operands = 0 : i64, tpu.core_type = #tpu.core_type<tc>, window_params = [{transform_indices = @transform_0, window_bounds = array<i64: 1, 16, 1>}, {pipeline_mode = #tpu.pipeline_mode<synchronous>, transform_indices = @transform_1, window_bounds = array<i64: 3, 64, 16>}, {pipeline_mode = #tpu.pipeline_mode<synchronous>, transform_indices = @transform_2, window_bounds = array<i64: 64, 1>}, {pipeline_mode = #tpu.pipeline_mode<synchronous>, transform_indices = @transform_3, window_bounds = array<i64: 64, 1>}, {pipeline_mode = #tpu.pipeline_mode<synchronous>, transform_indices = @transform_4, window_bounds = array<i64: 1, 5>}, {pipeline_mode = #tpu.pipeline_mode<synchronous>, transform_indices = @transform_5, window_bounds = array<i64: 7, 32, 64>}, {pipeline_mode = #tpu.pipeline_mode<synchronous>, transform_indices = @transform_6, window_bounds = array<i64: 32, 1>}, {pipeline_mode = #tpu.pipeline_mode<synchronous>, transform_indices = @transform_7, window_bounds = array<i64: 32, 1>}, {pipeline_mode = #tpu.pipeline_mode<synchronous>, transform_indices = @transform_8, window_bounds = array<i64: 3, 17>}, {pipeline_mode = #tpu.pipeline_mode<synchronous>, transform_indices = @transform_9, window_bounds = array<i64: 5, 32, 32>}, {pipeline_mode = #tpu.pipeline_mode<synchronous>, transform_indices = @transform_10, window_bounds = array<i64: 32, 1>}, {pipeline_mode = #tpu.pipeline_mode<synchronous>, transform_indices = @transform_11, window_bounds = array<i64: 32, 1>}, {pipeline_mode = #tpu.pipeline_mode<synchronous>, transform_indices = @transform_12, window_bounds = array<i64: 11, 19>}, {pipeline_mode = #tpu.pipeline_mode<synchronous>, transform_indices = @transform_13, window_bounds = array<i64: 5, 16, 32>}, {pipeline_mode = #tpu.pipeline_mode<synchronous>, transform_indices = @transform_14, window_bounds = array<i64: 16, 1>}, {pipeline_mode = #tpu.pipeline_mode<synchronous>, transform_indices = @transform_15, window_bounds = array<i64: 16, 1>}, {pipeline_mode = #tpu.pipeline_mode<synchronous>, transform_indices = @transform_16, window_bounds = array<i64: 15, 23>}, {pipeline_mode = #tpu.pipeline_mode<synchronous>, transform_indices = @transform_17, window_bounds = array<i64: 5, 16, 16>}, {pipeline_mode = #tpu.pipeline_mode<synchronous>, transform_indices = @transform_18, window_bounds = array<i64: 16, 1>}, {pipeline_mode = #tpu.pipeline_mode<synchronous>, transform_indices = @transform_19, window_bounds = array<i64: 16, 1>}, {pipeline_mode = #tpu.pipeline_mode<synchronous>, transform_indices = @transform_20, window_bounds = array<i64: 19, 27>}, {pipeline_mode = #tpu.pipeline_mode<synchronous>, transform_indices = @transform_21, window_bounds = array<i64: 7, 16, 16>}, {pipeline_mode = #tpu.pipeline_mode<synchronous>, transform_indices = @transform_22, window_bounds = array<i64: 16, 1>}, {pipeline_mode = #tpu.pipeline_mode<synchronous>, transform_indices = @transform_23, window_bounds = array<i64: 16, 1>}, {pipeline_mode = #tpu.pipeline_mode<synchronous>, transform_indices = @transform_24, window_bounds = array<i64: 23, 35>}, {pipeline_mode = #tpu.pipeline_mode<synchronous>, transform_indices = @transform_25, window_bounds = array<i64: 7, 8, 16>}, {pipeline_mode = #tpu.pipeline_mode<synchronous>, transform_indices = @transform_26, window_bounds = array<i64: 8, 1>}, {pipeline_mode = #tpu.pipeline_mode<synchronous>, transform_indices = @transform_27, window_bounds = array<i64: 8, 1>}, {pipeline_mode = #tpu.pipeline_mode<synchronous>, transform_indices = @transform_28, window_bounds = array<i64: 29, 41>}, {pipeline_mode = #tpu.pipeline_mode<synchronous>, transform_indices = @transform_29, window_bounds = array<i64: 7, 8, 8>}, {pipeline_mode = #tpu.pipeline_mode<synchronous>, transform_indices = @transform_30, window_bounds = array<i64: 8, 1>}, {pipeline_mode = #tpu.pipeline_mode<synchronous>, transform_indices = @transform_31, window_bounds = array<i64: 8, 1>}, {pipeline_mode = #tpu.pipeline_mode<synchronous>, transform_indices = @transform_32, window_bounds = array<i64: 35, 47>}, {pipeline_mode = #tpu.pipeline_mode<synchronous>, transform_indices = @transform_33, window_bounds = array<i64: 7, 8, 8>}, {pipeline_mode = #tpu.pipeline_mode<synchronous>, transform_indices = @transform_34, window_bounds = array<i64: 8, 1>}, {pipeline_mode = #tpu.pipeline_mode<synchronous>, transform_indices = @transform_35, window_bounds = array<i64: 8, 1>}, {pipeline_mode = #tpu.pipeline_mode<synchronous>, transform_indices = @transform_36, window_bounds = array<i64: 41, 93>}, {pipeline_mode = #tpu.pipeline_mode<synchronous>, transform_indices = @transform_37, window_bounds = array<i64: 7, 8, 8>}, {pipeline_mode = #tpu.pipeline_mode<synchronous>, transform_indices = @transform_38, window_bounds = array<i64: 8, 1>}, {pipeline_mode = #tpu.pipeline_mode<synchronous>, transform_indices = @transform_39, window_bounds = array<i64: 8, 1>}, {pipeline_mode = #tpu.pipeline_mode<synchronous>, transform_indices = @transform_40, window_bounds = array<i64: 87, 185>}, {pipeline_mode = #tpu.pipeline_mode<synchronous>, transform_indices = @transform_41, window_bounds = array<i64: 7, 8, 8>}, {pipeline_mode = #tpu.pipeline_mode<synchronous>, transform_indices = @transform_42, window_bounds = array<i64: 8, 1>}, {pipeline_mode = #tpu.pipeline_mode<synchronous>, transform_indices = @transform_43, window_bounds = array<i64: 8, 1>}, {pipeline_mode = #tpu.pipeline_mode<synchronous>, transform_indices = @transform_44, window_bounds = array<i64: 179, 369>}, {pipeline_mode = #tpu.pipeline_mode<synchronous>, transform_indices = @transform_45, window_bounds = array<i64: 10, 4, 8>}, {pipeline_mode = #tpu.pipeline_mode<synchronous>, transform_indices = @transform_46, window_bounds = array<i64: 4, 1>}, {pipeline_mode = #tpu.pipeline_mode<synchronous>, transform_indices = @transform_47, window_bounds = array<i64: 4, 1>}, {pipeline_mode = #tpu.pipeline_mode<synchronous>, transform_indices = @transform_48, window_bounds = array<i64: 363, 743>}, {pipeline_mode = #tpu.pipeline_mode<synchronous>, transform_indices = @transform_49, window_bounds = array<i64: 5, 4, 4>}, {pipeline_mode = #tpu.pipeline_mode<synchronous>, transform_indices = @transform_50, window_bounds = array<i64: 4, 1>}, {pipeline_mode = #tpu.pipeline_mode<synchronous>, transform_indices = @transform_51, window_bounds = array<i64: 4, 1>}, {pipeline_mode = #tpu.pipeline_mode<synchronous>, transform_indices = @transform_52, window_bounds = array<i64: 734, 742>}, {pipeline_mode = #tpu.pipeline_mode<synchronous>, transform_indices = @transform_53, window_bounds = array<i64: 3, 6, 4>}, {pipeline_mode = #tpu.pipeline_mode<synchronous>, transform_indices = @transform_54, window_bounds = array<i64: 6, 1>}, {pipeline_mode = #tpu.pipeline_mode<synchronous>, transform_indices = @transform_55, window_bounds = array<i64: 6, 1>}, {pipeline_mode = #tpu.pipeline_mode<synchronous>, transform_indices = @transform_56, window_bounds = array<i64: 738, 1479>}, {transform_indices = @transform_57, window_bounds = array<i64: 1, 6, 1477>}]} {
    %c0 = arith.constant 0 : index
    %c0_0 = arith.constant 0 : index
    %c0_1 = arith.constant 0 : index
    %0 = vector.load %arg1[%c0, %c0_0, %c0_1] : memref<1x16x1xf32, #tpu.memory_space<vmem>>, vector<1x16x1xf32>
    %1 = vector.shape_cast %0 : vector<1x16x1xf32> to vector<16x1xf32>
    %2 = arith.truncf %1 : vector<16x1xf32> to vector<16x1xbf16>
    %c0_2 = arith.constant 0 : index
    %c0_3 = arith.constant 0 : index
    %3 = vector.load %arg5[%c0_2, %c0_3] : memref<1x5xbf16, #tpu.memory_space<vmem>>, vector<1x5xbf16>
    %cst = arith.constant dense<0.000000e+00> : vector<16x5xf32>
    %4 = tpu.matmul %2, %3, %cst {dimension_numbers = #tpu.dot_dimension_numbers<[1], [0], [0], [1], [0, 0, 1, 1], [], []>} : vector<16x1xbf16>, vector<1x5xbf16>, vector<16x5xf32> -> vector<16x5xf32>
    %5 = arith.truncf %4 : vector<16x5xf32> to vector<16x5xbf16>
    %cst_4 = arith.constant 0.000000e+00 : f32
    %6 = vector.broadcast %cst_4 : f32 to vector<64x3xf32>
    %c0_5 = arith.constant 0 : index
    %c0_6 = arith.constant 0 : index
    %c0_7 = arith.constant 0 : index
    %7 = vector.load %arg2[%c0_5, %c0_6, %c0_7] : memref<3x64x16xbf16, #tpu.memory_space<vmem>>, vector<1x64x16xbf16>
    %8 = vector.shape_cast %7 : vector<1x64x16xbf16> to vector<64x16xbf16>
    %9 = vector.extract_strided_slice %5 {offsets = [0, 0], sizes = [16, 3], strides = [1, 1]} : vector<16x5xbf16> to vector<16x3xbf16>
    %cst_8 = arith.constant dense<0.000000e+00> : vector<64x3xf32>
    %10 = tpu.matmul %8, %9, %cst_8 {dimension_numbers = #tpu.dot_dimension_numbers<[1], [0], [0], [1], [0, 0, 1, 1], [], []>} : vector<64x16xbf16>, vector<16x3xbf16>, vector<64x3xf32> -> vector<64x3xf32>
    %11 = arith.addf %6, %10 : vector<64x3xf32>
    %c1 = arith.constant 1 : index
    %c0_9 = arith.constant 0 : index
    %c0_10 = arith.constant 0 : index
    %12 = vector.load %arg2[%c1, %c0_9, %c0_10] : memref<3x64x16xbf16, #tpu.memory_space<vmem>>, vector<1x64x16xbf16>
    %13 = vector.shape_cast %12 : vector<1x64x16xbf16> to vector<64x16xbf16>
    %14 = vector.extract_strided_slice %5 {offsets = [0, 1], sizes = [16, 3], strides = [1, 1]} : vector<16x5xbf16> to vector<16x3xbf16>
    %cst_11 = arith.constant dense<0.000000e+00> : vector<64x3xf32>
    %15 = tpu.matmul %13, %14, %cst_11 {dimension_numbers = #tpu.dot_dimension_numbers<[1], [0], [0], [1], [0, 0, 1, 1], [], []>} : vector<64x16xbf16>, vector<16x3xbf16>, vector<64x3xf32> -> vector<64x3xf32>
    %16 = arith.addf %11, %15 : vector<64x3xf32>
    %c2 = arith.constant 2 : index
    %c0_12 = arith.constant 0 : index
    %c0_13 = arith.constant 0 : index
    %17 = vector.load %arg2[%c2, %c0_12, %c0_13] : memref<3x64x16xbf16, #tpu.memory_space<vmem>>, vector<1x64x16xbf16>
    %18 = vector.shape_cast %17 : vector<1x64x16xbf16> to vector<64x16xbf16>
    %19 = vector.extract_strided_slice %5 {offsets = [0, 2], sizes = [16, 3], strides = [1, 1]} : vector<16x5xbf16> to vector<16x3xbf16>
    %cst_14 = arith.constant dense<0.000000e+00> : vector<64x3xf32>
    %20 = tpu.matmul %18, %19, %cst_14 {dimension_numbers = #tpu.dot_dimension_numbers<[1], [0], [0], [1], [0, 0, 1, 1], [], []>} : vector<64x16xbf16>, vector<16x3xbf16>, vector<64x3xf32> -> vector<64x3xf32>
    %21 = arith.addf %16, %20 : vector<64x3xf32>
    %c0_15 = arith.constant 0 : index
    %c0_16 = arith.constant 0 : index
    %22 = vector.load %arg3[%c0_15, %c0_16] : memref<64x1xf32, #tpu.memory_space<vmem>>, vector<64x1xf32>
    %23 = vector.broadcast %22 : vector<64x1xf32> to vector<64x3xf32>
    %24 = arith.mulf %21, %23 : vector<64x3xf32>
    %c0_17 = arith.constant 0 : index
    %c0_18 = arith.constant 0 : index
    %25 = vector.load %arg4[%c0_17, %c0_18] : memref<64x1xf32, #tpu.memory_space<vmem>>, vector<64x1xf32>
    %26 = vector.broadcast %25 : vector<64x1xf32> to vector<64x3xf32>
    %27 = arith.addf %24, %26 : vector<64x3xf32>
    %cst_19 = arith.constant 0.000000e+00 : f32
    %28 = vector.broadcast %cst_19 : f32 to vector<64x3xf32>
    %29 = arith.maximumf %27, %28 : vector<64x3xf32>
    %30 = arith.truncf %29 : vector<64x3xf32> to vector<64x3xbf16>
    %c0_20 = arith.constant 0 : index
    %c0_21 = arith.constant 0 : index
    %31 = vector.load %arg9[%c0_20, %c0_21] : memref<3x17xbf16, #tpu.memory_space<vmem>>, vector<3x17xbf16>
    %cst_22 = arith.constant dense<0.000000e+00> : vector<64x17xf32>
    %32 = tpu.matmul %30, %31, %cst_22 {dimension_numbers = #tpu.dot_dimension_numbers<[1], [0], [0], [1], [0, 0, 1, 1], [], []>} : vector<64x3xbf16>, vector<3x17xbf16>, vector<64x17xf32> -> vector<64x17xf32>
    %33 = arith.truncf %32 : vector<64x17xf32> to vector<64x17xbf16>
    %cst_23 = arith.constant 0.000000e+00 : f32
    %34 = vector.broadcast %cst_23 : f32 to vector<32x11xf32>
    %c0_24 = arith.constant 0 : index
    %c0_25 = arith.constant 0 : index
    %c0_26 = arith.constant 0 : index
    %35 = vector.load %arg6[%c0_24, %c0_25, %c0_26] : memref<7x32x64xbf16, #tpu.memory_space<vmem>>, vector<1x32x64xbf16>
    %36 = vector.shape_cast %35 : vector<1x32x64xbf16> to vector<32x64xbf16>
    %37 = vector.extract_strided_slice %33 {offsets = [0, 0], sizes = [64, 11], strides = [1, 1]} : vector<64x17xbf16> to vector<64x11xbf16>
    %cst_27 = arith.constant dense<0.000000e+00> : vector<32x11xf32>
    %38 = tpu.matmul %36, %37, %cst_27 {dimension_numbers = #tpu.dot_dimension_numbers<[1], [0], [0], [1], [0, 0, 1, 1], [], []>} : vector<32x64xbf16>, vector<64x11xbf16>, vector<32x11xf32> -> vector<32x11xf32>
    %39 = arith.addf %34, %38 : vector<32x11xf32>
    %c1_28 = arith.constant 1 : index
    %c0_29 = arith.constant 0 : index
    %c0_30 = arith.constant 0 : index
    %40 = vector.load %arg6[%c1_28, %c0_29, %c0_30] : memref<7x32x64xbf16, #tpu.memory_space<vmem>>, vector<1x32x64xbf16>
    %41 = vector.shape_cast %40 : vector<1x32x64xbf16> to vector<32x64xbf16>
    %42 = vector.extract_strided_slice %33 {offsets = [0, 1], sizes = [64, 11], strides = [1, 1]} : vector<64x17xbf16> to vector<64x11xbf16>
    %cst_31 = arith.constant dense<0.000000e+00> : vector<32x11xf32>
    %43 = tpu.matmul %41, %42, %cst_31 {dimension_numbers = #tpu.dot_dimension_numbers<[1], [0], [0], [1], [0, 0, 1, 1], [], []>} : vector<32x64xbf16>, vector<64x11xbf16>, vector<32x11xf32> -> vector<32x11xf32>
    %44 = arith.addf %39, %43 : vector<32x11xf32>
    %c2_32 = arith.constant 2 : index
    %c0_33 = arith.constant 0 : index
    %c0_34 = arith.constant 0 : index
    %45 = vector.load %arg6[%c2_32, %c0_33, %c0_34] : memref<7x32x64xbf16, #tpu.memory_space<vmem>>, vector<1x32x64xbf16>
    %46 = vector.shape_cast %45 : vector<1x32x64xbf16> to vector<32x64xbf16>
    %47 = vector.extract_strided_slice %33 {offsets = [0, 2], sizes = [64, 11], strides = [1, 1]} : vector<64x17xbf16> to vector<64x11xbf16>
    %cst_35 = arith.constant dense<0.000000e+00> : vector<32x11xf32>
    %48 = tpu.matmul %46, %47, %cst_35 {dimension_numbers = #tpu.dot_dimension_numbers<[1], [0], [0], [1], [0, 0, 1, 1], [], []>} : vector<32x64xbf16>, vector<64x11xbf16>, vector<32x11xf32> -> vector<32x11xf32>
    %49 = arith.addf %44, %48 : vector<32x11xf32>
    %c3 = arith.constant 3 : index
    %c0_36 = arith.constant 0 : index
    %c0_37 = arith.constant 0 : index
    %50 = vector.load %arg6[%c3, %c0_36, %c0_37] : memref<7x32x64xbf16, #tpu.memory_space<vmem>>, vector<1x32x64xbf16>
    %51 = vector.shape_cast %50 : vector<1x32x64xbf16> to vector<32x64xbf16>
    %52 = vector.extract_strided_slice %33 {offsets = [0, 3], sizes = [64, 11], strides = [1, 1]} : vector<64x17xbf16> to vector<64x11xbf16>
    %cst_38 = arith.constant dense<0.000000e+00> : vector<32x11xf32>
    %53 = tpu.matmul %51, %52, %cst_38 {dimension_numbers = #tpu.dot_dimension_numbers<[1], [0], [0], [1], [0, 0, 1, 1], [], []>} : vector<32x64xbf16>, vector<64x11xbf16>, vector<32x11xf32> -> vector<32x11xf32>
    %54 = arith.addf %49, %53 : vector<32x11xf32>
    %c4 = arith.constant 4 : index
    %c0_39 = arith.constant 0 : index
    %c0_40 = arith.constant 0 : index
    %55 = vector.load %arg6[%c4, %c0_39, %c0_40] : memref<7x32x64xbf16, #tpu.memory_space<vmem>>, vector<1x32x64xbf16>
    %56 = vector.shape_cast %55 : vector<1x32x64xbf16> to vector<32x64xbf16>
    %57 = vector.extract_strided_slice %33 {offsets = [0, 4], sizes = [64, 11], strides = [1, 1]} : vector<64x17xbf16> to vector<64x11xbf16>
    %cst_41 = arith.constant dense<0.000000e+00> : vector<32x11xf32>
    %58 = tpu.matmul %56, %57, %cst_41 {dimension_numbers = #tpu.dot_dimension_numbers<[1], [0], [0], [1], [0, 0, 1, 1], [], []>} : vector<32x64xbf16>, vector<64x11xbf16>, vector<32x11xf32> -> vector<32x11xf32>
    %59 = arith.addf %54, %58 : vector<32x11xf32>
    %c5 = arith.constant 5 : index
    %c0_42 = arith.constant 0 : index
    %c0_43 = arith.constant 0 : index
    %60 = vector.load %arg6[%c5, %c0_42, %c0_43] : memref<7x32x64xbf16, #tpu.memory_space<vmem>>, vector<1x32x64xbf16>
    %61 = vector.shape_cast %60 : vector<1x32x64xbf16> to vector<32x64xbf16>
    %62 = vector.extract_strided_slice %33 {offsets = [0, 5], sizes = [64, 11], strides = [1, 1]} : vector<64x17xbf16> to vector<64x11xbf16>
    %cst_44 = arith.constant dense<0.000000e+00> : vector<32x11xf32>
    %63 = tpu.matmul %61, %62, %cst_44 {dimension_numbers = #tpu.dot_dimension_numbers<[1], [0], [0], [1], [0, 0, 1, 1], [], []>} : vector<32x64xbf16>, vector<64x11xbf16>, vector<32x11xf32> -> vector<32x11xf32>
    %64 = arith.addf %59, %63 : vector<32x11xf32>
    %c6 = arith.constant 6 : index
    %c0_45 = arith.constant 0 : index
    %c0_46 = arith.constant 0 : index
    %65 = vector.load %arg6[%c6, %c0_45, %c0_46] : memref<7x32x64xbf16, #tpu.memory_space<vmem>>, vector<1x32x64xbf16>
    %66 = vector.shape_cast %65 : vector<1x32x64xbf16> to vector<32x64xbf16>
    %67 = vector.extract_strided_slice %33 {offsets = [0, 6], sizes = [64, 11], strides = [1, 1]} : vector<64x17xbf16> to vector<64x11xbf16>
    %cst_47 = arith.constant dense<0.000000e+00> : vector<32x11xf32>
    %68 = tpu.matmul %66, %67, %cst_47 {dimension_numbers = #tpu.dot_dimension_numbers<[1], [0], [0], [1], [0, 0, 1, 1], [], []>} : vector<32x64xbf16>, vector<64x11xbf16>, vector<32x11xf32> -> vector<32x11xf32>
    %69 = arith.addf %64, %68 : vector<32x11xf32>
    %c0_48 = arith.constant 0 : index
    %c0_49 = arith.constant 0 : index
    %70 = vector.load %arg7[%c0_48, %c0_49] : memref<32x1xf32, #tpu.memory_space<vmem>>, vector<32x1xf32>
    %71 = vector.broadcast %70 : vector<32x1xf32> to vector<32x11xf32>
    %72 = arith.mulf %69, %71 : vector<32x11xf32>
    %c0_50 = arith.constant 0 : index
    %c0_51 = arith.constant 0 : index
    %73 = vector.load %arg8[%c0_50, %c0_51] : memref<32x1xf32, #tpu.memory_space<vmem>>, vector<32x1xf32>
    %74 = vector.broadcast %73 : vector<32x1xf32> to vector<32x11xf32>
    %75 = arith.addf %72, %74 : vector<32x11xf32>
    %cst_52 = arith.constant 0.000000e+00 : f32
    %76 = vector.broadcast %cst_52 : f32 to vector<32x11xf32>
    %77 = arith.maximumf %75, %76 : vector<32x11xf32>
    %78 = arith.truncf %77 : vector<32x11xf32> to vector<32x11xbf16>
    %c0_53 = arith.constant 0 : index
    %c0_54 = arith.constant 0 : index
    %79 = vector.load %arg13[%c0_53, %c0_54] : memref<11x19xbf16, #tpu.memory_space<vmem>>, vector<11x19xbf16>
    %cst_55 = arith.constant dense<0.000000e+00> : vector<32x19xf32>
    %80 = tpu.matmul %78, %79, %cst_55 {dimension_numbers = #tpu.dot_dimension_numbers<[1], [0], [0], [1], [0, 0, 1, 1], [], []>} : vector<32x11xbf16>, vector<11x19xbf16>, vector<32x19xf32> -> vector<32x19xf32>
    %81 = arith.truncf %80 : vector<32x19xf32> to vector<32x19xbf16>
    %cst_56 = arith.constant 0.000000e+00 : f32
    %82 = vector.broadcast %cst_56 : f32 to vector<32x15xf32>
    %c0_57 = arith.constant 0 : index
    %c0_58 = arith.constant 0 : index
    %c0_59 = arith.constant 0 : index
    %83 = vector.load %arg10[%c0_57, %c0_58, %c0_59] : memref<5x32x32xbf16, #tpu.memory_space<vmem>>, vector<1x32x32xbf16>
    %84 = vector.shape_cast %83 : vector<1x32x32xbf16> to vector<32x32xbf16>
    %85 = vector.extract_strided_slice %81 {offsets = [0, 0], sizes = [32, 15], strides = [1, 1]} : vector<32x19xbf16> to vector<32x15xbf16>
    %cst_60 = arith.constant dense<0.000000e+00> : vector<32x15xf32>
    %86 = tpu.matmul %84, %85, %cst_60 {dimension_numbers = #tpu.dot_dimension_numbers<[1], [0], [0], [1], [0, 0, 1, 1], [], []>} : vector<32x32xbf16>, vector<32x15xbf16>, vector<32x15xf32> -> vector<32x15xf32>
    %87 = arith.addf %82, %86 : vector<32x15xf32>
    %c1_61 = arith.constant 1 : index
    %c0_62 = arith.constant 0 : index
    %c0_63 = arith.constant 0 : index
    %88 = vector.load %arg10[%c1_61, %c0_62, %c0_63] : memref<5x32x32xbf16, #tpu.memory_space<vmem>>, vector<1x32x32xbf16>
    %89 = vector.shape_cast %88 : vector<1x32x32xbf16> to vector<32x32xbf16>
    %90 = vector.extract_strided_slice %81 {offsets = [0, 1], sizes = [32, 15], strides = [1, 1]} : vector<32x19xbf16> to vector<32x15xbf16>
    %cst_64 = arith.constant dense<0.000000e+00> : vector<32x15xf32>
    %91 = tpu.matmul %89, %90, %cst_64 {dimension_numbers = #tpu.dot_dimension_numbers<[1], [0], [0], [1], [0, 0, 1, 1], [], []>} : vector<32x32xbf16>, vector<32x15xbf16>, vector<32x15xf32> -> vector<32x15xf32>
    %92 = arith.addf %87, %91 : vector<32x15xf32>
    %c2_65 = arith.constant 2 : index
    %c0_66 = arith.constant 0 : index
    %c0_67 = arith.constant 0 : index
    %93 = vector.load %arg10[%c2_65, %c0_66, %c0_67] : memref<5x32x32xbf16, #tpu.memory_space<vmem>>, vector<1x32x32xbf16>
    %94 = vector.shape_cast %93 : vector<1x32x32xbf16> to vector<32x32xbf16>
    %95 = vector.extract_strided_slice %81 {offsets = [0, 2], sizes = [32, 15], strides = [1, 1]} : vector<32x19xbf16> to vector<32x15xbf16>
    %cst_68 = arith.constant dense<0.000000e+00> : vector<32x15xf32>
    %96 = tpu.matmul %94, %95, %cst_68 {dimension_numbers = #tpu.dot_dimension_numbers<[1], [0], [0], [1], [0, 0, 1, 1], [], []>} : vector<32x32xbf16>, vector<32x15xbf16>, vector<32x15xf32> -> vector<32x15xf32>
    %97 = arith.addf %92, %96 : vector<32x15xf32>
    %c3_69 = arith.constant 3 : index
    %c0_70 = arith.constant 0 : index
    %c0_71 = arith.constant 0 : index
    %98 = vector.load %arg10[%c3_69, %c0_70, %c0_71] : memref<5x32x32xbf16, #tpu.memory_space<vmem>>, vector<1x32x32xbf16>
    %99 = vector.shape_cast %98 : vector<1x32x32xbf16> to vector<32x32xbf16>
    %100 = vector.extract_strided_slice %81 {offsets = [0, 3], sizes = [32, 15], strides = [1, 1]} : vector<32x19xbf16> to vector<32x15xbf16>
    %cst_72 = arith.constant dense<0.000000e+00> : vector<32x15xf32>
    %101 = tpu.matmul %99, %100, %cst_72 {dimension_numbers = #tpu.dot_dimension_numbers<[1], [0], [0], [1], [0, 0, 1, 1], [], []>} : vector<32x32xbf16>, vector<32x15xbf16>, vector<32x15xf32> -> vector<32x15xf32>
    %102 = arith.addf %97, %101 : vector<32x15xf32>
    %c4_73 = arith.constant 4 : index
    %c0_74 = arith.constant 0 : index
    %c0_75 = arith.constant 0 : index
    %103 = vector.load %arg10[%c4_73, %c0_74, %c0_75] : memref<5x32x32xbf16, #tpu.memory_space<vmem>>, vector<1x32x32xbf16>
    %104 = vector.shape_cast %103 : vector<1x32x32xbf16> to vector<32x32xbf16>
    %105 = vector.extract_strided_slice %81 {offsets = [0, 4], sizes = [32, 15], strides = [1, 1]} : vector<32x19xbf16> to vector<32x15xbf16>
    %cst_76 = arith.constant dense<0.000000e+00> : vector<32x15xf32>
    %106 = tpu.matmul %104, %105, %cst_76 {dimension_numbers = #tpu.dot_dimension_numbers<[1], [0], [0], [1], [0, 0, 1, 1], [], []>} : vector<32x32xbf16>, vector<32x15xbf16>, vector<32x15xf32> -> vector<32x15xf32>
    %107 = arith.addf %102, %106 : vector<32x15xf32>
    %c0_77 = arith.constant 0 : index
    %c0_78 = arith.constant 0 : index
    %108 = vector.load %arg11[%c0_77, %c0_78] : memref<32x1xf32, #tpu.memory_space<vmem>>, vector<32x1xf32>
    %109 = vector.broadcast %108 : vector<32x1xf32> to vector<32x15xf32>
    %110 = arith.mulf %107, %109 : vector<32x15xf32>
    %c0_79 = arith.constant 0 : index
    %c0_80 = arith.constant 0 : index
    %111 = vector.load %arg12[%c0_79, %c0_80] : memref<32x1xf32, #tpu.memory_space<vmem>>, vector<32x1xf32>
    %112 = vector.broadcast %111 : vector<32x1xf32> to vector<32x15xf32>
    %113 = arith.addf %110, %112 : vector<32x15xf32>
    %cst_81 = arith.constant 0.000000e+00 : f32
    %114 = vector.broadcast %cst_81 : f32 to vector<32x15xf32>
    %115 = arith.maximumf %113, %114 : vector<32x15xf32>
    %116 = arith.truncf %115 : vector<32x15xf32> to vector<32x15xbf16>
    %c0_82 = arith.constant 0 : index
    %c0_83 = arith.constant 0 : index
    %117 = vector.load %arg17[%c0_82, %c0_83] : memref<15x23xbf16, #tpu.memory_space<vmem>>, vector<15x23xbf16>
    %cst_84 = arith.constant dense<0.000000e+00> : vector<32x23xf32>
    %118 = tpu.matmul %116, %117, %cst_84 {dimension_numbers = #tpu.dot_dimension_numbers<[1], [0], [0], [1], [0, 0, 1, 1], [], []>} : vector<32x15xbf16>, vector<15x23xbf16>, vector<32x23xf32> -> vector<32x23xf32>
    %119 = arith.truncf %118 : vector<32x23xf32> to vector<32x23xbf16>
    %cst_85 = arith.constant 0.000000e+00 : f32
    %120 = vector.broadcast %cst_85 : f32 to vector<16x19xf32>
    %c0_86 = arith.constant 0 : index
    %c0_87 = arith.constant 0 : index
    %c0_88 = arith.constant 0 : index
    %121 = vector.load %arg14[%c0_86, %c0_87, %c0_88] : memref<5x16x32xbf16, #tpu.memory_space<vmem>>, vector<1x16x32xbf16>
    %122 = vector.shape_cast %121 : vector<1x16x32xbf16> to vector<16x32xbf16>
    %123 = vector.extract_strided_slice %119 {offsets = [0, 0], sizes = [32, 19], strides = [1, 1]} : vector<32x23xbf16> to vector<32x19xbf16>
    %cst_89 = arith.constant dense<0.000000e+00> : vector<16x19xf32>
    %124 = tpu.matmul %122, %123, %cst_89 {dimension_numbers = #tpu.dot_dimension_numbers<[1], [0], [0], [1], [0, 0, 1, 1], [], []>} : vector<16x32xbf16>, vector<32x19xbf16>, vector<16x19xf32> -> vector<16x19xf32>
    %125 = arith.addf %120, %124 : vector<16x19xf32>
    %c1_90 = arith.constant 1 : index
    %c0_91 = arith.constant 0 : index
    %c0_92 = arith.constant 0 : index
    %126 = vector.load %arg14[%c1_90, %c0_91, %c0_92] : memref<5x16x32xbf16, #tpu.memory_space<vmem>>, vector<1x16x32xbf16>
    %127 = vector.shape_cast %126 : vector<1x16x32xbf16> to vector<16x32xbf16>
    %128 = vector.extract_strided_slice %119 {offsets = [0, 1], sizes = [32, 19], strides = [1, 1]} : vector<32x23xbf16> to vector<32x19xbf16>
    %cst_93 = arith.constant dense<0.000000e+00> : vector<16x19xf32>
    %129 = tpu.matmul %127, %128, %cst_93 {dimension_numbers = #tpu.dot_dimension_numbers<[1], [0], [0], [1], [0, 0, 1, 1], [], []>} : vector<16x32xbf16>, vector<32x19xbf16>, vector<16x19xf32> -> vector<16x19xf32>
    %130 = arith.addf %125, %129 : vector<16x19xf32>
    %c2_94 = arith.constant 2 : index
    %c0_95 = arith.constant 0 : index
    %c0_96 = arith.constant 0 : index
    %131 = vector.load %arg14[%c2_94, %c0_95, %c0_96] : memref<5x16x32xbf16, #tpu.memory_space<vmem>>, vector<1x16x32xbf16>
    %132 = vector.shape_cast %131 : vector<1x16x32xbf16> to vector<16x32xbf16>
    %133 = vector.extract_strided_slice %119 {offsets = [0, 2], sizes = [32, 19], strides = [1, 1]} : vector<32x23xbf16> to vector<32x19xbf16>
    %cst_97 = arith.constant dense<0.000000e+00> : vector<16x19xf32>
    %134 = tpu.matmul %132, %133, %cst_97 {dimension_numbers = #tpu.dot_dimension_numbers<[1], [0], [0], [1], [0, 0, 1, 1], [], []>} : vector<16x32xbf16>, vector<32x19xbf16>, vector<16x19xf32> -> vector<16x19xf32>
    %135 = arith.addf %130, %134 : vector<16x19xf32>
    %c3_98 = arith.constant 3 : index
    %c0_99 = arith.constant 0 : index
    %c0_100 = arith.constant 0 : index
    %136 = vector.load %arg14[%c3_98, %c0_99, %c0_100] : memref<5x16x32xbf16, #tpu.memory_space<vmem>>, vector<1x16x32xbf16>
    %137 = vector.shape_cast %136 : vector<1x16x32xbf16> to vector<16x32xbf16>
    %138 = vector.extract_strided_slice %119 {offsets = [0, 3], sizes = [32, 19], strides = [1, 1]} : vector<32x23xbf16> to vector<32x19xbf16>
    %cst_101 = arith.constant dense<0.000000e+00> : vector<16x19xf32>
    %139 = tpu.matmul %137, %138, %cst_101 {dimension_numbers = #tpu.dot_dimension_numbers<[1], [0], [0], [1], [0, 0, 1, 1], [], []>} : vector<16x32xbf16>, vector<32x19xbf16>, vector<16x19xf32> -> vector<16x19xf32>
    %140 = arith.addf %135, %139 : vector<16x19xf32>
    %c4_102 = arith.constant 4 : index
    %c0_103 = arith.constant 0 : index
    %c0_104 = arith.constant 0 : index
    %141 = vector.load %arg14[%c4_102, %c0_103, %c0_104] : memref<5x16x32xbf16, #tpu.memory_space<vmem>>, vector<1x16x32xbf16>
    %142 = vector.shape_cast %141 : vector<1x16x32xbf16> to vector<16x32xbf16>
    %143 = vector.extract_strided_slice %119 {offsets = [0, 4], sizes = [32, 19], strides = [1, 1]} : vector<32x23xbf16> to vector<32x19xbf16>
    %cst_105 = arith.constant dense<0.000000e+00> : vector<16x19xf32>
    %144 = tpu.matmul %142, %143, %cst_105 {dimension_numbers = #tpu.dot_dimension_numbers<[1], [0], [0], [1], [0, 0, 1, 1], [], []>} : vector<16x32xbf16>, vector<32x19xbf16>, vector<16x19xf32> -> vector<16x19xf32>
    %145 = arith.addf %140, %144 : vector<16x19xf32>
    %c0_106 = arith.constant 0 : index
    %c0_107 = arith.constant 0 : index
    %146 = vector.load %arg15[%c0_106, %c0_107] : memref<16x1xf32, #tpu.memory_space<vmem>>, vector<16x1xf32>
    %147 = vector.broadcast %146 : vector<16x1xf32> to vector<16x19xf32>
    %148 = arith.mulf %145, %147 : vector<16x19xf32>
    %c0_108 = arith.constant 0 : index
    %c0_109 = arith.constant 0 : index
    %149 = vector.load %arg16[%c0_108, %c0_109] : memref<16x1xf32, #tpu.memory_space<vmem>>, vector<16x1xf32>
    %150 = vector.broadcast %149 : vector<16x1xf32> to vector<16x19xf32>
    %151 = arith.addf %148, %150 : vector<16x19xf32>
    %cst_110 = arith.constant 0.000000e+00 : f32
    %152 = vector.broadcast %cst_110 : f32 to vector<16x19xf32>
    %153 = arith.maximumf %151, %152 : vector<16x19xf32>
    %154 = arith.truncf %153 : vector<16x19xf32> to vector<16x19xbf16>
    %c0_111 = arith.constant 0 : index
    %c0_112 = arith.constant 0 : index
    %155 = vector.load %arg21[%c0_111, %c0_112] : memref<19x27xbf16, #tpu.memory_space<vmem>>, vector<19x27xbf16>
    %cst_113 = arith.constant dense<0.000000e+00> : vector<16x27xf32>
    %156 = tpu.matmul %154, %155, %cst_113 {dimension_numbers = #tpu.dot_dimension_numbers<[1], [0], [0], [1], [0, 0, 1, 1], [], []>} : vector<16x19xbf16>, vector<19x27xbf16>, vector<16x27xf32> -> vector<16x27xf32>
    %157 = arith.truncf %156 : vector<16x27xf32> to vector<16x27xbf16>
    %cst_114 = arith.constant 0.000000e+00 : f32
    %158 = vector.broadcast %cst_114 : f32 to vector<16x23xf32>
    %c0_115 = arith.constant 0 : index
    %c0_116 = arith.constant 0 : index
    %c0_117 = arith.constant 0 : index
    %159 = vector.load %arg18[%c0_115, %c0_116, %c0_117] : memref<5x16x16xbf16, #tpu.memory_space<vmem>>, vector<1x16x16xbf16>
    %160 = vector.shape_cast %159 : vector<1x16x16xbf16> to vector<16x16xbf16>
    %161 = vector.extract_strided_slice %157 {offsets = [0, 0], sizes = [16, 23], strides = [1, 1]} : vector<16x27xbf16> to vector<16x23xbf16>
    %cst_118 = arith.constant dense<0.000000e+00> : vector<16x23xf32>
    %162 = tpu.matmul %160, %161, %cst_118 {dimension_numbers = #tpu.dot_dimension_numbers<[1], [0], [0], [1], [0, 0, 1, 1], [], []>} : vector<16x16xbf16>, vector<16x23xbf16>, vector<16x23xf32> -> vector<16x23xf32>
    %163 = arith.addf %158, %162 : vector<16x23xf32>
    %c1_119 = arith.constant 1 : index
    %c0_120 = arith.constant 0 : index
    %c0_121 = arith.constant 0 : index
    %164 = vector.load %arg18[%c1_119, %c0_120, %c0_121] : memref<5x16x16xbf16, #tpu.memory_space<vmem>>, vector<1x16x16xbf16>
    %165 = vector.shape_cast %164 : vector<1x16x16xbf16> to vector<16x16xbf16>
    %166 = vector.extract_strided_slice %157 {offsets = [0, 1], sizes = [16, 23], strides = [1, 1]} : vector<16x27xbf16> to vector<16x23xbf16>
    %cst_122 = arith.constant dense<0.000000e+00> : vector<16x23xf32>
    %167 = tpu.matmul %165, %166, %cst_122 {dimension_numbers = #tpu.dot_dimension_numbers<[1], [0], [0], [1], [0, 0, 1, 1], [], []>} : vector<16x16xbf16>, vector<16x23xbf16>, vector<16x23xf32> -> vector<16x23xf32>
    %168 = arith.addf %163, %167 : vector<16x23xf32>
    %c2_123 = arith.constant 2 : index
    %c0_124 = arith.constant 0 : index
    %c0_125 = arith.constant 0 : index
    %169 = vector.load %arg18[%c2_123, %c0_124, %c0_125] : memref<5x16x16xbf16, #tpu.memory_space<vmem>>, vector<1x16x16xbf16>
    %170 = vector.shape_cast %169 : vector<1x16x16xbf16> to vector<16x16xbf16>
    %171 = vector.extract_strided_slice %157 {offsets = [0, 2], sizes = [16, 23], strides = [1, 1]} : vector<16x27xbf16> to vector<16x23xbf16>
    %cst_126 = arith.constant dense<0.000000e+00> : vector<16x23xf32>
    %172 = tpu.matmul %170, %171, %cst_126 {dimension_numbers = #tpu.dot_dimension_numbers<[1], [0], [0], [1], [0, 0, 1, 1], [], []>} : vector<16x16xbf16>, vector<16x23xbf16>, vector<16x23xf32> -> vector<16x23xf32>
    %173 = arith.addf %168, %172 : vector<16x23xf32>
    %c3_127 = arith.constant 3 : index
    %c0_128 = arith.constant 0 : index
    %c0_129 = arith.constant 0 : index
    %174 = vector.load %arg18[%c3_127, %c0_128, %c0_129] : memref<5x16x16xbf16, #tpu.memory_space<vmem>>, vector<1x16x16xbf16>
    %175 = vector.shape_cast %174 : vector<1x16x16xbf16> to vector<16x16xbf16>
    %176 = vector.extract_strided_slice %157 {offsets = [0, 3], sizes = [16, 23], strides = [1, 1]} : vector<16x27xbf16> to vector<16x23xbf16>
    %cst_130 = arith.constant dense<0.000000e+00> : vector<16x23xf32>
    %177 = tpu.matmul %175, %176, %cst_130 {dimension_numbers = #tpu.dot_dimension_numbers<[1], [0], [0], [1], [0, 0, 1, 1], [], []>} : vector<16x16xbf16>, vector<16x23xbf16>, vector<16x23xf32> -> vector<16x23xf32>
    %178 = arith.addf %173, %177 : vector<16x23xf32>
    %c4_131 = arith.constant 4 : index
    %c0_132 = arith.constant 0 : index
    %c0_133 = arith.constant 0 : index
    %179 = vector.load %arg18[%c4_131, %c0_132, %c0_133] : memref<5x16x16xbf16, #tpu.memory_space<vmem>>, vector<1x16x16xbf16>
    %180 = vector.shape_cast %179 : vector<1x16x16xbf16> to vector<16x16xbf16>
    %181 = vector.extract_strided_slice %157 {offsets = [0, 4], sizes = [16, 23], strides = [1, 1]} : vector<16x27xbf16> to vector<16x23xbf16>
    %cst_134 = arith.constant dense<0.000000e+00> : vector<16x23xf32>
    %182 = tpu.matmul %180, %181, %cst_134 {dimension_numbers = #tpu.dot_dimension_numbers<[1], [0], [0], [1], [0, 0, 1, 1], [], []>} : vector<16x16xbf16>, vector<16x23xbf16>, vector<16x23xf32> -> vector<16x23xf32>
    %183 = arith.addf %178, %182 : vector<16x23xf32>
    %c0_135 = arith.constant 0 : index
    %c0_136 = arith.constant 0 : index
    %184 = vector.load %arg19[%c0_135, %c0_136] : memref<16x1xf32, #tpu.memory_space<vmem>>, vector<16x1xf32>
    %185 = vector.broadcast %184 : vector<16x1xf32> to vector<16x23xf32>
    %186 = arith.mulf %183, %185 : vector<16x23xf32>
    %c0_137 = arith.constant 0 : index
    %c0_138 = arith.constant 0 : index
    %187 = vector.load %arg20[%c0_137, %c0_138] : memref<16x1xf32, #tpu.memory_space<vmem>>, vector<16x1xf32>
    %188 = vector.broadcast %187 : vector<16x1xf32> to vector<16x23xf32>
    %189 = arith.addf %186, %188 : vector<16x23xf32>
    %cst_139 = arith.constant 0.000000e+00 : f32
    %190 = vector.broadcast %cst_139 : f32 to vector<16x23xf32>
    %191 = arith.maximumf %189, %190 : vector<16x23xf32>
    %192 = arith.truncf %191 : vector<16x23xf32> to vector<16x23xbf16>
    %c0_140 = arith.constant 0 : index
    %c0_141 = arith.constant 0 : index
    %193 = vector.load %arg25[%c0_140, %c0_141] : memref<23x35xbf16, #tpu.memory_space<vmem>>, vector<23x35xbf16>
    %cst_142 = arith.constant dense<0.000000e+00> : vector<16x35xf32>
    %194 = tpu.matmul %192, %193, %cst_142 {dimension_numbers = #tpu.dot_dimension_numbers<[1], [0], [0], [1], [0, 0, 1, 1], [], []>} : vector<16x23xbf16>, vector<23x35xbf16>, vector<16x35xf32> -> vector<16x35xf32>
    %195 = arith.truncf %194 : vector<16x35xf32> to vector<16x35xbf16>
    %cst_143 = arith.constant 0.000000e+00 : f32
    %196 = vector.broadcast %cst_143 : f32 to vector<16x29xf32>
    %c0_144 = arith.constant 0 : index
    %c0_145 = arith.constant 0 : index
    %c0_146 = arith.constant 0 : index
    %197 = vector.load %arg22[%c0_144, %c0_145, %c0_146] : memref<7x16x16xbf16, #tpu.memory_space<vmem>>, vector<1x16x16xbf16>
    %198 = vector.shape_cast %197 : vector<1x16x16xbf16> to vector<16x16xbf16>
    %199 = vector.extract_strided_slice %195 {offsets = [0, 0], sizes = [16, 29], strides = [1, 1]} : vector<16x35xbf16> to vector<16x29xbf16>
    %cst_147 = arith.constant dense<0.000000e+00> : vector<16x29xf32>
    %200 = tpu.matmul %198, %199, %cst_147 {dimension_numbers = #tpu.dot_dimension_numbers<[1], [0], [0], [1], [0, 0, 1, 1], [], []>} : vector<16x16xbf16>, vector<16x29xbf16>, vector<16x29xf32> -> vector<16x29xf32>
    %201 = arith.addf %196, %200 : vector<16x29xf32>
    %c1_148 = arith.constant 1 : index
    %c0_149 = arith.constant 0 : index
    %c0_150 = arith.constant 0 : index
    %202 = vector.load %arg22[%c1_148, %c0_149, %c0_150] : memref<7x16x16xbf16, #tpu.memory_space<vmem>>, vector<1x16x16xbf16>
    %203 = vector.shape_cast %202 : vector<1x16x16xbf16> to vector<16x16xbf16>
    %204 = vector.extract_strided_slice %195 {offsets = [0, 1], sizes = [16, 29], strides = [1, 1]} : vector<16x35xbf16> to vector<16x29xbf16>
    %cst_151 = arith.constant dense<0.000000e+00> : vector<16x29xf32>
    %205 = tpu.matmul %203, %204, %cst_151 {dimension_numbers = #tpu.dot_dimension_numbers<[1], [0], [0], [1], [0, 0, 1, 1], [], []>} : vector<16x16xbf16>, vector<16x29xbf16>, vector<16x29xf32> -> vector<16x29xf32>
    %206 = arith.addf %201, %205 : vector<16x29xf32>
    %c2_152 = arith.constant 2 : index
    %c0_153 = arith.constant 0 : index
    %c0_154 = arith.constant 0 : index
    %207 = vector.load %arg22[%c2_152, %c0_153, %c0_154] : memref<7x16x16xbf16, #tpu.memory_space<vmem>>, vector<1x16x16xbf16>
    %208 = vector.shape_cast %207 : vector<1x16x16xbf16> to vector<16x16xbf16>
    %209 = vector.extract_strided_slice %195 {offsets = [0, 2], sizes = [16, 29], strides = [1, 1]} : vector<16x35xbf16> to vector<16x29xbf16>
    %cst_155 = arith.constant dense<0.000000e+00> : vector<16x29xf32>
    %210 = tpu.matmul %208, %209, %cst_155 {dimension_numbers = #tpu.dot_dimension_numbers<[1], [0], [0], [1], [0, 0, 1, 1], [], []>} : vector<16x16xbf16>, vector<16x29xbf16>, vector<16x29xf32> -> vector<16x29xf32>
    %211 = arith.addf %206, %210 : vector<16x29xf32>
    %c3_156 = arith.constant 3 : index
    %c0_157 = arith.constant 0 : index
    %c0_158 = arith.constant 0 : index
    %212 = vector.load %arg22[%c3_156, %c0_157, %c0_158] : memref<7x16x16xbf16, #tpu.memory_space<vmem>>, vector<1x16x16xbf16>
    %213 = vector.shape_cast %212 : vector<1x16x16xbf16> to vector<16x16xbf16>
    %214 = vector.extract_strided_slice %195 {offsets = [0, 3], sizes = [16, 29], strides = [1, 1]} : vector<16x35xbf16> to vector<16x29xbf16>
    %cst_159 = arith.constant dense<0.000000e+00> : vector<16x29xf32>
    %215 = tpu.matmul %213, %214, %cst_159 {dimension_numbers = #tpu.dot_dimension_numbers<[1], [0], [0], [1], [0, 0, 1, 1], [], []>} : vector<16x16xbf16>, vector<16x29xbf16>, vector<16x29xf32> -> vector<16x29xf32>
    %216 = arith.addf %211, %215 : vector<16x29xf32>
    %c4_160 = arith.constant 4 : index
    %c0_161 = arith.constant 0 : index
    %c0_162 = arith.constant 0 : index
    %217 = vector.load %arg22[%c4_160, %c0_161, %c0_162] : memref<7x16x16xbf16, #tpu.memory_space<vmem>>, vector<1x16x16xbf16>
    %218 = vector.shape_cast %217 : vector<1x16x16xbf16> to vector<16x16xbf16>
    %219 = vector.extract_strided_slice %195 {offsets = [0, 4], sizes = [16, 29], strides = [1, 1]} : vector<16x35xbf16> to vector<16x29xbf16>
    %cst_163 = arith.constant dense<0.000000e+00> : vector<16x29xf32>
    %220 = tpu.matmul %218, %219, %cst_163 {dimension_numbers = #tpu.dot_dimension_numbers<[1], [0], [0], [1], [0, 0, 1, 1], [], []>} : vector<16x16xbf16>, vector<16x29xbf16>, vector<16x29xf32> -> vector<16x29xf32>
    %221 = arith.addf %216, %220 : vector<16x29xf32>
    %c5_164 = arith.constant 5 : index
    %c0_165 = arith.constant 0 : index
    %c0_166 = arith.constant 0 : index
    %222 = vector.load %arg22[%c5_164, %c0_165, %c0_166] : memref<7x16x16xbf16, #tpu.memory_space<vmem>>, vector<1x16x16xbf16>
    %223 = vector.shape_cast %222 : vector<1x16x16xbf16> to vector<16x16xbf16>
    %224 = vector.extract_strided_slice %195 {offsets = [0, 5], sizes = [16, 29], strides = [1, 1]} : vector<16x35xbf16> to vector<16x29xbf16>
    %cst_167 = arith.constant dense<0.000000e+00> : vector<16x29xf32>
    %225 = tpu.matmul %223, %224, %cst_167 {dimension_numbers = #tpu.dot_dimension_numbers<[1], [0], [0], [1], [0, 0, 1, 1], [], []>} : vector<16x16xbf16>, vector<16x29xbf16>, vector<16x29xf32> -> vector<16x29xf32>
    %226 = arith.addf %221, %225 : vector<16x29xf32>
    %c6_168 = arith.constant 6 : index
    %c0_169 = arith.constant 0 : index
    %c0_170 = arith.constant 0 : index
    %227 = vector.load %arg22[%c6_168, %c0_169, %c0_170] : memref<7x16x16xbf16, #tpu.memory_space<vmem>>, vector<1x16x16xbf16>
    %228 = vector.shape_cast %227 : vector<1x16x16xbf16> to vector<16x16xbf16>
    %229 = vector.extract_strided_slice %195 {offsets = [0, 6], sizes = [16, 29], strides = [1, 1]} : vector<16x35xbf16> to vector<16x29xbf16>
    %cst_171 = arith.constant dense<0.000000e+00> : vector<16x29xf32>
    %230 = tpu.matmul %228, %229, %cst_171 {dimension_numbers = #tpu.dot_dimension_numbers<[1], [0], [0], [1], [0, 0, 1, 1], [], []>} : vector<16x16xbf16>, vector<16x29xbf16>, vector<16x29xf32> -> vector<16x29xf32>
    %231 = arith.addf %226, %230 : vector<16x29xf32>
    %c0_172 = arith.constant 0 : index
    %c0_173 = arith.constant 0 : index
    %232 = vector.load %arg23[%c0_172, %c0_173] : memref<16x1xf32, #tpu.memory_space<vmem>>, vector<16x1xf32>
    %233 = vector.broadcast %232 : vector<16x1xf32> to vector<16x29xf32>
    %234 = arith.mulf %231, %233 : vector<16x29xf32>
    %c0_174 = arith.constant 0 : index
    %c0_175 = arith.constant 0 : index
    %235 = vector.load %arg24[%c0_174, %c0_175] : memref<16x1xf32, #tpu.memory_space<vmem>>, vector<16x1xf32>
    %236 = vector.broadcast %235 : vector<16x1xf32> to vector<16x29xf32>
    %237 = arith.addf %234, %236 : vector<16x29xf32>
    %cst_176 = arith.constant 0.000000e+00 : f32
    %238 = vector.broadcast %cst_176 : f32 to vector<16x29xf32>
    %239 = arith.maximumf %237, %238 : vector<16x29xf32>
    %240 = arith.truncf %239 : vector<16x29xf32> to vector<16x29xbf16>
    %c0_177 = arith.constant 0 : index
    %c0_178 = arith.constant 0 : index
    %241 = vector.load %arg29[%c0_177, %c0_178] : memref<29x41xbf16, #tpu.memory_space<vmem>>, vector<29x41xbf16>
    %cst_179 = arith.constant dense<0.000000e+00> : vector<16x41xf32>
    %242 = tpu.matmul %240, %241, %cst_179 {dimension_numbers = #tpu.dot_dimension_numbers<[1], [0], [0], [1], [0, 0, 1, 1], [], []>} : vector<16x29xbf16>, vector<29x41xbf16>, vector<16x41xf32> -> vector<16x41xf32>
    %243 = arith.truncf %242 : vector<16x41xf32> to vector<16x41xbf16>
    %cst_180 = arith.constant 0.000000e+00 : f32
    %244 = vector.broadcast %cst_180 : f32 to vector<8x35xf32>
    %c0_181 = arith.constant 0 : index
    %c0_182 = arith.constant 0 : index
    %c0_183 = arith.constant 0 : index
    %245 = vector.load %arg26[%c0_181, %c0_182, %c0_183] : memref<7x8x16xbf16, #tpu.memory_space<vmem>>, vector<1x8x16xbf16>
    %246 = vector.shape_cast %245 : vector<1x8x16xbf16> to vector<8x16xbf16>
    %247 = vector.extract_strided_slice %243 {offsets = [0, 0], sizes = [16, 35], strides = [1, 1]} : vector<16x41xbf16> to vector<16x35xbf16>
    %cst_184 = arith.constant dense<0.000000e+00> : vector<8x35xf32>
    %248 = tpu.matmul %246, %247, %cst_184 {dimension_numbers = #tpu.dot_dimension_numbers<[1], [0], [0], [1], [0, 0, 1, 1], [], []>} : vector<8x16xbf16>, vector<16x35xbf16>, vector<8x35xf32> -> vector<8x35xf32>
    %249 = arith.addf %244, %248 : vector<8x35xf32>
    %c1_185 = arith.constant 1 : index
    %c0_186 = arith.constant 0 : index
    %c0_187 = arith.constant 0 : index
    %250 = vector.load %arg26[%c1_185, %c0_186, %c0_187] : memref<7x8x16xbf16, #tpu.memory_space<vmem>>, vector<1x8x16xbf16>
    %251 = vector.shape_cast %250 : vector<1x8x16xbf16> to vector<8x16xbf16>
    %252 = vector.extract_strided_slice %243 {offsets = [0, 1], sizes = [16, 35], strides = [1, 1]} : vector<16x41xbf16> to vector<16x35xbf16>
    %cst_188 = arith.constant dense<0.000000e+00> : vector<8x35xf32>
    %253 = tpu.matmul %251, %252, %cst_188 {dimension_numbers = #tpu.dot_dimension_numbers<[1], [0], [0], [1], [0, 0, 1, 1], [], []>} : vector<8x16xbf16>, vector<16x35xbf16>, vector<8x35xf32> -> vector<8x35xf32>
    %254 = arith.addf %249, %253 : vector<8x35xf32>
    %c2_189 = arith.constant 2 : index
    %c0_190 = arith.constant 0 : index
    %c0_191 = arith.constant 0 : index
    %255 = vector.load %arg26[%c2_189, %c0_190, %c0_191] : memref<7x8x16xbf16, #tpu.memory_space<vmem>>, vector<1x8x16xbf16>
    %256 = vector.shape_cast %255 : vector<1x8x16xbf16> to vector<8x16xbf16>
    %257 = vector.extract_strided_slice %243 {offsets = [0, 2], sizes = [16, 35], strides = [1, 1]} : vector<16x41xbf16> to vector<16x35xbf16>
    %cst_192 = arith.constant dense<0.000000e+00> : vector<8x35xf32>
    %258 = tpu.matmul %256, %257, %cst_192 {dimension_numbers = #tpu.dot_dimension_numbers<[1], [0], [0], [1], [0, 0, 1, 1], [], []>} : vector<8x16xbf16>, vector<16x35xbf16>, vector<8x35xf32> -> vector<8x35xf32>
    %259 = arith.addf %254, %258 : vector<8x35xf32>
    %c3_193 = arith.constant 3 : index
    %c0_194 = arith.constant 0 : index
    %c0_195 = arith.constant 0 : index
    %260 = vector.load %arg26[%c3_193, %c0_194, %c0_195] : memref<7x8x16xbf16, #tpu.memory_space<vmem>>, vector<1x8x16xbf16>
    %261 = vector.shape_cast %260 : vector<1x8x16xbf16> to vector<8x16xbf16>
    %262 = vector.extract_strided_slice %243 {offsets = [0, 3], sizes = [16, 35], strides = [1, 1]} : vector<16x41xbf16> to vector<16x35xbf16>
    %cst_196 = arith.constant dense<0.000000e+00> : vector<8x35xf32>
    %263 = tpu.matmul %261, %262, %cst_196 {dimension_numbers = #tpu.dot_dimension_numbers<[1], [0], [0], [1], [0, 0, 1, 1], [], []>} : vector<8x16xbf16>, vector<16x35xbf16>, vector<8x35xf32> -> vector<8x35xf32>
    %264 = arith.addf %259, %263 : vector<8x35xf32>
    %c4_197 = arith.constant 4 : index
    %c0_198 = arith.constant 0 : index
    %c0_199 = arith.constant 0 : index
    %265 = vector.load %arg26[%c4_197, %c0_198, %c0_199] : memref<7x8x16xbf16, #tpu.memory_space<vmem>>, vector<1x8x16xbf16>
    %266 = vector.shape_cast %265 : vector<1x8x16xbf16> to vector<8x16xbf16>
    %267 = vector.extract_strided_slice %243 {offsets = [0, 4], sizes = [16, 35], strides = [1, 1]} : vector<16x41xbf16> to vector<16x35xbf16>
    %cst_200 = arith.constant dense<0.000000e+00> : vector<8x35xf32>
    %268 = tpu.matmul %266, %267, %cst_200 {dimension_numbers = #tpu.dot_dimension_numbers<[1], [0], [0], [1], [0, 0, 1, 1], [], []>} : vector<8x16xbf16>, vector<16x35xbf16>, vector<8x35xf32> -> vector<8x35xf32>
    %269 = arith.addf %264, %268 : vector<8x35xf32>
    %c5_201 = arith.constant 5 : index
    %c0_202 = arith.constant 0 : index
    %c0_203 = arith.constant 0 : index
    %270 = vector.load %arg26[%c5_201, %c0_202, %c0_203] : memref<7x8x16xbf16, #tpu.memory_space<vmem>>, vector<1x8x16xbf16>
    %271 = vector.shape_cast %270 : vector<1x8x16xbf16> to vector<8x16xbf16>
    %272 = vector.extract_strided_slice %243 {offsets = [0, 5], sizes = [16, 35], strides = [1, 1]} : vector<16x41xbf16> to vector<16x35xbf16>
    %cst_204 = arith.constant dense<0.000000e+00> : vector<8x35xf32>
    %273 = tpu.matmul %271, %272, %cst_204 {dimension_numbers = #tpu.dot_dimension_numbers<[1], [0], [0], [1], [0, 0, 1, 1], [], []>} : vector<8x16xbf16>, vector<16x35xbf16>, vector<8x35xf32> -> vector<8x35xf32>
    %274 = arith.addf %269, %273 : vector<8x35xf32>
    %c6_205 = arith.constant 6 : index
    %c0_206 = arith.constant 0 : index
    %c0_207 = arith.constant 0 : index
    %275 = vector.load %arg26[%c6_205, %c0_206, %c0_207] : memref<7x8x16xbf16, #tpu.memory_space<vmem>>, vector<1x8x16xbf16>
    %276 = vector.shape_cast %275 : vector<1x8x16xbf16> to vector<8x16xbf16>
    %277 = vector.extract_strided_slice %243 {offsets = [0, 6], sizes = [16, 35], strides = [1, 1]} : vector<16x41xbf16> to vector<16x35xbf16>
    %cst_208 = arith.constant dense<0.000000e+00> : vector<8x35xf32>
    %278 = tpu.matmul %276, %277, %cst_208 {dimension_numbers = #tpu.dot_dimension_numbers<[1], [0], [0], [1], [0, 0, 1, 1], [], []>} : vector<8x16xbf16>, vector<16x35xbf16>, vector<8x35xf32> -> vector<8x35xf32>
    %279 = arith.addf %274, %278 : vector<8x35xf32>
    %c0_209 = arith.constant 0 : index
    %c0_210 = arith.constant 0 : index
    %280 = vector.load %arg27[%c0_209, %c0_210] : memref<8x1xf32, #tpu.memory_space<vmem>>, vector<8x1xf32>
    %281 = vector.broadcast %280 : vector<8x1xf32> to vector<8x35xf32>
    %282 = arith.mulf %279, %281 : vector<8x35xf32>
    %c0_211 = arith.constant 0 : index
    %c0_212 = arith.constant 0 : index
    %283 = vector.load %arg28[%c0_211, %c0_212] : memref<8x1xf32, #tpu.memory_space<vmem>>, vector<8x1xf32>
    %284 = vector.broadcast %283 : vector<8x1xf32> to vector<8x35xf32>
    %285 = arith.addf %282, %284 : vector<8x35xf32>
    %cst_213 = arith.constant 0.000000e+00 : f32
    %286 = vector.broadcast %cst_213 : f32 to vector<8x35xf32>
    %287 = arith.maximumf %285, %286 : vector<8x35xf32>
    %288 = arith.truncf %287 : vector<8x35xf32> to vector<8x35xbf16>
    %c0_214 = arith.constant 0 : index
    %c0_215 = arith.constant 0 : index
    %289 = vector.load %arg33[%c0_214, %c0_215] : memref<35x47xbf16, #tpu.memory_space<vmem>>, vector<35x47xbf16>
    %cst_216 = arith.constant dense<0.000000e+00> : vector<8x47xf32>
    %290 = tpu.matmul %288, %289, %cst_216 {dimension_numbers = #tpu.dot_dimension_numbers<[1], [0], [0], [1], [0, 0, 1, 1], [], []>} : vector<8x35xbf16>, vector<35x47xbf16>, vector<8x47xf32> -> vector<8x47xf32>
    %291 = arith.truncf %290 : vector<8x47xf32> to vector<8x47xbf16>
    %cst_217 = arith.constant 0.000000e+00 : f32
    %292 = vector.broadcast %cst_217 : f32 to vector<8x41xf32>
    %c0_218 = arith.constant 0 : index
    %c0_219 = arith.constant 0 : index
    %c0_220 = arith.constant 0 : index
    %293 = vector.load %arg30[%c0_218, %c0_219, %c0_220] : memref<7x8x8xbf16, #tpu.memory_space<vmem>>, vector<1x8x8xbf16>
    %294 = vector.shape_cast %293 : vector<1x8x8xbf16> to vector<8x8xbf16>
    %295 = vector.extract_strided_slice %291 {offsets = [0, 0], sizes = [8, 41], strides = [1, 1]} : vector<8x47xbf16> to vector<8x41xbf16>
    %cst_221 = arith.constant dense<0.000000e+00> : vector<8x41xf32>
    %296 = tpu.matmul %294, %295, %cst_221 {dimension_numbers = #tpu.dot_dimension_numbers<[1], [0], [0], [1], [0, 0, 1, 1], [], []>} : vector<8x8xbf16>, vector<8x41xbf16>, vector<8x41xf32> -> vector<8x41xf32>
    %297 = arith.addf %292, %296 : vector<8x41xf32>
    %c1_222 = arith.constant 1 : index
    %c0_223 = arith.constant 0 : index
    %c0_224 = arith.constant 0 : index
    %298 = vector.load %arg30[%c1_222, %c0_223, %c0_224] : memref<7x8x8xbf16, #tpu.memory_space<vmem>>, vector<1x8x8xbf16>
    %299 = vector.shape_cast %298 : vector<1x8x8xbf16> to vector<8x8xbf16>
    %300 = vector.extract_strided_slice %291 {offsets = [0, 1], sizes = [8, 41], strides = [1, 1]} : vector<8x47xbf16> to vector<8x41xbf16>
    %cst_225 = arith.constant dense<0.000000e+00> : vector<8x41xf32>
    %301 = tpu.matmul %299, %300, %cst_225 {dimension_numbers = #tpu.dot_dimension_numbers<[1], [0], [0], [1], [0, 0, 1, 1], [], []>} : vector<8x8xbf16>, vector<8x41xbf16>, vector<8x41xf32> -> vector<8x41xf32>
    %302 = arith.addf %297, %301 : vector<8x41xf32>
    %c2_226 = arith.constant 2 : index
    %c0_227 = arith.constant 0 : index
    %c0_228 = arith.constant 0 : index
    %303 = vector.load %arg30[%c2_226, %c0_227, %c0_228] : memref<7x8x8xbf16, #tpu.memory_space<vmem>>, vector<1x8x8xbf16>
    %304 = vector.shape_cast %303 : vector<1x8x8xbf16> to vector<8x8xbf16>
    %305 = vector.extract_strided_slice %291 {offsets = [0, 2], sizes = [8, 41], strides = [1, 1]} : vector<8x47xbf16> to vector<8x41xbf16>
    %cst_229 = arith.constant dense<0.000000e+00> : vector<8x41xf32>
    %306 = tpu.matmul %304, %305, %cst_229 {dimension_numbers = #tpu.dot_dimension_numbers<[1], [0], [0], [1], [0, 0, 1, 1], [], []>} : vector<8x8xbf16>, vector<8x41xbf16>, vector<8x41xf32> -> vector<8x41xf32>
    %307 = arith.addf %302, %306 : vector<8x41xf32>
    %c3_230 = arith.constant 3 : index
    %c0_231 = arith.constant 0 : index
    %c0_232 = arith.constant 0 : index
    %308 = vector.load %arg30[%c3_230, %c0_231, %c0_232] : memref<7x8x8xbf16, #tpu.memory_space<vmem>>, vector<1x8x8xbf16>
    %309 = vector.shape_cast %308 : vector<1x8x8xbf16> to vector<8x8xbf16>
    %310 = vector.extract_strided_slice %291 {offsets = [0, 3], sizes = [8, 41], strides = [1, 1]} : vector<8x47xbf16> to vector<8x41xbf16>
    %cst_233 = arith.constant dense<0.000000e+00> : vector<8x41xf32>
    %311 = tpu.matmul %309, %310, %cst_233 {dimension_numbers = #tpu.dot_dimension_numbers<[1], [0], [0], [1], [0, 0, 1, 1], [], []>} : vector<8x8xbf16>, vector<8x41xbf16>, vector<8x41xf32> -> vector<8x41xf32>
    %312 = arith.addf %307, %311 : vector<8x41xf32>
    %c4_234 = arith.constant 4 : index
    %c0_235 = arith.constant 0 : index
    %c0_236 = arith.constant 0 : index
    %313 = vector.load %arg30[%c4_234, %c0_235, %c0_236] : memref<7x8x8xbf16, #tpu.memory_space<vmem>>, vector<1x8x8xbf16>
    %314 = vector.shape_cast %313 : vector<1x8x8xbf16> to vector<8x8xbf16>
    %315 = vector.extract_strided_slice %291 {offsets = [0, 4], sizes = [8, 41], strides = [1, 1]} : vector<8x47xbf16> to vector<8x41xbf16>
    %cst_237 = arith.constant dense<0.000000e+00> : vector<8x41xf32>
    %316 = tpu.matmul %314, %315, %cst_237 {dimension_numbers = #tpu.dot_dimension_numbers<[1], [0], [0], [1], [0, 0, 1, 1], [], []>} : vector<8x8xbf16>, vector<8x41xbf16>, vector<8x41xf32> -> vector<8x41xf32>
    %317 = arith.addf %312, %316 : vector<8x41xf32>
    %c5_238 = arith.constant 5 : index
    %c0_239 = arith.constant 0 : index
    %c0_240 = arith.constant 0 : index
    %318 = vector.load %arg30[%c5_238, %c0_239, %c0_240] : memref<7x8x8xbf16, #tpu.memory_space<vmem>>, vector<1x8x8xbf16>
    %319 = vector.shape_cast %318 : vector<1x8x8xbf16> to vector<8x8xbf16>
    %320 = vector.extract_strided_slice %291 {offsets = [0, 5], sizes = [8, 41], strides = [1, 1]} : vector<8x47xbf16> to vector<8x41xbf16>
    %cst_241 = arith.constant dense<0.000000e+00> : vector<8x41xf32>
    %321 = tpu.matmul %319, %320, %cst_241 {dimension_numbers = #tpu.dot_dimension_numbers<[1], [0], [0], [1], [0, 0, 1, 1], [], []>} : vector<8x8xbf16>, vector<8x41xbf16>, vector<8x41xf32> -> vector<8x41xf32>
    %322 = arith.addf %317, %321 : vector<8x41xf32>
    %c6_242 = arith.constant 6 : index
    %c0_243 = arith.constant 0 : index
    %c0_244 = arith.constant 0 : index
    %323 = vector.load %arg30[%c6_242, %c0_243, %c0_244] : memref<7x8x8xbf16, #tpu.memory_space<vmem>>, vector<1x8x8xbf16>
    %324 = vector.shape_cast %323 : vector<1x8x8xbf16> to vector<8x8xbf16>
    %325 = vector.extract_strided_slice %291 {offsets = [0, 6], sizes = [8, 41], strides = [1, 1]} : vector<8x47xbf16> to vector<8x41xbf16>
    %cst_245 = arith.constant dense<0.000000e+00> : vector<8x41xf32>
    %326 = tpu.matmul %324, %325, %cst_245 {dimension_numbers = #tpu.dot_dimension_numbers<[1], [0], [0], [1], [0, 0, 1, 1], [], []>} : vector<8x8xbf16>, vector<8x41xbf16>, vector<8x41xf32> -> vector<8x41xf32>
    %327 = arith.addf %322, %326 : vector<8x41xf32>
    %c0_246 = arith.constant 0 : index
    %c0_247 = arith.constant 0 : index
    %328 = vector.load %arg31[%c0_246, %c0_247] : memref<8x1xf32, #tpu.memory_space<vmem>>, vector<8x1xf32>
    %329 = vector.broadcast %328 : vector<8x1xf32> to vector<8x41xf32>
    %330 = arith.mulf %327, %329 : vector<8x41xf32>
    %c0_248 = arith.constant 0 : index
    %c0_249 = arith.constant 0 : index
    %331 = vector.load %arg32[%c0_248, %c0_249] : memref<8x1xf32, #tpu.memory_space<vmem>>, vector<8x1xf32>
    %332 = vector.broadcast %331 : vector<8x1xf32> to vector<8x41xf32>
    %333 = arith.addf %330, %332 : vector<8x41xf32>
    %cst_250 = arith.constant 0.000000e+00 : f32
    %334 = vector.broadcast %cst_250 : f32 to vector<8x41xf32>
    %335 = arith.maximumf %333, %334 : vector<8x41xf32>
    %336 = arith.truncf %335 : vector<8x41xf32> to vector<8x41xbf16>
    %c0_251 = arith.constant 0 : index
    %c0_252 = arith.constant 0 : index
    %337 = vector.load %arg37[%c0_251, %c0_252] : memref<41x93xbf16, #tpu.memory_space<vmem>>, vector<41x93xbf16>
    %cst_253 = arith.constant dense<0.000000e+00> : vector<8x93xf32>
    %338 = tpu.matmul %336, %337, %cst_253 {dimension_numbers = #tpu.dot_dimension_numbers<[1], [0], [0], [1], [0, 0, 1, 1], [], []>} : vector<8x41xbf16>, vector<41x93xbf16>, vector<8x93xf32> -> vector<8x93xf32>
    %339 = arith.truncf %338 : vector<8x93xf32> to vector<8x93xbf16>
    %cst_254 = arith.constant 0.000000e+00 : f32
    %340 = vector.broadcast %cst_254 : f32 to vector<8x87xf32>
    %c0_255 = arith.constant 0 : index
    %c0_256 = arith.constant 0 : index
    %c0_257 = arith.constant 0 : index
    %341 = vector.load %arg34[%c0_255, %c0_256, %c0_257] : memref<7x8x8xbf16, #tpu.memory_space<vmem>>, vector<1x8x8xbf16>
    %342 = vector.shape_cast %341 : vector<1x8x8xbf16> to vector<8x8xbf16>
    %343 = vector.extract_strided_slice %339 {offsets = [0, 0], sizes = [8, 87], strides = [1, 1]} : vector<8x93xbf16> to vector<8x87xbf16>
    %cst_258 = arith.constant dense<0.000000e+00> : vector<8x87xf32>
    %344 = tpu.matmul %342, %343, %cst_258 {dimension_numbers = #tpu.dot_dimension_numbers<[1], [0], [0], [1], [0, 0, 1, 1], [], []>} : vector<8x8xbf16>, vector<8x87xbf16>, vector<8x87xf32> -> vector<8x87xf32>
    %345 = arith.addf %340, %344 : vector<8x87xf32>
    %c1_259 = arith.constant 1 : index
    %c0_260 = arith.constant 0 : index
    %c0_261 = arith.constant 0 : index
    %346 = vector.load %arg34[%c1_259, %c0_260, %c0_261] : memref<7x8x8xbf16, #tpu.memory_space<vmem>>, vector<1x8x8xbf16>
    %347 = vector.shape_cast %346 : vector<1x8x8xbf16> to vector<8x8xbf16>
    %348 = vector.extract_strided_slice %339 {offsets = [0, 1], sizes = [8, 87], strides = [1, 1]} : vector<8x93xbf16> to vector<8x87xbf16>
    %cst_262 = arith.constant dense<0.000000e+00> : vector<8x87xf32>
    %349 = tpu.matmul %347, %348, %cst_262 {dimension_numbers = #tpu.dot_dimension_numbers<[1], [0], [0], [1], [0, 0, 1, 1], [], []>} : vector<8x8xbf16>, vector<8x87xbf16>, vector<8x87xf32> -> vector<8x87xf32>
    %350 = arith.addf %345, %349 : vector<8x87xf32>
    %c2_263 = arith.constant 2 : index
    %c0_264 = arith.constant 0 : index
    %c0_265 = arith.constant 0 : index
    %351 = vector.load %arg34[%c2_263, %c0_264, %c0_265] : memref<7x8x8xbf16, #tpu.memory_space<vmem>>, vector<1x8x8xbf16>
    %352 = vector.shape_cast %351 : vector<1x8x8xbf16> to vector<8x8xbf16>
    %353 = vector.extract_strided_slice %339 {offsets = [0, 2], sizes = [8, 87], strides = [1, 1]} : vector<8x93xbf16> to vector<8x87xbf16>
    %cst_266 = arith.constant dense<0.000000e+00> : vector<8x87xf32>
    %354 = tpu.matmul %352, %353, %cst_266 {dimension_numbers = #tpu.dot_dimension_numbers<[1], [0], [0], [1], [0, 0, 1, 1], [], []>} : vector<8x8xbf16>, vector<8x87xbf16>, vector<8x87xf32> -> vector<8x87xf32>
    %355 = arith.addf %350, %354 : vector<8x87xf32>
    %c3_267 = arith.constant 3 : index
    %c0_268 = arith.constant 0 : index
    %c0_269 = arith.constant 0 : index
    %356 = vector.load %arg34[%c3_267, %c0_268, %c0_269] : memref<7x8x8xbf16, #tpu.memory_space<vmem>>, vector<1x8x8xbf16>
    %357 = vector.shape_cast %356 : vector<1x8x8xbf16> to vector<8x8xbf16>
    %358 = vector.extract_strided_slice %339 {offsets = [0, 3], sizes = [8, 87], strides = [1, 1]} : vector<8x93xbf16> to vector<8x87xbf16>
    %cst_270 = arith.constant dense<0.000000e+00> : vector<8x87xf32>
    %359 = tpu.matmul %357, %358, %cst_270 {dimension_numbers = #tpu.dot_dimension_numbers<[1], [0], [0], [1], [0, 0, 1, 1], [], []>} : vector<8x8xbf16>, vector<8x87xbf16>, vector<8x87xf32> -> vector<8x87xf32>
    %360 = arith.addf %355, %359 : vector<8x87xf32>
    %c4_271 = arith.constant 4 : index
    %c0_272 = arith.constant 0 : index
    %c0_273 = arith.constant 0 : index
    %361 = vector.load %arg34[%c4_271, %c0_272, %c0_273] : memref<7x8x8xbf16, #tpu.memory_space<vmem>>, vector<1x8x8xbf16>
    %362 = vector.shape_cast %361 : vector<1x8x8xbf16> to vector<8x8xbf16>
    %363 = vector.extract_strided_slice %339 {offsets = [0, 4], sizes = [8, 87], strides = [1, 1]} : vector<8x93xbf16> to vector<8x87xbf16>
    %cst_274 = arith.constant dense<0.000000e+00> : vector<8x87xf32>
    %364 = tpu.matmul %362, %363, %cst_274 {dimension_numbers = #tpu.dot_dimension_numbers<[1], [0], [0], [1], [0, 0, 1, 1], [], []>} : vector<8x8xbf16>, vector<8x87xbf16>, vector<8x87xf32> -> vector<8x87xf32>
    %365 = arith.addf %360, %364 : vector<8x87xf32>
    %c5_275 = arith.constant 5 : index
    %c0_276 = arith.constant 0 : index
    %c0_277 = arith.constant 0 : index
    %366 = vector.load %arg34[%c5_275, %c0_276, %c0_277] : memref<7x8x8xbf16, #tpu.memory_space<vmem>>, vector<1x8x8xbf16>
    %367 = vector.shape_cast %366 : vector<1x8x8xbf16> to vector<8x8xbf16>
    %368 = vector.extract_strided_slice %339 {offsets = [0, 5], sizes = [8, 87], strides = [1, 1]} : vector<8x93xbf16> to vector<8x87xbf16>
    %cst_278 = arith.constant dense<0.000000e+00> : vector<8x87xf32>
    %369 = tpu.matmul %367, %368, %cst_278 {dimension_numbers = #tpu.dot_dimension_numbers<[1], [0], [0], [1], [0, 0, 1, 1], [], []>} : vector<8x8xbf16>, vector<8x87xbf16>, vector<8x87xf32> -> vector<8x87xf32>
    %370 = arith.addf %365, %369 : vector<8x87xf32>
    %c6_279 = arith.constant 6 : index
    %c0_280 = arith.constant 0 : index
    %c0_281 = arith.constant 0 : index
    %371 = vector.load %arg34[%c6_279, %c0_280, %c0_281] : memref<7x8x8xbf16, #tpu.memory_space<vmem>>, vector<1x8x8xbf16>
    %372 = vector.shape_cast %371 : vector<1x8x8xbf16> to vector<8x8xbf16>
    %373 = vector.extract_strided_slice %339 {offsets = [0, 6], sizes = [8, 87], strides = [1, 1]} : vector<8x93xbf16> to vector<8x87xbf16>
    %cst_282 = arith.constant dense<0.000000e+00> : vector<8x87xf32>
    %374 = tpu.matmul %372, %373, %cst_282 {dimension_numbers = #tpu.dot_dimension_numbers<[1], [0], [0], [1], [0, 0, 1, 1], [], []>} : vector<8x8xbf16>, vector<8x87xbf16>, vector<8x87xf32> -> vector<8x87xf32>
    %375 = arith.addf %370, %374 : vector<8x87xf32>
    %c0_283 = arith.constant 0 : index
    %c0_284 = arith.constant 0 : index
    %376 = vector.load %arg35[%c0_283, %c0_284] : memref<8x1xf32, #tpu.memory_space<vmem>>, vector<8x1xf32>
    %377 = vector.broadcast %376 : vector<8x1xf32> to vector<8x87xf32>
    %378 = arith.mulf %375, %377 : vector<8x87xf32>
    %c0_285 = arith.constant 0 : index
    %c0_286 = arith.constant 0 : index
    %379 = vector.load %arg36[%c0_285, %c0_286] : memref<8x1xf32, #tpu.memory_space<vmem>>, vector<8x1xf32>
    %380 = vector.broadcast %379 : vector<8x1xf32> to vector<8x87xf32>
    %381 = arith.addf %378, %380 : vector<8x87xf32>
    %cst_287 = arith.constant 0.000000e+00 : f32
    %382 = vector.broadcast %cst_287 : f32 to vector<8x87xf32>
    %383 = arith.maximumf %381, %382 : vector<8x87xf32>
    %384 = arith.truncf %383 : vector<8x87xf32> to vector<8x87xbf16>
    %c0_288 = arith.constant 0 : index
    %c0_289 = arith.constant 0 : index
    %385 = vector.load %arg41[%c0_288, %c0_289] : memref<87x185xbf16, #tpu.memory_space<vmem>>, vector<87x185xbf16>
    %cst_290 = arith.constant dense<0.000000e+00> : vector<8x185xf32>
    %386 = tpu.matmul %384, %385, %cst_290 {dimension_numbers = #tpu.dot_dimension_numbers<[1], [0], [0], [1], [0, 0, 1, 1], [], []>} : vector<8x87xbf16>, vector<87x185xbf16>, vector<8x185xf32> -> vector<8x185xf32>
    %387 = arith.truncf %386 : vector<8x185xf32> to vector<8x185xbf16>
    %cst_291 = arith.constant 0.000000e+00 : f32
    %388 = vector.broadcast %cst_291 : f32 to vector<8x179xf32>
    %c0_292 = arith.constant 0 : index
    %c0_293 = arith.constant 0 : index
    %c0_294 = arith.constant 0 : index
    %389 = vector.load %arg38[%c0_292, %c0_293, %c0_294] : memref<7x8x8xbf16, #tpu.memory_space<vmem>>, vector<1x8x8xbf16>
    %390 = vector.shape_cast %389 : vector<1x8x8xbf16> to vector<8x8xbf16>
    %391 = vector.extract_strided_slice %387 {offsets = [0, 0], sizes = [8, 179], strides = [1, 1]} : vector<8x185xbf16> to vector<8x179xbf16>
    %cst_295 = arith.constant dense<0.000000e+00> : vector<8x179xf32>
    %392 = tpu.matmul %390, %391, %cst_295 {dimension_numbers = #tpu.dot_dimension_numbers<[1], [0], [0], [1], [0, 0, 1, 1], [], []>} : vector<8x8xbf16>, vector<8x179xbf16>, vector<8x179xf32> -> vector<8x179xf32>
    %393 = arith.addf %388, %392 : vector<8x179xf32>
    %c1_296 = arith.constant 1 : index
    %c0_297 = arith.constant 0 : index
    %c0_298 = arith.constant 0 : index
    %394 = vector.load %arg38[%c1_296, %c0_297, %c0_298] : memref<7x8x8xbf16, #tpu.memory_space<vmem>>, vector<1x8x8xbf16>
    %395 = vector.shape_cast %394 : vector<1x8x8xbf16> to vector<8x8xbf16>
    %396 = vector.extract_strided_slice %387 {offsets = [0, 1], sizes = [8, 179], strides = [1, 1]} : vector<8x185xbf16> to vector<8x179xbf16>
    %cst_299 = arith.constant dense<0.000000e+00> : vector<8x179xf32>
    %397 = tpu.matmul %395, %396, %cst_299 {dimension_numbers = #tpu.dot_dimension_numbers<[1], [0], [0], [1], [0, 0, 1, 1], [], []>} : vector<8x8xbf16>, vector<8x179xbf16>, vector<8x179xf32> -> vector<8x179xf32>
    %398 = arith.addf %393, %397 : vector<8x179xf32>
    %c2_300 = arith.constant 2 : index
    %c0_301 = arith.constant 0 : index
    %c0_302 = arith.constant 0 : index
    %399 = vector.load %arg38[%c2_300, %c0_301, %c0_302] : memref<7x8x8xbf16, #tpu.memory_space<vmem>>, vector<1x8x8xbf16>
    %400 = vector.shape_cast %399 : vector<1x8x8xbf16> to vector<8x8xbf16>
    %401 = vector.extract_strided_slice %387 {offsets = [0, 2], sizes = [8, 179], strides = [1, 1]} : vector<8x185xbf16> to vector<8x179xbf16>
    %cst_303 = arith.constant dense<0.000000e+00> : vector<8x179xf32>
    %402 = tpu.matmul %400, %401, %cst_303 {dimension_numbers = #tpu.dot_dimension_numbers<[1], [0], [0], [1], [0, 0, 1, 1], [], []>} : vector<8x8xbf16>, vector<8x179xbf16>, vector<8x179xf32> -> vector<8x179xf32>
    %403 = arith.addf %398, %402 : vector<8x179xf32>
    %c3_304 = arith.constant 3 : index
    %c0_305 = arith.constant 0 : index
    %c0_306 = arith.constant 0 : index
    %404 = vector.load %arg38[%c3_304, %c0_305, %c0_306] : memref<7x8x8xbf16, #tpu.memory_space<vmem>>, vector<1x8x8xbf16>
    %405 = vector.shape_cast %404 : vector<1x8x8xbf16> to vector<8x8xbf16>
    %406 = vector.extract_strided_slice %387 {offsets = [0, 3], sizes = [8, 179], strides = [1, 1]} : vector<8x185xbf16> to vector<8x179xbf16>
    %cst_307 = arith.constant dense<0.000000e+00> : vector<8x179xf32>
    %407 = tpu.matmul %405, %406, %cst_307 {dimension_numbers = #tpu.dot_dimension_numbers<[1], [0], [0], [1], [0, 0, 1, 1], [], []>} : vector<8x8xbf16>, vector<8x179xbf16>, vector<8x179xf32> -> vector<8x179xf32>
    %408 = arith.addf %403, %407 : vector<8x179xf32>
    %c4_308 = arith.constant 4 : index
    %c0_309 = arith.constant 0 : index
    %c0_310 = arith.constant 0 : index
    %409 = vector.load %arg38[%c4_308, %c0_309, %c0_310] : memref<7x8x8xbf16, #tpu.memory_space<vmem>>, vector<1x8x8xbf16>
    %410 = vector.shape_cast %409 : vector<1x8x8xbf16> to vector<8x8xbf16>
    %411 = vector.extract_strided_slice %387 {offsets = [0, 4], sizes = [8, 179], strides = [1, 1]} : vector<8x185xbf16> to vector<8x179xbf16>
    %cst_311 = arith.constant dense<0.000000e+00> : vector<8x179xf32>
    %412 = tpu.matmul %410, %411, %cst_311 {dimension_numbers = #tpu.dot_dimension_numbers<[1], [0], [0], [1], [0, 0, 1, 1], [], []>} : vector<8x8xbf16>, vector<8x179xbf16>, vector<8x179xf32> -> vector<8x179xf32>
    %413 = arith.addf %408, %412 : vector<8x179xf32>
    %c5_312 = arith.constant 5 : index
    %c0_313 = arith.constant 0 : index
    %c0_314 = arith.constant 0 : index
    %414 = vector.load %arg38[%c5_312, %c0_313, %c0_314] : memref<7x8x8xbf16, #tpu.memory_space<vmem>>, vector<1x8x8xbf16>
    %415 = vector.shape_cast %414 : vector<1x8x8xbf16> to vector<8x8xbf16>
    %416 = vector.extract_strided_slice %387 {offsets = [0, 5], sizes = [8, 179], strides = [1, 1]} : vector<8x185xbf16> to vector<8x179xbf16>
    %cst_315 = arith.constant dense<0.000000e+00> : vector<8x179xf32>
    %417 = tpu.matmul %415, %416, %cst_315 {dimension_numbers = #tpu.dot_dimension_numbers<[1], [0], [0], [1], [0, 0, 1, 1], [], []>} : vector<8x8xbf16>, vector<8x179xbf16>, vector<8x179xf32> -> vector<8x179xf32>
    %418 = arith.addf %413, %417 : vector<8x179xf32>
    %c6_316 = arith.constant 6 : index
    %c0_317 = arith.constant 0 : index
    %c0_318 = arith.constant 0 : index
    %419 = vector.load %arg38[%c6_316, %c0_317, %c0_318] : memref<7x8x8xbf16, #tpu.memory_space<vmem>>, vector<1x8x8xbf16>
    %420 = vector.shape_cast %419 : vector<1x8x8xbf16> to vector<8x8xbf16>
    %421 = vector.extract_strided_slice %387 {offsets = [0, 6], sizes = [8, 179], strides = [1, 1]} : vector<8x185xbf16> to vector<8x179xbf16>
    %cst_319 = arith.constant dense<0.000000e+00> : vector<8x179xf32>
    %422 = tpu.matmul %420, %421, %cst_319 {dimension_numbers = #tpu.dot_dimension_numbers<[1], [0], [0], [1], [0, 0, 1, 1], [], []>} : vector<8x8xbf16>, vector<8x179xbf16>, vector<8x179xf32> -> vector<8x179xf32>
    %423 = arith.addf %418, %422 : vector<8x179xf32>
    %c0_320 = arith.constant 0 : index
    %c0_321 = arith.constant 0 : index
    %424 = vector.load %arg39[%c0_320, %c0_321] : memref<8x1xf32, #tpu.memory_space<vmem>>, vector<8x1xf32>
    %425 = vector.broadcast %424 : vector<8x1xf32> to vector<8x179xf32>
    %426 = arith.mulf %423, %425 : vector<8x179xf32>
    %c0_322 = arith.constant 0 : index
    %c0_323 = arith.constant 0 : index
    %427 = vector.load %arg40[%c0_322, %c0_323] : memref<8x1xf32, #tpu.memory_space<vmem>>, vector<8x1xf32>
    %428 = vector.broadcast %427 : vector<8x1xf32> to vector<8x179xf32>
    %429 = arith.addf %426, %428 : vector<8x179xf32>
    %cst_324 = arith.constant 0.000000e+00 : f32
    %430 = vector.broadcast %cst_324 : f32 to vector<8x179xf32>
    %431 = arith.maximumf %429, %430 : vector<8x179xf32>
    %432 = arith.truncf %431 : vector<8x179xf32> to vector<8x179xbf16>
    %c0_325 = arith.constant 0 : index
    %c0_326 = arith.constant 0 : index
    %433 = vector.load %arg45[%c0_325, %c0_326] : memref<179x369xbf16, #tpu.memory_space<vmem>>, vector<179x369xbf16>
    %cst_327 = arith.constant dense<0.000000e+00> : vector<8x369xf32>
    %434 = tpu.matmul %432, %433, %cst_327 {dimension_numbers = #tpu.dot_dimension_numbers<[1], [0], [0], [1], [0, 0, 1, 1], [], []>} : vector<8x179xbf16>, vector<179x369xbf16>, vector<8x369xf32> -> vector<8x369xf32>
    %435 = arith.truncf %434 : vector<8x369xf32> to vector<8x369xbf16>
    %cst_328 = arith.constant 0.000000e+00 : f32
    %436 = vector.broadcast %cst_328 : f32 to vector<8x363xf32>
    %c0_329 = arith.constant 0 : index
    %c0_330 = arith.constant 0 : index
    %c0_331 = arith.constant 0 : index
    %437 = vector.load %arg42[%c0_329, %c0_330, %c0_331] : memref<7x8x8xbf16, #tpu.memory_space<vmem>>, vector<1x8x8xbf16>
    %438 = vector.shape_cast %437 : vector<1x8x8xbf16> to vector<8x8xbf16>
    %439 = vector.extract_strided_slice %435 {offsets = [0, 0], sizes = [8, 363], strides = [1, 1]} : vector<8x369xbf16> to vector<8x363xbf16>
    %cst_332 = arith.constant dense<0.000000e+00> : vector<8x363xf32>
    %440 = tpu.matmul %438, %439, %cst_332 {dimension_numbers = #tpu.dot_dimension_numbers<[1], [0], [0], [1], [0, 0, 1, 1], [], []>} : vector<8x8xbf16>, vector<8x363xbf16>, vector<8x363xf32> -> vector<8x363xf32>
    %441 = arith.addf %436, %440 : vector<8x363xf32>
    %c1_333 = arith.constant 1 : index
    %c0_334 = arith.constant 0 : index
    %c0_335 = arith.constant 0 : index
    %442 = vector.load %arg42[%c1_333, %c0_334, %c0_335] : memref<7x8x8xbf16, #tpu.memory_space<vmem>>, vector<1x8x8xbf16>
    %443 = vector.shape_cast %442 : vector<1x8x8xbf16> to vector<8x8xbf16>
    %444 = vector.extract_strided_slice %435 {offsets = [0, 1], sizes = [8, 363], strides = [1, 1]} : vector<8x369xbf16> to vector<8x363xbf16>
    %cst_336 = arith.constant dense<0.000000e+00> : vector<8x363xf32>
    %445 = tpu.matmul %443, %444, %cst_336 {dimension_numbers = #tpu.dot_dimension_numbers<[1], [0], [0], [1], [0, 0, 1, 1], [], []>} : vector<8x8xbf16>, vector<8x363xbf16>, vector<8x363xf32> -> vector<8x363xf32>
    %446 = arith.addf %441, %445 : vector<8x363xf32>
    %c2_337 = arith.constant 2 : index
    %c0_338 = arith.constant 0 : index
    %c0_339 = arith.constant 0 : index
    %447 = vector.load %arg42[%c2_337, %c0_338, %c0_339] : memref<7x8x8xbf16, #tpu.memory_space<vmem>>, vector<1x8x8xbf16>
    %448 = vector.shape_cast %447 : vector<1x8x8xbf16> to vector<8x8xbf16>
    %449 = vector.extract_strided_slice %435 {offsets = [0, 2], sizes = [8, 363], strides = [1, 1]} : vector<8x369xbf16> to vector<8x363xbf16>
    %cst_340 = arith.constant dense<0.000000e+00> : vector<8x363xf32>
    %450 = tpu.matmul %448, %449, %cst_340 {dimension_numbers = #tpu.dot_dimension_numbers<[1], [0], [0], [1], [0, 0, 1, 1], [], []>} : vector<8x8xbf16>, vector<8x363xbf16>, vector<8x363xf32> -> vector<8x363xf32>
    %451 = arith.addf %446, %450 : vector<8x363xf32>
    %c3_341 = arith.constant 3 : index
    %c0_342 = arith.constant 0 : index
    %c0_343 = arith.constant 0 : index
    %452 = vector.load %arg42[%c3_341, %c0_342, %c0_343] : memref<7x8x8xbf16, #tpu.memory_space<vmem>>, vector<1x8x8xbf16>
    %453 = vector.shape_cast %452 : vector<1x8x8xbf16> to vector<8x8xbf16>
    %454 = vector.extract_strided_slice %435 {offsets = [0, 3], sizes = [8, 363], strides = [1, 1]} : vector<8x369xbf16> to vector<8x363xbf16>
    %cst_344 = arith.constant dense<0.000000e+00> : vector<8x363xf32>
    %455 = tpu.matmul %453, %454, %cst_344 {dimension_numbers = #tpu.dot_dimension_numbers<[1], [0], [0], [1], [0, 0, 1, 1], [], []>} : vector<8x8xbf16>, vector<8x363xbf16>, vector<8x363xf32> -> vector<8x363xf32>
    %456 = arith.addf %451, %455 : vector<8x363xf32>
    %c4_345 = arith.constant 4 : index
    %c0_346 = arith.constant 0 : index
    %c0_347 = arith.constant 0 : index
    %457 = vector.load %arg42[%c4_345, %c0_346, %c0_347] : memref<7x8x8xbf16, #tpu.memory_space<vmem>>, vector<1x8x8xbf16>
    %458 = vector.shape_cast %457 : vector<1x8x8xbf16> to vector<8x8xbf16>
    %459 = vector.extract_strided_slice %435 {offsets = [0, 4], sizes = [8, 363], strides = [1, 1]} : vector<8x369xbf16> to vector<8x363xbf16>
    %cst_348 = arith.constant dense<0.000000e+00> : vector<8x363xf32>
    %460 = tpu.matmul %458, %459, %cst_348 {dimension_numbers = #tpu.dot_dimension_numbers<[1], [0], [0], [1], [0, 0, 1, 1], [], []>} : vector<8x8xbf16>, vector<8x363xbf16>, vector<8x363xf32> -> vector<8x363xf32>
    %461 = arith.addf %456, %460 : vector<8x363xf32>
    %c5_349 = arith.constant 5 : index
    %c0_350 = arith.constant 0 : index
    %c0_351 = arith.constant 0 : index
    %462 = vector.load %arg42[%c5_349, %c0_350, %c0_351] : memref<7x8x8xbf16, #tpu.memory_space<vmem>>, vector<1x8x8xbf16>
    %463 = vector.shape_cast %462 : vector<1x8x8xbf16> to vector<8x8xbf16>
    %464 = vector.extract_strided_slice %435 {offsets = [0, 5], sizes = [8, 363], strides = [1, 1]} : vector<8x369xbf16> to vector<8x363xbf16>
    %cst_352 = arith.constant dense<0.000000e+00> : vector<8x363xf32>
    %465 = tpu.matmul %463, %464, %cst_352 {dimension_numbers = #tpu.dot_dimension_numbers<[1], [0], [0], [1], [0, 0, 1, 1], [], []>} : vector<8x8xbf16>, vector<8x363xbf16>, vector<8x363xf32> -> vector<8x363xf32>
    %466 = arith.addf %461, %465 : vector<8x363xf32>
    %c6_353 = arith.constant 6 : index
    %c0_354 = arith.constant 0 : index
    %c0_355 = arith.constant 0 : index
    %467 = vector.load %arg42[%c6_353, %c0_354, %c0_355] : memref<7x8x8xbf16, #tpu.memory_space<vmem>>, vector<1x8x8xbf16>
    %468 = vector.shape_cast %467 : vector<1x8x8xbf16> to vector<8x8xbf16>
    %469 = vector.extract_strided_slice %435 {offsets = [0, 6], sizes = [8, 363], strides = [1, 1]} : vector<8x369xbf16> to vector<8x363xbf16>
    %cst_356 = arith.constant dense<0.000000e+00> : vector<8x363xf32>
    %470 = tpu.matmul %468, %469, %cst_356 {dimension_numbers = #tpu.dot_dimension_numbers<[1], [0], [0], [1], [0, 0, 1, 1], [], []>} : vector<8x8xbf16>, vector<8x363xbf16>, vector<8x363xf32> -> vector<8x363xf32>
    %471 = arith.addf %466, %470 : vector<8x363xf32>
    %c0_357 = arith.constant 0 : index
    %c0_358 = arith.constant 0 : index
    %472 = vector.load %arg43[%c0_357, %c0_358] : memref<8x1xf32, #tpu.memory_space<vmem>>, vector<8x1xf32>
    %473 = vector.broadcast %472 : vector<8x1xf32> to vector<8x363xf32>
    %474 = arith.mulf %471, %473 : vector<8x363xf32>
    %c0_359 = arith.constant 0 : index
    %c0_360 = arith.constant 0 : index
    %475 = vector.load %arg44[%c0_359, %c0_360] : memref<8x1xf32, #tpu.memory_space<vmem>>, vector<8x1xf32>
    %476 = vector.broadcast %475 : vector<8x1xf32> to vector<8x363xf32>
    %477 = arith.addf %474, %476 : vector<8x363xf32>
    %cst_361 = arith.constant 0.000000e+00 : f32
    %478 = vector.broadcast %cst_361 : f32 to vector<8x363xf32>
    %479 = arith.maximumf %477, %478 : vector<8x363xf32>
    %480 = arith.truncf %479 : vector<8x363xf32> to vector<8x363xbf16>
    %c0_362 = arith.constant 0 : index
    %c0_363 = arith.constant 0 : index
    %481 = vector.load %arg49[%c0_362, %c0_363] : memref<363x743xbf16, #tpu.memory_space<vmem>>, vector<363x743xbf16>
    %cst_364 = arith.constant dense<0.000000e+00> : vector<8x743xf32>
    %482 = tpu.matmul %480, %481, %cst_364 {dimension_numbers = #tpu.dot_dimension_numbers<[1], [0], [0], [1], [0, 0, 1, 1], [], []>} : vector<8x363xbf16>, vector<363x743xbf16>, vector<8x743xf32> -> vector<8x743xf32>
    %483 = arith.truncf %482 : vector<8x743xf32> to vector<8x743xbf16>
    %cst_365 = arith.constant 0.000000e+00 : f32
    %484 = vector.broadcast %cst_365 : f32 to vector<4x734xf32>
    %c0_366 = arith.constant 0 : index
    %c0_367 = arith.constant 0 : index
    %c0_368 = arith.constant 0 : index
    %485 = vector.load %arg46[%c0_366, %c0_367, %c0_368] : memref<10x4x8xbf16, #tpu.memory_space<vmem>>, vector<1x4x8xbf16>
    %486 = vector.shape_cast %485 : vector<1x4x8xbf16> to vector<4x8xbf16>
    %487 = vector.extract_strided_slice %483 {offsets = [0, 0], sizes = [8, 734], strides = [1, 1]} : vector<8x743xbf16> to vector<8x734xbf16>
    %cst_369 = arith.constant dense<0.000000e+00> : vector<4x734xf32>
    %488 = tpu.matmul %486, %487, %cst_369 {dimension_numbers = #tpu.dot_dimension_numbers<[1], [0], [0], [1], [0, 0, 1, 1], [], []>} : vector<4x8xbf16>, vector<8x734xbf16>, vector<4x734xf32> -> vector<4x734xf32>
    %489 = arith.addf %484, %488 : vector<4x734xf32>
    %c1_370 = arith.constant 1 : index
    %c0_371 = arith.constant 0 : index
    %c0_372 = arith.constant 0 : index
    %490 = vector.load %arg46[%c1_370, %c0_371, %c0_372] : memref<10x4x8xbf16, #tpu.memory_space<vmem>>, vector<1x4x8xbf16>
    %491 = vector.shape_cast %490 : vector<1x4x8xbf16> to vector<4x8xbf16>
    %492 = vector.extract_strided_slice %483 {offsets = [0, 1], sizes = [8, 734], strides = [1, 1]} : vector<8x743xbf16> to vector<8x734xbf16>
    %cst_373 = arith.constant dense<0.000000e+00> : vector<4x734xf32>
    %493 = tpu.matmul %491, %492, %cst_373 {dimension_numbers = #tpu.dot_dimension_numbers<[1], [0], [0], [1], [0, 0, 1, 1], [], []>} : vector<4x8xbf16>, vector<8x734xbf16>, vector<4x734xf32> -> vector<4x734xf32>
    %494 = arith.addf %489, %493 : vector<4x734xf32>
    %c2_374 = arith.constant 2 : index
    %c0_375 = arith.constant 0 : index
    %c0_376 = arith.constant 0 : index
    %495 = vector.load %arg46[%c2_374, %c0_375, %c0_376] : memref<10x4x8xbf16, #tpu.memory_space<vmem>>, vector<1x4x8xbf16>
    %496 = vector.shape_cast %495 : vector<1x4x8xbf16> to vector<4x8xbf16>
    %497 = vector.extract_strided_slice %483 {offsets = [0, 2], sizes = [8, 734], strides = [1, 1]} : vector<8x743xbf16> to vector<8x734xbf16>
    %cst_377 = arith.constant dense<0.000000e+00> : vector<4x734xf32>
    %498 = tpu.matmul %496, %497, %cst_377 {dimension_numbers = #tpu.dot_dimension_numbers<[1], [0], [0], [1], [0, 0, 1, 1], [], []>} : vector<4x8xbf16>, vector<8x734xbf16>, vector<4x734xf32> -> vector<4x734xf32>
    %499 = arith.addf %494, %498 : vector<4x734xf32>
    %c3_378 = arith.constant 3 : index
    %c0_379 = arith.constant 0 : index
    %c0_380 = arith.constant 0 : index
    %500 = vector.load %arg46[%c3_378, %c0_379, %c0_380] : memref<10x4x8xbf16, #tpu.memory_space<vmem>>, vector<1x4x8xbf16>
    %501 = vector.shape_cast %500 : vector<1x4x8xbf16> to vector<4x8xbf16>
    %502 = vector.extract_strided_slice %483 {offsets = [0, 3], sizes = [8, 734], strides = [1, 1]} : vector<8x743xbf16> to vector<8x734xbf16>
    %cst_381 = arith.constant dense<0.000000e+00> : vector<4x734xf32>
    %503 = tpu.matmul %501, %502, %cst_381 {dimension_numbers = #tpu.dot_dimension_numbers<[1], [0], [0], [1], [0, 0, 1, 1], [], []>} : vector<4x8xbf16>, vector<8x734xbf16>, vector<4x734xf32> -> vector<4x734xf32>
    %504 = arith.addf %499, %503 : vector<4x734xf32>
    %c4_382 = arith.constant 4 : index
    %c0_383 = arith.constant 0 : index
    %c0_384 = arith.constant 0 : index
    %505 = vector.load %arg46[%c4_382, %c0_383, %c0_384] : memref<10x4x8xbf16, #tpu.memory_space<vmem>>, vector<1x4x8xbf16>
    %506 = vector.shape_cast %505 : vector<1x4x8xbf16> to vector<4x8xbf16>
    %507 = vector.extract_strided_slice %483 {offsets = [0, 4], sizes = [8, 734], strides = [1, 1]} : vector<8x743xbf16> to vector<8x734xbf16>
    %cst_385 = arith.constant dense<0.000000e+00> : vector<4x734xf32>
    %508 = tpu.matmul %506, %507, %cst_385 {dimension_numbers = #tpu.dot_dimension_numbers<[1], [0], [0], [1], [0, 0, 1, 1], [], []>} : vector<4x8xbf16>, vector<8x734xbf16>, vector<4x734xf32> -> vector<4x734xf32>
    %509 = arith.addf %504, %508 : vector<4x734xf32>
    %c5_386 = arith.constant 5 : index
    %c0_387 = arith.constant 0 : index
    %c0_388 = arith.constant 0 : index
    %510 = vector.load %arg46[%c5_386, %c0_387, %c0_388] : memref<10x4x8xbf16, #tpu.memory_space<vmem>>, vector<1x4x8xbf16>
    %511 = vector.shape_cast %510 : vector<1x4x8xbf16> to vector<4x8xbf16>
    %512 = vector.extract_strided_slice %483 {offsets = [0, 5], sizes = [8, 734], strides = [1, 1]} : vector<8x743xbf16> to vector<8x734xbf16>
    %cst_389 = arith.constant dense<0.000000e+00> : vector<4x734xf32>
    %513 = tpu.matmul %511, %512, %cst_389 {dimension_numbers = #tpu.dot_dimension_numbers<[1], [0], [0], [1], [0, 0, 1, 1], [], []>} : vector<4x8xbf16>, vector<8x734xbf16>, vector<4x734xf32> -> vector<4x734xf32>
    %514 = arith.addf %509, %513 : vector<4x734xf32>
    %c6_390 = arith.constant 6 : index
    %c0_391 = arith.constant 0 : index
    %c0_392 = arith.constant 0 : index
    %515 = vector.load %arg46[%c6_390, %c0_391, %c0_392] : memref<10x4x8xbf16, #tpu.memory_space<vmem>>, vector<1x4x8xbf16>
    %516 = vector.shape_cast %515 : vector<1x4x8xbf16> to vector<4x8xbf16>
    %517 = vector.extract_strided_slice %483 {offsets = [0, 6], sizes = [8, 734], strides = [1, 1]} : vector<8x743xbf16> to vector<8x734xbf16>
    %cst_393 = arith.constant dense<0.000000e+00> : vector<4x734xf32>
    %518 = tpu.matmul %516, %517, %cst_393 {dimension_numbers = #tpu.dot_dimension_numbers<[1], [0], [0], [1], [0, 0, 1, 1], [], []>} : vector<4x8xbf16>, vector<8x734xbf16>, vector<4x734xf32> -> vector<4x734xf32>
    %519 = arith.addf %514, %518 : vector<4x734xf32>
    %c7 = arith.constant 7 : index
    %c0_394 = arith.constant 0 : index
    %c0_395 = arith.constant 0 : index
    %520 = vector.load %arg46[%c7, %c0_394, %c0_395] : memref<10x4x8xbf16, #tpu.memory_space<vmem>>, vector<1x4x8xbf16>
    %521 = vector.shape_cast %520 : vector<1x4x8xbf16> to vector<4x8xbf16>
    %522 = vector.extract_strided_slice %483 {offsets = [0, 7], sizes = [8, 734], strides = [1, 1]} : vector<8x743xbf16> to vector<8x734xbf16>
    %cst_396 = arith.constant dense<0.000000e+00> : vector<4x734xf32>
    %523 = tpu.matmul %521, %522, %cst_396 {dimension_numbers = #tpu.dot_dimension_numbers<[1], [0], [0], [1], [0, 0, 1, 1], [], []>} : vector<4x8xbf16>, vector<8x734xbf16>, vector<4x734xf32> -> vector<4x734xf32>
    %524 = arith.addf %519, %523 : vector<4x734xf32>
    %c8 = arith.constant 8 : index
    %c0_397 = arith.constant 0 : index
    %c0_398 = arith.constant 0 : index
    %525 = vector.load %arg46[%c8, %c0_397, %c0_398] : memref<10x4x8xbf16, #tpu.memory_space<vmem>>, vector<1x4x8xbf16>
    %526 = vector.shape_cast %525 : vector<1x4x8xbf16> to vector<4x8xbf16>
    %527 = vector.extract_strided_slice %483 {offsets = [0, 8], sizes = [8, 734], strides = [1, 1]} : vector<8x743xbf16> to vector<8x734xbf16>
    %cst_399 = arith.constant dense<0.000000e+00> : vector<4x734xf32>
    %528 = tpu.matmul %526, %527, %cst_399 {dimension_numbers = #tpu.dot_dimension_numbers<[1], [0], [0], [1], [0, 0, 1, 1], [], []>} : vector<4x8xbf16>, vector<8x734xbf16>, vector<4x734xf32> -> vector<4x734xf32>
    %529 = arith.addf %524, %528 : vector<4x734xf32>
    %c9 = arith.constant 9 : index
    %c0_400 = arith.constant 0 : index
    %c0_401 = arith.constant 0 : index
    %530 = vector.load %arg46[%c9, %c0_400, %c0_401] : memref<10x4x8xbf16, #tpu.memory_space<vmem>>, vector<1x4x8xbf16>
    %531 = vector.shape_cast %530 : vector<1x4x8xbf16> to vector<4x8xbf16>
    %532 = vector.extract_strided_slice %483 {offsets = [0, 9], sizes = [8, 734], strides = [1, 1]} : vector<8x743xbf16> to vector<8x734xbf16>
    %cst_402 = arith.constant dense<0.000000e+00> : vector<4x734xf32>
    %533 = tpu.matmul %531, %532, %cst_402 {dimension_numbers = #tpu.dot_dimension_numbers<[1], [0], [0], [1], [0, 0, 1, 1], [], []>} : vector<4x8xbf16>, vector<8x734xbf16>, vector<4x734xf32> -> vector<4x734xf32>
    %534 = arith.addf %529, %533 : vector<4x734xf32>
    %c0_403 = arith.constant 0 : index
    %c0_404 = arith.constant 0 : index
    %535 = vector.load %arg47[%c0_403, %c0_404] : memref<4x1xf32, #tpu.memory_space<vmem>>, vector<4x1xf32>
    %536 = vector.broadcast %535 : vector<4x1xf32> to vector<4x734xf32>
    %537 = arith.mulf %534, %536 : vector<4x734xf32>
    %c0_405 = arith.constant 0 : index
    %c0_406 = arith.constant 0 : index
    %538 = vector.load %arg48[%c0_405, %c0_406] : memref<4x1xf32, #tpu.memory_space<vmem>>, vector<4x1xf32>
    %539 = vector.broadcast %538 : vector<4x1xf32> to vector<4x734xf32>
    %540 = arith.addf %537, %539 : vector<4x734xf32>
    %cst_407 = arith.constant 0.000000e+00 : f32
    %541 = vector.broadcast %cst_407 : f32 to vector<4x734xf32>
    %542 = arith.maximumf %540, %541 : vector<4x734xf32>
    %543 = arith.truncf %542 : vector<4x734xf32> to vector<4x734xbf16>
    %c0_408 = arith.constant 0 : index
    %c0_409 = arith.constant 0 : index
    %544 = vector.load %arg53[%c0_408, %c0_409] : memref<734x742xbf16, #tpu.memory_space<vmem>>, vector<734x742xbf16>
    %cst_410 = arith.constant dense<0.000000e+00> : vector<4x742xf32>
    %545 = tpu.matmul %543, %544, %cst_410 {dimension_numbers = #tpu.dot_dimension_numbers<[1], [0], [0], [1], [0, 0, 1, 1], [], []>} : vector<4x734xbf16>, vector<734x742xbf16>, vector<4x742xf32> -> vector<4x742xf32>
    %546 = arith.truncf %545 : vector<4x742xf32> to vector<4x742xbf16>
    %cst_411 = arith.constant 0.000000e+00 : f32
    %547 = vector.broadcast %cst_411 : f32 to vector<4x738xf32>
    %c0_412 = arith.constant 0 : index
    %c0_413 = arith.constant 0 : index
    %c0_414 = arith.constant 0 : index
    %548 = vector.load %arg50[%c0_412, %c0_413, %c0_414] : memref<5x4x4xbf16, #tpu.memory_space<vmem>>, vector<1x4x4xbf16>
    %549 = vector.shape_cast %548 : vector<1x4x4xbf16> to vector<4x4xbf16>
    %550 = vector.extract_strided_slice %546 {offsets = [0, 0], sizes = [4, 738], strides = [1, 1]} : vector<4x742xbf16> to vector<4x738xbf16>
    %cst_415 = arith.constant dense<0.000000e+00> : vector<4x738xf32>
    %551 = tpu.matmul %549, %550, %cst_415 {dimension_numbers = #tpu.dot_dimension_numbers<[1], [0], [0], [1], [0, 0, 1, 1], [], []>} : vector<4x4xbf16>, vector<4x738xbf16>, vector<4x738xf32> -> vector<4x738xf32>
    %552 = arith.addf %547, %551 : vector<4x738xf32>
    %c1_416 = arith.constant 1 : index
    %c0_417 = arith.constant 0 : index
    %c0_418 = arith.constant 0 : index
    %553 = vector.load %arg50[%c1_416, %c0_417, %c0_418] : memref<5x4x4xbf16, #tpu.memory_space<vmem>>, vector<1x4x4xbf16>
    %554 = vector.shape_cast %553 : vector<1x4x4xbf16> to vector<4x4xbf16>
    %555 = vector.extract_strided_slice %546 {offsets = [0, 1], sizes = [4, 738], strides = [1, 1]} : vector<4x742xbf16> to vector<4x738xbf16>
    %cst_419 = arith.constant dense<0.000000e+00> : vector<4x738xf32>
    %556 = tpu.matmul %554, %555, %cst_419 {dimension_numbers = #tpu.dot_dimension_numbers<[1], [0], [0], [1], [0, 0, 1, 1], [], []>} : vector<4x4xbf16>, vector<4x738xbf16>, vector<4x738xf32> -> vector<4x738xf32>
    %557 = arith.addf %552, %556 : vector<4x738xf32>
    %c2_420 = arith.constant 2 : index
    %c0_421 = arith.constant 0 : index
    %c0_422 = arith.constant 0 : index
    %558 = vector.load %arg50[%c2_420, %c0_421, %c0_422] : memref<5x4x4xbf16, #tpu.memory_space<vmem>>, vector<1x4x4xbf16>
    %559 = vector.shape_cast %558 : vector<1x4x4xbf16> to vector<4x4xbf16>
    %560 = vector.extract_strided_slice %546 {offsets = [0, 2], sizes = [4, 738], strides = [1, 1]} : vector<4x742xbf16> to vector<4x738xbf16>
    %cst_423 = arith.constant dense<0.000000e+00> : vector<4x738xf32>
    %561 = tpu.matmul %559, %560, %cst_423 {dimension_numbers = #tpu.dot_dimension_numbers<[1], [0], [0], [1], [0, 0, 1, 1], [], []>} : vector<4x4xbf16>, vector<4x738xbf16>, vector<4x738xf32> -> vector<4x738xf32>
    %562 = arith.addf %557, %561 : vector<4x738xf32>
    %c3_424 = arith.constant 3 : index
    %c0_425 = arith.constant 0 : index
    %c0_426 = arith.constant 0 : index
    %563 = vector.load %arg50[%c3_424, %c0_425, %c0_426] : memref<5x4x4xbf16, #tpu.memory_space<vmem>>, vector<1x4x4xbf16>
    %564 = vector.shape_cast %563 : vector<1x4x4xbf16> to vector<4x4xbf16>
    %565 = vector.extract_strided_slice %546 {offsets = [0, 3], sizes = [4, 738], strides = [1, 1]} : vector<4x742xbf16> to vector<4x738xbf16>
    %cst_427 = arith.constant dense<0.000000e+00> : vector<4x738xf32>
    %566 = tpu.matmul %564, %565, %cst_427 {dimension_numbers = #tpu.dot_dimension_numbers<[1], [0], [0], [1], [0, 0, 1, 1], [], []>} : vector<4x4xbf16>, vector<4x738xbf16>, vector<4x738xf32> -> vector<4x738xf32>
    %567 = arith.addf %562, %566 : vector<4x738xf32>
    %c4_428 = arith.constant 4 : index
    %c0_429 = arith.constant 0 : index
    %c0_430 = arith.constant 0 : index
    %568 = vector.load %arg50[%c4_428, %c0_429, %c0_430] : memref<5x4x4xbf16, #tpu.memory_space<vmem>>, vector<1x4x4xbf16>
    %569 = vector.shape_cast %568 : vector<1x4x4xbf16> to vector<4x4xbf16>
    %570 = vector.extract_strided_slice %546 {offsets = [0, 4], sizes = [4, 738], strides = [1, 1]} : vector<4x742xbf16> to vector<4x738xbf16>
    %cst_431 = arith.constant dense<0.000000e+00> : vector<4x738xf32>
    %571 = tpu.matmul %569, %570, %cst_431 {dimension_numbers = #tpu.dot_dimension_numbers<[1], [0], [0], [1], [0, 0, 1, 1], [], []>} : vector<4x4xbf16>, vector<4x738xbf16>, vector<4x738xf32> -> vector<4x738xf32>
    %572 = arith.addf %567, %571 : vector<4x738xf32>
    %c0_432 = arith.constant 0 : index
    %c0_433 = arith.constant 0 : index
    %573 = vector.load %arg51[%c0_432, %c0_433] : memref<4x1xf32, #tpu.memory_space<vmem>>, vector<4x1xf32>
    %574 = vector.broadcast %573 : vector<4x1xf32> to vector<4x738xf32>
    %575 = arith.mulf %572, %574 : vector<4x738xf32>
    %c0_434 = arith.constant 0 : index
    %c0_435 = arith.constant 0 : index
    %576 = vector.load %arg52[%c0_434, %c0_435] : memref<4x1xf32, #tpu.memory_space<vmem>>, vector<4x1xf32>
    %577 = vector.broadcast %576 : vector<4x1xf32> to vector<4x738xf32>
    %578 = arith.addf %575, %577 : vector<4x738xf32>
    %cst_436 = arith.constant 0.000000e+00 : f32
    %579 = vector.broadcast %cst_436 : f32 to vector<4x738xf32>
    %580 = arith.maximumf %578, %579 : vector<4x738xf32>
    %581 = arith.truncf %580 : vector<4x738xf32> to vector<4x738xbf16>
    %c0_437 = arith.constant 0 : index
    %c0_438 = arith.constant 0 : index
    %582 = vector.load %arg57[%c0_437, %c0_438] : memref<738x1479xbf16, #tpu.memory_space<vmem>>, vector<738x1479xbf16>
    %cst_439 = arith.constant dense<0.000000e+00> : vector<4x1479xf32>
    %583 = tpu.matmul %581, %582, %cst_439 {dimension_numbers = #tpu.dot_dimension_numbers<[1], [0], [0], [1], [0, 0, 1, 1], [], []>} : vector<4x738xbf16>, vector<738x1479xbf16>, vector<4x1479xf32> -> vector<4x1479xf32>
    %584 = arith.truncf %583 : vector<4x1479xf32> to vector<4x1479xbf16>
    %cst_440 = arith.constant 0.000000e+00 : f32
    %585 = vector.broadcast %cst_440 : f32 to vector<6x1477xf32>
    %c0_441 = arith.constant 0 : index
    %c0_442 = arith.constant 0 : index
    %c0_443 = arith.constant 0 : index
    %586 = vector.load %arg54[%c0_441, %c0_442, %c0_443] : memref<3x6x4xbf16, #tpu.memory_space<vmem>>, vector<1x6x4xbf16>
    %587 = vector.shape_cast %586 : vector<1x6x4xbf16> to vector<6x4xbf16>
    %588 = vector.extract_strided_slice %584 {offsets = [0, 0], sizes = [4, 1477], strides = [1, 1]} : vector<4x1479xbf16> to vector<4x1477xbf16>
    %cst_444 = arith.constant dense<0.000000e+00> : vector<6x1477xf32>
    %589 = tpu.matmul %587, %588, %cst_444 {dimension_numbers = #tpu.dot_dimension_numbers<[1], [0], [0], [1], [0, 0, 1, 1], [], []>} : vector<6x4xbf16>, vector<4x1477xbf16>, vector<6x1477xf32> -> vector<6x1477xf32>
    %590 = arith.addf %585, %589 : vector<6x1477xf32>
    %c1_445 = arith.constant 1 : index
    %c0_446 = arith.constant 0 : index
    %c0_447 = arith.constant 0 : index
    %591 = vector.load %arg54[%c1_445, %c0_446, %c0_447] : memref<3x6x4xbf16, #tpu.memory_space<vmem>>, vector<1x6x4xbf16>
    %592 = vector.shape_cast %591 : vector<1x6x4xbf16> to vector<6x4xbf16>
    %593 = vector.extract_strided_slice %584 {offsets = [0, 1], sizes = [4, 1477], strides = [1, 1]} : vector<4x1479xbf16> to vector<4x1477xbf16>
    %cst_448 = arith.constant dense<0.000000e+00> : vector<6x1477xf32>
    %594 = tpu.matmul %592, %593, %cst_448 {dimension_numbers = #tpu.dot_dimension_numbers<[1], [0], [0], [1], [0, 0, 1, 1], [], []>} : vector<6x4xbf16>, vector<4x1477xbf16>, vector<6x1477xf32> -> vector<6x1477xf32>
    %595 = arith.addf %590, %594 : vector<6x1477xf32>
    %c2_449 = arith.constant 2 : index
    %c0_450 = arith.constant 0 : index
    %c0_451 = arith.constant 0 : index
    %596 = vector.load %arg54[%c2_449, %c0_450, %c0_451] : memref<3x6x4xbf16, #tpu.memory_space<vmem>>, vector<1x6x4xbf16>
    %597 = vector.shape_cast %596 : vector<1x6x4xbf16> to vector<6x4xbf16>
    %598 = vector.extract_strided_slice %584 {offsets = [0, 2], sizes = [4, 1477], strides = [1, 1]} : vector<4x1479xbf16> to vector<4x1477xbf16>
    %cst_452 = arith.constant dense<0.000000e+00> : vector<6x1477xf32>
    %599 = tpu.matmul %597, %598, %cst_452 {dimension_numbers = #tpu.dot_dimension_numbers<[1], [0], [0], [1], [0, 0, 1, 1], [], []>} : vector<6x4xbf16>, vector<4x1477xbf16>, vector<6x1477xf32> -> vector<6x1477xf32>
    %600 = arith.addf %595, %599 : vector<6x1477xf32>
    %c0_453 = arith.constant 0 : index
    %c0_454 = arith.constant 0 : index
    %601 = vector.load %arg55[%c0_453, %c0_454] : memref<6x1xf32, #tpu.memory_space<vmem>>, vector<6x1xf32>
    %602 = vector.broadcast %601 : vector<6x1xf32> to vector<6x1477xf32>
    %603 = arith.mulf %600, %602 : vector<6x1477xf32>
    %c0_455 = arith.constant 0 : index
    %c0_456 = arith.constant 0 : index
    %604 = vector.load %arg56[%c0_455, %c0_456] : memref<6x1xf32, #tpu.memory_space<vmem>>, vector<6x1xf32>
    %605 = vector.broadcast %604 : vector<6x1xf32> to vector<6x1477xf32>
    %606 = arith.addf %603, %605 : vector<6x1477xf32>
    %c0_457 = arith.constant 0 : index
    %c0_458 = arith.constant 0 : index
    %c0_459 = arith.constant 0 : index
    %607 = vector.load %arg58[%c0_457, %c0_458, %c0_459] : memref<1x6x1477xf32, #tpu.memory_space<vmem>>, vector<1x6x1477xf32>
    %608 = vector.shape_cast %607 : vector<1x6x1477xf32> to vector<6x1477xf32>
    %609 = vector.shape_cast %606 : vector<6x1477xf32> to vector<1x6x1477xf32>
    tpu.vector_store %arg58[%c0_457, %c0_458, %c0_459], %609 {strides = array<i32>} : memref<1x6x1477xf32, #tpu.memory_space<vmem>>, vector<1x6x1477xf32>,
    return
  }
  func.func @transform_0(%arg0: i32) -> (i32, i32, i32) {
    %c0_i32 = arith.constant 0 : i32
    %c0_i32_0 = arith.constant 0 : i32
    %c0_i32_1 = arith.constant 0 : i32
    return %arg0, %c0_i32, %c0_i32_0 : i32, i32, i32
  }
  func.func @transform_1(%arg0: i32) -> (i32, i32, i32) {
    %c0_i32 = arith.constant 0 : i32
    %c0_i32_0 = arith.constant 0 : i32
    %c0_i32_1 = arith.constant 0 : i32
    %c0_i32_2 = arith.constant 0 : i32
    return %c0_i32, %c0_i32_0, %c0_i32_1 : i32, i32, i32
  }
  func.func @transform_2(%arg0: i32) -> (i32, i32) {
    %c0_i32 = arith.constant 0 : i32
    %c0_i32_0 = arith.constant 0 : i32
    %c0_i32_1 = arith.constant 0 : i32
    return %c0_i32, %c0_i32_0 : i32, i32
  }
  func.func @transform_3(%arg0: i32) -> (i32, i32) {
    %c0_i32 = arith.constant 0 : i32
    %c0_i32_0 = arith.constant 0 : i32
    %c0_i32_1 = arith.constant 0 : i32
    return %c0_i32, %c0_i32_0 : i32, i32
  }
  func.func @transform_4(%arg0: i32) -> (i32, i32) {
    %c0_i32 = arith.constant 0 : i32
    %c0_i32_0 = arith.constant 0 : i32
    %c0_i32_1 = arith.constant 0 : i32
    return %c0_i32, %c0_i32_0 : i32, i32
  }
  func.func @transform_5(%arg0: i32) -> (i32, i32, i32) {
    %c0_i32 = arith.constant 0 : i32
    %c0_i32_0 = arith.constant 0 : i32
    %c0_i32_1 = arith.constant 0 : i32
    %c0_i32_2 = arith.constant 0 : i32
    return %c0_i32, %c0_i32_0, %c0_i32_1 : i32, i32, i32
  }
  func.func @transform_6(%arg0: i32) -> (i32, i32) {
    %c0_i32 = arith.constant 0 : i32
    %c0_i32_0 = arith.constant 0 : i32
    %c0_i32_1 = arith.constant 0 : i32
    return %c0_i32, %c0_i32_0 : i32, i32
  }
  func.func @transform_7(%arg0: i32) -> (i32, i32) {
    %c0_i32 = arith.constant 0 : i32
    %c0_i32_0 = arith.constant 0 : i32
    %c0_i32_1 = arith.constant 0 : i32
    return %c0_i32, %c0_i32_0 : i32, i32
  }
  func.func @transform_8(%arg0: i32) -> (i32, i32) {
    %c0_i32 = arith.constant 0 : i32
    %c0_i32_0 = arith.constant 0 : i32
    %c0_i32_1 = arith.constant 0 : i32
    return %c0_i32, %c0_i32_0 : i32, i32
  }
  func.func @transform_9(%arg0: i32) -> (i32, i32, i32) {
    %c0_i32 = arith.constant 0 : i32
    %c0_i32_0 = arith.constant 0 : i32
    %c0_i32_1 = arith.constant 0 : i32
    %c0_i32_2 = arith.constant 0 : i32
    return %c0_i32, %c0_i32_0, %c0_i32_1 : i32, i32, i32
  }
  func.func @transform_10(%arg0: i32) -> (i32, i32) {
    %c0_i32 = arith.constant 0 : i32
    %c0_i32_0 = arith.constant 0 : i32
    %c0_i32_1 = arith.constant 0 : i32
    return %c0_i32, %c0_i32_0 : i32, i32
  }
  func.func @transform_11(%arg0: i32) -> (i32, i32) {
    %c0_i32 = arith.constant 0 : i32
    %c0_i32_0 = arith.constant 0 : i32
    %c0_i32_1 = arith.constant 0 : i32
    return %c0_i32, %c0_i32_0 : i32, i32
  }
  func.func @transform_12(%arg0: i32) -> (i32, i32) {
    %c0_i32 = arith.constant 0 : i32
    %c0_i32_0 = arith.constant 0 : i32
    %c0_i32_1 = arith.constant 0 : i32
    return %c0_i32, %c0_i32_0 : i32, i32
  }
  func.func @transform_13(%arg0: i32) -> (i32, i32, i32) {
    %c0_i32 = arith.constant 0 : i32
    %c0_i32_0 = arith.constant 0 : i32
    %c0_i32_1 = arith.constant 0 : i32
    %c0_i32_2 = arith.constant 0 : i32
    return %c0_i32, %c0_i32_0, %c0_i32_1 : i32, i32, i32
  }
  func.func @transform_14(%arg0: i32) -> (i32, i32) {
    %c0_i32 = arith.constant 0 : i32
    %c0_i32_0 = arith.constant 0 : i32
    %c0_i32_1 = arith.constant 0 : i32
    return %c0_i32, %c0_i32_0 : i32, i32
  }
  func.func @transform_15(%arg0: i32) -> (i32, i32) {
    %c0_i32 = arith.constant 0 : i32
    %c0_i32_0 = arith.constant 0 : i32
    %c0_i32_1 = arith.constant 0 : i32
    return %c0_i32, %c0_i32_0 : i32, i32
  }
  func.func @transform_16(%arg0: i32) -> (i32, i32) {
    %c0_i32 = arith.constant 0 : i32
    %c0_i32_0 = arith.constant 0 : i32
    %c0_i32_1 = arith.constant 0 : i32
    return %c0_i32, %c0_i32_0 : i32, i32
  }
  func.func @transform_17(%arg0: i32) -> (i32, i32, i32) {
    %c0_i32 = arith.constant 0 : i32
    %c0_i32_0 = arith.constant 0 : i32
    %c0_i32_1 = arith.constant 0 : i32
    %c0_i32_2 = arith.constant 0 : i32
    return %c0_i32, %c0_i32_0, %c0_i32_1 : i32, i32, i32
  }
  func.func @transform_18(%arg0: i32) -> (i32, i32) {
    %c0_i32 = arith.constant 0 : i32
    %c0_i32_0 = arith.constant 0 : i32
    %c0_i32_1 = arith.constant 0 : i32
    return %c0_i32, %c0_i32_0 : i32, i32
  }
  func.func @transform_19(%arg0: i32) -> (i32, i32) {
    %c0_i32 = arith.constant 0 : i32
    %c0_i32_0 = arith.constant 0 : i32
    %c0_i32_1 = arith.constant 0 : i32
    return %c0_i32, %c0_i32_0 : i32, i32
  }
  func.func @transform_20(%arg0: i32) -> (i32, i32) {
    %c0_i32 = arith.constant 0 : i32
    %c0_i32_0 = arith.constant 0 : i32
    %c0_i32_1 = arith.constant 0 : i32
    return %c0_i32, %c0_i32_0 : i32, i32
  }
  func.func @transform_21(%arg0: i32) -> (i32, i32, i32) {
    %c0_i32 = arith.constant 0 : i32
    %c0_i32_0 = arith.constant 0 : i32
    %c0_i32_1 = arith.constant 0 : i32
    %c0_i32_2 = arith.constant 0 : i32
    return %c0_i32, %c0_i32_0, %c0_i32_1 : i32, i32, i32
  }
  func.func @transform_22(%arg0: i32) -> (i32, i32) {
    %c0_i32 = arith.constant 0 : i32
    %c0_i32_0 = arith.constant 0 : i32
    %c0_i32_1 = arith.constant 0 : i32
    return %c0_i32, %c0_i32_0 : i32, i32
  }
  func.func @transform_23(%arg0: i32) -> (i32, i32) {
    %c0_i32 = arith.constant 0 : i32
    %c0_i32_0 = arith.constant 0 : i32
    %c0_i32_1 = arith.constant 0 : i32
    return %c0_i32, %c0_i32_0 : i32, i32
  }
  func.func @transform_24(%arg0: i32) -> (i32, i32) {
    %c0_i32 = arith.constant 0 : i32
    %c0_i32_0 = arith.constant 0 : i32
    %c0_i32_1 = arith.constant 0 : i32
    return %c0_i32, %c0_i32_0 : i32, i32
  }
  func.func @transform_25(%arg0: i32) -> (i32, i32, i32) {
    %c0_i32 = arith.constant 0 : i32
    %c0_i32_0 = arith.constant 0 : i32
    %c0_i32_1 = arith.constant 0 : i32
    %c0_i32_2 = arith.constant 0 : i32
    return %c0_i32, %c0_i32_0, %c0_i32_1 : i32, i32, i32
  }
  func.func @transform_26(%arg0: i32) -> (i32, i32) {
    %c0_i32 = arith.constant 0 : i32
    %c0_i32_0 = arith.constant 0 : i32
    %c0_i32_1 = arith.constant 0 : i32
    return %c0_i32, %c0_i32_0 : i32, i32
  }
  func.func @transform_27(%arg0: i32) -> (i32, i32) {
    %c0_i32 = arith.constant 0 : i32
    %c0_i32_0 = arith.constant 0 : i32
    %c0_i32_1 = arith.constant 0 : i32
    return %c0_i32, %c0_i32_0 : i32, i32
  }
  func.func @transform_28(%arg0: i32) -> (i32, i32) {
    %c0_i32 = arith.constant 0 : i32
    %c0_i32_0 = arith.constant 0 : i32
    %c0_i32_1 = arith.constant 0 : i32
    return %c0_i32, %c0_i32_0 : i32, i32
  }
  func.func @transform_29(%arg0: i32) -> (i32, i32, i32) {
    %c0_i32 = arith.constant 0 : i32
    %c0_i32_0 = arith.constant 0 : i32
    %c0_i32_1 = arith.constant 0 : i32
    %c0_i32_2 = arith.constant 0 : i32
    return %c0_i32, %c0_i32_0, %c0_i32_1 : i32, i32, i32
  }
  func.func @transform_30(%arg0: i32) -> (i32, i32) {
    %c0_i32 = arith.constant 0 : i32
    %c0_i32_0 = arith.constant 0 : i32
    %c0_i32_1 = arith.constant 0 : i32
    return %c0_i32, %c0_i32_0 : i32, i32
  }
  func.func @transform_31(%arg0: i32) -> (i32, i32) {
    %c0_i32 = arith.constant 0 : i32
    %c0_i32_0 = arith.constant 0 : i32
    %c0_i32_1 = arith.constant 0 : i32
    return %c0_i32, %c0_i32_0 : i32, i32
  }
  func.func @transform_32(%arg0: i32) -> (i32, i32) {
    %c0_i32 = arith.constant 0 : i32
    %c0_i32_0 = arith.constant 0 : i32
    %c0_i32_1 = arith.constant 0 : i32
    return %c0_i32, %c0_i32_0 : i32, i32
  }
  func.func @transform_33(%arg0: i32) -> (i32, i32, i32) {
    %c0_i32 = arith.constant 0 : i32
    %c0_i32_0 = arith.constant 0 : i32
    %c0_i32_1 = arith.constant 0 : i32
    %c0_i32_2 = arith.constant 0 : i32
    return %c0_i32, %c0_i32_0, %c0_i32_1 : i32, i32, i32
  }
  func.func @transform_34(%arg0: i32) -> (i32, i32) {
    %c0_i32 = arith.constant 0 : i32
    %c0_i32_0 = arith.constant 0 : i32
    %c0_i32_1 = arith.constant 0 : i32
    return %c0_i32, %c0_i32_0 : i32, i32
  }
  func.func @transform_35(%arg0: i32) -> (i32, i32) {
    %c0_i32 = arith.constant 0 : i32
    %c0_i32_0 = arith.constant 0 : i32
    %c0_i32_1 = arith.constant 0 : i32
    return %c0_i32, %c0_i32_0 : i32, i32
  }
  func.func @transform_36(%arg0: i32) -> (i32, i32) {
    %c0_i32 = arith.constant 0 : i32
    %c0_i32_0 = arith.constant 0 : i32
    %c0_i32_1 = arith.constant 0 : i32
    return %c0_i32, %c0_i32_0 : i32, i32
  }
  func.func @transform_37(%arg0: i32) -> (i32, i32, i32) {
    %c0_i32 = arith.constant 0 : i32
    %c0_i32_0 = arith.constant 0 : i32
    %c0_i32_1 = arith.constant 0 : i32
    %c0_i32_2 = arith.constant 0 : i32
    return %c0_i32, %c0_i32_0, %c0_i32_1 : i32, i32, i32
  }
  func.func @transform_38(%arg0: i32) -> (i32, i32) {
    %c0_i32 = arith.constant 0 : i32
    %c0_i32_0 = arith.constant 0 : i32
    %c0_i32_1 = arith.constant 0 : i32
    return %c0_i32, %c0_i32_0 : i32, i32
  }
  func.func @transform_39(%arg0: i32) -> (i32, i32) {
    %c0_i32 = arith.constant 0 : i32
    %c0_i32_0 = arith.constant 0 : i32
    %c0_i32_1 = arith.constant 0 : i32
    return %c0_i32, %c0_i32_0 : i32, i32
  }
  func.func @transform_40(%arg0: i32) -> (i32, i32) {
    %c0_i32 = arith.constant 0 : i32
    %c0_i32_0 = arith.constant 0 : i32
    %c0_i32_1 = arith.constant 0 : i32
    return %c0_i32, %c0_i32_0 : i32, i32
  }
  func.func @transform_41(%arg0: i32) -> (i32, i32, i32) {
    %c0_i32 = arith.constant 0 : i32
    %c0_i32_0 = arith.constant 0 : i32
    %c0_i32_1 = arith.constant 0 : i32
    %c0_i32_2 = arith.constant 0 : i32
    return %c0_i32, %c0_i32_0, %c0_i32_1 : i32, i32, i32
  }
  func.func @transform_42(%arg0: i32) -> (i32, i32) {
    %c0_i32 = arith.constant 0 : i32
    %c0_i32_0 = arith.constant 0 : i32
    %c0_i32_1 = arith.constant 0 : i32
    return %c0_i32, %c0_i32_0 : i32, i32
  }
  func.func @transform_43(%arg0: i32) -> (i32, i32) {
    %c0_i32 = arith.constant 0 : i32
    %c0_i32_0 = arith.constant 0 : i32
    %c0_i32_1 = arith.constant 0 : i32
    return %c0_i32, %c0_i32_0 : i32, i32
  }
  func.func @transform_44(%arg0: i32) -> (i32, i32) {
    %c0_i32 = arith.constant 0 : i32
    %c0_i32_0 = arith.constant 0 : i32
    %c0_i32_1 = arith.constant 0 : i32
    return %c0_i32, %c0_i32_0 : i32, i32
  }
  func.func @transform_45(%arg0: i32) -> (i32, i32, i32) {
    %c0_i32 = arith.constant 0 : i32
    %c0_i32_0 = arith.constant 0 : i32
    %c0_i32_1 = arith.constant 0 : i32
    %c0_i32_2 = arith.constant 0 : i32
    return %c0_i32, %c0_i32_0, %c0_i32_1 : i32, i32, i32
  }
  func.func @transform_46(%arg0: i32) -> (i32, i32) {
    %c0_i32 = arith.constant 0 : i32
    %c0_i32_0 = arith.constant 0 : i32
    %c0_i32_1 = arith.constant 0 : i32
    return %c0_i32, %c0_i32_0 : i32, i32
  }
  func.func @transform_47(%arg0: i32) -> (i32, i32) {
    %c0_i32 = arith.constant 0 : i32
    %c0_i32_0 = arith.constant 0 : i32
    %c0_i32_1 = arith.constant 0 : i32
    return %c0_i32, %c0_i32_0 : i32, i32
  }
  func.func @transform_48(%arg0: i32) -> (i32, i32) {
    %c0_i32 = arith.constant 0 : i32
    %c0_i32_0 = arith.constant 0 : i32
    %c0_i32_1 = arith.constant 0 : i32
    return %c0_i32, %c0_i32_0 : i32, i32
  }
  func.func @transform_49(%arg0: i32) -> (i32, i32, i32) {
    %c0_i32 = arith.constant 0 : i32
    %c0_i32_0 = arith.constant 0 : i32
    %c0_i32_1 = arith.constant 0 : i32
    %c0_i32_2 = arith.constant 0 : i32
    return %c0_i32, %c0_i32_0, %c0_i32_1 : i32, i32, i32
  }
  func.func @transform_50(%arg0: i32) -> (i32, i32) {
    %c0_i32 = arith.constant 0 : i32
    %c0_i32_0 = arith.constant 0 : i32
    %c0_i32_1 = arith.constant 0 : i32
    return %c0_i32, %c0_i32_0 : i32, i32
  }
  func.func @transform_51(%arg0: i32) -> (i32, i32) {
    %c0_i32 = arith.constant 0 : i32
    %c0_i32_0 = arith.constant 0 : i32
    %c0_i32_1 = arith.constant 0 : i32
    return %c0_i32, %c0_i32_0 : i32, i32
  }
  func.func @transform_52(%arg0: i32) -> (i32, i32) {
    %c0_i32 = arith.constant 0 : i32
    %c0_i32_0 = arith.constant 0 : i32
    %c0_i32_1 = arith.constant 0 : i32
    return %c0_i32, %c0_i32_0 : i32, i32
  }
  func.func @transform_53(%arg0: i32) -> (i32, i32, i32) {
    %c0_i32 = arith.constant 0 : i32
    %c0_i32_0 = arith.constant 0 : i32
    %c0_i32_1 = arith.constant 0 : i32
    %c0_i32_2 = arith.constant 0 : i32
    return %c0_i32, %c0_i32_0, %c0_i32_1 : i32, i32, i32
  }
  func.func @transform_54(%arg0: i32) -> (i32, i32) {
    %c0_i32 = arith.constant 0 : i32
    %c0_i32_0 = arith.constant 0 : i32
    %c0_i32_1 = arith.constant 0 : i32
    return %c0_i32, %c0_i32_0 : i32, i32
  }
  func.func @transform_55(%arg0: i32) -> (i32, i32) {
    %c0_i32 = arith.constant 0 : i32
    %c0_i32_0 = arith.constant 0 : i32
    %c0_i32_1 = arith.constant 0 : i32
    return %c0_i32, %c0_i32_0 : i32, i32
  }
  func.func @transform_56(%arg0: i32) -> (i32, i32) {
    %c0_i32 = arith.constant 0 : i32
    %c0_i32_0 = arith.constant 0 : i32
    %c0_i32_1 = arith.constant 0 : i32
    return %c0_i32, %c0_i32_0 : i32, i32
  }
  func.func @transform_57(%arg0: i32) -> (i32, i32, i32) {
    %c0_i32 = arith.constant 0 : i32
    %c0_i32_0 = arith.constant 0 : i32
    %c0_i32_1 = arith.constant 0 : i32
    return %arg0, %c0_i32, %c0_i32_0 : i32, i32, i32
  }
}

</mosaic_0001>

<bundles_post_ra>
// kernel: generator_forward.1
= control target key start
LH: loop header
LB: loop body
LE: loop exit
PB: predicated region body
PF: predicated region fallthrough
CT: control target
= control target key end

     0   :  { %s22497_s6 = smov 1   ;;  %s22498_s10 = smov 2   ;;  %s25582_s0 = inlined_call_operand.smem [shape: u32[58], index: -1, kind: input, shape index: {}] }
   0x1   :  { %s22575_s5 = sld [smem:[%s25582_s0]]   ;;  %s22499_s14 = smov 3  }
   0x2   :  { %s22580_s9 = sld [smem:[%s25582_s0 + %s22497_s6]]   ;;  %s22500_s18 = smov 4  }
   0x3   :  { %s22585_s13 = sld [smem:[%s25582_s0 + %s22498_s10]]   ;;  %s22501_s22 = smov 5  }
   0x4   :  { %s22590_s17 = sld [smem:[%s25582_s0 + %s22499_s14]]   ;;  %s22502_s26 = smov 6  }
   0x5   :  { %s22595_s21 = sld [smem:[%s25582_s0 + %s22500_s18]]   ;;  %s22503_s30 = smov 7  }
   0x6   :  { %s22600_s25 = sld [smem:[%s25582_s0 + %s22501_s22]]   ;;  %s22504_s4 = smov 8  }
   0x7   :  { %25639 = sst [smem:[#allocation2_spill]] %s22575_s5  ;;  %s22505_s10 = smov 9  }
   0x8   :  { %25640 = sst [smem:[#allocation3_spill]] %s22580_s9  ;;  %s22506_s15 = smov 10  }
   0x9   :  { %s22605_s29 = sld [smem:[%s25582_s0 + %s22502_s26]]   ;;  %s22507_s20 = smov 11  }
   0xa   :  { %s22610_s3 = sld [smem:[%s25582_s0 + %s22503_s30]]   ;;  %s22508_s26 = smov 12  }
   0xb   :  { %s22615_s8 = sld [smem:[%s25582_s0 + %s22504_s4]]   ;;  %s22509_s1 = smov 13  }
   0xc   :  { %s22620_s14 = sld [smem:[%s25582_s0 + %s22505_s10]]   ;;  %s22510_s7 = smov 14  }
   0xd   :  { %s22625_s19 = sld [smem:[%s25582_s0 + %s22506_s15]]   ;;  %s22511_s15 = smov 15  }
   0xe   :  { %s22630_s24 = sld [smem:[%s25582_s0 + %s22507_s20]]   ;;  %s22512_s22 = smov 16  }
   0xf   :  { %s22635_s30 = sld [smem:[%s25582_s0 + %s22508_s26]]   ;;  %s22513_s28 = smov 17  }
  0x10   :  { %25641 = sst [smem:[#allocation4_spill]] %s22610_s3 }
  0x11   :  { %25642 = sst [smem:[#allocation5_spill]] %s22615_s8 }
  0x12   :  { %s22640_s6 = sld [smem:[%s25582_s0 + %s22509_s1]]  }
  0x13   :  { %s22645_s12 = sld [smem:[%s25582_s0 + %s22510_s7]]   ;;  %s22514_s7 = smov 18  }
  0x14   :  { %s22650_s20 = sld [smem:[%s25582_s0 + %s22511_s15]]   ;;  %s22515_s15 = smov 19  }
  0x15   :  { %s22655_s27 = sld [smem:[%s25582_s0 + %s22512_s22]]   ;;  %s22516_s22 = smov 20  }
  0x16   :  { %s22660_s4 = sld [smem:[%s25582_s0 + %s22513_s28]]   ;;  %s22517_s28 = smov 21  }
  0x18   :  { %25643 = sst [smem:[#allocation6_spill]] %s22640_s6 }
  0x19   :  { %25644 = sst [smem:[#allocation7_spill]] %s22645_s12 }
  0x1a   :  { %25645 = sst [smem:[#allocation8_spill]] %s22650_s20 }
  0x1b   :  { %s22665_s12 = sld [smem:[%s25582_s0 + %s22514_s7]]   ;;  %s22518_s7 = smov 22  }
  0x1c   :  { %25646 = sst [smem:[#allocation9_spill]] %s22660_s4 }
  0x1d   :  { %s22670_s20 = sld [smem:[%s25582_s0 + %s22515_s15]]   ;;  %s22519_s15 = smov 23  }
  0x1e   :  { %s22675_s6 = sld [smem:[%s25582_s0 + %s22516_s22]]   ;;  %s22520_s22 = smov 24  }
  0x1f   :  { %s22680_s4 = sld [smem:[%s25582_s0 + %s22517_s28]]   ;;  %s22521_s28 = smov 25  }
  0x21   :  { %25647 = sst [smem:[#allocation10_spill]] %s22665_s12 }
  0x22   :  { %s22685_s12 = sld [smem:[%s25582_s0 + %s22518_s7]]   ;;  %s22522_s7 = smov 26  }
  0x23   :  { %25648 = sst [smem:[#allocation11_spill]] %s22670_s20 }
  0x24   :  { %25649 = sst [smem:[#allocation12_spill]] %s22675_s6 }
  0x25   :  { %25650 = sst [smem:[#allocation13_spill]] %s22680_s4 }
  0x26   :  { %s22690_s20 = sld [smem:[%s25582_s0 + %s22519_s15]]   ;;  %s22523_s15 = smov 27  }
  0x27   :  { %s22695_s6 = sld [smem:[%s25582_s0 + %s22520_s22]]   ;;  %s22524_s22 = smov 28  }
  0x28   :  { %25651 = sst [smem:[#allocation14_spill]] %s22685_s12 }
  0x29   :  { %s22700_s4 = sld [smem:[%s25582_s0 + %s22521_s28]]   ;;  %s22525_s28 = smov 29  }
  0x2a   :  { %s22705_s12 = sld [smem:[%s25582_s0 + %s22522_s7]]   ;;  %s22526_s7 = smov 30  }
  0x2c   :  { %25652 = sst [smem:[#allocation15_spill]] %s22690_s20 }
  0x2d   :  { %25653 = sst [smem:[#allocation16_spill]] %s22695_s6 }
  0x2e   :  { %s22710_s20 = sld [smem:[%s25582_s0 + %s22523_s15]]   ;;  %s22527_s15 = smov 31  }
  0x2f   :  { %25654 = sst [smem:[#allocation17_spill]] %s22700_s4 }
  0x30   :  { %25655 = sst [smem:[#allocation18_spill]] %s22705_s12 }
  0x31   :  { %s22715_s6 = sld [smem:[%s25582_s0 + %s22524_s22]]   ;;  %s22528_s22 = smov 32  }
  0x32   :  { %s22720_s4 = sld [smem:[%s25582_s0 + %s22525_s28]]   ;;  %s22529_s28 = smov 33  }
  0x33   :  { %s22725_s12 = sld [smem:[%s25582_s0 + %s22526_s7]]   ;;  %s22530_s7 = smov 34  }
  0x34   :  { %25656 = sst [smem:[#allocation19_spill]] %s22710_s20 }
  0x35   :  { %s22730_s20 = sld [smem:[%s25582_s0 + %s22527_s15]]   ;;  %s22531_s15 = smov 35  }
  0x37   :  { %25657 = sst [smem:[#allocation20_spill]] %s22715_s6 }
  0x38   :  { %25658 = sst [smem:[#allocation21_spill]] %s22720_s4 }
  0x39   :  { %25659 = sst [smem:[#allocation22_spill]] %s22725_s12 }
  0x3a   :  { %s22735_s6 = sld [smem:[%s25582_s0 + %s22528_s22]]   ;;  %s22532_s22 = smov 36  }
  0x3b   :  { %25660 = sst [smem:[#allocation23_spill]] %s22730_s20 }
  0x3c   :  { %s22740_s4 = sld [smem:[%s25582_s0 + %s22529_s28]]   ;;  %s22533_s28 = smov 37  }
  0x3d   :  { %s22745_s12 = sld [smem:[%s25582_s0 + %s22530_s7]]   ;;  %s22534_s7 = smov 38  }
  0x3e   :  { %s22750_s20 = sld [smem:[%s25582_s0 + %s22531_s15]]   ;;  %s22535_s15 = smov 39  }
  0x40   :  { %25661 = sst [smem:[#allocation24_spill]] %s22735_s6 }
  0x41   :  { %s22755_s6 = sld [smem:[%s25582_s0 + %s22532_s22]]   ;;  %s22536_s22 = smov 40  }
  0x42   :  { %25662 = sst [smem:[#allocation25_spill]] %s22740_s4 }
  0x43   :  { %25663 = sst [smem:[#allocation26_spill]] %s22745_s12 }
  0x44   :  { %25664 = sst [smem:[#allocation27_spill]] %s22750_s20 }
  0x45   :  { %s22760_s4 = sld [smem:[%s25582_s0 + %s22533_s28]]   ;;  %s22537_s28 = smov 41  }
  0x46   :  { %s22765_s12 = sld [smem:[%s25582_s0 + %s22534_s7]]   ;;  %s22538_s7 = smov 42  }
  0x47   :  { %25665 = sst [smem:[#allocation28_spill]] %s22755_s6 }
  0x48   :  { %s22770_s20 = sld [smem:[%s25582_s0 + %s22535_s15]]   ;;  %s22539_s15 = smov 43  }
  0x49   :  { %s22775_s6 = sld [smem:[%s25582_s0 + %s22536_s22]]   ;;  %s22540_s22 = smov 44  }
  0x4b   :  { %25666 = sst [smem:[#allocation29_spill]] %s22760_s4 }
  0x4c   :  { %25667 = sst [smem:[#allocation30_spill]] %s22765_s12 }
  0x4d   :  { %s22780_s4 = sld [smem:[%s25582_s0 + %s22537_s28]]   ;;  %s22541_s28 = smov 45  }
  0x4e   :  { %25668 = sst [smem:[#allocation31_spill]] %s22770_s20 }
  0x4f   :  { %25669 = sst [smem:[#allocation32_spill]] %s22775_s6 }
  0x50   :  { %s22785_s12 = sld [smem:[%s25582_s0 + %s22538_s7]]   ;;  %s22542_s7 = smov 46  }
  0x51   :  { %s22790_s20 = sld [smem:[%s25582_s0 + %s22539_s15]]   ;;  %s22543_s15 = smov 47  }
  0x52   :  { %s22795_s6 = sld [smem:[%s25582_s0 + %s22540_s22]]   ;;  %s22544_s22 = smov 48  }
  0x53   :  { %25670 = sst [smem:[#allocation33_spill]] %s22780_s4 }
  0x54   :  { %s22800_s4 = sld [smem:[%s25582_s0 + %s22541_s28]]   ;;  %s22545_s28 = smov 49  }
  0x56   :  { %25671 = sst [smem:[#allocation34_spill]] %s22785_s12 }
  0x57   :  { %25672 = sst [smem:[#allocation35_spill]] %s22790_s20 }
  0x58   :  { %25673 = sst [smem:[#allocation36_spill]] %s22795_s6 }
  0x59   :  { %s22805_s12 = sld [smem:[%s25582_s0 + %s22542_s7]]   ;;  %s22546_s7 = smov 50  }
  0x5a   :  { %25674 = sst [smem:[#allocation37_spill]] %s22800_s4 }
  0x5b   :  { %s22810_s20 = sld [smem:[%s25582_s0 + %s22543_s15]]   ;;  %s22547_s15 = smov 51  }
  0x5c   :  { %s22815_s6 = sld [smem:[%s25582_s0 + %s22544_s22]]   ;;  %s22548_s22 = smov 52  }
  0x5d   :  { %s22820_s4 = sld [smem:[%s25582_s0 + %s22545_s28]]   ;;  %s22549_s28 = smov 53  }
  0x5f   :  { %25675 = sst [smem:[#allocation38_spill]] %s22805_s12 }
  0x60   :  { %s22825_s12 = sld [smem:[%s25582_s0 + %s22546_s7]]   ;;  %s22550_s7 = smov 54  }
  0x61   :  { %25676 = sst [smem:[#allocation39_spill]] %s22810_s20 }
  0x62   :  { %25677 = sst [smem:[#allocation40_spill]] %s22815_s6 }
  0x63   :  { %25678 = sst [smem:[#allocation41_spill]] %s22820_s4 }
  0x64   :  { %s22830_s20 = sld [smem:[%s25582_s0 + %s22547_s15]]   ;;  %s22551_s15 = smov 55  }
  0x65   :  { %s22835_s6 = sld [smem:[%s25582_s0 + %s22548_s22]]   ;;  %s22552_s22 = smov 56  }
  0x66   :  { %25679 = sst [smem:[#allocation42_spill]] %s22825_s12 }
  0x67   :  { %s22840_s4 = sld [smem:[%s25582_s0 + %s22549_s28]]   ;;  %s22553_s28 = smov 57  }
  0x68   :  { %s22845_s12 = sld [smem:[%s25582_s0 + %s22550_s7]]   ;;  %s22862_s7 = smov 0  }
  0x6a   :  { %25680 = sst [smem:[#allocation43_spill]] %s22830_s20 }
  0x6b   :  { %25681 = sst [smem:[#allocation44_spill]] %s22835_s6 }
  0x6c   :  { %s22850_s20 = sld [smem:[%s25582_s0 + %s22551_s15]]  }
  0x6d   :  { %25682 = sst [smem:[#allocation45_spill]] %s22840_s4 }
  0x6e   :  { %s22855_s6 = sld [smem:[%s25582_s0 + %s22552_s22]]  }
  0x6f   :  { %s22860_s4 = sld [smem:[%s25582_s0 + %s22553_s28]]  }
  0x70 LB: > { %s25683_s9 = sld [smem:[#allocation3_spill]]  ;;  %s18602_s10 = sadd.s32 4294967295, %s22495_s7   ;;  %s22495_s7 = sphi %s22862_s7, %s125_s7  }
  0x71   : > { %s25684_s3 = sld [smem:[#allocation4_spill]]  ;;  %p18606_p0 = scmp.ge.s32.totalorder %s22495_s7, 1 }
  0x72   : > { %p1545_p1 = scmp.lt.s32.totalorder %s22495_s7, 3 }
  0x74   : > { %p1546_p2 = pnand %p18606_p0, %p1545_p1 }
  0x75   : > { %s25685_s5 = sld [smem:[#allocation2_spill]] (!%p1546_p2)  ;;  %p1677_p3 = scmp.lt.s32.totalorder (!%p1546_p2), %s18602_s10, 1 }
  0x76   : > { %1549 = sbr.rel (%p1546_p2) target bundleno = 8825 (0x2279), region = 248  ;;  %s25617_s15 = smov (!%p1546_p2), 127  }
  0x77   : > { %s25623_s16 = smov (!%p1546_p2), 126   ;;  %s25686_s8 = sld [smem:[#allocation5_spill]] (!%p1546_p2) }
  0x78   : > { %s25613_s18 = smov (!%p1546_p2), 125   ;;  %s25615_s22 = smov (!%p1546_p2), 124  }
  0x79   : > { %s25609_s23 = smov (!%p1546_p2), 123   ;;  %s25611_s26 = smov (!%p1546_p2), 122  }
  0x7a   : > { %s25687_s28 = sld [smem:[#allocation6_spill]] (!%p1546_p2) }
  0x7b   : > { %v1691_v0 = vld [vmem:[%s22595_s21] sm:$0x1]  ;;  %vm1696_vm0 = vcmask 1040384   ;;  %v22554_v1 = vmov 0.0   ;;  %v22555_v2 = vmov 0   ;;  %vm22556_vm1 = vmmov 0  }
  0x7c   : > { %20310 = vmatprep.subr.bf16.mxu0 %v22554_v1  ;;  %v1698_v3 = vsel %vm1696_vm0, 65535, %v22555_v2  ;;  %20312 = vmatprep.mubr.msk.bf16.mxu0 %vm22556_vm1, %v22554_v1  ;;  %s25734_s10 = smov (!%p1677_p3, %s18602_s10), 1  ;;  %vm1692_vm2 = vcmask 7168   ;;  %v20897_v8 = vld [vmem:[%s25683_s9 + $0x20] sm:$0xff]   ;;  %vm1785_vm3 = vcmask 130048   ;;  %v20900_v15 = vld [vmem:[%s25683_s9 + $0x8] sm:$0xff]  }
  0x7d   : > { %v1700_v4 = vand.u32 %v1698_v3, %v1691_v0  ;;  %20895 = vset.pattern.permute.xlu1 %v22555_v2  ;;  %20896 = vset.pattern.permute.xlu0 %v22555_v2  ;;  %s20107_s0 = sshll.u32 %s25734_s10, 4  ;;  %v20898_v9 = vld [vmem:[%s25683_s9] sm:$0xff]   ;;  %v20902_v16 = vld [vmem:[%s25683_s9 + $0x10] sm:$0xff]   ;;  %v20904_v17 = vld [vmem:[%s25683_s9 + $0x18] sm:$0xff]   ;;  %vm2215_vm4 = vcmask 1041408   ;;  %v22559_v43 = vmov 65535  }
  0x7e   : > { %s1681_s11 = scalar_lea.vmem %s25685_s5, %s20107_s0  ;;  %20318 = vmatprep.mubr.msk.bf16.mxu1 %vm1785_vm3, %v20897_v8  ;;  %v2077_v18 = vld [vmem:[%s22585_s13] sm:$0xff]  ;;  %v2079_v19 = vld [vmem:[%s22585_s13 + $0x10] sm:$0xff]  ;;  %v2078_v20 = vld [vmem:[%s22585_s13 + $0x8] sm:$0xff]  ;;  %v2216_v44 = vsel %vm1696_vm0, 4294967295, %v22559_v43  ;;  %vm2202_vm5 = vcmask 23552   ;;  %vm2325_vm6 = vcmask 523264  }
  0x7f   : > { %20311 = vmatpush3.bf16.msra.mxu0 %v1700_v4  ;;  %v1688_v5 = vld [vmem:[%s1681_s11] sm:$0xff]  ;;  %v1689_v6 = vld [vmem:[%s1681_s11 + $0x8] sm:$0xff]  ;;  %2087 = vperm.xlu1 %20895, %v2077_v18   ;;  %v2080_v22 = vld [vmem:[%s22585_s13 + $0x18] sm:$0xff]  ;;  %v22928_v46 = vsel %vm2215_vm4, %v2216_v44, 0  ;;  %vm2952_vm7 = vcmask 1044480   ;;  %vm2953_vm8 = vcmask 1045504  }
  0x80   : > { %v1690_v7 = vpack.c.bf16 %v1689_v6, %v1688_v5  ;;  %v2134_v21 = vld [vmem:[%s22590_s17 + $0x8] sm:$0xff]  ;;  %v2136_v23 = vld [vmem:[%s22590_s17 + $0x18] sm:$0xff]  ;;  %v2133_v24 = vld [vmem:[%s22590_s17] sm:$0xff]  ;;  %vm2945_vm9 = vcmask 89088   ;;  %vm3037_vm10 = vcmask 261120   ;;  %vm3474_vm11 = vcmask 1046528  }
  0x81   : > { %v2082_v25 = vld [vmem:[%s22585_s13 + $0x28] sm:$0xff]  ;;  %v2135_v26 = vld [vmem:[%s22590_s17 + $0x10] sm:$0xff]  ;;  %v2084_v27 = vld [vmem:[%s22585_s13 + $0x38] sm:$0xff]  ;;  %vm3475_vm12 = vcmask 1047552   ;;  %vm3467_vm13 = vcmask 121856   ;;  %s25688_s1 = sld [smem:[#allocation7_spill]] }
  0x82   : > { %20313 = vmatmul.mubr.msk.bf16.vlgmr.msra.gmra.mxu0 %vm1692_vm2, %v1690_v7  ;;  %v2081_v28 = vld [vmem:[%s22585_s13 + $0x20] sm:$0xff]  ;;  %v2138_v29 = vld [vmem:[%s22590_s17 + $0x28] sm:$0xff]  ;;  %v2083_v30 = vld [vmem:[%s22585_s13 + $0x30] sm:$0xff]  ;;  %s25689_s2 = sld [smem:[#allocation8_spill]]  ;;  %vm3866_vm14 = vcmask 154624   ;;  %vm4240_vm15 = vcmask 1042432  }
  0x83   : > { %20328 = vmatprep.mubr.msk.bf16.mxu0 %vm1785_vm3, %v20898_v9  ;;  %2092 = vperm.xlu1 %20895, %v2078_v20   ;;  %v2140_v31 = vld [vmem:[%s22590_s17 + $0x38] sm:$0xff]  ;;  %v2137_v32 = vld [vmem:[%s22590_s17 + $0x20] sm:$0xff]  ;;  %v2139_v33 = vld [vmem:[%s22590_s17 + $0x30] sm:$0xff]  ;;  %s25690_s0 = sld [smem:[#allocation12_spill]]  ;;  %vm4241_vm2 = vcmask 1043456   ;;  %s25701_s5 = smov 122  }
  0x84   : > { %v20899_v34 = vld [vmem:[%s25683_s9 + $0x28] sm:$0xff]   ;;  %v20901_v36 = vld [vmem:[%s25683_s9 + $0x30] sm:$0xff]   ;;  %v20903_v38 = vld [vmem:[%s25683_s9 + $0x38] sm:$0xff]   ;;  %s25691_s11 = sld [smem:[#allocation9_spill]] }
  0x85   : > { %v20905_v39 = vld [vmem:[%s25683_s9 + $0x40] sm:$0xff]   ;;  %v20906_v40 = vld [vmem:[%s25683_s9 + $0x48] sm:$0xff]   ;;  %v20907_v41 = vld [vmem:[%s25683_s9 + $0x50] sm:$0xff]  }
  0x86   : > { %v20908_v42 = vld [vmem:[%s25683_s9 + $0x58] sm:$0xff]   ;;  %v2201_v45 = vld [vmem:[%s25686_s8] sm:$0x3]  ;;  %s25705_s8 = sld [smem:[#allocation19_spill]] }
  0x87   : > { %2102 = vperm.xlu1 %20895, %v2080_v22   ;;  %v2219_v47 = vand.u32 %v22928_v46, %v2201_v45  ;;  %s25706_s9 = sld [smem:[#allocation18_spill]] }
  0x8b   : > { %2143 = vperm.xlu1 %20895, %v2133_v24  }
  0x8f   : > { %2153 = vperm.xlu1 %20895, %v2135_v26  }
  0x93   : > { %2107 = vperm.xlu1 %20895, %v2081_v28  }
  0x97   : > { %2117 = vperm.xlu1 %20895, %v2083_v30  }
  0x9b   : > { %2163 = vperm.xlu1 %20895, %v2137_v32  }
  0x9f   : > { %2173 = vperm.xlu1 %20895, %v2139_v33  }
  0xfa   : > { %v2088_v48 = vpop.permute.xlu1 %2087 }
  0xfe   : > { %v2093_v49 = vpop.permute.xlu1 %2092 }
 0x102   : > { %v2103_v50 = vpop.permute.xlu1 %2102 }
 0x106   : > { %v2144_v56 = vpop.permute.xlu1 %2143 }
 0x10a   : > { %v2154_v62 = vpop.permute.xlu1 %2153 }
 0x10e   : > { %v2108_v7 = vpop.permute.xlu1 %2107 }
 0x112   : > { %v2118_v18 = vpop.permute.xlu1 %2117 }
 0x142   : > { %v1736_v10 = vpop.f32.mrf.mxu0 }
 0x144   : > { %v20314_v11 = vpop.f32.mrf.mxu0 }
 0x146   : > { %v1739_v12 = vpop.f32.mrf.mxu0 }
 0x147   : > { %v1743_v13 = vpack.c.bf16 %v1739_v12, %v1736_v10 }
 0x148   : > { %v20315_v14 = vpop.f32.mrf.mxu0 }
 0x149   : > { %1782 = vrot.lane.b32.xlu0 %v1743_v13, %s25617_s15  ;;  %20326 = vmatprep.subr.bf16.mxu0 %v1743_v13 }
 0x14a   : > { %20327 = vmatpush3.bf16.msra.mxu0 %v1743_v13 }
 0x14b   : > { %20346 = vmatprep.subr.bf16.mxu0 %v2219_v47 }
 0x14d   : > { %1989 = vrot.lane.b32.xlu0 %v1743_v13, %s25623_s16  ;;  %20329 = vmatmul.mubr.msk.bf16.vlgmr.msra.gmra.mxu0 %vm1785_vm3, %v20900_v15 }
 0x14e   : > { %20332 = vmatprep.mubr.msk.bf16.mxu0 %vm1785_vm3, %v20902_v16  ;;  %20347 = vmatpush3.bf16.msra.mxu0 %v2219_v47 }
 0x151   : > { %2097 = vperm.xlu0 %20896, %v2079_v19  }
 0x155   : > { %20333 = vmatmul.mubr.msk.bf16.gmra.mxu0 %vm1785_vm3, %v20904_v17  ;;  %2148 = vperm.xlu0 %20896, %v2134_v21  }
 0x159   : > { %2158 = vperm.xlu0 %20896, %v2136_v23  }
 0x15d   : > { %2112 = vperm.xlu0 %20896, %v2082_v25  }
 0x161   : > { %2122 = vperm.xlu0 %20896, %v2084_v27  }
 0x165   : > { %2168 = vperm.xlu0 %20896, %v2138_v29  }
 0x169   : > { %2178 = vperm.xlu0 %20896, %v2140_v31  }
 0x1bb   : > { %v1783_v35 = vpop.permute.xlu0 %1782 }
 0x1bc   : > { %20316 = vmatprep.subr.bf16.mxu1 %v1783_v35 }
 0x1bd   : > { %20317 = vmatpush3.bf16.msra.mxu1 %v1783_v35 }
 0x1bf   : > { %v1990_v37 = vpop.permute.xlu0 %1989 }
 0x1c0   : > { %20319 = vmatmul.mubr.msk.bf16.vlgmr.msra.gmra.mxu1 %vm1785_vm3, %v20899_v34  ;;  %20336 = vmatprep.subr.bf16.mxu1 %v1990_v37 }
 0x1c1   : > { %20337 = vmatpush3.bf16.msra.mxu1 %v1990_v37  ;;  %20322 = vmatprep.mubr.msk.bf16.mxu1 %vm1785_vm3, %v20901_v36 }
 0x1c8   : > { %20323 = vmatmul.mubr.msk.bf16.gmra.mxu1 %vm1785_vm3, %v20903_v38  ;;  %v2164_v38 = vpop.permute.xlu1 %2163 }
 0x1c9   : > { %20338 = vmatprep.mubr.msk.bf16.mxu1 %vm1785_vm3, %v20905_v39 }
 0x1cc   : > { %v2098_v51 = vpop.permute.xlu0 %2097 }
 0x1d0   : > { %20339 = vmatmul.mubr.msk.bf16.vlgmr.msra.gmra.mxu1 %vm1785_vm3, %v20906_v40  ;;  %v2149_v57 = vpop.permute.xlu0 %2148 }
 0x1d1   : > { %20342 = vmatprep.mubr.msk.bf16.mxu1 %vm1785_vm3, %v20907_v41 }
 0x1d4   : > { %v2159_v63 = vpop.permute.xlu0 %2158 }
 0x1d8   : > { %20343 = vmatmul.mubr.msk.bf16.gmra.mxu1 %vm1785_vm3, %v20908_v42  ;;  %v2113_v8 = vpop.permute.xlu0 %2112 }
 0x1dc   : > { %v2123_v19 = vpop.permute.xlu0 %2122 }
 0x1e0   : > { %v2169_v39 = vpop.permute.xlu0 %2168 }
 0x20d   : > { %v20330_v52 = vpop.f32.mrf.mxu0 }
 0x20f   : > { %v1929_v55 = vpop.f32.mrf.mxu0 }
 0x211   : > { %v20331_v59 = vpop.f32.mrf.mxu0 }
 0x213   : > { %v1932_v0 = vpop.f32.mrf.mxu0 }
 0x215   : > { %v20334_v5 = vpop.f32.mrf.mxu0 }
 0x217   : > { %v1945_v12 = vpop.f32.mrf.mxu0 }
 0x219   : > { %v20335_v23 = vpop.f32.mrf.mxu0 }
 0x21b   : > { %v1948_v34 = vpop.f32.mrf.mxu0 }
 0x280   : > { %v20320_v53 = vpop.f32.mrf.mxu1 }
 0x281   : > { %v1938_v9 = vadd.f32 %v20330_v52, %v20320_v53 }
 0x282   : > { %v1832_v54 = vpop.f32.mrf.mxu1 }
 0x283   : > { %v1930_v11 = vadd.f32 %v1929_v55, %v1832_v54 }
 0x284   : > { %v20321_v58 = vpop.f32.mrf.mxu1 }
 0x285   : > { %v1941_v15 = vadd.f32 %v20331_v59, %v20321_v58 }
 0x286   : > { %v1835_v60 = vpop.f32.mrf.mxu1 }
 0x287   : > { %v1933_v20 = vadd.f32 %v1932_v0, %v1835_v60  ;;  %v2174_v60 = vpop.permute.xlu1 %2173 }
 0x288   : > { %v20324_v61 = vpop.f32.mrf.mxu1 }
 0x289   : > { %v1954_v28 = vadd.f32 %v20334_v5, %v20324_v61  ;;  %v2179_v61 = vpop.permute.xlu0 %2178 }
 0x28a   : > { %v1848_v3 = vpop.f32.mrf.mxu1 }
 0x28b   : > { %v1946_v30 = vadd.f32 %v1945_v12, %v1848_v3 }
 0x28c   : > { %v20325_v4 = vpop.f32.mrf.mxu1 }
 0x28d   : > { %v1957_v42 = vadd.f32 %v20335_v23, %v20325_v4 }
 0x28e   : > { %v1851_v6 = vpop.f32.mrf.mxu1 }
 0x28f   : > { %v1949_v47 = vadd.f32 %v1948_v34, %v1851_v6 }
 0x290   : > { %v20340_v10 = vpop.f32.mrf.mxu1 }
 0x291   : > { %v2071_v13 = vadd.f32 %v20340_v10, %v1938_v9 }
 0x292   : > { %v2038_v14 = vpop.f32.mrf.mxu1 }
 0x293   : > { %v2069_v16 = vadd.f32 %v2038_v14, %v1930_v11  ;;  %v2127_v24 = vmul.f32 %v2098_v51, %v2071_v13 }
 0x294   : > { %v20341_v17 = vpop.f32.mrf.mxu1 }
 0x295   : > { %v2125_v21 = vmul.f32 %v2088_v48, %v2069_v16  ;;  %v2072_v22 = vadd.f32 %v20341_v17, %v1941_v15  ;;  %v2183_v35 = vadd.f32 %v2154_v62, %v2127_v24  ;;  %v20912_v24 = vld [vmem:[%s22600_s25 + $0x8] sm:$0xff]  }
 0x296   : > { %v2041_v25 = vpop.f32.mrf.mxu1 }
 0x297   : > { %v2128_v26 = vmul.f32 %v2103_v50, %v2072_v22  ;;  %v2070_v27 = vadd.f32 %v2041_v25, %v1933_v20  ;;  %v2181_v31 = vadd.f32 %v2144_v56, %v2125_v21  ;;  %v2191_v52 = vmax.f32 %v2183_v35, 0.0  ;;  %v20909_v20 = vld [vmem:[%s22600_s25 + $0x10] sm:$0xff]   ;;  %v20910_v21 = vld [vmem:[%s22600_s25] sm:$0xff]  }
 0x298   : > { %v20344_v29 = vpop.f32.mrf.mxu1  ;;  %20364 = vmatprep.mubr.msk.bf16.mxu1 %vm2325_vm6, %v20909_v20  ;;  %v20915_v25 = vld [vmem:[%s22600_s25 + $0x30] sm:$0xff]  }
 0x299   : > { %v2184_v32 = vadd.f32 %v2159_v63, %v2128_v26  ;;  %v2126_v33 = vmul.f32 %v2093_v49, %v2070_v27  ;;  %v2075_v36 = vadd.f32 %v20344_v29, %v1954_v28  ;;  %v2189_v48 = vmax.f32 %v2181_v31, 0.0  ;;  %v2876_v26 = vld [vmem:[%s22605_s29] sm:$0xff]  ;;  %v2877_v27 = vld [vmem:[%s22605_s29 + $0x8] sm:$0xff]  ;;  %v2878_v28 = vld [vmem:[%s22605_s29 + $0x10] sm:$0xff] }
 0x29a   : > { %v2054_v37 = vpop.f32.mrf.mxu1  ;;  %v2879_v29 = vld [vmem:[%s22605_s29 + $0x18] sm:$0xff]  ;;  %v2905_v31 = vld [vmem:[%s25684_s3 + $0x8] sm:$0xff] }
 0x29b   : > { %v2182_v40 = vadd.f32 %v2149_v57, %v2126_v33  ;;  %v2073_v41 = vadd.f32 %v2054_v37, %v1946_v30  ;;  %v2192_v44 = vmax.f32 %v2184_v32, 0.0  ;;  %v2131_v53 = vmul.f32 %v2118_v18, %v2075_v36  ;;  %v2904_v30 = vld [vmem:[%s25684_s3] sm:$0xff]  ;;  %v2906_v32 = vld [vmem:[%s25684_s3 + $0x10] sm:$0xff]  ;;  %v2907_v33 = vld [vmem:[%s25684_s3 + $0x18] sm:$0xff]  ;;  %s25700_s3 = smov 125  }
 0x29c   : > { %v20345_v45 = vpop.f32.mrf.mxu1 }
 0x29d   : > { %v2190_v50 = vmax.f32 %v2182_v40, 0.0  ;;  %v2129_v51 = vmul.f32 %v2108_v7, %v2073_v41  ;;  %v2076_v54 = vadd.f32 %v20345_v45, %v1957_v42  ;;  %v2198_v58 = vpack.c.bf16 %v2192_v44, %v2191_v52  ;;  %v20911_v41 = vld [vmem:[%s22600_s25 + $0x18] sm:$0xff]   ;;  %v20913_v44 = vld [vmem:[%s22600_s25 + $0x20] sm:$0xff]  }
 0x29e   : > { %v2057_v55 = vpop.f32.mrf.mxu1  ;;  %v2187_v63 = vadd.f32 %v2174_v60, %v2131_v53 }
 0x29f   : > { %v2074_v49 = vadd.f32 %v2057_v55, %v1949_v47  ;;  %v2197_v56 = vpack.c.bf16 %v2190_v50, %v2189_v48  ;;  %v2132_v59 = vmul.f32 %v2123_v19, %v2076_v54  ;;  %v2185_v57 = vadd.f32 %v2164_v38, %v2129_v51  ;;  %v20914_v54 = vld [vmem:[%s22600_s25 + $0x28] sm:$0xff]   ;;  %v20916_v55 = vld [vmem:[%s22600_s25 + $0x38] sm:$0xff]  }
 0x2a0   : > { %v2195_v7 = vmax.f32 %v2187_v63, 0.0  ;;  %v20918_v63 = vld [vmem:[%s22600_s25 + $0x48] sm:$0xff]  }
 0x2a1   : > { %v2130_v62 = vmul.f32 %v2113_v8, %v2074_v49  ;;  %20348 = vmatprep.mubr.msk.bf16.mxu0 %vm2202_vm5, %v2197_v56  ;;  %v2188_v0 = vadd.f32 %v2179_v61, %v2132_v59  ;;  %v2193_v5 = vmax.f32 %v2185_v57, 0.0  ;;  %v20917_v56 = vld [vmem:[%s22600_s25 + $0x40] sm:$0xff]  }
 0x2a2   : > { %20349 = vmatmul.mubr.msk.bf16.vlgmr.msra.gmra.mxu0 %vm2202_vm5, %v2198_v58  ;;  %v20919_v58 = vld [vmem:[%s22600_s25 + $0x50] sm:$0xff]  }
 0x2a3   : > { %v2186_v3 = vadd.f32 %v2169_v39, %v2130_v62  ;;  %v2196_v4 = vmax.f32 %v2188_v0, 0.0 }
 0x2a5   : > { %v2194_v6 = vmax.f32 %v2186_v3, 0.0  ;;  %v2200_v10 = vpack.c.bf16 %v2196_v4, %v2195_v7  ;;  %v20920_v3 = vld [vmem:[%s22600_s25 + $0x58] sm:$0xff]   ;;  %v20921_v4 = vld [vmem:[%s22600_s25 + $0x60] sm:$0xff]   ;;  %v20922_v7 = vld [vmem:[%s22600_s25 + $0x68] sm:$0xff]  }
 0x2a7   : > { %v2199_v9 = vpack.c.bf16 %v2194_v6, %v2193_v5 }
 0x2a9   : > { %20352 = vmatprep.mubr.msk.bf16.mxu0 %vm2202_vm5, %v2199_v9  ;;  %v20923_v9 = vld [vmem:[%s22635_s30] sm:$0x3f]  }
 0x2aa   : > { %20353 = vmatmul.mubr.msk.bf16.gmra.mxu0 %vm2202_vm5, %v2200_v10  ;;  %v2954_v10 = vsel %vm2952_vm7, 4294967295, %v22559_v43  ;;  %vm4236_vm5 = vcmask 187392  }
 0x2ab   : > { %20376 = vmatprep.mubr.msk.bf16.mxu0 %vm2325_vm6, %v20910_v21 }
 0x362   : > { %v20350_v8 = vpop.f32.mrf.mxu0 }
 0x364   : > { %v2255_v11 = vpop.f32.mrf.mxu0 }
 0x366   : > { %v20351_v12 = vpop.f32.mrf.mxu0 }
 0x367   : > { %v2287_v22 = vpack.c.bf16 %v20351_v12, %v20350_v8  ;;  %v22999_v8 = vsel %vm2953_vm8, %v2954_v10, 0 }
 0x368   : > { %v2258_v13 = vpop.f32.mrf.mxu0 }
 0x369   : > { %v2286_v23 = vpack.c.bf16 %v2258_v13, %v2255_v11  ;;  %v2957_v11 = vand.u32 %v20923_v9, %v22999_v8 }
 0x36a   : > { %v20354_v14 = vpop.f32.mrf.mxu0 }
 0x36c   : > { %v2271_v15 = vpop.f32.mrf.mxu0 }
 0x36e   : > { %v20355_v16 = vpop.f32.mrf.mxu0 }
 0x36f   : > { %v2289_v17 = vpack.c.bf16 %v20355_v16, %v20354_v14 }
 0x370   : > { %v2274_v18 = vpop.f32.mrf.mxu0 }
 0x371   : > { %v2288_v19 = vpack.c.bf16 %v2274_v18, %v2271_v15  ;;  %2319 = vrot.lane.b32.xlu1 %v2289_v17, %s25617_s15  ;;  %20368 = vmatprep.subr.bf16.mxu0 %v2289_v17 }
 0x372   : > { %20369 = vmatpush3.bf16.msra.mxu0 %v2289_v17 }
 0x373   : > { %2317 = vrot.lane.b32.xlu0 %v2288_v19, %s25617_s15  ;;  %20370 = vmatprep.subr.bf16.mxu0 %v2288_v19 }
 0x375   : > { %2315 = vrot.lane.b32.xlu1 %v2287_v22, %s25617_s15 }
 0x376   : > { %20371 = vmatpush3.bf16.msra.mxu0 %v2288_v19 }
 0x377   : > { %2313 = vrot.lane.b32.xlu0 %v2286_v23, %s25617_s15  ;;  %20372 = vmatprep.subr.bf16.mxu0 %v2287_v22 }
 0x379   : > { %2467 = vrot.lane.b32.xlu1 %v2289_v17, %s25623_s16 }
 0x37a   : > { %20373 = vmatpush3.bf16.msra.mxu0 %v2287_v22 }
 0x37b   : > { %2465 = vrot.lane.b32.xlu0 %v2288_v19, %s25623_s16  ;;  %20374 = vmatprep.subr.bf16.mxu0 %v2286_v23 }
 0x37d   : > { %2463 = vrot.lane.b32.xlu1 %v2287_v22, %s25623_s16 }
 0x37e   : > { %20375 = vmatpush3.bf16.msra.mxu0 %v2286_v23 }
 0x37f   : > { %2461 = vrot.lane.b32.xlu0 %v2286_v23, %s25623_s16 }
 0x381   : > { %2553 = vrot.lane.b32.xlu1 %v2289_v17, %s25613_s18  ;;  %20377 = vmatmul.mubr.msk.bf16.vlgmr.msra.gmra.mxu0 %vm2325_vm6, %v20912_v24 }
 0x382   : > { %20400 = vmatprep.mubr.msk.bf16.mxu0 %vm2325_vm6, %v20915_v25 }
 0x383   : > { %2639 = vrot.lane.b32.xlu0 %v2289_v17, %s25615_s22 }
 0x385   : > { %2551 = vrot.lane.b32.xlu1 %v2288_v19, %s25613_s18 }
 0x387   : > { %2637 = vrot.lane.b32.xlu0 %v2288_v19, %s25615_s22 }
 0x389   : > { %2549 = vrot.lane.b32.xlu1 %v2287_v22, %s25613_s18 }
 0x38b   : > { %2635 = vrot.lane.b32.xlu0 %v2287_v22, %s25615_s22 }
 0x38d   : > { %2547 = vrot.lane.b32.xlu1 %v2286_v23, %s25613_s18 }
 0x38f   : > { %2633 = vrot.lane.b32.xlu0 %v2286_v23, %s25615_s22 }
 0x391   : > { %2725 = vrot.lane.b32.xlu1 %v2289_v17, %s25609_s23 }
 0x393   : > { %2811 = vrot.lane.b32.xlu0 %v2289_v17, %s25611_s26 }
 0x395   : > { %2723 = vrot.lane.b32.xlu1 %v2288_v19, %s25609_s23 }
 0x397   : > { %2809 = vrot.lane.b32.xlu0 %v2288_v19, %s25611_s26 }
 0x399   : > { %2721 = vrot.lane.b32.xlu1 %v2287_v22, %s25609_s23 }
 0x39b   : > { %2807 = vrot.lane.b32.xlu0 %v2287_v22, %s25611_s26 }
 0x39d   : > { %2719 = vrot.lane.b32.xlu1 %v2286_v23, %s25609_s23  ;;  %s25692_s23 = sld [smem:[#allocation10_spill]] }
 0x39f   : > { %2805 = vrot.lane.b32.xlu0 %v2286_v23, %s25611_s26  ;;  %s25693_s26 = sld [smem:[#allocation11_spill]] }
 0x3a1   : > { %2882 = vperm.xlu1 %20895, %v2876_v26  }
 0x3a3   : > { %2887 = vperm.xlu0 %20896, %v2877_v27  }
 0x3a5   : > { %2892 = vperm.xlu1 %20895, %v2878_v28  }
 0x3a7   : > { %2897 = vperm.xlu0 %20896, %v2879_v29  }
 0x3a9   : > { %2910 = vperm.xlu1 %20895, %v2904_v30  }
 0x3ab   : > { %2915 = vperm.xlu0 %20896, %v2905_v31  }
 0x3ad   : > { %2920 = vperm.xlu1 %20895, %v2906_v32  }
 0x3af   : > { %2925 = vperm.xlu0 %20896, %v2907_v33  }
 0x3e3   : > { %v2320_v34 = vpop.permute.xlu1 %2319 }
 0x3e4   : > { %20356 = vmatprep.subr.bf16.mxu1 %v2320_v34 }
 0x3e5   : > { %20357 = vmatpush3.bf16.msra.mxu1 %v2320_v34  ;;  %v2318_v35 = vpop.permute.xlu0 %2317 }
 0x3e6   : > { %20358 = vmatprep.subr.bf16.mxu1 %v2318_v35 }
 0x3e7   : > { %v2316_v36 = vpop.permute.xlu1 %2315 }
 0x3e9   : > { %20359 = vmatpush3.bf16.msra.mxu1 %v2318_v35  ;;  %v2314_v37 = vpop.permute.xlu0 %2313 }
 0x3ea   : > { %20360 = vmatprep.subr.bf16.mxu1 %v2316_v36 }
 0x3eb   : > { %v2468_v38 = vpop.permute.xlu1 %2467 }
 0x3ed   : > { %20361 = vmatpush3.bf16.msra.mxu1 %v2316_v36  ;;  %v2466_v39 = vpop.permute.xlu0 %2465 }
 0x3ee   : > { %20362 = vmatprep.subr.bf16.mxu1 %v2314_v37 }
 0x3ef   : > { %v2464_v40 = vpop.permute.xlu1 %2463 }
 0x3f1   : > { %20363 = vmatpush3.bf16.msra.mxu1 %v2314_v37  ;;  %v2462_v42 = vpop.permute.xlu0 %2461 }
 0x3f2   : > { %20380 = vmatprep.subr.bf16.mxu1 %v2468_v38 }
 0x3f3   : > { %v2554_v45 = vpop.permute.xlu1 %2553 }
 0x3f4   : > { %20365 = vmatmul.mubr.msk.bf16.vlgmr.msra.gmra.mxu1 %vm2325_vm6, %v20911_v41  ;;  %20392 = vmatprep.subr.bf16.mxu0 %v2554_v45 }
 0x3f5   : > { %20381 = vmatpush3.bf16.msra.mxu1 %v2468_v38  ;;  %v2640_v47 = vpop.permute.xlu0 %2639  ;;  %20393 = vmatpush3.bf16.msra.mxu0 %v2554_v45 }
 0x3f6   : > { %20382 = vmatprep.subr.bf16.mxu1 %v2466_v39  ;;  %20388 = vmatprep.mubr.msk.bf16.mxu1 %vm2325_vm6, %v20913_v44 }
 0x3f7   : > { %v2552_v48 = vpop.permute.xlu1 %2551 }
 0x3f8   : > { %20394 = vmatprep.subr.bf16.mxu0 %v2552_v48 }
 0x3f9   : > { %20383 = vmatpush3.bf16.msra.mxu1 %v2466_v39  ;;  %v2638_v50 = vpop.permute.xlu0 %2637  ;;  %20395 = vmatpush3.bf16.msra.mxu0 %v2552_v48 }
 0x3fa   : > { %20384 = vmatprep.subr.bf16.mxu1 %v2464_v40 }
 0x3fb   : > { %v2550_v51 = vpop.permute.xlu1 %2549 }
 0x3fc   : > { %20396 = vmatprep.subr.bf16.mxu0 %v2550_v51 }
 0x3fd   : > { %20385 = vmatpush3.bf16.msra.mxu1 %v2464_v40  ;;  %20397 = vmatpush3.bf16.msra.mxu0 %v2550_v51  ;;  %v2636_v52 = vpop.permute.xlu0 %2635 }
 0x3fe   : > { %20386 = vmatprep.subr.bf16.mxu1 %v2462_v42 }
 0x3ff   : > { %v2548_v53 = vpop.permute.xlu1 %2547 }
 0x400   : > { %20398 = vmatprep.subr.bf16.mxu0 %v2548_v53 }
 0x401   : > { %20387 = vmatpush3.bf16.msra.mxu1 %v2462_v42  ;;  %20399 = vmatpush3.bf16.msra.mxu0 %v2548_v53  ;;  %v2634_v59 = vpop.permute.xlu0 %2633 }
 0x402   : > { %20404 = vmatprep.subr.bf16.mxu1 %v2640_v47 }
 0x403   : > { %v2726_v49 = vpop.permute.xlu1 %2725 }
 0x404   : > { %20389 = vmatmul.mubr.msk.bf16.vlgmr.msra.gmra.mxu1 %vm2325_vm6, %v20914_v54  ;;  %20416 = vmatprep.subr.bf16.mxu0 %v2726_v49 }
 0x405   : > { %20405 = vmatpush3.bf16.msra.mxu1 %v2640_v47  ;;  %20401 = vmatmul.mubr.msk.bf16.vlgmr.msra.gmra.mxu0 %vm2325_vm6, %v20916_v55  ;;  %v2812_v61 = vpop.permute.xlu0 %2811 }
 0x406   : > { %20417 = vmatpush3.bf16.msra.mxu0 %v2726_v49  ;;  %20406 = vmatprep.subr.bf16.mxu1 %v2638_v50 }
 0x407   : > { %v2724_v60 = vpop.permute.xlu1 %2723  ;;  %20412 = vmatprep.mubr.msk.bf16.mxu1 %vm2325_vm6, %v20917_v56  ;;  %20424 = vmatprep.mubr.msk.bf16.mxu0 %vm2325_vm6, %v20919_v58 }
 0x408   : > { %20418 = vmatprep.subr.bf16.mxu0 %v2724_v60 }
 0x409   : > { %20407 = vmatpush3.bf16.msra.mxu1 %v2638_v50  ;;  %v2810_v0 = vpop.permute.xlu0 %2809 }
 0x40a   : > { %20419 = vmatpush3.bf16.msra.mxu0 %v2724_v60  ;;  %20408 = vmatprep.subr.bf16.mxu1 %v2636_v52 }
 0x40b   : > { %v2722_v57 = vpop.permute.xlu1 %2721 }
 0x40c   : > { %20420 = vmatprep.subr.bf16.mxu0 %v2722_v57 }
 0x40d   : > { %20409 = vmatpush3.bf16.msra.mxu1 %v2636_v52  ;;  %v2808_v5 = vpop.permute.xlu0 %2807 }
 0x40e   : > { %20421 = vmatpush3.bf16.msra.mxu0 %v2722_v57  ;;  %20410 = vmatprep.subr.bf16.mxu1 %v2634_v59 }
 0x40f   : > { %v2720_v62 = vpop.permute.xlu1 %2719 }
 0x410   : > { %20422 = vmatprep.subr.bf16.mxu0 %v2720_v62 }
 0x411   : > { %20411 = vmatpush3.bf16.msra.mxu1 %v2634_v59  ;;  %v2806_v6 = vpop.permute.xlu0 %2805 }
 0x412   : > { %20423 = vmatpush3.bf16.msra.mxu0 %v2720_v62  ;;  %20428 = vmatprep.subr.bf16.mxu1 %v2812_v61 }
 0x413   : > { %20440 = vmatprep.subr.bf16.mxu0 %v2957_v11 }
 0x414   : > { %20413 = vmatmul.mubr.msk.bf16.vlgmr.msra.gmra.mxu1 %vm2325_vm6, %v20918_v63 }
 0x415   : > { %20429 = vmatpush3.bf16.msra.mxu1 %v2812_v61  ;;  %20425 = vmatmul.mubr.msk.bf16.vlgmr.msra.gmra.mxu0 %vm2325_vm6, %v20920_v3 }
 0x416   : > { %20430 = vmatprep.subr.bf16.mxu1 %v2810_v0  ;;  %20436 = vmatprep.mubr.msk.bf16.mxu1 %vm2325_vm6, %v20921_v4 }
 0x417   : > { %20441 = vmatpush3.bf16.msra.mxu0 %v2957_v11 }
 0x419   : > { %20431 = vmatpush3.bf16.msra.mxu1 %v2810_v0 }
 0x41a   : > { %20432 = vmatprep.subr.bf16.mxu1 %v2808_v5 }
 0x41c   : > { %v2883_v35 = vpop.permute.xlu1 %2882 }
 0x41d   : > { %20433 = vmatpush3.bf16.msra.mxu1 %v2808_v5 }
 0x41e   : > { %20434 = vmatprep.subr.bf16.mxu1 %v2806_v6  ;;  %v2888_v30 = vpop.permute.xlu0 %2887 }
 0x420   : > { %v2893_v50 = vpop.permute.xlu1 %2892 }
 0x421   : > { %20435 = vmatpush3.bf16.msra.mxu1 %v2806_v6 }
 0x422   : > { %v2898_v44 = vpop.permute.xlu0 %2897 }
 0x424   : > { %20437 = vmatmul.mubr.msk.bf16.vlgmr.msra.gmra.mxu1 %vm2325_vm6, %v20922_v7  ;;  %v2911_v0 = vpop.permute.xlu1 %2910  ;;  %vm4727_vm6 = vcmask 236544  }
 0x426   : > { %v2916_v59 = vpop.permute.xlu0 %2915 }
 0x441   : > { %v20378_v13 = vpop.f32.mrf.mxu0 }
 0x443   : > { %v2431_v15 = vpop.f32.mrf.mxu0 }
 0x445   : > { %v20379_v17 = vpop.f32.mrf.mxu0 }
 0x447   : > { %v2434_v20 = vpop.f32.mrf.mxu0 }
 0x4b4   : > { %v20366_v12 = vpop.f32.mrf.mxu1 }
 0x4b5   : > { %v2440_v28 = vadd.f32 %v20378_v13, %v20366_v12 }
 0x4b6   : > { %v2366_v14 = vpop.f32.mrf.mxu1 }
 0x4b7   : > { %v2432_v31 = vadd.f32 %v2431_v15, %v2366_v14  ;;  %v2926_v14 = vpop.permute.xlu0 %2925  ;;  %v2921_v15 = vpop.permute.xlu1 %2920 }
 0x4b8   : > { %v20367_v16 = vpop.f32.mrf.mxu1 }
 0x4b9   : > { %v2443_v36 = vadd.f32 %v20379_v17, %v20367_v16 }
 0x4ba   : > { %v2369_v18 = vpop.f32.mrf.mxu1 }
 0x4bb   : > { %v2435_v38 = vadd.f32 %v2434_v20, %v2369_v18 }
 0x4c4   : > { %v20390_v19 = vpop.f32.mrf.mxu1 }
 0x4c5   : > { %v20402_v22 = vpop.f32.mrf.mxu0  ;;  %v2530_v32 = vadd.f32 %v20390_v19, %v2440_v28  ;;  %v20924_v28 = vld [vmem:[%s22620_s14 + $0x10] sm:$0xff]  }
 0x4c6   : > { %v2513_v21 = vpop.f32.mrf.mxu1 }
 0x4c7   : > { %v2599_v24 = vpop.f32.mrf.mxu0  ;;  %v2528_v37 = vadd.f32 %v2513_v21, %v2432_v31  ;;  %v2616_v40 = vadd.f32 %v20402_v22, %v2530_v32 }
 0x4c8   : > { %v20391_v23 = vpop.f32.mrf.mxu1 }
 0x4c9   : > { %v20403_v26 = vpop.f32.mrf.mxu0  ;;  %v2531_v39 = vadd.f32 %v20391_v23, %v2443_v36  ;;  %v2614_v45 = vadd.f32 %v2599_v24, %v2528_v37  ;;  %v20929_v36 = vld [vmem:[%s22620_s14 + $0x30] sm:$0xff]   ;;  %v3398_v37 = vld [vmem:[%s22625_s19] sm:$0xff] }
 0x4ca   : > { %v2516_v25 = vpop.f32.mrf.mxu1 }
 0x4cb   : > { %v2602_v29 = vpop.f32.mrf.mxu0  ;;  %v2529_v47 = vadd.f32 %v2516_v25, %v2435_v38  ;;  %v2617_v51 = vadd.f32 %v20403_v26, %v2531_v39  ;;  %v3399_v38 = vld [vmem:[%s22625_s19 + $0x8] sm:$0xff]  ;;  %v3400_v39 = vld [vmem:[%s22625_s19 + $0x10] sm:$0xff] }
 0x4cd   : > { %v2615_v55 = vadd.f32 %v2602_v29, %v2529_v47  ;;  %v20925_v29 = vld [vmem:[%s22620_s14] sm:$0xff]  }
 0x4ce   : > { %20458 = vmatprep.mubr.msk.bf16.mxu1 %vm3037_vm10, %v20925_v29 }
 0x4d4   : > { %v20414_v27 = vpop.f32.mrf.mxu1 }
 0x4d5   : > { %v20426_v34 = vpop.f32.mrf.mxu0  ;;  %v2702_v48 = vadd.f32 %v20414_v27, %v2616_v40  ;;  %v3401_v40 = vld [vmem:[%s22625_s19 + $0x18] sm:$0xff] }
 0x4d6   : > { %v2685_v33 = vpop.f32.mrf.mxu1 }
 0x4d7   : > { %v2771_v42 = vpop.f32.mrf.mxu0  ;;  %v2700_v52 = vadd.f32 %v2685_v33, %v2614_v45  ;;  %v2788_v56 = vadd.f32 %v20426_v34, %v2702_v48  ;;  %v3429_v45 = vld [vmem:[%s22630_s24 + $0x18] sm:$0xff] }
 0x4d8   : > { %v20415_v41 = vpop.f32.mrf.mxu1 }
 0x4d9   : > { %v20427_v54 = vpop.f32.mrf.mxu0  ;;  %v2703_v49 = vadd.f32 %v20415_v41, %v2617_v51  ;;  %v2786_v60 = vadd.f32 %v2771_v42, %v2700_v52  ;;  %v3426_v41 = vld [vmem:[%s22630_s24] sm:$0xff]  ;;  %v3427_v42 = vld [vmem:[%s22630_s24 + $0x8] sm:$0xff]  ;;  %v20926_v51 = vld [vmem:[%s22620_s14 + $0x18] sm:$0xff]  }
 0x4da   : > { %v2688_v53 = vpop.f32.mrf.mxu1 }
 0x4db   : > { %v2701_v61 = vadd.f32 %v2688_v53, %v2615_v55  ;;  %v2774_v57 = vpop.f32.mrf.mxu0  ;;  %v2789_v3 = vadd.f32 %v20427_v54, %v2703_v49  ;;  %v20928_v53 = vld [vmem:[%s22620_s14 + $0x20] sm:$0xff]  }
 0x4dd   : > { %v2787_v6 = vadd.f32 %v2774_v57, %v2701_v61  ;;  %v20933_v61 = vld [vmem:[%s22620_s14 + $0x48] sm:$0xff]   ;;  %v20934_v57 = vld [vmem:[%s22655_s27] sm:$0xff]  }
 0x4e4   : > { %v20438_v58 = vpop.f32.mrf.mxu1 }
 0x4e5   : > { %v2874_v62 = vadd.f32 %v20438_v58, %v2788_v56  ;;  %v20930_v56 = vld [vmem:[%s22620_s14 + $0x28] sm:$0xff]   ;;  %v20931_v58 = vld [vmem:[%s22620_s14 + $0x38] sm:$0xff]  }
 0x4e6   : > { %v2857_v63 = vpop.f32.mrf.mxu1 }
 0x4e7   : > { %v2872_v4 = vadd.f32 %v2857_v63, %v2786_v60  ;;  %v2902_v10 = vmul.f32 %v2893_v50, %v2874_v62  ;;  %v3476_v62 = vsel %vm3474_vm11, 4294967295, %v22559_v43 }
 0x4e8   : > { %v20439_v5 = vpop.f32.mrf.mxu1  ;;  %v3477_v63 = vsel %vm3475_vm12, %v3476_v62, 0  ;;  %vm6308_vm12 = vcmask 1022976  }
 0x4e9   : > { %v2900_v7 = vmul.f32 %v2883_v35, %v2872_v4  ;;  %v2875_v9 = vadd.f32 %v20439_v5, %v2789_v3  ;;  %v2930_v19 = vadd.f32 %v2921_v15, %v2902_v10  ;;  %v20927_v35 = vld [vmem:[%s22620_s14 + $0x8] sm:$0xff]  }
 0x4ea   : > { %v2860_v11 = vpop.f32.mrf.mxu1 }
 0x4eb   : > { %v2903_v12 = vmul.f32 %v2898_v44, %v2875_v9  ;;  %v2873_v13 = vadd.f32 %v2860_v11, %v2787_v6  ;;  %v2928_v16 = vadd.f32 %v2911_v0, %v2900_v7  ;;  %v2934_v24 = vmax.f32 %v2930_v19, 0.0  ;;  %v3428_v44 = vld [vmem:[%s22630_s24 + $0x10] sm:$0xff] }
 0x4ec   : > { %v3479_v0 = vand.u32 %v20934_v57, %v3477_v63 }
 0x4ed   : > { %v2931_v17 = vadd.f32 %v2926_v14, %v2903_v12  ;;  %v2901_v18 = vmul.f32 %v2888_v30, %v2873_v13  ;;  %v2932_v22 = vmax.f32 %v2928_v16, 0.0 }
 0x4ef   : > { %v2929_v20 = vadd.f32 %v2916_v59, %v2901_v18  ;;  %v2935_v21 = vmax.f32 %v2931_v17, 0.0  ;;  %v20932_v59 = vld [vmem:[%s22620_s14 + $0x40] sm:$0xff]  }
 0x4f1   : > { %v2933_v23 = vmax.f32 %v2929_v20, 0.0  ;;  %v2937_v26 = vpack.c.bf16 %v2935_v21, %v2934_v24 }
 0x4f3   : > { %v2936_v25 = vpack.c.bf16 %v2933_v23, %v2932_v22 }
 0x4f5   : > { %20442 = vmatprep.mubr.msk.bf16.mxu0 %vm2945_vm9, %v2936_v25 }
 0x4f6   : > { %20443 = vmatmul.mubr.msk.bf16.vlgmr.msra.gmra.mxu0 %vm2945_vm9, %v2937_v26  ;;  %vm6078_vm9 = vcmask 711680  }
 0x4f7   : > { %20450 = vmatprep.mubr.msk.bf16.mxu0 %vm3037_vm10, %v20924_v28 }
 0x5b6   : > { %v20444_v27 = vpop.f32.mrf.mxu0 }
 0x5b8   : > { %v2993_v31 = vpop.f32.mrf.mxu0 }
 0x5ba   : > { %v20445_v30 = vpop.f32.mrf.mxu0 }
 0x5bb   : > { %v3009_v32 = vpack.c.bf16 %v20445_v30, %v20444_v27 }
 0x5bc   : > { %v2996_v33 = vpop.f32.mrf.mxu0 }
 0x5bd   : > { %v3008_v34 = vpack.c.bf16 %v2996_v33, %v2993_v31  ;;  %3033 = vrot.lane.b32.xlu1 %v3009_v32, %s25617_s15  ;;  %20454 = vmatprep.subr.bf16.mxu1 %v3009_v32 }
 0x5be   : > { %20455 = vmatpush3.bf16.msra.mxu1 %v3009_v32 }
 0x5bf   : > { %3031 = vrot.lane.b32.xlu0 %v3008_v34, %s25617_s15  ;;  %20456 = vmatprep.subr.bf16.mxu1 %v3008_v34 }
 0x5c1   : > { %3175 = vrot.lane.b32.xlu1 %v3009_v32, %s25623_s16 }
 0x5c2   : > { %20457 = vmatpush3.bf16.msra.mxu1 %v3008_v34 }
 0x5c3   : > { %3173 = vrot.lane.b32.xlu0 %v3008_v34, %s25623_s16 }
 0x5c5   : > { %3255 = vrot.lane.b32.xlu1 %v3009_v32, %s25613_s18  ;;  %20459 = vmatmul.mubr.msk.bf16.vlgmr.msra.gmra.mxu1 %vm3037_vm10, %v20927_v35 }
 0x5c6   : > { %20474 = vmatprep.mubr.msk.bf16.mxu1 %vm3037_vm10, %v20929_v36 }
 0x5c7   : > { %3335 = vrot.lane.b32.xlu0 %v3009_v32, %s25615_s22 }
 0x5c9   : > { %3253 = vrot.lane.b32.xlu1 %v3008_v34, %s25613_s18 }
 0x5cb   : > { %3333 = vrot.lane.b32.xlu0 %v3008_v34, %s25615_s22 }
 0x5cd   : > { %3404 = vperm.xlu1 %20895, %v3398_v37  }
 0x5cf   : > { %3409 = vperm.xlu0 %20896, %v3399_v38  }
 0x5d1   : > { %3414 = vperm.xlu1 %20895, %v3400_v39  }
 0x5d3   : > { %3419 = vperm.xlu0 %20896, %v3401_v40  }
 0x5d5   : > { %3432 = vperm.xlu1 %20895, %v3426_v41  }
 0x5d7   : > { %3437 = vperm.xlu0 %20896, %v3427_v42  }
 0x5d9   : > { %3442 = vperm.xlu1 %20895, %v3428_v44  }
 0x5db   : > { %3447 = vperm.xlu0 %20896, %v3429_v45  }
 0x62f   : > { %v3034_v47 = vpop.permute.xlu1 %3033 }
 0x630   : > { %20446 = vmatprep.subr.bf16.mxu0 %v3034_v47 }
 0x631   : > { %20447 = vmatpush3.bf16.msra.mxu0 %v3034_v47  ;;  %v3032_v48 = vpop.permute.xlu0 %3031 }
 0x632   : > { %20448 = vmatprep.subr.bf16.mxu0 %v3032_v48 }
 0x633   : > { %v3176_v50 = vpop.permute.xlu1 %3175 }
 0x635   : > { %20449 = vmatpush3.bf16.msra.mxu0 %v3032_v48  ;;  %v3174_v52 = vpop.permute.xlu0 %3173 }
 0x636   : > { %20462 = vmatprep.subr.bf16.mxu0 %v3176_v50 }
 0x637   : > { %v3256_v54 = vpop.permute.xlu1 %3255 }
 0x638   : > { %20451 = vmatmul.mubr.msk.bf16.vlgmr.msra.gmra.mxu0 %vm3037_vm10, %v20926_v51  ;;  %20470 = vmatprep.subr.bf16.mxu1 %v3256_v54 }
 0x639   : > { %20463 = vmatpush3.bf16.msra.mxu0 %v3176_v50  ;;  %20471 = vmatpush3.bf16.msra.mxu1 %v3256_v54  ;;  %v3336_v55 = vpop.permute.xlu0 %3335 }
 0x63a   : > { %20464 = vmatprep.subr.bf16.mxu0 %v3174_v52  ;;  %20466 = vmatprep.mubr.msk.bf16.mxu0 %vm3037_vm10, %v20928_v53 }
 0x63b   : > { %v3254_v49 = vpop.permute.xlu1 %3253 }
 0x63c   : > { %20472 = vmatprep.subr.bf16.mxu1 %v3254_v49 }
 0x63d   : > { %20465 = vmatpush3.bf16.msra.mxu0 %v3174_v52  ;;  %20473 = vmatpush3.bf16.msra.mxu1 %v3254_v49  ;;  %v3334_v60 = vpop.permute.xlu0 %3333 }
 0x63e   : > { %20478 = vmatprep.subr.bf16.mxu0 %v3336_v55  ;;  %20486 = vmatprep.subr.bf16.mxu1 %v3479_v0 }
 0x640   : > { %20467 = vmatmul.mubr.msk.bf16.vlgmr.msra.gmra.mxu0 %vm3037_vm10, %v20930_v56  ;;  %20475 = vmatmul.mubr.msk.bf16.vlgmr.msra.gmra.mxu1 %vm3037_vm10, %v20931_v58 }
 0x641   : > { %20479 = vmatpush3.bf16.msra.mxu0 %v3336_v55  ;;  %20482 = vmatprep.mubr.msk.bf16.mxu0 %vm3037_vm10, %v20932_v59 }
 0x642   : > { %20480 = vmatprep.subr.bf16.mxu0 %v3334_v60  ;;  %20487 = vmatpush3.bf16.msra.mxu1 %v3479_v0 }
 0x643   : > { %20500 = vmatprep.subr.bf16.mxu1 %v22554_v1 }
 0x645   : > { %20481 = vmatpush3.bf16.msra.mxu0 %v3334_v60 }
 0x646   : > { %20492 = vmatprep.subr.bf16.mxu0 %v22554_v1 }
 0x648   : > { %20483 = vmatmul.mubr.msk.bf16.vlgmr.msra.gmra.mxu0 %vm3037_vm10, %v20933_v61  ;;  %v3405_v13 = vpop.permute.xlu1 %3404 }
 0x649   : > { %20496 = vmatprep.mubr.msk.bf16.mxu0 %vm22556_vm1, %v22554_v1 }
 0x64a   : > { %v3410_v11 = vpop.permute.xlu0 %3409 }
 0x64c   : > { %v3415_v23 = vpop.permute.xlu1 %3414 }
 0x64e   : > { %v3420_v18 = vpop.permute.xlu0 %3419 }
 0x650   : > { %v3433_v37 = vpop.permute.xlu1 %3432 }
 0x652   : > { %v3438_v34 = vpop.permute.xlu0 %3437 }
 0x654   : > { %v3443_v53 = vpop.permute.xlu1 %3442 }
 0x656   : > { %v3448_v52 = vpop.permute.xlu0 %3447 }
 0x685   : > { %v20460_v3 = vpop.f32.mrf.mxu1 }
 0x687   : > { %v3143_v4 = vpop.f32.mrf.mxu1 }
 0x689   : > { %v20461_v6 = vpop.f32.mrf.mxu1 }
 0x68b   : > { %v3146_v10 = vpop.f32.mrf.mxu1 }
 0x6f8   : > { %v20452_v5 = vpop.f32.mrf.mxu0 }
 0x6f9   : > { %v3152_v16 = vadd.f32 %v20460_v3, %v20452_v5 }
 0x6fa   : > { %v3078_v7 = vpop.f32.mrf.mxu0 }
 0x6fb   : > { %v3144_v19 = vadd.f32 %v3143_v4, %v3078_v7 }
 0x6fc   : > { %v20453_v9 = vpop.f32.mrf.mxu0 }
 0x6fd   : > { %v3155_v24 = vadd.f32 %v20461_v6, %v20453_v9  ;;  %v20936_v9 = vld [vmem:[%s25687_s28] sm:$0xff]  }
 0x6fe   : > { %v3081_v12 = vpop.f32.mrf.mxu0 }
 0x6ff   : > { %v3147_v27 = vadd.f32 %v3146_v10, %v3081_v12  ;;  %v3823_v10 = vld [vmem:[%s25688_s1] sm:$0xff] }
 0x700   : > { %v20468_v14 = vpop.f32.mrf.mxu0  ;;  %v20476_v15 = vpop.f32.mrf.mxu1  ;;  %v3837_v12 = vld [vmem:[%s25689_s2] sm:$0xff] }
 0x701   : > { %v3236_v20 = vadd.f32 %v20468_v14, %v3152_v16 }
 0x702   : > { %v3219_v17 = vpop.f32.mrf.mxu0  ;;  %v3299_v21 = vpop.f32.mrf.mxu1 }
 0x703   : > { %v3234_v25 = vadd.f32 %v3219_v17, %v3144_v19  ;;  %v3316_v29 = vadd.f32 %v20476_v15, %v3236_v20  ;;  %v20935_v17 = vld [vmem:[%s25687_s28 + $0x8] sm:$0xff]  }
 0x704   : > { %v20469_v22 = vpop.f32.mrf.mxu0  ;;  %v20477_v31 = vpop.f32.mrf.mxu1 }
 0x705   : > { %v3237_v28 = vadd.f32 %v20469_v22, %v3155_v24  ;;  %v3314_v32 = vadd.f32 %v3299_v21, %v3234_v25  ;;  %v20937_v21 = vld [vmem:[%s25687_s28 + $0x10] sm:$0xff]   ;;  %v20938_v22 = vld [vmem:[%s25687_s28 + $0x18] sm:$0xff]   ;;  %v20939_v25 = vld [vmem:[%s25687_s28 + $0x20] sm:$0xff]  }
 0x706   : > { %v3222_v26 = vpop.f32.mrf.mxu0  ;;  %v3302_v40 = vpop.f32.mrf.mxu1 }
 0x707   : > { %v3235_v33 = vadd.f32 %v3222_v26, %v3147_v27  ;;  %v3317_v38 = vadd.f32 %v20477_v31, %v3237_v28  ;;  %v20940_v31 = vld [vmem:[%s25690_s0 + $0x8] ss:$0 sps:$4 sm:$0x33]  }
 0x708   : > { %v20484_v30 = vpop.f32.mrf.mxu0 }
 0x709   : > { %v3396_v35 = vadd.f32 %v20484_v30, %v3316_v29  ;;  %v3315_v42 = vadd.f32 %v3302_v40, %v3235_v33  ;;  %v3871_v30 = vand.u32 %v20940_v31, %v22928_v46 }
 0x70a   : > { %v3379_v36 = vpop.f32.mrf.mxu0 }
 0x70b   : > { %v3394_v39 = vadd.f32 %v3379_v36, %v3314_v32  ;;  %v3424_v47 = vmul.f32 %v3415_v23, %v3396_v35  ;;  %v20941_v32 = vld [vmem:[%s25690_s0] sm:$0xff]   ;;  %s25697_s0 = sld [smem:[#allocation15_spill]] }
 0x70c   : > { %v20485_v41 = vpop.f32.mrf.mxu0 }
 0x70d   : > { %v3422_v44 = vmul.f32 %v3405_v13, %v3394_v39  ;;  %v3397_v45 = vadd.f32 %v20485_v41, %v3317_v38  ;;  %v3452_v56 = vadd.f32 %v3443_v53, %v3424_v47  ;;  %v3838_v13 = vld [vmem:[%s25689_s2 + $0x8] sm:$0xff]  ;;  %s25699_s2 = smov 124  }
 0x70e   : > { %v3382_v48 = vpop.f32.mrf.mxu0 }
 0x70f   : > { %v3425_v50 = vmul.f32 %v3420_v18, %v3397_v45  ;;  %v3395_v51 = vadd.f32 %v3382_v48, %v3315_v42  ;;  %v3450_v54 = vadd.f32 %v3433_v37, %v3422_v44  ;;  %v3456_v57 = vmax.f32 %v3452_v56, 0.0 }
 0x711   : > { %v3453_v55 = vadd.f32 %v3448_v52, %v3425_v50  ;;  %v3423_v49 = vmul.f32 %v3410_v11, %v3395_v51  ;;  %v3454_v60 = vmax.f32 %v3450_v54, 0.0  ;;  %v3824_v11 = vld [vmem:[%s25688_s1 + $0x8] sm:$0xff]  ;;  %s25698_s1 = smov 127  }
 0x713   : > { %v3451_v58 = vadd.f32 %v3438_v34, %v3423_v49  ;;  %v3457_v59 = vmax.f32 %v3453_v55, 0.0 }
 0x715   : > { %v3455_v61 = vmax.f32 %v3451_v58, 0.0  ;;  %v3459_v63 = vpack.c.bf16 %v3457_v59, %v3456_v57 }
 0x717   : > { %v3458_v62 = vpack.c.bf16 %v3455_v61, %v3454_v60 }
 0x719   : > { %20488 = vmatprep.mubr.msk.bf16.mxu1 %vm3467_vm13, %v3458_v62 }
 0x71a   : > { %20489 = vmatmul.mubr.msk.bf16.vlgmr.msra.gmra.mxu1 %vm3467_vm13, %v3459_v63  ;;  %vm6248_vm13 = vcmask 1031168  }
 0x71b   : > { %20504 = vmatprep.mubr.msk.bf16.mxu1 %vm22556_vm1, %v22554_v1 }
 0x7da   : > { %v20490_v0 = vpop.f32.mrf.mxu1 }
 0x7dc   : > { %v3515_v3 = vpop.f32.mrf.mxu1 }
 0x7de   : > { %v20491_v4 = vpop.f32.mrf.mxu1 }
 0x7df   : > { %v3531_v5 = vpack.c.bf16 %v20491_v4, %v20490_v0 }
 0x7e0   : > { %v3518_v6 = vpop.f32.mrf.mxu1 }
 0x7e1   : > { %v3530_v7 = vpack.c.bf16 %v3518_v6, %v3515_v3  ;;  %3546 = vrot.lane.b32.xlu1 %v3531_v5, %s25617_s15  ;;  %20501 = vmatpush3.bf16.msra.mxu1 %v3531_v5 }
 0x7e2   : > { %20502 = vmatprep.subr.bf16.mxu1 %v22554_v1 }
 0x7e3   : > { %3544 = vrot.lane.b32.xlu0 %v3530_v7, %s25617_s15 }
 0x7e5   : > { %3653 = vrot.lane.b32.xlu1 %v3531_v5, %s25623_s16  ;;  %20503 = vmatpush3.bf16.msra.mxu1 %v3530_v7 }
 0x7e6   : > { %20516 = vmatprep.subr.bf16.mxu1 %v22554_v1 }
 0x7e7   : > { %3651 = vrot.lane.b32.xlu0 %v3530_v7, %s25623_s16 }
 0x7e8   : > { %20505 = vmatmul.mubr.msk.bf16.vlgmr.msra.gmra.mxu1 %vm3037_vm10, %v20936_v9 }
 0x7e9   : > { %3713 = vrot.lane.b32.xlu1 %v3531_v5, %s25613_s18  ;;  %20520 = vmatprep.mubr.msk.bf16.mxu1 %vm22556_vm1, %v22554_v1 }
 0x7eb   : > { %3773 = vrot.lane.b32.xlu0 %v3531_v5, %s25615_s22 }
 0x7ed   : > { %3711 = vrot.lane.b32.xlu1 %v3530_v7, %s25613_s18 }
 0x7ef   : > { %3771 = vrot.lane.b32.xlu0 %v3530_v7, %s25615_s22 }
 0x7f1   : > { %3827 = vperm.xlu1 %20895, %v3823_v10  }
 0x7f3   : > { %3832 = vperm.xlu0 %20896, %v3824_v11  }
 0x7f5   : > { %3841 = vperm.xlu1 %20895, %v3837_v12  }
 0x7f7   : > { %3846 = vperm.xlu0 %20896, %v3838_v13  }
 0x853   : > { %v3547_v14 = vpop.permute.xlu1 %3546 }
 0x854   : > { %20493 = vmatpush3.bf16.msra.mxu0 %v3547_v14  ;;  %v20943_v14 = vld [vmem:[%s25691_s11] sm:$0xff]  }
 0x855   : > { %v3545_v15 = vpop.permute.xlu0 %3544  ;;  %20494 = vmatprep.subr.bf16.mxu0 %v22554_v1 }
 0x857   : > { %v3654_v16 = vpop.permute.xlu1 %3653 }
 0x858   : > { %20495 = vmatpush3.bf16.msra.mxu0 %v3545_v15  ;;  %v4194_v15 = vld [vmem:[%s25692_s23 + $0x8] sm:$0xff] }
 0x859   : > { %20508 = vmatprep.subr.bf16.mxu0 %v22554_v1  ;;  %v3652_v18 = vpop.permute.xlu0 %3651 }
 0x85b   : > { %v3714_v19 = vpop.permute.xlu1 %3713  ;;  %20497 = vmatmul.mubr.msk.bf16.vlgmr.msra.gmra.mxu0 %vm3037_vm10, %v20935_v17  ;;  %v4208_v17 = vld [vmem:[%s25693_s26 + $0x8] sm:$0xff] }
 0x85c   : > { %20509 = vmatpush3.bf16.msra.mxu0 %v3654_v16  ;;  %20517 = vmatpush3.bf16.msra.mxu1 %v3714_v19  ;;  %v4193_v16 = vld [vmem:[%s25692_s23] sm:$0xff] }
 0x85d   : > { %20510 = vmatprep.subr.bf16.mxu0 %v22554_v1  ;;  %20518 = vmatprep.subr.bf16.mxu1 %v22554_v1  ;;  %v3774_v23 = vpop.permute.xlu0 %3773 }
 0x85e   : > { %20512 = vmatprep.mubr.msk.bf16.mxu0 %vm22556_vm1, %v22554_v1 }
 0x85f   : > { %v3712_v20 = vpop.permute.xlu1 %3711 }
 0x860   : > { %20511 = vmatpush3.bf16.msra.mxu0 %v3652_v18  ;;  %20519 = vmatpush3.bf16.msra.mxu1 %v3712_v20  ;;  %v4207_v18 = vld [vmem:[%s25693_s26] sm:$0xff]  ;;  %v20942_v20 = vld [vmem:[%s25691_s11 + $0x8] sm:$0xff]  }
 0x861   : > { %20524 = vmatprep.subr.bf16.mxu0 %v22554_v1  ;;  %20532 = vmatprep.subr.bf16.mxu1 %v22554_v1  ;;  %v3772_v24 = vpop.permute.xlu0 %3771 }
 0x863   : > { %20513 = vmatmul.mubr.msk.bf16.vlgmr.msra.gmra.mxu0 %vm3037_vm10, %v20937_v21  ;;  %20521 = vmatmul.mubr.msk.bf16.vlgmr.msra.gmra.mxu1 %vm3037_vm10, %v20938_v22 }
 0x864   : > { %20525 = vmatpush3.bf16.msra.mxu0 %v3774_v23  ;;  %20528 = vmatprep.mubr.msk.bf16.mxu0 %vm22556_vm1, %v22554_v1  ;;  %v20945_v23 = vld [vmem:[%s25691_s11 + $0x18] sm:$0xff]  }
 0x865   : > { %20526 = vmatprep.subr.bf16.mxu0 %v22554_v1  ;;  %20536 = vmatprep.mubr.msk.bf16.mxu1 %vm22556_vm1, %v22554_v1 }
 0x866   : > { %20533 = vmatpush3.bf16.msra.mxu1 %v3871_v30 }
 0x867   : > { %20534 = vmatprep.subr.bf16.mxu1 %v22554_v1 }
 0x868   : > { %20527 = vmatpush3.bf16.msra.mxu0 %v3772_v24  ;;  %v20944_v24 = vld [vmem:[%s25691_s11 + $0x10] sm:$0xff]  }
 0x869   : > { %20540 = vmatprep.subr.bf16.mxu0 %v22554_v1 }
 0x86a   : > { %20535 = vmatpush3.bf16.msra.mxu1 %v20941_v32  ;;  %v4242_v32 = vsel %vm4240_vm15, 4294967295, %v22559_v43  ;;  %vm6368_vm15 = vcmask 1014784  }
 0x86b   : > { %20529 = vmatmul.mubr.msk.bf16.vlgmr.msra.gmra.mxu0 %vm3037_vm10, %v20939_v25  ;;  %20546 = vmatprep.subr.bf16.mxu1 %v22554_v1  ;;  %vm6140_vm10 = vcmask 1039360  }
 0x86c   : > { %20542 = vmatprep.mubr.msk.bf16.mxu0 %vm22556_vm1, %v22554_v1  ;;  %v3828_v53 = vpop.permute.xlu1 %3827 }
 0x86e   : > { %v3833_v49 = vpop.permute.xlu0 %3832 }
 0x870   : > { %v3842_v57 = vpop.permute.xlu1 %3841 }
 0x872   : > { %v3847_v3 = vpop.permute.xlu0 %3846 }
 0x8a8   : > { %v3636_v26 = vpop.f32.mrf.mxu1 }
 0x8aa   : > { %v20506_v27 = vpop.f32.mrf.mxu1 }
 0x8ac   : > { %v3639_v28 = vpop.f32.mrf.mxu1 }
 0x8ae   : > { %v20507_v29 = vpop.f32.mrf.mxu1 }
 0x91b   : > { %v3587_v33 = vpop.f32.mrf.mxu0 }
 0x91c   : > { %v3637_v39 = vadd.f32 %v3636_v26, %v3587_v33  ;;  %v20946_v26 = vld [vmem:[%s25691_s11 + $0x20] sm:$0xff]   ;;  %v23132_v33 = vsel %vm4241_vm2, %v4242_v32, 0  ;;  %s25707_s11 = smov 126  }
 0x91d   : > { %v20498_v34 = vpop.f32.mrf.mxu0 }
 0x91f   : > { %v3590_v35 = vpop.f32.mrf.mxu0 }
 0x920   : > { %v3640_v47 = vadd.f32 %v3639_v28, %v3590_v35 }
 0x921   : > { %v20499_v36 = vpop.f32.mrf.mxu0 }
 0x923   : > { %v3694_v37 = vpop.f32.mrf.mxu0  ;;  %v3754_v38 = vpop.f32.mrf.mxu1 }
 0x924   : > { %v3701_v42 = vadd.f32 %v3694_v37, %v3637_v39 }
 0x925   : > { %v20514_v40 = vpop.f32.mrf.mxu0  ;;  %v20522_v41 = vpop.f32.mrf.mxu1 }
 0x926   : > { %v3761_v51 = vadd.f32 %v3754_v38, %v3701_v42 }
 0x927   : > { %v3697_v44 = vpop.f32.mrf.mxu0  ;;  %v3757_v45 = vpop.f32.mrf.mxu1 }
 0x928   : > { %v3702_v52 = vadd.f32 %v3697_v44, %v3640_v47 }
 0x929   : > { %v20515_v48 = vpop.f32.mrf.mxu0  ;;  %v20523_v50 = vpop.f32.mrf.mxu1 }
 0x92a   : > { %v3762_v58 = vadd.f32 %v3757_v45, %v3702_v52 }
 0x92b   : > { %v3814_v54 = vpop.f32.mrf.mxu0 }
 0x92c   : > { %v3821_v55 = vadd.f32 %v3814_v54, %v3761_v51 }
 0x92d   : > { %v20530_v56 = vpop.f32.mrf.mxu0 }
 0x92e   : > { %v3835_v59 = vmul.f32 %v3828_v53, %v3821_v55 }
 0x92f   : > { %v3817_v60 = vpop.f32.mrf.mxu0 }
 0x930   : > { %v3822_v61 = vadd.f32 %v3817_v60, %v3762_v58  ;;  %v3849_v63 = vadd.f32 %v3842_v57, %v3835_v59 }
 0x931   : > { %v20531_v62 = vpop.f32.mrf.mxu0 }
 0x932   : > { %v3836_v0 = vmul.f32 %v3833_v49, %v3822_v61  ;;  %v3851_v5 = vmax.f32 %v3849_v63, 0.0 }
 0x934   : > { %v3850_v4 = vadd.f32 %v3847_v3, %v3836_v0 }
 0x936   : > { %v3852_v6 = vmax.f32 %v3850_v4, 0.0 }
 0x938   : > { %v3853_v7 = vpack.c.bf16 %v3852_v6, %v3851_v5 }
 0x93a   : > { %20537 = vmatmul.mubr.msk.bf16.vlgmr.msra.gmra.mxu1 %vm3866_vm14, %v3853_v7  ;;  %vm6428_vm14 = vcmask 1006592  }
 0x93b   : > { %20548 = vmatprep.mubr.msk.bf16.mxu1 %vm22556_vm1, %v22554_v1 }
 0x9fa   : > { %v3907_v9 = vpop.f32.mrf.mxu1 }
 0x9fc   : > { %v20538_v10 = vpop.f32.mrf.mxu1 }
 0x9fe   : > { %v3910_v11 = vpop.f32.mrf.mxu1 }
 0x9ff   : > { %v3914_v12 = vpack.c.bf16 %v3910_v11, %v3907_v9 }
 0xa00   : > { %v20539_v13 = vpop.f32.mrf.mxu1 }
 0xa01   : > { %4030 = vrot.lane.b32.xlu0 %v3914_v12, %s25623_s16  ;;  %3926 = vrot.lane.b32.xlu1 %v3914_v12, %s25617_s15  ;;  %s25696_s15 = sld [smem:[#allocation14_spill]] }
 0xa02   : > { %20547 = vmatpush3.bf16.msra.mxu1 %v3914_v12 }
 0xa03   : > { %20558 = vmatprep.subr.bf16.mxu1 %v22554_v1 }
 0xa05   : > { %4144 = vrot.lane.b32.xlu0 %v3914_v12, %s25615_s22  ;;  %4087 = vrot.lane.b32.xlu1 %v3914_v12, %s25613_s18  ;;  %s25694_s18 = sld [smem:[#allocation16_spill]] }
 0xa06   : > { %20549 = vmatmul.mubr.msk.bf16.vlgmr.msra.gmra.mxu1 %vm1785_vm3, %v20943_v14  ;;  %s25695_s22 = sld [smem:[#allocation13_spill]] }
 0xa07   : > { %20560 = vmatprep.mubr.msk.bf16.mxu1 %vm22556_vm1, %v22554_v1 }
 0xa09   : > { %4202 = vperm.xlu0 %20896, %v4194_v15   ;;  %4197 = vperm.xlu1 %20895, %v4193_v16  }
 0xa0b   : > { %v20947_v30 = vld [vmem:[%s25694_s18 + $0x8] ss:$0 sps:$4 sm:$0xff]   ;;  %v20948_v35 = vld [vmem:[%s25694_s18] sm:$0xff]  }
 0xa0c   : > { %v4245_v34 = vand.u32 %v20947_v30, %v23132_v33  ;;  %v20953_v30 = vld [vmem:[%s25695_s22 + $0x20] sm:$0xff]  }
 0xa0d   : > { %4216 = vperm.xlu0 %20896, %v4208_v17   ;;  %4211 = vperm.xlu1 %20895, %v4207_v18   ;;  %v20949_v17 = vld [vmem:[%s25695_s22] sm:$0xff]   ;;  %v4682_v18 = vld [vmem:[%s25696_s15 + $0x8] sm:$0xff] }
 0xa73   : > { %v3927_v19 = vpop.permute.xlu1 %3926  ;;  %v4031_v21 = vpop.permute.xlu0 %4030 }
 0xa74   : > { %20541 = vmatpush3.bf16.msra.mxu0 %v3927_v19  ;;  %v4681_v19 = vld [vmem:[%s25696_s15] sm:$0xff] }
 0xa75   : > { %20552 = vmatprep.subr.bf16.mxu0 %v22554_v1 }
 0xa77   : > { %20543 = vmatmul.mubr.msk.bf16.vlgmr.msra.gmra.mxu0 %vm1785_vm3, %v20942_v20  ;;  %v4088_v22 = vpop.permute.xlu1 %4087  ;;  %v4145_v25 = vpop.permute.xlu0 %4144  ;;  %v4696_v20 = vld [vmem:[%s25697_s0 + $0x8] sm:$0xff] }
 0xa78   : > { %20553 = vmatpush3.bf16.msra.mxu0 %v4031_v21  ;;  %20559 = vmatpush3.bf16.msra.mxu1 %v4088_v22  ;;  %v4695_v21 = vld [vmem:[%s25697_s0] sm:$0xff]  ;;  %s25703_s0 = sld [smem:[#allocation20_spill]] }
 0xa79   : > { %20554 = vmatprep.mubr.msk.bf16.mxu0 %vm22556_vm1, %v22554_v1  ;;  %20564 = vmatprep.subr.bf16.mxu0 %v22554_v1 }
 0xa7a   : > { %20570 = vmatprep.subr.bf16.mxu1 %v22554_v1 }
 0xa7b   : > { %20561 = vmatmul.mubr.msk.bf16.vlgmr.msra.gmra.mxu1 %vm1785_vm3, %v20945_v23  ;;  %v20950_v23 = vld [vmem:[%s25695_s22 + $0x8] sm:$0xff]  }
 0xa7c   : > { %20574 = vmatprep.mubr.msk.bf16.mxu1 %vm22556_vm1, %v22554_v1  ;;  %20571 = vmatpush3.bf16.msra.mxu1 %v4245_v34  ;;  %v20955_v34 = vld [vmem:[%s25695_s22 + $0x30] sm:$0xff]  }
 0xa7d   : > { %20572 = vmatprep.subr.bf16.mxu1 %v22554_v1 }
 0xa7f   : > { %20555 = vmatmul.mubr.msk.bf16.vlgmr.msra.gmra.mxu0 %vm1785_vm3, %v20944_v24 }
 0xa80   : > { %20565 = vmatpush3.bf16.msra.mxu0 %v4145_v25  ;;  %20566 = vmatprep.mubr.msk.bf16.mxu0 %vm22556_vm1, %v22554_v1 }
 0xa81   : > { %20578 = vmatprep.subr.bf16.mxu0 %v22554_v1  ;;  %20573 = vmatpush3.bf16.msra.mxu1 %v20948_v35 }
 0xa82   : > { %20584 = vmatprep.subr.bf16.mxu1 %v22554_v1 }
 0xa84   : > { %v4198_v49 = vpop.permute.xlu1 %4197  ;;  %v4203_v59 = vpop.permute.xlu0 %4202 }
 0xa87   : > { %20567 = vmatmul.mubr.msk.bf16.vlgmr.msra.gmra.mxu0 %vm1785_vm3, %v20946_v26  ;;  %v20951_v26 = vld [vmem:[%s25695_s22 + $0x18] sm:$0xff]  }
 0xa88   : > { %20580 = vmatprep.mubr.msk.bf16.mxu0 %vm22556_vm1, %v22554_v1  ;;  %v4212_v0 = vpop.permute.xlu1 %4211  ;;  %v4217_v6 = vpop.permute.xlu0 %4216 }
 0xac6   : > { %v4015_v27 = vpop.f32.mrf.mxu1 }
 0xac8   : > { %v20550_v28 = vpop.f32.mrf.mxu1 }
 0xac9   : > { %v20952_v28 = vld [vmem:[%s25695_s22 + $0x10] sm:$0xff]  }
 0xaca   : > { %v4018_v29 = vpop.f32.mrf.mxu1 }
 0xacc   : > { %v20551_v31 = vpop.f32.mrf.mxu1 }
 0xacd   : > { %v20954_v31 = vld [vmem:[%s25695_s22 + $0x28] sm:$0xff]  }
 0xb37   : > { %v3966_v36 = vpop.f32.mrf.mxu0 }
 0xb38   : > { %v4016_v45 = vadd.f32 %v4015_v27, %v3966_v36 }
 0xb39   : > { %v20544_v37 = vpop.f32.mrf.mxu0 }
 0xb3b   : > { %v3969_v38 = vpop.f32.mrf.mxu0  ;;  %v4127_v39 = vpop.f32.mrf.mxu1 }
 0xb3c   : > { %v4019_v52 = vadd.f32 %v4018_v29, %v3969_v38 }
 0xb3d   : > { %v20545_v40 = vpop.f32.mrf.mxu0  ;;  %v20562_v41 = vpop.f32.mrf.mxu1 }
 0xb3e   : > { %v4731_v40 = vsel %vm2953_vm8, 4294967295, %v22559_v43  ;;  %vm5206_vm8 = vcmask 64512  }
 0xb3f   : > { %v4070_v42 = vpop.f32.mrf.mxu0  ;;  %v4130_v44 = vpop.f32.mrf.mxu1  ;;  %v4732_v41 = vsel %vm3474_vm11, %v4731_v40, 0  ;;  %v5116_v40 = vld [vmem:[%s25706_s9] sm:$0xff]  ;;  %s25708_s9 = sld [smem:[#allocation24_spill]] }
 0xb40   : > { %v4077_v50 = vadd.f32 %v4070_v42, %v4016_v45 }
 0xb41   : > { %v20556_v47 = vpop.f32.mrf.mxu0  ;;  %v20563_v48 = vpop.f32.mrf.mxu1 }
 0xb42   : > { %v4134_v54 = vadd.f32 %v4127_v39, %v4077_v50  ;;  %v20956_v39 = vld [vmem:[%s25703_s0 + $0x8] sm:$0x7f]  }
 0xb43   : > { %v4073_v51 = vpop.f32.mrf.mxu0  ;;  %v4734_v42 = vand.u32 %v20956_v39, %v4732_v41  ;;  %v5123_v39 = vld [vmem:[%s25705_s8] sm:$0xff]  ;;  %s25709_s8 = sld [smem:[#allocation21_spill]] }
 0xb44   : > { %v4078_v55 = vadd.f32 %v4073_v51, %v4019_v52 }
 0xb45   : > { %v20557_v53 = vpop.f32.mrf.mxu0 }
 0xb46   : > { %v4135_v61 = vadd.f32 %v4130_v44, %v4078_v55  ;;  %v20957_v44 = vld [vmem:[%s25703_s0] sm:$0xff]   ;;  %s25704_s0 = sld [smem:[#allocation17_spill]] }
 0xb47   : > { %v4184_v56 = vpop.f32.mrf.mxu0 }
 0xb48   : > { %v4191_v58 = vadd.f32 %v4184_v56, %v4134_v54 }
 0xb49   : > { %v20568_v60 = vpop.f32.mrf.mxu0 }
 0xb4a   : > { %v4205_v57 = vmul.f32 %v4198_v49, %v4191_v58 }
 0xb4b   : > { %v4187_v62 = vpop.f32.mrf.mxu0 }
 0xb4c   : > { %v4192_v63 = vadd.f32 %v4187_v62, %v4135_v61  ;;  %v4219_v4 = vadd.f32 %v4212_v0, %v4205_v57 }
 0xb4d   : > { %v20569_v3 = vpop.f32.mrf.mxu0 }
 0xb4e   : > { %v4206_v5 = vmul.f32 %v4203_v59, %v4192_v63  ;;  %v4221_v9 = vmax.f32 %v4219_v4, 0.0 }
 0xb50   : > { %v4220_v7 = vadd.f32 %v4217_v6, %v4206_v5 }
 0xb52   : > { %v4222_v10 = vmax.f32 %v4220_v7, 0.0 }
 0xb54   : > { %v4223_v11 = vpack.c.bf16 %v4222_v10, %v4221_v9 }
 0xb56   : > { %20575 = vmatmul.mubr.msk.bf16.vlgmr.msra.gmra.mxu1 %vm4236_vm5, %v4223_v11  ;;  %vm6488_vm5 = vcmask 998400  }
 0xb57   : > { %20586 = vmatprep.mubr.msk.bf16.mxu1 %vm22556_vm1, %v22554_v1 }
 0xc16   : > { %v4281_v12 = vpop.f32.mrf.mxu1 }
 0xc18   : > { %v20576_v13 = vpop.f32.mrf.mxu1 }
 0xc1a   : > { %v4284_v14 = vpop.f32.mrf.mxu1 }
 0xc1b   : > { %v4288_v15 = vpack.c.bf16 %v4284_v14, %v4281_v12 }
 0xc1c   : > { %v20577_v16 = vpop.f32.mrf.mxu1 }
 0xc1d   : > { %4404 = vrot.lane.b32.xlu0 %v4288_v15, %s25623_s16  ;;  %4300 = vrot.lane.b32.xlu1 %v4288_v15, %s25698_s1  ;;  %s25702_s16 = smov 123  }
 0xc1e   : > { %20585 = vmatpush3.bf16.msra.mxu1 %v4288_v15 }
 0xc1f   : > { %20596 = vmatprep.subr.bf16.mxu1 %v22554_v1 }
 0xc21   : > { %4518 = vrot.lane.b32.xlu0 %v4288_v15, %s25699_s2  ;;  %4461 = vrot.lane.b32.xlu1 %v4288_v15, %s25700_s3 }
 0xc22   : > { %20587 = vmatmul.mubr.msk.bf16.vlgmr.msra.gmra.mxu1 %vm1785_vm3, %v20949_v17 }
 0xc23   : > { %20598 = vmatprep.mubr.msk.bf16.mxu1 %vm22556_vm1, %v22554_v1 }
 0xc25   : > { %4632 = vrot.lane.b32.xlu0 %v4288_v15, %s25701_s5  ;;  %4575 = vrot.lane.b32.xlu1 %v4288_v15, %s25702_s16 }
 0xc29   : > { %4690 = vperm.xlu0 %20896, %v4682_v18   ;;  %4685 = vperm.xlu1 %20895, %v4681_v19  }
 0xc2d   : > { %4704 = vperm.xlu0 %20896, %v4696_v20   ;;  %4699 = vperm.xlu1 %20895, %v4695_v21  }
 0xc8f   : > { %v4301_v22 = vpop.permute.xlu1 %4300  ;;  %v4405_v24 = vpop.permute.xlu0 %4404 }
 0xc90   : > { %20579 = vmatpush3.bf16.msra.mxu0 %v4301_v22 }
 0xc91   : > { %20590 = vmatprep.subr.bf16.mxu0 %v22554_v1 }
 0xc93   : > { %20581 = vmatmul.mubr.msk.bf16.vlgmr.msra.gmra.mxu0 %vm1785_vm3, %v20950_v23  ;;  %v4462_v25 = vpop.permute.xlu1 %4461  ;;  %v4519_v29 = vpop.permute.xlu0 %4518 }
 0xc94   : > { %20591 = vmatpush3.bf16.msra.mxu0 %v4405_v24  ;;  %20597 = vmatpush3.bf16.msra.mxu1 %v4462_v25 }
 0xc95   : > { %20608 = vmatprep.subr.bf16.mxu1 %v22554_v1  ;;  %20592 = vmatprep.mubr.msk.bf16.mxu0 %vm22556_vm1, %v22554_v1 }
 0xc96   : > { %20602 = vmatprep.subr.bf16.mxu0 %v22554_v1 }
 0xc97   : > { %v4576_v27 = vpop.permute.xlu1 %4575  ;;  %20599 = vmatmul.mubr.msk.bf16.vlgmr.msra.gmra.mxu1 %vm1785_vm3, %v20951_v26  ;;  %v4633_v32 = vpop.permute.xlu0 %4632 }
 0xc98   : > { %20609 = vmatpush3.bf16.msra.mxu1 %v4576_v27  ;;  %20610 = vmatprep.mubr.msk.bf16.mxu1 %vm22556_vm1, %v22554_v1 }
 0xc99   : > { %20620 = vmatprep.subr.bf16.mxu1 %v22554_v1 }
 0xc9b   : > { %20593 = vmatmul.mubr.msk.bf16.vlgmr.msra.gmra.mxu0 %vm1785_vm3, %v20952_v28 }
 0xc9c   : > { %20603 = vmatpush3.bf16.msra.mxu0 %v4519_v29  ;;  %20604 = vmatprep.mubr.msk.bf16.mxu0 %vm22556_vm1, %v22554_v1 }
 0xc9d   : > { %20614 = vmatprep.subr.bf16.mxu0 %v22554_v1 }
 0xc9f   : > { %20611 = vmatmul.mubr.msk.bf16.vlgmr.msra.gmra.mxu1 %vm1785_vm3, %v20954_v31 }
 0xca0   : > { %20624 = vmatprep.mubr.msk.bf16.mxu1 %vm22556_vm1, %v22554_v1  ;;  %20621 = vmatpush3.bf16.msra.mxu1 %v4734_v42  ;;  %v18820_v42 = vld [vmem:[%s25704_s0 + $0x4] sm:$0xf] }
 0xca1   : > { %20622 = vmatprep.subr.bf16.mxu1 %v22554_v1 }
 0xca3   : > { %20605 = vmatmul.mubr.msk.bf16.vlgmr.msra.gmra.mxu0 %vm1785_vm3, %v20953_v30 }
 0xca4   : > { %20615 = vmatpush3.bf16.msra.mxu0 %v4633_v32  ;;  %20616 = vmatprep.mubr.msk.bf16.mxu0 %vm22556_vm1, %v22554_v1  ;;  %v4686_v14 = vpop.permute.xlu1 %4685  ;;  %v4691_v17 = vpop.permute.xlu0 %4690 }
 0xca5   : > { %20628 = vmatprep.subr.bf16.mxu0 %v22554_v1  ;;  %20623 = vmatpush3.bf16.msra.mxu1 %v20957_v44 }
 0xca6   : > { %20634 = vmatprep.subr.bf16.mxu1 %v22554_v1 }
 0xca8   : > { %v4700_v23 = vpop.permute.xlu1 %4699  ;;  %v4705_v27 = vpop.permute.xlu0 %4704 }
 0xcab   : > { %20617 = vmatmul.mubr.msk.bf16.vlgmr.msra.gmra.mxu0 %vm1785_vm3, %v20955_v34 }
 0xcac   : > { %20630 = vmatprep.mubr.msk.bf16.mxu0 %vm22556_vm1, %v22554_v1 }
 0xce2   : > { %v4389_v35 = vpop.f32.mrf.mxu1 }
 0xce4   : > { %v20588_v36 = vpop.f32.mrf.mxu1 }
 0xce6   : > { %v4392_v37 = vpop.f32.mrf.mxu1 }
 0xce8   : > { %v20589_v38 = vpop.f32.mrf.mxu1 }
 0xce9   : > { %v4778_v38 = vld [vmem:[%s25704_s0] sm:$0xf] }
 0xd53   : > { %v4340_v45 = vpop.f32.mrf.mxu0 }
 0xd54   : > { %v4390_v56 = vadd.f32 %v4389_v35, %v4340_v45 }
 0xd55   : > { %v20582_v47 = vpop.f32.mrf.mxu0 }
 0xd56   : > { %v18825_v47 = vld [vmem:[%s25704_s0 + $0xc] sm:$0xf] }
 0xd57   : > { %v4343_v48 = vpop.f32.mrf.mxu0  ;;  %v4501_v50 = vpop.f32.mrf.mxu1 }
 0xd58   : > { %v4393_v62 = vadd.f32 %v4392_v37, %v4343_v48 }
 0xd59   : > { %v20583_v51 = vpop.f32.mrf.mxu0  ;;  %v20600_v52 = vpop.f32.mrf.mxu1 }
 0xd5a   : > { %v18829_v52 = vld [vmem:[%s25704_s0 + $0x14] sm:$0xf] }
 0xd5b   : > { %v4444_v53 = vpop.f32.mrf.mxu0  ;;  %v4504_v54 = vpop.f32.mrf.mxu1 }
 0xd5c   : > { %v4451_v60 = vadd.f32 %v4444_v53, %v4390_v56  ;;  %v18827_v53 = vld [vmem:[%s25704_s0 + $0x10] sm:$0xf] }
 0xd5d   : > { %v20594_v55 = vpop.f32.mrf.mxu0  ;;  %v20601_v49 = vpop.f32.mrf.mxu1 }
 0xd5e   : > { %v4508_v3 = vadd.f32 %v4501_v50, %v4451_v60  ;;  %v18823_v50 = vld [vmem:[%s25704_s0 + $0x8] sm:$0xf]  ;;  %v18831_v55 = vld [vmem:[%s25704_s0 + $0x18] sm:$0xf]  ;;  %s25710_s0 = sld [smem:[#allocation23_spill]] }
 0xd5f   : > { %v4447_v58 = vpop.f32.mrf.mxu0  ;;  %v4615_v59 = vpop.f32.mrf.mxu1  ;;  %v20958_v60 = vld [vmem:[%s25708_s9 + $0x10] ss:$0 sps:$4 sm:$0x33]  }
 0xd60   : > { %v4452_v4 = vadd.f32 %v4447_v58, %v4393_v62  ;;  %v20960_v62 = vld [vmem:[%s25708_s9] sm:$0xff]  }
 0xd61   : > { %v20595_v61 = vpop.f32.mrf.mxu0  ;;  %v20612_v57 = vpop.f32.mrf.mxu1 }
 0xd62   : > { %v4509_v10 = vadd.f32 %v4504_v54, %v4452_v4  ;;  %v5157_v61 = vand.u32 %v20958_v60, %v22928_v46  ;;  %v20959_v57 = vld [vmem:[%s25708_s9 + $0x8] sm:$0xff]   ;;  %s25711_s9 = sld [smem:[#allocation22_spill]] }
 0xd63   : > { %v4558_v63 = vpop.f32.mrf.mxu0  ;;  %v4618_v0 = vpop.f32.mrf.mxu1 }
 0xd64   : > { %v4565_v7 = vadd.f32 %v4558_v63, %v4508_v3 }
 0xd65   : > { %v20606_v5 = vpop.f32.mrf.mxu0  ;;  %v20613_v6 = vpop.f32.mrf.mxu1 }
 0xd66   : > { %v4622_v12 = vadd.f32 %v4615_v59, %v4565_v7 }
 0xd67   : > { %v4561_v9 = vpop.f32.mrf.mxu0 }
 0xd68   : > { %v4566_v13 = vadd.f32 %v4561_v9, %v4509_v10 }
 0xd69   : > { %v20607_v11 = vpop.f32.mrf.mxu0 }
 0xd6a   : > { %v4623_v19 = vadd.f32 %v4618_v0, %v4566_v13 }
 0xd6b   : > { %v4672_v15 = vpop.f32.mrf.mxu0 }
 0xd6c   : > { %v4679_v16 = vadd.f32 %v4672_v15, %v4622_v12 }
 0xd6d   : > { %v20618_v18 = vpop.f32.mrf.mxu0 }
 0xd6e   : > { %v4693_v20 = vmul.f32 %v4686_v14, %v4679_v16 }
 0xd6f   : > { %v4675_v21 = vpop.f32.mrf.mxu0 }
 0xd70   : > { %v4680_v22 = vadd.f32 %v4675_v21, %v4623_v19  ;;  %v4707_v25 = vadd.f32 %v4700_v23, %v4693_v20 }
 0xd71   : > { %v20619_v24 = vpop.f32.mrf.mxu0 }
 0xd72   : > { %v4694_v26 = vmul.f32 %v4691_v17, %v4680_v22  ;;  %v4709_v29 = vmax.f32 %v4707_v25, 0.0 }
 0xd74   : > { %v4708_v28 = vadd.f32 %v4705_v27, %v4694_v26 }
 0xd76   : > { %v4710_v31 = vmax.f32 %v4708_v28, 0.0 }
 0xd78   : > { %v4711_v30 = vpack.c.bf16 %v4710_v31, %v4709_v29 }
 0xd7a   : > { %20625 = vmatmul.mubr.msk.bf16.vlgmr.msra.gmra.mxu1 %vm4727_vm6, %v4711_v30  ;;  %vm6792_vm6 = vcmask 416768  }
 0xd7b   : > { %20636 = vmatprep.mubr.msk.bf16.mxu1 %vm22556_vm1, %v22554_v1 }
 0xe3a   : > { %v4770_v32 = vpop.f32.mrf.mxu1 }
 0xe3c   : > { %v20626_v34 = vpop.f32.mrf.mxu1 }
 0xe3e   : > { %v4773_v35 = vpop.f32.mrf.mxu1 }
 0xe3f   : > { %v4777_v36 = vpack.c.bf16 %v4773_v35, %v4770_v32 }
 0xe40   : > { %v20627_v37 = vpop.f32.mrf.mxu1 }
 0xe41   : > { %4873 = vrot.lane.b32.xlu0 %v4777_v36, %s25707_s11  ;;  %4782 = vrot.lane.b32.xlu1 %v4777_v36, %s25698_s1 }
 0xe42   : > { %20635 = vmatpush3.bf16.msra.mxu1 %v4777_v36 }
 0xe43   : > { %20646 = vmatprep.subr.bf16.mxu1 %v22554_v1 }
 0xe45   : > { %4971 = vrot.lane.b32.xlu0 %v4777_v36, %s25699_s2  ;;  %4922 = vrot.lane.b32.xlu1 %v4777_v36, %s25700_s3 }
 0xe46   : > { %20637 = vmatmul.mubr.msk.bf16.vlgmr.msra.gmra.mxu1 %vm1785_vm3, %v4778_v38 }
 0xe47   : > { %20648 = vmatprep.mubr.msk.bf16.mxu1 %vm22556_vm1, %v22554_v1 }
 0xe49   : > { %5069 = vrot.lane.b32.xlu0 %v4777_v36, %s25701_s5  ;;  %5020 = vrot.lane.b32.xlu1 %v4777_v36, %s25702_s16 }
 0xe4d   : > { %5126 = vperm.xlu0 %20896, %v5123_v39   ;;  %5119 = vperm.xlu1 %20895, %v5116_v40  }
 0xeb3   : > { %v4783_v41 = vpop.permute.xlu1 %4782  ;;  %v4874_v44 = vpop.permute.xlu0 %4873 }
 0xeb4   : > { %20629 = vmatpush3.bf16.msra.mxu0 %v4783_v41 }
 0xeb5   : > { %20640 = vmatprep.subr.bf16.mxu0 %v22554_v1 }
 0xeb7   : > { %20631 = vmatmul.mubr.msk.bf16.vlgmr.msra.gmra.mxu0 %vm1785_vm3, %v18820_v42  ;;  %v4923_v45 = vpop.permute.xlu1 %4922  ;;  %v4972_v51 = vpop.permute.xlu0 %4971 }
 0xeb8   : > { %20641 = vmatpush3.bf16.msra.mxu0 %v4874_v44  ;;  %20647 = vmatpush3.bf16.msra.mxu1 %v4923_v45  ;;  %v5200_v45 = vld [vmem:[%s25709_s8] sm:$0xf] }
 0xeb9   : > { %20658 = vmatprep.subr.bf16.mxu1 %v22554_v1  ;;  %20642 = vmatprep.mubr.msk.bf16.mxu0 %vm22556_vm1, %v22554_v1 }
 0xeba   : > { %20652 = vmatprep.subr.bf16.mxu0 %v22554_v1 }
 0xebb   : > { %v5021_v48 = vpop.permute.xlu1 %5020  ;;  %20649 = vmatmul.mubr.msk.bf16.vlgmr.msra.gmra.mxu1 %vm1785_vm3, %v18825_v47  ;;  %v5070_v54 = vpop.permute.xlu0 %5069 }
 0xebc   : > { %20659 = vmatpush3.bf16.msra.mxu1 %v5021_v48  ;;  %20660 = vmatprep.mubr.msk.bf16.mxu1 %vm22556_vm1, %v22554_v1  ;;  %v5561_v48 = vld [vmem:[%s25710_s0] sm:$0xff]  ;;  %s25712_s0 = sld [smem:[#allocation28_spill]] }
 0xebd   : > { %20670 = vmatprep.subr.bf16.mxu1 %v22554_v1 }
 0xebf   : > { %20643 = vmatmul.mubr.msk.bf16.vlgmr.msra.gmra.mxu0 %vm1785_vm3, %v18823_v50  ;;  %v5554_v50 = vld [vmem:[%s25711_s9] sm:$0xff]  ;;  %s25713_s9 = sld [smem:[#allocation27_spill]] }
 0xec0   : > { %20653 = vmatpush3.bf16.msra.mxu0 %v4972_v51  ;;  %20654 = vmatprep.mubr.msk.bf16.mxu0 %vm22556_vm1, %v22554_v1 }
 0xec1   : > { %20664 = vmatprep.subr.bf16.mxu0 %v22554_v1 }
 0xec3   : > { %20661 = vmatmul.mubr.msk.bf16.vlgmr.msra.gmra.mxu1 %vm1785_vm3, %v18829_v52 }
 0xec4   : > { %20676 = vmatprep.mubr.msk.bf16.mxu1 %vm22556_vm1, %v22554_v1  ;;  %20671 = vmatpush3.bf16.msra.mxu1 %v5157_v61 }
 0xec5   : > { %20672 = vmatprep.subr.bf16.mxu1 %v22554_v1 }
 0xec7   : > { %20655 = vmatmul.mubr.msk.bf16.vlgmr.msra.gmra.mxu0 %vm1785_vm3, %v18827_v53 }
 0xec8   : > { %20665 = vmatpush3.bf16.msra.mxu0 %v5070_v54  ;;  %20666 = vmatprep.mubr.msk.bf16.mxu0 %vm22556_vm1, %v22554_v1  ;;  %v5120_v29 = vpop.permute.xlu1 %5119  ;;  %v5127_v32 = vpop.permute.xlu0 %5126  ;;  %v18837_v54 = vld [vmem:[%s25709_s8 + $0x4] sm:$0xf] }
 0xec9   : > { %20680 = vmatprep.subr.bf16.mxu0 %v22554_v1  ;;  %20673 = vmatpush3.bf16.msra.mxu1 %v20959_v57  ;;  %v18840_v57 = vld [vmem:[%s25709_s8 + $0x8] sm:$0xf] }
 0xeca   : > { %20674 = vmatprep.subr.bf16.mxu1 %v22554_v1 }
 0xecd   : > { %20675 = vmatpush3.bf16.msra.mxu1 %v20960_v62 }
 0xece   : > { %20686 = vmatprep.subr.bf16.mxu1 %v22554_v1 }
 0xecf   : > { %20667 = vmatmul.mubr.msk.bf16.vlgmr.msra.gmra.mxu0 %vm1785_vm3, %v18831_v55  ;;  %vm5152_vm3 = vcmask 285696  }
 0xed0   : > { %20682 = vmatprep.mubr.msk.bf16.mxu0 %vm22556_vm1, %v22554_v1 }
 0xf06   : > { %v4865_v49 = vpop.f32.mrf.mxu1 }
 0xf08   : > { %v20638_v56 = vpop.f32.mrf.mxu1 }
 0xf0a   : > { %v4868_v58 = vpop.f32.mrf.mxu1 }
 0xf0b   : > { %v18842_v58 = vld [vmem:[%s25709_s8 + $0xc] sm:$0xf] }
 0xf0c   : > { %v20639_v59 = vpop.f32.mrf.mxu1 }
 0xf77   : > { %v4822_v63 = vpop.f32.mrf.mxu0 }
 0xf78   : > { %v4866_v12 = vadd.f32 %v4865_v49, %v4822_v63  ;;  %v18846_v63 = vld [vmem:[%s25709_s8 + $0x14] sm:$0xf] }
 0xf79   : > { %v20632_v0 = vpop.f32.mrf.mxu0 }
 0xf7b   : > { %v4825_v3 = vpop.f32.mrf.mxu0  ;;  %v4962_v4 = vpop.f32.mrf.mxu1 }
 0xf7c   : > { %v18844_v3 = vld [vmem:[%s25709_s8 + $0x10] sm:$0xf] }
 0xf7d   : > { %v20633_v5 = vpop.f32.mrf.mxu0  ;;  %v20650_v6 = vpop.f32.mrf.mxu1 }
 0xf7e   : > { %v18848_v5 = vld [vmem:[%s25709_s8 + $0x18] sm:$0xf]  ;;  %s25715_s8 = sld [smem:[#allocation25_spill]] }
 0xf7f   : > { %v4913_v7 = vpop.f32.mrf.mxu0  ;;  %v4965_v9 = vpop.f32.mrf.mxu1 }
 0xf80   : > { %v4919_v15 = vadd.f32 %v4913_v7, %v4866_v12  ;;  %v5597_v12 = vsel %vm4241_vm2, 4294967295, %v22559_v43 }
 0xf81   : > { %v20644_v10 = vpop.f32.mrf.mxu0  ;;  %v20651_v11 = vpop.f32.mrf.mxu1 }
 0xf82   : > { %v4968_v20 = vadd.f32 %v4962_v4, %v4919_v15  ;;  %v20961_v11 = vld [vmem:[%s25712_s0 + $0x10] sm:$0x1f]   ;;  %v20962_v15 = vld [vmem:[%s25712_s0 + $0x8] sm:$0xff]  }
 0xf83   : > { %v4916_v13 = vpop.f32.mrf.mxu0  ;;  %v5060_v14 = vpop.f32.mrf.mxu1 }
 0xf84   : > { %v5598_v13 = vsel %vm2952_vm7, %v5597_v12, 0  ;;  %vm5593_vm7 = vcmask 334848   ;;  %v5643_v12 = vld [vmem:[%s25715_s8] sm:$0xf] }
 0xf85   : > { %v20645_v16 = vpop.f32.mrf.mxu0  ;;  %v20662_v17 = vpop.f32.mrf.mxu1 }
 0xf86   : > { %v20963_v16 = vld [vmem:[%s25712_s0] sm:$0xff]   ;;  %s25714_s0 = sld [smem:[#allocation26_spill]] }
 0xf87   : > { %v5011_v18 = vpop.f32.mrf.mxu0  ;;  %v5063_v19 = vpop.f32.mrf.mxu1 }
 0xf88   : > { %v5017_v23 = vadd.f32 %v5011_v18, %v4968_v20 }
 0xf89   : > { %v20656_v21 = vpop.f32.mrf.mxu0  ;;  %v20663_v22 = vpop.f32.mrf.mxu1 }
 0xf8a   : > { %v5066_v26 = vadd.f32 %v5060_v14, %v5017_v23  ;;  %v5600_v14 = vand.u32 %v20961_v11, %v5598_v13  ;;  %v18861_v13 = vld [vmem:[%s25715_s8 + $0x10] sm:$0xf] }
 0xf8b   : > { %v5014_v24 = vpop.f32.mrf.mxu0 }
 0xf8d   : > { %v20657_v25 = vpop.f32.mrf.mxu0 }
 0xf8f   : > { %v5109_v27 = vpop.f32.mrf.mxu0 }
 0xf90   : > { %v5115_v28 = vadd.f32 %v5109_v27, %v5066_v26 }
 0xf91   : > { %v20668_v31 = vpop.f32.mrf.mxu0 }
 0xf92   : > { %v5122_v30 = vmul.f32 %v5120_v29, %v5115_v28 }
 0xf93   : > { %v5112_v34 = vpop.f32.mrf.mxu0 }
 0xf94   : > { %v5129_v35 = vadd.f32 %v5127_v32, %v5122_v30 }
 0xf95   : > { %v20669_v36 = vpop.f32.mrf.mxu0 }
 0xf96   : > { %v5130_v37 = vmax.f32 %v5129_v35, 0.0 }
 0xf98   : > { %v5131_v38 = vpack.c.bf16 %v5130_v37, %v5130_v37 }
 0xf9a   : > { %20677 = vmatmul.mubr.msk.bf16.vlgmr.msra.gmra.mxu1 %vm5152_vm3, %v5131_v38  ;;  %vm9912_vm3 = vcmask 990208  }
 0xf9b   : > { %20688 = vmatprep.mubr.msk.bf16.mxu1 %vm22556_vm1, %v22554_v1 }
0x105a   : > { %v5193_v39 = vpop.f32.mrf.mxu1 }
0x105b   : > { %v5199_v40 = vpack.c.bf16 %v5193_v39, %v5193_v39 }
0x105c   : > { %v20678_v41 = vpop.f32.mrf.mxu1 }
0x105d   : > { %5301 = vrot.lane.b32.xlu0 %v5199_v40, %s25707_s11  ;;  %5204 = vrot.lane.b32.xlu1 %v5199_v40, %s25698_s1  ;;  %v5257_v42 = vsel %vm4241_vm2, %v5199_v40, 0 }
0x105e   : > { %v5196_v44 = vpop.f32.mrf.mxu1  ;;  %20687 = vmatpush3.bf16.msra.mxu1 %v5257_v42 }
0x105f   : > { %20698 = vmatprep.subr.bf16.mxu1 %v22554_v1 }
0x1060   : > { %v20679_v47 = vpop.f32.mrf.mxu1 }
0x1061   : > { %5403 = vrot.lane.b32.xlu0 %v5199_v40, %s25699_s2  ;;  %5352 = vrot.lane.b32.xlu1 %v5199_v40, %s25700_s3 }
0x1062   : > { %20689 = vmatmul.mubr.msk.bf16.vlgmr.msra.gmra.mxu1 %vm5206_vm8, %v5200_v45 }
0x1063   : > { %20700 = vmatprep.mubr.msk.bf16.mxu1 %vm22556_vm1, %v22554_v1 }
0x1065   : > { %5505 = vrot.lane.b32.xlu0 %v5199_v40, %s25701_s5  ;;  %5454 = vrot.lane.b32.xlu1 %v5199_v40, %s25702_s16 }
0x1069   : > { %5564 = vperm.xlu0 %20896, %v5561_v48   ;;  %5557 = vperm.xlu1 %20895, %v5554_v50  }
0x10cf   : > { %v5205_v51 = vpop.permute.xlu1 %5204  ;;  %v5302_v53 = vpop.permute.xlu0 %5301 }
0x10d0   : > { %v5211_v52 = vsel %vm4241_vm2, %v5205_v51, 0  ;;  %v5307_v49 = vsel %vm4241_vm2, %v5302_v53, 0 }
0x10d1   : > { %20681 = vmatpush3.bf16.msra.mxu0 %v5211_v52 }
0x10d2   : > { %20692 = vmatprep.subr.bf16.mxu0 %v22554_v1 }
0x10d3   : > { %v5353_v55 = vpop.permute.xlu1 %5352  ;;  %v5404_v61 = vpop.permute.xlu0 %5403 }
0x10d4   : > { %v5358_v56 = vsel %vm4241_vm2, %v5353_v55, 0  ;;  %20683 = vmatmul.mubr.msk.bf16.vlgmr.msra.gmra.mxu0 %vm5206_vm8, %v18837_v54  ;;  %v5409_v62 = vsel %vm4241_vm2, %v5404_v61, 0  ;;  %v6003_v61 = vld [vmem:[%s25713_s9] sm:$0xff]  ;;  %s25717_s9 = sld [smem:[#allocation30_spill]] }
0x10d5   : > { %20693 = vmatpush3.bf16.msra.mxu0 %v5307_v49  ;;  %20699 = vmatpush3.bf16.msra.mxu1 %v5358_v56 }
0x10d6   : > { %20710 = vmatprep.subr.bf16.mxu1 %v22554_v1  ;;  %20694 = vmatprep.mubr.msk.bf16.mxu0 %vm22556_vm1, %v22554_v1 }
0x10d7   : > { %v5455_v59 = vpop.permute.xlu1 %5454  ;;  %20704 = vmatprep.subr.bf16.mxu0 %v22554_v1  ;;  %v5506_v0 = vpop.permute.xlu0 %5505 }
0x10d8   : > { %v5460_v60 = vsel %vm4241_vm2, %v5455_v59, 0  ;;  %20701 = vmatmul.mubr.msk.bf16.vlgmr.msra.gmra.mxu1 %vm5206_vm8, %v18842_v58  ;;  %v5511_v4 = vsel %vm4241_vm2, %v5506_v0, 0 }
0x10d9   : > { %20711 = vmatpush3.bf16.msra.mxu1 %v5460_v60  ;;  %20712 = vmatprep.mubr.msk.bf16.mxu1 %vm22556_vm1, %v22554_v1 }
0x10da   : > { %20722 = vmatprep.subr.bf16.mxu1 %v22554_v1 }
0x10dc   : > { %20695 = vmatmul.mubr.msk.bf16.vlgmr.msra.gmra.mxu0 %vm5206_vm8, %v18840_v57  ;;  %v5996_v57 = vld [vmem:[%s25714_s0] sm:$0xff]  ;;  %s25716_s0 = sld [smem:[#allocation32_spill]] }
0x10dd   : > { %20705 = vmatpush3.bf16.msra.mxu0 %v5409_v62  ;;  %20706 = vmatprep.mubr.msk.bf16.mxu0 %vm22556_vm1, %v22554_v1 }
0x10de   : > { %20716 = vmatprep.subr.bf16.mxu0 %v22554_v1 }
0x10e0   : > { %20713 = vmatmul.mubr.msk.bf16.vlgmr.msra.gmra.mxu1 %vm5206_vm8, %v18846_v63 }
0x10e1   : > { %20728 = vmatprep.mubr.msk.bf16.mxu1 %vm22556_vm1, %v22554_v1  ;;  %20723 = vmatpush3.bf16.msra.mxu1 %v5600_v14 }
0x10e2   : > { %20724 = vmatprep.subr.bf16.mxu1 %v22554_v1 }
0x10e4   : > { %20707 = vmatmul.mubr.msk.bf16.vlgmr.msra.gmra.mxu0 %vm5206_vm8, %v18844_v3  ;;  %v5558_v45 = vpop.permute.xlu1 %5557  ;;  %v5565_v50 = vpop.permute.xlu0 %5564 }
0x10e5   : > { %20717 = vmatpush3.bf16.msra.mxu0 %v5511_v4  ;;  %20718 = vmatprep.mubr.msk.bf16.mxu0 %vm22556_vm1, %v22554_v1  ;;  %v18854_v4 = vld [vmem:[%s25715_s8 + $0x4] sm:$0xf] }
0x10e6   : > { %20732 = vmatprep.subr.bf16.mxu0 %v22554_v1  ;;  %20725 = vmatpush3.bf16.msra.mxu1 %v20962_v15 }
0x10e7   : > { %20726 = vmatprep.subr.bf16.mxu1 %v22554_v1 }
0x10ea   : > { %20727 = vmatpush3.bf16.msra.mxu1 %v20963_v16 }
0x10eb   : > { %20744 = vmatprep.subr.bf16.mxu1 %v22554_v1 }
0x10ec   : > { %20719 = vmatmul.mubr.msk.bf16.vlgmr.msra.gmra.mxu0 %vm5206_vm8, %v18848_v5  ;;  %v18857_v5 = vld [vmem:[%s25715_s8 + $0x8] sm:$0xf] }
0x10ed   : > { %20734 = vmatprep.mubr.msk.bf16.mxu0 %vm22556_vm1, %v22554_v1 }
0x1122   : > { %v5293_v6 = vpop.f32.mrf.mxu1 }
0x1124   : > { %v20690_v7 = vpop.f32.mrf.mxu1 }
0x1126   : > { %v5296_v9 = vpop.f32.mrf.mxu1 }
0x1128   : > { %v20691_v10 = vpop.f32.mrf.mxu1 }
0x1194   : > { %v5247_v17 = vpop.f32.mrf.mxu0 }
0x1195   : > { %v5294_v26 = vadd.f32 %v5293_v6, %v5247_v17  ;;  %v18859_v17 = vld [vmem:[%s25715_s8 + $0xc] sm:$0xf] }
0x1196   : > { %v20684_v18 = vpop.f32.mrf.mxu0 }
0x1197   : > { %v18865_v18 = vld [vmem:[%s25715_s8 + $0x18] sm:$0xf] }
0x1198   : > { %v5250_v19 = vpop.f32.mrf.mxu0  ;;  %v5394_v20 = vpop.f32.mrf.mxu1 }
0x119a   : > { %v20685_v21 = vpop.f32.mrf.mxu0  ;;  %v20702_v43 = vpop.f32.mrf.mxu1 }
0x119b   : > { %v6022_v21 = vld [vmem:[%s25716_s0 + $0x50] sm:$0xff] }
0x119c   : > { %v5343_v22 = vpop.f32.mrf.mxu0  ;;  %v5397_v23 = vpop.f32.mrf.mxu1  ;;  %v18878_v43 = vcombine.high %v6022_v21, %v6022_v21 }
0x119d   : > { %v5349_v29 = vadd.f32 %v5343_v22, %v5294_v26  ;;  %v18877_v22 = vcombine.low %v6022_v21, %v6022_v21  ;;  %v20966_v26 = vld [vmem:[%s25716_s0 + $0x40] ss:$8 sps:$4 sm:$0xff]  }
0x119e   : > { %v20696_v24 = vpop.f32.mrf.mxu0  ;;  %v20703_v25 = vpop.f32.mrf.mxu1  ;;  %v6086_v23 = vand.u32 %v18878_v43, %v23132_v33  ;;  %v6542_v43 = vld [vmem:[%s25717_s9] sm:$0xff]  ;;  %s25721_s9 = sld [smem:[#allocation34_spill]] }
0x119f   : > { %v5400_v35 = vadd.f32 %v5394_v20, %v5349_v29  ;;  %v18863_v20 = vld [vmem:[%s25715_s8 + $0x14] sm:$0xf]  ;;  %v6083_v24 = vand.u32 %v18877_v22, %v23132_v33  ;;  %v20968_v25 = vld [vmem:[%s25716_s0 + $0x44] ss:$8 sps:$4 sm:$0xff]   ;;  %s25719_s8 = sld [smem:[#allocation29_spill]] }
0x11a0   : > { %v5346_v27 = vpop.f32.mrf.mxu0  ;;  %v5496_v28 = vpop.f32.mrf.mxu1  ;;  %v20974_v29 = vld [vmem:[%s25716_s0 + $0x24] ss:$8 sps:$4 sm:$0xff]  }
0x11a1   : > { %v20969_v27 = vld [vmem:[%s25716_s0 + $0x30] ss:$8 sps:$4 sm:$0xff]   ;;  %v20980_v33 = vld [vmem:[%s25716_s0 + $0x4] ss:$8 sps:$4 sm:$0xff]  }
0x11a2   : > { %v20697_v31 = vpop.f32.mrf.mxu0  ;;  %v20714_v30 = vpop.f32.mrf.mxu1 }
0x11a3   : > { %v20972_v31 = vld [vmem:[%s25716_s0 + $0x20] ss:$8 sps:$4 sm:$0xff]   ;;  %v20977_v30 = vld [vmem:[%s25716_s0 + $0x14] ss:$8 sps:$4 sm:$0xff]  }
0x11a4   : > { %v5445_v32 = vpop.f32.mrf.mxu0  ;;  %v5499_v34 = vpop.f32.mrf.mxu1 }
0x11a5   : > { %v5451_v38 = vadd.f32 %v5445_v32, %v5400_v35  ;;  %v20975_v32 = vld [vmem:[%s25716_s0 + $0x10] ss:$8 sps:$4 sm:$0xff]   ;;  %v20978_v34 = vld [vmem:[%s25716_s0] ss:$8 sps:$4 sm:$0xff]  }
0x11a6   : > { %v20708_v36 = vpop.f32.mrf.mxu0  ;;  %v20715_v37 = vpop.f32.mrf.mxu1 }
0x11a7   : > { %v5502_v41 = vadd.f32 %v5496_v28, %v5451_v38  ;;  %v20971_v28 = vld [vmem:[%s25716_s0 + $0x34] ss:$8 sps:$4 sm:$0xff]   ;;  %s25718_s0 = sld [smem:[#allocation31_spill]] }
0x11a8   : > { %v5448_v39 = vpop.f32.mrf.mxu0 }
0x11aa   : > { %v20709_v40 = vpop.f32.mrf.mxu0 }
0x11ac   : > { %v5547_v42 = vpop.f32.mrf.mxu0 }
0x11ad   : > { %v5553_v44 = vadd.f32 %v5547_v42, %v5502_v41  ;;  %v6550_v22 = vld [vmem:[%s25718_s0] sm:$0xff]  ;;  %s25720_s0 = sld [smem:[#allocation36_spill]] }
0x11ae   : > { %v20720_v47 = vpop.f32.mrf.mxu0 }
0x11af   : > { %v5560_v48 = vmul.f32 %v5558_v45, %v5553_v44 }
0x11b0   : > { %v5550_v51 = vpop.f32.mrf.mxu0 }
0x11b1   : > { %v5567_v52 = vadd.f32 %v5565_v50, %v5560_v48 }
0x11b2   : > { %v20721_v53 = vpop.f32.mrf.mxu0 }
0x11b3   : > { %v5568_v54 = vmax.f32 %v5567_v52, 0.0 }
0x11b5   : > { %v5569_v55 = vpack.c.bf16 %v5568_v54, %v5568_v54 }
0x11b7   : > { %20729 = vmatmul.mubr.msk.bf16.vlgmr.msra.gmra.mxu1 %vm5593_vm7, %v5569_v55  ;;  %vm10082_vm7 = vcmask 982016  }
0x11b8   : > { %20746 = vmatprep.mubr.msk.bf16.mxu1 %vm22556_vm1, %v22554_v1 }
0x1277   : > { %v5636_v49 = vpop.f32.mrf.mxu1 }
0x1278   : > { %v5642_v56 = vpack.c.bf16 %v5636_v49, %v5636_v49 }
0x1279   : > { %v20730_v58 = vpop.f32.mrf.mxu1 }
0x127a   : > { %5743 = vrot.lane.b32.xlu0 %v5642_v56, %s25707_s11  ;;  %5647 = vrot.lane.b32.xlu1 %v5642_v56, %s25698_s1  ;;  %v5699_v9 = vsel %vm4241_vm2, %v5642_v56, 0 }
0x127b   : > { %v5639_v59 = vpop.f32.mrf.mxu1 }
0x127d   : > { %v20731_v60 = vpop.f32.mrf.mxu1 }
0x127e   : > { %5845 = vrot.lane.b32.xlu0 %v5642_v56, %s25699_s2  ;;  %5794 = vrot.lane.b32.xlu1 %v5642_v56, %s25700_s3 }
0x1282   : > { %5947 = vrot.lane.b32.xlu0 %v5642_v56, %s25701_s5  ;;  %5896 = vrot.lane.b32.xlu1 %v5642_v56, %s25702_s16 }
0x1286   : > { %6006 = vperm.xlu0 %20896, %v6003_v61   ;;  %5999 = vperm.xlu1 %20895, %v5996_v57  }
0x12ec   : > { %v5744_v62 = vpop.permute.xlu0 %5743  ;;  %v5648_v63 = vpop.permute.xlu1 %5647 }
0x12ed   : > { %v5749_v0 = vsel %vm4241_vm2, %v5744_v62, 0  ;;  %v5653_v3 = vsel %vm4241_vm2, %v5648_v63, 0 }
0x12ee   : > { %20733 = vmatpush3.bf16.msra.mxu0 %v5653_v3  ;;  %20745 = vmatpush3.bf16.msra.mxu1 %v5749_v0 }
0x12ef   : > { %20738 = vmatprep.subr.bf16.mxu0 %v22554_v1  ;;  %20756 = vmatprep.subr.bf16.mxu1 %v22554_v1 }
0x12f0   : > { %v5846_v6 = vpop.permute.xlu0 %5845  ;;  %v5795_v10 = vpop.permute.xlu1 %5794 }
0x12f1   : > { %v5851_v7 = vsel %vm4241_vm2, %v5846_v6, 0  ;;  %20735 = vmatmul.mubr.msk.bf16.vlgmr.msra.gmra.mxu0 %vm5206_vm8, %v18854_v4  ;;  %20747 = vmatmul.mubr.msk.bf16.vlgmr.msra.gmra.mxu1 %vm5206_vm8, %v18857_v5  ;;  %v5800_v14 = vsel %vm4241_vm2, %v5795_v10, 0 }
0x12f2   : > { %20739 = vmatpush3.bf16.msra.mxu0 %v5699_v9  ;;  %20757 = vmatpush3.bf16.msra.mxu1 %v5851_v7 }
0x12f3   : > { %20740 = vmatprep.mubr.msk.bf16.mxu0 %vm22556_vm1, %v22554_v1  ;;  %20750 = vmatprep.subr.bf16.mxu0 %v22554_v1 }
0x12f4   : > { %20758 = vmatprep.mubr.msk.bf16.mxu1 %vm22556_vm1, %v22554_v1  ;;  %20768 = vmatprep.subr.bf16.mxu1 %v22554_v1  ;;  %v5948_v11 = vpop.permute.xlu0 %5947  ;;  %v5897_v16 = vpop.permute.xlu1 %5896 }
0x12f5   : > { %v5953_v15 = vsel %vm4241_vm2, %v5948_v11, 0  ;;  %v5902_v19 = vsel %vm4241_vm2, %v5897_v16, 0 }
0x12f9   : > { %20741 = vmatmul.mubr.msk.bf16.vlgmr.msra.gmra.mxu0 %vm5206_vm8, %v5643_v12  ;;  %20759 = vmatmul.mubr.msk.bf16.vlgmr.msra.gmra.mxu1 %vm5206_vm8, %v18861_v13 }
0x12fa   : > { %20751 = vmatpush3.bf16.msra.mxu0 %v5800_v14  ;;  %20769 = vmatpush3.bf16.msra.mxu1 %v5953_v15 }
0x12fb   : > { %20752 = vmatprep.mubr.msk.bf16.mxu0 %vm22556_vm1, %v22554_v1  ;;  %20762 = vmatprep.subr.bf16.mxu0 %v22554_v1 }
0x12fc   : > { %20770 = vmatprep.mubr.msk.bf16.mxu1 %vm22556_vm1, %v22554_v1 }
0x1301   : > { %20753 = vmatmul.mubr.msk.bf16.vlgmr.msra.gmra.mxu0 %vm5206_vm8, %v18859_v17  ;;  %20771 = vmatmul.mubr.msk.bf16.vlgmr.msra.gmra.mxu1 %vm5206_vm8, %v18865_v18  ;;  %v6000_v7 = vpop.permute.xlu1 %5999  ;;  %v6007_v11 = vpop.permute.xlu0 %6006 }
0x1302   : > { %20763 = vmatpush3.bf16.msra.mxu0 %v5902_v19  ;;  %20764 = vmatprep.mubr.msk.bf16.mxu0 %vm22556_vm1, %v22554_v1 }
0x1303   : > { %6183 = vmatprep.mubr.bf16.mxu1 %v22555_v2  ;;  %6092 = vmatprep.subr.bf16.mxu0 %v6086_v23 }
0x1309   : > { %20765 = vmatmul.mubr.msk.bf16.vlgmr.msra.gmra.mxu0 %vm5206_vm8, %v18863_v20 }
0x130a   : > { %6120 = vmatprep.mubr.bf16.mxu0 %v22555_v2  ;;  %6093 = vmatpush1.bf16.msra.mxu0 %v6083_v24 }
0x130b   : > { %6094 = vmatprep.subr.bf16.mxu0 %v20968_v25 }
0x130e   : > { %6095 = vmatpush1.bf16.msra.mxu0 %v20966_v26 }
0x130f   : > { %6096 = vmatprep.subr.bf16.mxu0 %v20971_v28  ;;  %v18880_v28 = vld [vmem:[%s25719_s8 + $0x4] sm:$0xf] }
0x1312   : > { %6097 = vmatpush1.bf16.msra.mxu0 %v20969_v27 }
0x1313   : > { %6098 = vmatprep.subr.bf16.mxu0 %v20974_v29 }
0x1316   : > { %6099 = vmatpush1.bf16.msra.mxu0 %v20972_v31 }
0x1317   : > { %6100 = vmatprep.subr.bf16.mxu0 %v20977_v30 }
0x131a   : > { %6101 = vmatpush1.bf16.msra.mxu0 %v20975_v32 }
0x131b   : > { %6102 = vmatprep.subr.bf16.mxu0 %v20980_v33 }
0x131e   : > { %6103 = vmatpush1.bf16.msra.mxu0 %v20978_v34 }
0x13b1   : > { %v5689_v35 = vpop.f32.mrf.mxu0  ;;  %v5785_v36 = vpop.f32.mrf.mxu1 }
0x13b3   : > { %v20736_v37 = vpop.f32.mrf.mxu0  ;;  %v20748_v38 = vpop.f32.mrf.mxu1 }
0x13b4   : > { %v6131_v37 = vld [vmem:[%s25719_s8] sm:$0xf]  ;;  %v18888_v38 = vld [vmem:[%s25719_s8 + $0xc] sm:$0xf] }
0x13b5   : > { %v5692_v39 = vpop.f32.mrf.mxu0  ;;  %v5788_v40 = vpop.f32.mrf.mxu1 }
0x13b7   : > { %v20737_v41 = vpop.f32.mrf.mxu0  ;;  %v20749_v42 = vpop.f32.mrf.mxu1 }
0x13b9   : > { %v5735_v44 = vpop.f32.mrf.mxu0  ;;  %v5887_v45 = vpop.f32.mrf.mxu1 }
0x13ba   : > { %v5736_v52 = vadd.f32 %v5735_v44, %v5689_v35  ;;  %v20983_v44 = vld [vmem:[%s25720_s0 + $0xac] ss:$12 sps:$4 sm:$0xff]  }
0x13bb   : > { %v20742_v47 = vpop.f32.mrf.mxu0  ;;  %v20760_v48 = vpop.f32.mrf.mxu1 }
0x13bc   : > { %v5791_v56 = vadd.f32 %v5785_v36, %v5736_v52  ;;  %v20981_v52 = vld [vmem:[%s25720_s0 + $0xa8] ss:$12 sps:$4 sm:$0xff]  }
0x13bd   : > { %v5738_v50 = vpop.f32.mrf.mxu0  ;;  %v5890_v51 = vpop.f32.mrf.mxu1 }
0x13be   : > { %v18885_v50 = vld [vmem:[%s25719_s8 + $0x8] sm:$0xf]  ;;  %v18894_v51 = vld [vmem:[%s25719_s8 + $0x14] sm:$0xf] }
0x13bf   : > { %v20743_v53 = vpop.f32.mrf.mxu0  ;;  %v20761_v54 = vpop.f32.mrf.mxu1 }
0x13c1   : > { %v5836_v55 = vpop.f32.mrf.mxu0  ;;  %v5989_v49 = vpop.f32.mrf.mxu1 }
0x13c2   : > { %v5842_v60 = vadd.f32 %v5836_v55, %v5791_v56  ;;  %v18891_v56 = vld [vmem:[%s25719_s8 + $0x10] sm:$0xf] }
0x13c3   : > { %v20754_v58 = vpop.f32.mrf.mxu0  ;;  %v20772_v59 = vpop.f32.mrf.mxu1 }
0x13c4   : > { %v5893_v0 = vadd.f32 %v5887_v45, %v5842_v60  ;;  %v18897_v59 = vld [vmem:[%s25719_s8 + $0x18] sm:$0xf]  ;;  %v20984_v60 = vld [vmem:[%s25720_s0 + $0xb0] ss:$12 sps:$4 sm:$0xff]   ;;  %s25723_s8 = sld [smem:[#allocation33_spill]] }
0x13c5   : > { %v5839_v61 = vpop.f32.mrf.mxu0  ;;  %v5992_v57 = vpop.f32.mrf.mxu1 }
0x13c6   : > { %v20987_v61 = vld [vmem:[%s25720_s0 + $0x94] ss:$12 sps:$4 sm:$0xff]   ;;  %v20985_v57 = vld [vmem:[%s25720_s0 + $0x90] ss:$12 sps:$4 sm:$0xff]  }
0x13c7   : > { %v20755_v62 = vpop.f32.mrf.mxu0  ;;  %v20773_v63 = vpop.f32.mrf.mxu1 }
0x13c8   : > { %v20988_v62 = vld [vmem:[%s25720_s0 + $0x98] ss:$12 sps:$4 sm:$0xff]   ;;  %v20991_v63 = vld [vmem:[%s25720_s0 + $0x7c] ss:$12 sps:$4 sm:$0xff]  }
0x13c9   : > { %v5938_v3 = vpop.f32.mrf.mxu0 }
0x13ca   : > { %v5944_v4 = vadd.f32 %v5938_v3, %v5893_v0  ;;  %v20989_v0 = vld [vmem:[%s25720_s0 + $0x78] ss:$12 sps:$4 sm:$0xff]   ;;  %v20992_v3 = vld [vmem:[%s25720_s0 + $0x80] ss:$12 sps:$4 sm:$0xff]  }
0x13cb   : > { %v20766_v5 = vpop.f32.mrf.mxu0 }
0x13cc   : > { %v5995_v6 = vadd.f32 %v5989_v49, %v5944_v4  ;;  %v20995_v4 = vld [vmem:[%s25720_s0 + $0x64] ss:$12 sps:$4 sm:$0xff]   ;;  %v20993_v5 = vld [vmem:[%s25720_s0 + $0x60] ss:$12 sps:$4 sm:$0xff]  }
0x13cd   : > { %v5941_v9 = vpop.f32.mrf.mxu0 }
0x13ce   : > { %v6002_v10 = vmul.f32 %v6000_v7, %v5995_v6  ;;  %v20996_v6 = vld [vmem:[%s25720_s0 + $0x68] ss:$12 sps:$4 sm:$0xff]   ;;  %v20999_v7 = vld [vmem:[%s25720_s0 + $0x4c] ss:$12 sps:$4 sm:$0xff]  }
0x13cf   : > { %v20767_v12 = vpop.f32.mrf.mxu0  ;;  %v20997_v9 = vld [vmem:[%s25720_s0 + $0x48] ss:$12 sps:$4 sm:$0xff]  }
0x13d0   : > { %v6009_v13 = vadd.f32 %v6007_v11, %v6002_v10  ;;  %v21000_v10 = vld [vmem:[%s25720_s0 + $0x50] ss:$12 sps:$4 sm:$0xff]   ;;  %v21003_v11 = vld [vmem:[%s25720_s0 + $0x34] ss:$12 sps:$4 sm:$0xff]  }
0x13d1   : > { %v21001_v12 = vld [vmem:[%s25720_s0 + $0x30] ss:$12 sps:$4 sm:$0xff]  }
0x13d2   : > { %v6010_v14 = vmax.f32 %v6009_v13, 0.0  ;;  %v21004_v13 = vld [vmem:[%s25720_s0 + $0x38] ss:$12 sps:$4 sm:$0xff]  }
0x13d4   : > { %v6011_v15 = vpack.c.bf16 %v6010_v14, %v6010_v14  ;;  %v21007_v14 = vld [vmem:[%s25720_s0 + $0x1c] ss:$12 sps:$4 sm:$0xff]  }
0x13d6   : > { %18879 = vmatmul.mubr.msk.bf16.vlgmr.msra.gmra.mxu0 %vm6078_vm9, %v6011_v15  ;;  %v21005_v15 = vld [vmem:[%s25720_s0 + $0x18] ss:$12 sps:$4 sm:$0xff]   ;;  %vm10252_vm9 = vcmask 973824  }
0x13d7   : > { %6351 = vmatprep.mubr.bf16.mxu0 %v22555_v2 }
0x1496   : > { %v6122_v16 = vpop.f32.mrf.mxu0 }
0x1497   : > { %v6129_v17 = vpack.c.bf16 %v6122_v16, %v6122_v16  ;;  %v21008_v16 = vld [vmem:[%s25720_s0 + $0x20] ss:$12 sps:$4 sm:$0xff]  }
0x1498   : > { %v6124_v18 = vpop.f32.mrf.mxu0 }
0x1499   : > { %v6130_v19 = vpack.c.bf16 %v6124_v18, %v6124_v18  ;;  %6136 = vrot.lane.b32.xlu1 %v6129_v17, %s25698_s1  ;;  %v6196_v30 = vsel %vm4241_vm2, %v6129_v17, 0  ;;  %v21009_v18 = vld [vmem:[%s25720_s0] ss:$12 sps:$4 sm:$0xff]  }
0x149a   : > { %v6126_v20 = vpop.f32.mrf.mxu0 }
0x149b   : > { %6138 = vrot.lane.b32.xlu0 %v6130_v19, %s25698_s1  ;;  %v6606_v20 = vld [vmem:[%s25720_s0 + $0x108] sm:$0x33] }
0x149c   : > { %v6127_v21 = vpop.f32.mrf.mxu0 }
0x149d   : > { %6244 = vrot.lane.b32.xlu1 %v6129_v17, %s25707_s11  ;;  %v18934_v21 = vcombine.high %v6606_v20, %v6606_v20 }
0x149f   : > { %6246 = vrot.lane.b32.xlu0 %v6130_v19, %s25707_s11 }
0x14a1   : > { %6304 = vrot.lane.b32.xlu1 %v6129_v17, %s25700_s3 }
0x14a3   : > { %6306 = vrot.lane.b32.xlu0 %v6130_v19, %s25700_s3 }
0x14a5   : > { %6364 = vrot.lane.b32.xlu1 %v6129_v17, %s25699_s2 }
0x14a7   : > { %6366 = vrot.lane.b32.xlu0 %v6130_v19, %s25699_s2 }
0x14a9   : > { %6424 = vrot.lane.b32.xlu1 %v6129_v17, %s25702_s16 }
0x14ab   : > { %6426 = vrot.lane.b32.xlu0 %v6130_v19, %s25702_s16 }
0x14ad   : > { %6484 = vrot.lane.b32.xlu1 %v6129_v17, %s25701_s5  ;;  %v21011_v17 = vld [vmem:[%s25720_s0 + $0x4] ss:$12 sps:$4 sm:$0xff]  }
0x14af   : > { %6486 = vrot.lane.b32.xlu0 %v6130_v19, %s25701_s5 }
0x14b1   : > { %6545 = vperm.xlu1 %20895, %v6542_v43   ;;  %v18933_v43 = vcombine.low %v6606_v20, %v6606_v20 }
0x14b3   : > { %6553 = vperm.xlu0 %20896, %v6550_v22   ;;  %v21015_v22 = vld [vmem:[%s25720_s0 + $0x110] ss:$0 sps:$4 sm:$0x33]  }
0x150b   : > { %v6137_v23 = vpop.permute.xlu1 %6136 }
0x150d   : > { %v6139_v24 = vpop.permute.xlu0 %6138 }
0x150e   : > { %v6141_v25 = vsel %vm6140_vm10, %v6137_v23, %v6139_v24  ;;  %18881 = vmatprep.subr.msk.bf16.mxu1 %vm4241_vm2, %v6139_v24  ;;  %v6800_v23 = vand.u32 %v18934_v21, %v22928_v46  ;;  %v6797_v24 = vand.u32 %v18933_v43, %v22928_v46 }
0x150f   : > { %v6245_v26 = vpop.permute.xlu1 %6244  ;;  %v6146_v27 = vsel %vm4241_vm2, %v6141_v25, 0  ;;  %v6803_v25 = vand.u32 %v21015_v22, %v22928_v46  ;;  %v21026_v46 = vld [vmem:[%s25720_s0 + $0xc4] ss:$12 sps:$4 sm:$0xff]  }
0x1510   : > { %6166 = vmatpush1.bf16.msra.mxu1 %v6146_v27  ;;  %v21016_v27 = vld [vmem:[%s25720_s0 + $0xf0] ss:$12 sps:$4 sm:$0xff]  }
0x1511   : > { %18883 = vmatprep.subr.msk.bf16.mxu1 %vm4241_vm2, %v6130_v19  ;;  %v6247_v29 = vpop.permute.xlu0 %6246  ;;  %v21012_v19 = vld [vmem:[%s25720_s0 + $0x8] ss:$12 sps:$4 sm:$0xff]  }
0x1512   : > { %v6249_v36 = vsel %vm6248_vm13, %v6245_v26, %v6247_v29  ;;  %v21018_v26 = vld [vmem:[%s25720_s0 + $0xf4] ss:$12 sps:$4 sm:$0xff]  }
0x1513   : > { %v6305_v31 = vpop.permute.xlu1 %6304  ;;  %18882 = vmatmul.mubr.msk.bf16.vlgmr.msra.gmra.mxu1 %vm5206_vm8, %v18880_v28  ;;  %v6254_v40 = vsel %vm4241_vm2, %v6249_v36, 0  ;;  %v21019_v28 = vld [vmem:[%s25720_s0 + $0xf8] ss:$12 sps:$4 sm:$0xff]  }
0x1514   : > { %6216 = vmatpush1.bf16.msra.mxu1 %v6196_v30  ;;  %6233 = vmatprep.mubr.bf16.mxu1 %v22555_v2  ;;  %v21023_v30 = vld [vmem:[%s25720_s0 + $0xe0] ss:$12 sps:$4 sm:$0xff]  }
0x1515   : > { %18886 = vmatprep.subr.msk.bf16.mxu1 %vm4241_vm2, %v6247_v29  ;;  %v6307_v32 = vpop.permute.xlu0 %6306  ;;  %v21022_v29 = vld [vmem:[%s25720_s0 + $0xdc] ss:$12 sps:$4 sm:$0xff]  }
0x1516   : > { %v6309_v33 = vsel %vm6308_vm12, %v6305_v31, %v6307_v32  ;;  %18889 = vmatprep.subr.msk.bf16.mxu0 %vm4241_vm2, %v6307_v32  ;;  %v21020_v31 = vld [vmem:[%s25720_s0 + $0xd8] ss:$12 sps:$4 sm:$0xff]   ;;  %v21024_v32 = vld [vmem:[%s25720_s0 + $0xc0] ss:$12 sps:$4 sm:$0xff]  }
0x1517   : > { %v6365_v34 = vpop.permute.xlu1 %6364  ;;  %v6314_v35 = vsel %vm4241_vm2, %v6309_v33, 0  ;;  %v21027_v33 = vld [vmem:[%s25720_s0 + $0xc8] ss:$12 sps:$4 sm:$0xff]   ;;  %s25722_s0 = sld [smem:[#allocation35_spill]] }
0x1518   : > { %6334 = vmatpush1.bf16.msra.mxu0 %v6314_v35 }
0x1519   : > { %v6367_v39 = vpop.permute.xlu0 %6366 }
0x151a   : > { %v6369_v48 = vsel %vm6368_vm15, %v6365_v34, %v6367_v39 }
0x151b   : > { %18884 = vmatmul.mubr.msk.bf16.vlgmr.msra.gmra.mxu1 %vm5206_vm8, %v6131_v37  ;;  %18890 = vmatmul.mubr.msk.bf16.vlgmr.msra.gmra.mxu0 %vm5206_vm8, %v18888_v38  ;;  %v6425_v41 = vpop.permute.xlu1 %6424  ;;  %v6374_v53 = vsel %vm4241_vm2, %v6369_v48, 0 }
0x151c   : > { %6274 = vmatpush1.bf16.msra.mxu1 %v6254_v40  ;;  %6291 = vmatprep.mubr.bf16.mxu1 %v22555_v2 }
0x151d   : > { %18892 = vmatprep.subr.msk.bf16.mxu1 %vm4241_vm2, %v6367_v39  ;;  %v6427_v42 = vpop.permute.xlu0 %6426  ;;  %6471 = vmatprep.mubr.bf16.mxu0 %v22555_v2 }
0x151e   : > { %v6429_v45 = vsel %vm6428_vm14, %v6425_v41, %v6427_v42  ;;  %18895 = vmatprep.subr.msk.bf16.mxu0 %vm4241_vm2, %v6427_v42 }
0x151f   : > { %v6434_v47 = vsel %vm4241_vm2, %v6429_v45, 0  ;;  %v6485_v55 = vpop.permute.xlu1 %6484 }
0x1520   : > { %6454 = vmatpush1.bf16.msra.mxu0 %v6434_v47 }
0x1521   : > { %6805 = vmatprep.subr.bf16.mxu0 %v20983_v44  ;;  %v6487_v54 = vpop.permute.xlu0 %6486 }
0x1522   : > { %v6489_v49 = vsel %vm6488_vm5, %v6485_v55, %v6487_v54 }
0x1523   : > { %18887 = vmatmul.mubr.msk.bf16.vlgmr.msra.gmra.mxu1 %vm5206_vm8, %v18885_v50  ;;  %18896 = vmatmul.mubr.msk.bf16.vlgmr.msra.gmra.mxu0 %vm5206_vm8, %v18894_v51  ;;  %v6494_v58 = vsel %vm4241_vm2, %v6489_v49, 0 }
0x1524   : > { %6394 = vmatpush1.bf16.msra.mxu1 %v6374_v53  ;;  %6411 = vmatprep.mubr.bf16.mxu1 %v22555_v2 }
0x1525   : > { %18898 = vmatprep.subr.msk.bf16.mxu1 %vm4241_vm2, %v6487_v54  ;;  %6806 = vmatpush1.bf16.msra.mxu0 %v20981_v52 }
0x1526   : > { %6807 = vmatprep.subr.bf16.mxu0 %v20987_v61 }
0x1529   : > { %6808 = vmatpush1.bf16.msra.mxu0 %v20985_v57 }
0x152a   : > { %6809 = vmatprep.subr.bf16.mxu0 %v20991_v63 }
0x152b   : > { %18893 = vmatmul.mubr.msk.bf16.vlgmr.msra.gmra.mxu1 %vm5206_vm8, %v18891_v56 }
0x152c   : > { %6514 = vmatpush1.bf16.msra.mxu1 %v6494_v58  ;;  %6531 = vmatprep.mubr.bf16.mxu1 %v22555_v2 }
0x152d   : > { %6846 = vmatprep.subr.bf16.mxu1 %v22555_v2  ;;  %6810 = vmatpush1.bf16.msra.mxu0 %v20989_v0 }
0x152e   : > { %6811 = vmatprep.subr.bf16.mxu0 %v20995_v4 }
0x1531   : > { %6812 = vmatpush1.bf16.msra.mxu0 %v20993_v5 }
0x1532   : > { %6813 = vmatprep.subr.bf16.mxu0 %v20999_v7 }
0x1533   : > { %18899 = vmatmul.mubr.msk.bf16.vlgmr.msra.gmra.mxu1 %vm5206_vm8, %v18897_v59 }
0x1534   : > { %6847 = vmatpush1.bf16.msra.mxu1 %v20984_v60 }
0x1535   : > { %6848 = vmatprep.subr.bf16.mxu1 %v22555_v2  ;;  %6814 = vmatpush1.bf16.msra.mxu0 %v20997_v9 }
0x1536   : > { %6815 = vmatprep.subr.bf16.mxu0 %v21003_v11  ;;  %v6546_v11 = vpop.permute.xlu1 %6545 }
0x1538   : > { %6849 = vmatpush1.bf16.msra.mxu1 %v20988_v62 }
0x1539   : > { %6850 = vmatprep.subr.bf16.mxu1 %v22555_v2  ;;  %6816 = vmatpush1.bf16.msra.mxu0 %v21001_v12 }
0x153a   : > { %6817 = vmatprep.subr.bf16.mxu0 %v21007_v14 }
0x153c   : > { %6851 = vmatpush1.bf16.msra.mxu1 %v20992_v3 }
0x153d   : > { %6852 = vmatprep.subr.bf16.mxu1 %v22555_v2  ;;  %6818 = vmatpush1.bf16.msra.mxu0 %v21005_v15  ;;  %v6554_v15 = vpop.permute.xlu0 %6553 }
0x153e   : > { %6819 = vmatprep.subr.bf16.mxu0 %v21011_v17 }
0x1540   : > { %6853 = vmatpush1.bf16.msra.mxu1 %v20996_v6 }
0x1541   : > { %6854 = vmatprep.subr.bf16.mxu1 %v22555_v2  ;;  %6820 = vmatpush1.bf16.msra.mxu0 %v21009_v18 }
0x1542   : > { %6829 = vmatprep.subr.bf16.mxu0 %v6800_v23 }
0x1544   : > { %6855 = vmatpush1.bf16.msra.mxu1 %v21000_v10 }
0x1545   : > { %6856 = vmatprep.subr.bf16.mxu1 %v22555_v2  ;;  %6830 = vmatpush2.bf16.msra.mxu0 %v6797_v24 }
0x1546   : > { %6831 = vmatprep.subr.bf16.mxu0 %v21018_v26 }
0x1548   : > { %6857 = vmatpush1.bf16.msra.mxu1 %v21004_v13 }
0x1549   : > { %6858 = vmatprep.subr.bf16.mxu1 %v22555_v2  ;;  %6832 = vmatpush2.bf16.msra.mxu0 %v21016_v27 }
0x154a   : > { %6833 = vmatprep.subr.bf16.mxu0 %v21022_v29 }
0x154c   : > { %6859 = vmatpush1.bf16.msra.mxu1 %v21008_v16 }
0x154d   : > { %6860 = vmatprep.subr.bf16.mxu1 %v22555_v2  ;;  %6834 = vmatpush2.bf16.msra.mxu0 %v21020_v31 }
0x154e   : > { %6835 = vmatprep.subr.bf16.mxu0 %v21026_v46 }
0x1550   : > { %6861 = vmatpush1.bf16.msra.mxu1 %v21012_v19 }
0x1551   : > { %6870 = vmatprep.subr.bf16.mxu1 %v22555_v2  ;;  %6836 = vmatpush2.bf16.msra.mxu0 %v21024_v32 }
0x1554   : > { %6871 = vmatpush2.bf16.msra.mxu1 %v6803_v25 }
0x1555   : > { %6872 = vmatprep.subr.bf16.mxu1 %v22555_v2 }
0x1558   : > { %6873 = vmatpush2.bf16.msra.mxu1 %v21019_v28 }
0x1559   : > { %6874 = vmatprep.subr.bf16.mxu1 %v22555_v2 }
0x155c   : > { %6875 = vmatpush2.bf16.msra.mxu1 %v21023_v30 }
0x155d   : > { %6876 = vmatprep.subr.bf16.mxu1 %v22555_v2 }
0x1560   : > { %6877 = vmatpush2.bf16.msra.mxu1 %v21027_v33 }
0x1561   : > { %20774 = vmatprep.subr.bf16.mxu1 %v22554_v1 }
0x15d3   : > { %v6185_v34 = vpop.f32.mrf.mxu1 }
0x15d5   : > { %v6187_v35 = vpop.f32.mrf.mxu1 }
0x15d7   : > { %v6189_v36 = vpop.f32.mrf.mxu1 }
0x15d9   : > { %v6190_v37 = vpop.f32.mrf.mxu1 }
0x15db   : > { %v6235_v38 = vpop.f32.mrf.mxu1  ;;  %v6353_v39 = vpop.f32.mrf.mxu0 }
0x15dc   : > { %v6236_v53 = vadd.f32 %v6235_v38, %v6185_v34  ;;  %v7619_v34 = vld [vmem:[%s25721_s9] sm:$0xff]  ;;  %s25725_s9 = sld [smem:[#allocation37_spill]] }
0x15dd   : > { %v6237_v40 = vpop.f32.mrf.mxu1  ;;  %v6355_v41 = vpop.f32.mrf.mxu0 }
0x15de   : > { %v6238_v49 = vadd.f32 %v6237_v40, %v6187_v35  ;;  %v7628_v35 = vld [vmem:[%s25722_s0] sm:$0xff]  ;;  %s25724_s0 = sld [smem:[#allocation40_spill]] }
0x15df   : > { %v6239_v42 = vpop.f32.mrf.mxu1  ;;  %v6357_v44 = vpop.f32.mrf.mxu0 }
0x15e1   : > { %v6240_v45 = vpop.f32.mrf.mxu1  ;;  %v6358_v47 = vpop.f32.mrf.mxu0 }
0x15e2   : > { %v18938_v45 = vld [vmem:[%s25723_s8 + $0x4] sm:$0xf] }
0x15e3   : > { %v6293_v48 = vpop.f32.mrf.mxu1  ;;  %v6473_v50 = vpop.f32.mrf.mxu0 }
0x15e4   : > { %v6300_v56 = vadd.f32 %v6293_v48, %v6236_v53 }
0x15e5   : > { %v6295_v51 = vpop.f32.mrf.mxu1  ;;  %v6475_v52 = vpop.f32.mrf.mxu0 }
0x15e6   : > { %v6301_v60 = vadd.f32 %v6295_v51, %v6238_v49  ;;  %v6360_v57 = vadd.f32 %v6353_v39, %v6300_v56 }
0x15e7   : > { %v6297_v54 = vpop.f32.mrf.mxu1  ;;  %v6477_v55 = vpop.f32.mrf.mxu0 }
0x15e8   : > { %v6361_v63 = vadd.f32 %v6355_v41, %v6301_v60  ;;  %v6889_v55 = vld [vmem:[%s25723_s8] sm:$0xf] }
0x15e9   : > { %v6298_v58 = vpop.f32.mrf.mxu1  ;;  %v6478_v59 = vpop.f32.mrf.mxu0 }
0x15eb   : > { %v6413_v61 = vpop.f32.mrf.mxu1 }
0x15ec   : > { %v6420_v0 = vadd.f32 %v6413_v61, %v6360_v57 }
0x15ed   : > { %v6415_v62 = vpop.f32.mrf.mxu1 }
0x15ee   : > { %v6421_v4 = vadd.f32 %v6415_v62, %v6361_v63  ;;  %v6480_v6 = vadd.f32 %v6473_v50, %v6420_v0  ;;  %v18945_v63 = vld [vmem:[%s25723_s8 + $0x8] sm:$0xf] }
0x15ef   : > { %v6417_v3 = vpop.f32.mrf.mxu1 }
0x15f0   : > { %v6481_v9 = vadd.f32 %v6475_v52, %v6421_v4 }
0x15f1   : > { %v6418_v5 = vpop.f32.mrf.mxu1 }
0x15f3   : > { %v6533_v7 = vpop.f32.mrf.mxu1 }
0x15f4   : > { %v6540_v10 = vadd.f32 %v6533_v7, %v6480_v6 }
0x15f5   : > { %v6535_v12 = vpop.f32.mrf.mxu1 }
0x15f6   : > { %v6548_v13 = vmul.f32 %v6546_v11, %v6540_v10  ;;  %v6541_v14 = vadd.f32 %v6535_v12, %v6481_v9  ;;  %v18949_v9 = vld [vmem:[%s25723_s8 + $0xc] sm:$0xf] }
0x15f7   : > { %v6537_v16 = vpop.f32.mrf.mxu1 }
0x15f8   : > { %v6556_v17 = vadd.f32 %v6554_v15, %v6548_v13  ;;  %v6549_v18 = vmul.f32 %v6546_v11, %v6541_v14  ;;  %v18953_v16 = vld [vmem:[%s25723_s8 + $0x10] sm:$0xf] }
0x15f9   : > { %v6538_v19 = vpop.f32.mrf.mxu1 }
0x15fa   : > { %v6557_v20 = vadd.f32 %v6554_v15, %v6549_v18  ;;  %v6558_v21 = vmax.f32 %v6556_v17, 0.0 }
0x15fc   : > { %v6559_v43 = vmax.f32 %v6557_v20, 0.0  ;;  %v6560_v23 = vpack.c.bf16 %v6558_v21, %v6558_v21 }
0x15fe   : > { %v6561_v22 = vpack.c.bf16 %v6559_v43, %v6559_v43 }
0x1600   : > { %18936 = vmatprep.mubr.msk.bf16.mxu0 %vm6792_vm6, %v6561_v22  ;;  %18937 = vmatprep.mubr.msk.bf16.mxu1 %vm6792_vm6, %v6561_v22  ;;  %v18957_v22 = vld [vmem:[%s25723_s8 + $0x14] sm:$0xf] }
0x1601   : > { %6838 = vmatmul.mubr.bf16.vlgmr.msra.gmra.mxu0 %v6560_v23  ;;  %6879 = vmatmul.mubr.bf16.vlgmr.msra.gmra.mxu1 %v6560_v23 }
0x1602   : > { %20776 = vmatprep.mubr.msk.bf16.mxu1 %vm22556_vm1, %v22554_v1  ;;  %6947 = vmatprep.mubr.bf16.mxu0 %v22555_v2 }
0x16c1   : > { %v6839_v24 = vpop.f32.mrf.mxu0  ;;  %v6880_v25 = vpop.f32.mrf.mxu1 }
0x16c2   : > { %v6886_v26 = vpack.c.bf16 %v6839_v24, %v6839_v24  ;;  %v6888_v46 = vpack.c.bf16 %v6880_v25, %v6880_v25  ;;  %v21030_v24 = vld [vmem:[%s25724_s0 + $0x154] ss:$24 sps:$4 sm:$0xff]  }
0x16c3   : > { %v6841_v27 = vpop.f32.mrf.mxu0  ;;  %v6882_v28 = vpop.f32.mrf.mxu1 }
0x16c4   : > { %v6887_v29 = vpack.c.bf16 %v6841_v27, %v6841_v27  ;;  %6895 = vrot.lane.b32.xlu1 %v6886_v26, %s25698_s1  ;;  %v7006_v48 = vsel %vm4241_vm2, %v6888_v46, 0  ;;  %v7000_v51 = vsel %vm4241_vm2, %v6886_v26, 0  ;;  %v18961_v27 = vld [vmem:[%s25723_s8 + $0x18] sm:$0xf]  ;;  %v21028_v28 = vld [vmem:[%s25724_s0 + $0x150] ss:$24 sps:$4 sm:$0xff]  }
0x16c5   : > { %v6843_v31 = vpop.f32.mrf.mxu0  ;;  %v6883_v30 = vpop.f32.mrf.mxu1  ;;  %s22566_s8 = smov 119  }
0x16c6   : > { %6897 = vrot.lane.b32.xlu0 %v6887_v29, %s25698_s1  ;;  %v21031_v31 = vld [vmem:[%s25724_s0 + $0x120] ss:$24 sps:$4 sm:$0xff]   ;;  %v21034_v30 = vld [vmem:[%s25724_s0 + $0xf0] ss:$24 sps:$4 sm:$0xff]  }
0x16c7   : > { %v6844_v32 = vpop.f32.mrf.mxu0  ;;  %v6884_v33 = vpop.f32.mrf.mxu1 }
0x16c8   : > { %6899 = vrot.lane.b32.xlu1 %v6888_v46, %s25698_s1  ;;  %v21037_v32 = vld [vmem:[%s25724_s0 + $0xc0] ss:$24 sps:$4 sm:$0xff]   ;;  %v21042_v33 = vld [vmem:[%s25724_s0 + $0x94] ss:$24 sps:$4 sm:$0xff]  }
0x16ca   : > { %7091 = vrot.lane.b32.xlu0 %v6886_v26, %s25707_s11 }
0x16cc   : > { %7093 = vrot.lane.b32.xlu1 %v6887_v29, %s25707_s11 }
0x16ce   : > { %7095 = vrot.lane.b32.xlu0 %v6888_v46, %s25707_s11 }
0x16d0   : > { %7197 = vrot.lane.b32.xlu1 %v6886_v26, %s25700_s3 }
0x16d2   : > { %7199 = vrot.lane.b32.xlu0 %v6887_v29, %s25700_s3 }
0x16d4   : > { %7201 = vrot.lane.b32.xlu1 %v6888_v46, %s25700_s3 }
0x16d6   : > { %7303 = vrot.lane.b32.xlu0 %v6886_v26, %s25699_s2 }
0x16d8   : > { %7305 = vrot.lane.b32.xlu1 %v6887_v29, %s25699_s2 }
0x16da   : > { %7307 = vrot.lane.b32.xlu0 %v6888_v46, %s25699_s2 }
0x16dc   : > { %7409 = vrot.lane.b32.xlu1 %v6886_v26, %s25702_s16 }
0x16de   : > { %7411 = vrot.lane.b32.xlu0 %v6887_v29, %s25702_s16 }
0x16e0   : > { %7413 = vrot.lane.b32.xlu1 %v6888_v46, %s25702_s16 }
0x16e2   : > { %7515 = vrot.lane.b32.xlu0 %v6886_v26, %s25701_s5 }
0x16e4   : > { %7517 = vrot.lane.b32.xlu1 %v6887_v29, %s25701_s5 }
0x16e6   : > { %7519 = vrot.lane.b32.xlu0 %v6888_v46, %s25701_s5  ;;  %v21039_v46 = vld [vmem:[%s25724_s0 + $0xc4] ss:$24 sps:$4 sm:$0xff]  }
0x16e8   : > { %7622 = vperm.xlu1 %20895, %v7619_v34   ;;  %v21040_v34 = vld [vmem:[%s25724_s0 + $0x90] ss:$24 sps:$4 sm:$0xff]  }
0x16ea   : > { %7631 = vperm.xlu0 %20896, %v7628_v35   ;;  %v21045_v35 = vld [vmem:[%s25724_s0 + $0x64] ss:$24 sps:$4 sm:$0xff]  }
0x1736   : > { %v6896_v36 = vpop.permute.xlu1 %6895 }
0x1738   : > { %v6898_v37 = vpop.permute.xlu0 %6897 }
0x1739   : > { %v6901_v38 = vsel %vm6140_vm10, %v6896_v36, %v6898_v37  ;;  %v21043_v36 = vld [vmem:[%s25724_s0 + $0x60] ss:$24 sps:$4 sm:$0xff]  }
0x173a   : > { %v6900_v39 = vpop.permute.xlu1 %6899  ;;  %v6907_v44 = vsel %vm4241_vm2, %v6901_v38, 0  ;;  %v21046_v38 = vld [vmem:[%s25724_s0 + $0x30] ss:$24 sps:$4 sm:$0xff]  }
0x173b   : > { %v6902_v40 = vsel %vm6140_vm10, %v6898_v37, %v6900_v39  ;;  %v6913_v41 = vsel %vm4241_vm2, %v6900_v39, 0  ;;  %v21048_v37 = vld [vmem:[%s25724_s0 + $0x34] ss:$24 sps:$4 sm:$0xff]   ;;  %v21051_v39 = vld [vmem:[%s25724_s0 + $0x4] ss:$24 sps:$4 sm:$0xff]  }
0x173c   : > { %18939 = vmatprep.subr.msk.bf16.mxu0 %vm4241_vm2, %v6902_v40  ;;  %20775 = vmatpush3.bf16.msra.mxu1 %v6913_v41  ;;  %v7092_v42 = vpop.permute.xlu0 %7091  ;;  %v21049_v40 = vld [vmem:[%s25724_s0] ss:$24 sps:$4 sm:$0xff]   ;;  %v21057_v41 = vld [vmem:[%s25724_s0 + $0x424] ss:$24 sps:$4 sm:$0x3f]  }
0x173d   : > { %6930 = vmatpush1.bf16.msra.mxu0 %v6907_v44  ;;  %20780 = vmatprep.subr.bf16.mxu1 %v22554_v1  ;;  %v21054_v44 = vld [vmem:[%s25724_s0 + $0x2d4] ss:$24 sps:$4 sm:$0xff]  }
0x173e   : > { %v7094_v47 = vpop.permute.xlu1 %7093  ;;  %18942 = vmatprep.subr.msk.bf16.mxu0 %vm4241_vm2, %v6887_v29  ;;  %v21033_v29 = vld [vmem:[%s25724_s0 + $0x124] ss:$24 sps:$4 sm:$0xff]  }
0x173f   : > { %20777 = vmatmul.mubr.msk.bf16.vlgmr.msra.gmra.mxu1 %vm5206_vm8, %v18938_v45  ;;  %v7097_v49 = vsel %vm6248_vm13, %v7092_v42, %v7094_v47  ;;  %v21055_v42 = vld [vmem:[%s25724_s0 + $0x420] ss:$24 sps:$4 sm:$0x3f]  }
0x1740   : > { %18940 = vmatmul.mubr.msk.bf16.vlgmr.msra.gmra.mxu0 %vm5206_vm8, %v18938_v45  ;;  %20781 = vmatpush3.bf16.msra.mxu1 %v7006_v48  ;;  %v7096_v50 = vpop.permute.xlu0 %7095  ;;  %v7103_v60 = vsel %vm4241_vm2, %v7097_v49, 0  ;;  %v8473_v45 = vand.u32 %v21057_v41, %v22999_v8  ;;  %v8470_v48 = vand.u32 %v21055_v42, %v22999_v8  ;;  %v21064_v49 = vld [vmem:[%s25724_s0 + $0x270] ss:$24 sps:$4 sm:$0xff]  }
0x1741   : > { %7023 = vmatpush1.bf16.msra.mxu0 %v7000_v51  ;;  %v7098_v52 = vsel %vm6248_vm13, %v7094_v47, %v7096_v50  ;;  %20782 = vmatprep.mubr.msk.bf16.mxu1 %vm22556_vm1, %v22554_v1  ;;  %v7109_v58 = vsel %vm4241_vm2, %v7096_v50, 0  ;;  %v21052_v47 = vld [vmem:[%s25724_s0 + $0x2d0] ss:$24 sps:$4 sm:$0xff]   ;;  %v21060_v50 = vld [vmem:[%s25724_s0 + $0x2a4] ss:$24 sps:$4 sm:$0xff]  }
0x1742   : > { %v7198_v53 = vpop.permute.xlu1 %7197  ;;  %18946 = vmatprep.subr.msk.bf16.mxu0 %vm4241_vm2, %v7098_v52  ;;  %20786 = vmatprep.subr.bf16.mxu1 %v22554_v1  ;;  %v21063_v51 = vld [vmem:[%s25724_s0 + $0x3f4] ss:$24 sps:$4 sm:$0xff]   ;;  %v21058_v52 = vld [vmem:[%s25724_s0 + $0x2a0] ss:$24 sps:$4 sm:$0xff]  }
0x1743   : > { %7040 = vmatprep.mubr.bf16.mxu0 %v22555_v2 }
0x1744   : > { %v7200_v54 = vpop.permute.xlu0 %7199 }
0x1745   : > { %v7203_v0 = vsel %vm6308_vm12, %v7198_v53, %v7200_v54  ;;  %v21061_v53 = vld [vmem:[%s25724_s0 + $0x3f0] ss:$24 sps:$4 sm:$0xff]  }
0x1746   : > { %v7202_v56 = vpop.permute.xlu1 %7201  ;;  %v7209_v5 = vsel %vm4241_vm2, %v7203_v0, 0  ;;  %v21079_v0 = vld [vmem:[%s25724_s0 + $0x360] ss:$24 sps:$4 sm:$0xff]  }
0x1747   : > { %20783 = vmatmul.mubr.msk.bf16.vlgmr.msra.gmra.mxu1 %vm5206_vm8, %v6889_v55  ;;  %v7204_v59 = vsel %vm6308_vm12, %v7200_v54, %v7202_v56  ;;  %v7215_v3 = vsel %vm4241_vm2, %v7202_v56, 0  ;;  %v21066_v54 = vld [vmem:[%s25724_s0 + $0x274] ss:$24 sps:$4 sm:$0xff]   ;;  %v21067_v56 = vld [vmem:[%s25724_s0 + $0x3c0] ss:$24 sps:$4 sm:$0xff]  }
0x1748   : > { %20787 = vmatpush3.bf16.msra.mxu1 %v7109_v58  ;;  %18943 = vmatmul.mubr.msk.bf16.vlgmr.msra.gmra.mxu0 %vm5206_vm8, %v6889_v55  ;;  %v7304_v61 = vpop.permute.xlu0 %7303  ;;  %v21069_v55 = vld [vmem:[%s25724_s0 + $0x3c4] ss:$24 sps:$4 sm:$0xff]  }
0x1749   : > { %7126 = vmatpush1.bf16.msra.mxu0 %v7103_v60  ;;  %20788 = vmatprep.mubr.msk.bf16.mxu1 %vm22556_vm1, %v22554_v1  ;;  %v21072_v58 = vld [vmem:[%s25724_s0 + $0x244] ss:$24 sps:$4 sm:$0xff]   ;;  %v21070_v60 = vld [vmem:[%s25724_s0 + $0x240] ss:$24 sps:$4 sm:$0xff]  }
0x174a   : > { %18950 = vmatprep.subr.msk.bf16.mxu0 %vm4241_vm2, %v7204_v59  ;;  %v7306_v57 = vpop.permute.xlu1 %7305  ;;  %20792 = vmatprep.subr.bf16.mxu1 %v22554_v1  ;;  %v21075_v59 = vld [vmem:[%s25724_s0 + $0x394] ss:$24 sps:$4 sm:$0xff]  }
0x174b   : > { %7143 = vmatprep.mubr.bf16.mxu0 %v22555_v2  ;;  %v7309_v10 = vsel %vm6368_vm15, %v7304_v61, %v7306_v57  ;;  %v21073_v61 = vld [vmem:[%s25724_s0 + $0x390] ss:$24 sps:$4 sm:$0xff]  }
0x174c   : > { %v7308_v62 = vpop.permute.xlu0 %7307  ;;  %v7315_v14 = vsel %vm4241_vm2, %v7309_v10, 0  ;;  %v21088_v10 = vld [vmem:[%s25724_s0 + $0x1b0] ss:$24 sps:$4 sm:$0xff]  }
0x174d   : > { %v7310_v6 = vsel %vm6368_vm15, %v7306_v57, %v7308_v62  ;;  %v7321_v12 = vsel %vm4241_vm2, %v7308_v62, 0  ;;  %v21078_v57 = vld [vmem:[%s25724_s0 + $0x214] ss:$24 sps:$4 sm:$0xff]   ;;  %v21081_v62 = vld [vmem:[%s25724_s0 + $0x364] ss:$24 sps:$4 sm:$0xff]  }
0x174e   : > { %v7410_v4 = vpop.permute.xlu1 %7409 }
0x174f   : > { %20789 = vmatmul.mubr.msk.bf16.vlgmr.msra.gmra.mxu1 %vm5206_vm8, %v18945_v63 }
0x1750   : > { %20793 = vmatpush3.bf16.msra.mxu1 %v7215_v3  ;;  %18947 = vmatmul.mubr.msk.bf16.vlgmr.msra.gmra.mxu0 %vm5206_vm8, %v18945_v63  ;;  %v7412_v7 = vpop.permute.xlu0 %7411  ;;  %v21076_v63 = vld [vmem:[%s25724_s0 + $0x210] ss:$24 sps:$4 sm:$0xff]   ;;  %v21084_v3 = vld [vmem:[%s25724_s0 + $0x1e4] ss:$24 sps:$4 sm:$0xff]  }
0x1751   : > { %7232 = vmatpush1.bf16.msra.mxu0 %v7209_v5  ;;  %20794 = vmatprep.mubr.msk.bf16.mxu1 %vm22556_vm1, %v22554_v1  ;;  %v7415_v17 = vsel %vm6428_vm14, %v7410_v4, %v7412_v7  ;;  %v21087_v4 = vld [vmem:[%s25724_s0 + $0x334] ss:$24 sps:$4 sm:$0xff]   ;;  %v21082_v5 = vld [vmem:[%s25724_s0 + $0x1e0] ss:$24 sps:$4 sm:$0xff]  }
0x1752   : > { %18954 = vmatprep.subr.msk.bf16.mxu0 %vm4241_vm2, %v7310_v6  ;;  %20798 = vmatprep.subr.bf16.mxu1 %v22554_v1  ;;  %v7414_v11 = vpop.permute.xlu1 %7413  ;;  %v7421_v21 = vsel %vm4241_vm2, %v7415_v17, 0  ;;  %v21085_v6 = vld [vmem:[%s25724_s0 + $0x330] ss:$24 sps:$4 sm:$0xff]  }
0x1753   : > { %7249 = vmatprep.mubr.bf16.mxu0 %v22555_v2  ;;  %v7416_v15 = vsel %vm6428_vm14, %v7412_v7, %v7414_v11  ;;  %v7427_v19 = vsel %vm4241_vm2, %v7414_v11, 0  ;;  %v21090_v7 = vld [vmem:[%s25724_s0 + $0x1b4] ss:$24 sps:$4 sm:$0xff]   ;;  %v21091_v11 = vld [vmem:[%s25724_s0 + $0x300] ss:$24 sps:$4 sm:$0xff]  }
0x1754   : > { %v7516_v13 = vpop.permute.xlu0 %7515 }
0x1756   : > { %v7518_v20 = vpop.permute.xlu1 %7517 }
0x1757   : > { %20795 = vmatmul.mubr.msk.bf16.vlgmr.msra.gmra.mxu1 %vm5206_vm8, %v18949_v9  ;;  %v7521_v23 = vsel %vm6488_vm5, %v7516_v13, %v7518_v20  ;;  %v21099_v13 = vld [vmem:[%s25724_s0 + $0x15c] ss:$24 sps:$4 sm:$0xff]  }
0x1758   : > { %20799 = vmatpush3.bf16.msra.mxu1 %v7321_v12  ;;  %18951 = vmatmul.mubr.msk.bf16.vlgmr.msra.gmra.mxu0 %vm5206_vm8, %v18949_v9  ;;  %v7520_v18 = vpop.permute.xlu0 %7519  ;;  %v7527_v26 = vsel %vm4241_vm2, %v7521_v23, 0  ;;  %v21093_v9 = vld [vmem:[%s25724_s0 + $0x304] ss:$24 sps:$4 sm:$0xff]  }
0x1759   : > { %7338 = vmatpush1.bf16.msra.mxu0 %v7315_v14  ;;  %20800 = vmatprep.mubr.msk.bf16.mxu1 %vm22556_vm1, %v22554_v1  ;;  %v7522_v43 = vsel %vm6488_vm5, %v7518_v20, %v7520_v18  ;;  %v7533_v25 = vsel %vm4241_vm2, %v7520_v18, 0  ;;  %v21096_v12 = vld [vmem:[%s25724_s0 + $0x184] ss:$24 sps:$4 sm:$0xff]   ;;  %v21094_v14 = vld [vmem:[%s25724_s0 + $0x180] ss:$24 sps:$4 sm:$0xff]  }
0x175a   : > { %18958 = vmatprep.subr.msk.bf16.mxu0 %vm4241_vm2, %v7416_v15  ;;  %20804 = vmatprep.subr.bf16.mxu1 %v22554_v1  ;;  %v21105_v15 = vld [vmem:[%s25724_s0 + $0x42c] ss:$24 sps:$4 sm:$0x3f]  }
0x175b   : > { %7355 = vmatprep.mubr.bf16.mxu0 %v22555_v2 }
0x175f   : > { %20801 = vmatmul.mubr.msk.bf16.vlgmr.msra.gmra.mxu1 %vm5206_vm8, %v18953_v16 }
0x1760   : > { %20805 = vmatpush3.bf16.msra.mxu1 %v7427_v19  ;;  %18955 = vmatmul.mubr.msk.bf16.vlgmr.msra.gmra.mxu0 %vm5206_vm8, %v18953_v16  ;;  %v8479_v16 = vand.u32 %v21105_v15, %v22999_v8 }
0x1761   : > { %7444 = vmatpush1.bf16.msra.mxu0 %v7421_v21  ;;  %20806 = vmatprep.mubr.msk.bf16.mxu1 %vm22556_vm1, %v22554_v1 }
0x1762   : > { %18962 = vmatprep.subr.msk.bf16.mxu0 %vm4241_vm2, %v7522_v43  ;;  %20810 = vmatprep.subr.bf16.mxu1 %v22554_v1 }
0x1763   : > { %7461 = vmatprep.mubr.bf16.mxu0 %v22555_v2 }
0x1767   : > { %20807 = vmatmul.mubr.msk.bf16.vlgmr.msra.gmra.mxu1 %vm5206_vm8, %v18957_v22 }
0x1768   : > { %20811 = vmatpush3.bf16.msra.mxu1 %v7533_v25  ;;  %18959 = vmatmul.mubr.msk.bf16.vlgmr.msra.gmra.mxu0 %vm5206_vm8, %v18957_v22 }
0x1769   : > { %7550 = vmatpush1.bf16.msra.mxu0 %v7527_v26  ;;  %20812 = vmatprep.mubr.msk.bf16.mxu1 %vm22556_vm1, %v22554_v1  ;;  %v21036_v1 = vld [vmem:[%s25724_s0 + $0xf4] ss:$24 sps:$4 sm:$0xff]   ;;  %vm8465_vm1 = vcmask 875520  }
0x176a   : > { %7567 = vmatprep.mubr.bf16.mxu0 %v22555_v2  ;;  %8487 = vmatprep.subr.bf16.mxu0 %v21030_v24 }
0x176b   : > { %8530 = vmatprep.subr.bf16.mxu1 %v8473_v45 }
0x176f   : > { %20813 = vmatmul.mubr.msk.bf16.vlgmr.msra.gmra.mxu1 %vm5206_vm8, %v18961_v27 }
0x1770   : > { %18963 = vmatmul.mubr.msk.bf16.vlgmr.msra.gmra.mxu0 %vm5206_vm8, %v18961_v27  ;;  %8560 = vmatprep.mubr.bf16.mxu1 %v22555_v2 }
0x1771   : > { %8488 = vmatpush1.bf16.msra.mxu0 %v21028_v28  ;;  %8531 = vmatpush1.bf16.msra.mxu1 %v8470_v48 }
0x1772   : > { %8489 = vmatprep.subr.bf16.mxu0 %v21033_v29  ;;  %8532 = vmatprep.subr.bf16.mxu1 %v21063_v51 }
0x1775   : > { %8490 = vmatpush1.bf16.msra.mxu0 %v21031_v31  ;;  %8533 = vmatpush1.bf16.msra.mxu1 %v21061_v53 }
0x1776   : > { %8491 = vmatprep.subr.bf16.mxu0 %v21036_v1  ;;  %8534 = vmatprep.subr.bf16.mxu1 %v21069_v55 }
0x1779   : > { %8492 = vmatpush1.bf16.msra.mxu0 %v21034_v30  ;;  %8535 = vmatpush1.bf16.msra.mxu1 %v21067_v56 }
0x177a   : > { %8493 = vmatprep.subr.bf16.mxu0 %v21039_v46  ;;  %8536 = vmatprep.subr.bf16.mxu1 %v21075_v59 }
0x177d   : > { %8494 = vmatpush1.bf16.msra.mxu0 %v21037_v32  ;;  %8537 = vmatpush1.bf16.msra.mxu1 %v21073_v61 }
0x177e   : > { %8495 = vmatprep.subr.bf16.mxu0 %v21042_v33  ;;  %8538 = vmatprep.subr.bf16.mxu1 %v21081_v62 }
0x1781   : > { %8496 = vmatpush1.bf16.msra.mxu0 %v21040_v34  ;;  %8539 = vmatpush1.bf16.msra.mxu1 %v21079_v0 }
0x1782   : > { %8497 = vmatprep.subr.bf16.mxu0 %v21045_v35  ;;  %8540 = vmatprep.subr.bf16.mxu1 %v21087_v4 }
0x1785   : > { %8498 = vmatpush1.bf16.msra.mxu0 %v21043_v36  ;;  %8541 = vmatpush1.bf16.msra.mxu1 %v21085_v6 }
0x1786   : > { %8499 = vmatprep.subr.bf16.mxu0 %v21048_v37  ;;  %8542 = vmatprep.subr.bf16.mxu1 %v21093_v9 }
0x1789   : > { %8500 = vmatpush1.bf16.msra.mxu0 %v21046_v38  ;;  %8543 = vmatpush1.bf16.msra.mxu1 %v21091_v11 }
0x178a   : > { %8501 = vmatprep.subr.bf16.mxu0 %v21051_v39  ;;  %8569 = vmatprep.subr.bf16.mxu1 %v21099_v13 }
0x178d   : > { %8502 = vmatpush1.bf16.msra.mxu0 %v21049_v40 }
0x178e   : > { %8503 = vmatprep.subr.bf16.mxu0 %v21054_v44 }
0x1791   : > { %8504 = vmatpush2.bf16.msra.mxu0 %v21052_v47 }
0x1792   : > { %8505 = vmatprep.subr.bf16.mxu0 %v21060_v50 }
0x1795   : > { %8506 = vmatpush2.bf16.msra.mxu0 %v21058_v52 }
0x1796   : > { %8507 = vmatprep.subr.bf16.mxu0 %v21066_v54 }
0x1799   : > { %8508 = vmatpush2.bf16.msra.mxu0 %v21064_v49 }
0x179a   : > { %8509 = vmatprep.subr.bf16.mxu0 %v21072_v58 }
0x179d   : > { %8510 = vmatpush2.bf16.msra.mxu0 %v21070_v60 }
0x179e   : > { %8511 = vmatprep.subr.bf16.mxu0 %v21078_v57 }
0x17a1   : > { %8512 = vmatpush2.bf16.msra.mxu0 %v21076_v63 }
0x17a2   : > { %8513 = vmatprep.subr.bf16.mxu0 %v21084_v3 }
0x17a5   : > { %8514 = vmatpush2.bf16.msra.mxu0 %v21082_v5 }
0x17a6   : > { %8515 = vmatprep.subr.bf16.mxu0 %v21090_v7 }
0x17a9   : > { %8516 = vmatpush2.bf16.msra.mxu0 %v21088_v10 }
0x17aa   : > { %8517 = vmatprep.subr.bf16.mxu0 %v21096_v12 }
0x17ad   : > { %8518 = vmatpush2.bf16.msra.mxu0 %v21094_v14 }
0x17ae   : > { %8612 = vmatprep.subr.bf16.mxu0 %v8479_v16 }
0x17ff   : > { %v6990_v17 = vpop.f32.mrf.mxu1 }
0x1800   : > { %v6949_v18 = vpop.f32.mrf.mxu0 }
0x1801   : > { %v20778_v19 = vpop.f32.mrf.mxu1 }
0x1802   : > { %v6951_v20 = vpop.f32.mrf.mxu0 }
0x1803   : > { %v6993_v21 = vpop.f32.mrf.mxu1 }
0x1804   : > { %v6953_v43 = vpop.f32.mrf.mxu0 }
0x1805   : > { %v20779_v22 = vpop.f32.mrf.mxu1 }
0x1806   : > { %v6954_v23 = vpop.f32.mrf.mxu0 }
0x1807   : > { %v7083_v24 = vpop.f32.mrf.mxu1 }
0x1808   : > { %v7042_v25 = vpop.f32.mrf.mxu0  ;;  %v7084_v49 = vadd.f32 %v7083_v24, %v6990_v17 }
0x1809   : > { %v20784_v26 = vpop.f32.mrf.mxu1  ;;  %v7043_v58 = vadd.f32 %v7042_v25, %v6949_v18  ;;  %v7632_v25 = vpop.permute.xlu0 %7631 }
0x180a   : > { %v7044_v27 = vpop.f32.mrf.mxu0 }
0x180b   : > { %v7086_v28 = vpop.f32.mrf.mxu1  ;;  %v7045_v57 = vadd.f32 %v7044_v27, %v6951_v20  ;;  %v7623_v20 = vpop.permute.xlu1 %7622 }
0x180c   : > { %v7046_v29 = vpop.f32.mrf.mxu0 }
0x180d   : > { %v20785_v31 = vpop.f32.mrf.mxu1 }
0x180e   : > { %v7047_v1 = vpop.f32.mrf.mxu0 }
0x180f   : > { %v7186_v30 = vpop.f32.mrf.mxu1 }
0x1810   : > { %v7145_v46 = vpop.f32.mrf.mxu0  ;;  %v7194_v60 = vadd.f32 %v7186_v30, %v7084_v49  ;;  %v21120_v49 = vld [vmem:[%s25724_s0 + $0x9c] ss:$24 sps:$4 sm:$0xff]  }
0x1811   : > { %v20790_v32 = vpop.f32.mrf.mxu1  ;;  %v7192_v62 = vadd.f32 %v7145_v46, %v7043_v58  ;;  %v21118_v58 = vld [vmem:[%s25724_s0 + $0x98] ss:$24 sps:$4 sm:$0xff]  }
0x1812   : > { %v7147_v33 = vpop.f32.mrf.mxu0 }
0x1813   : > { %v7189_v34 = vpop.f32.mrf.mxu1  ;;  %v7193_v4 = vadd.f32 %v7147_v33, %v7045_v57  ;;  %v21124_v57 = vld [vmem:[%s25724_s0 + $0x68] ss:$24 sps:$4 sm:$0xff]  }
0x1814   : > { %v7149_v35 = vpop.f32.mrf.mxu0 }
0x1815   : > { %v20791_v36 = vpop.f32.mrf.mxu1  ;;  %v21097_v35 = vld [vmem:[%s25724_s0 + $0x158] ss:$24 sps:$4 sm:$0xff]  }
0x1816   : > { %v7150_v37 = vpop.f32.mrf.mxu0  ;;  %v21103_v36 = vld [vmem:[%s25724_s0 + $0x428] ss:$24 sps:$4 sm:$0x3f]  }
0x1817   : > { %v7292_v38 = vpop.f32.mrf.mxu1 }
0x1818   : > { %v7251_v39 = vpop.f32.mrf.mxu0  ;;  %v7300_v0 = vadd.f32 %v7292_v38, %v7194_v60  ;;  %v21126_v60 = vld [vmem:[%s25724_s0 + $0x6c] ss:$24 sps:$4 sm:$0xff]  }
0x1819   : > { %v20796_v40 = vpop.f32.mrf.mxu1  ;;  %v7298_v5 = vadd.f32 %v7251_v39, %v7192_v62  ;;  %v21102_v39 = vld [vmem:[%s25724_s0 + $0x12c] ss:$24 sps:$4 sm:$0xff]   ;;  %v21127_v62 = vld [vmem:[%s25724_s0 + $0x368] ss:$24 sps:$4 sm:$0xff]  }
0x181a   : > { %v7253_v41 = vpop.f32.mrf.mxu0 }
0x181b   : > { %v7295_v42 = vpop.f32.mrf.mxu1  ;;  %v7299_v10 = vadd.f32 %v7253_v41, %v7193_v4  ;;  %v21133_v4 = vld [vmem:[%s25724_s0 + $0x338] ss:$24 sps:$4 sm:$0xff]  }
0x181c   : > { %v7255_v44 = vpop.f32.mrf.mxu0  ;;  %v21100_v42 = vld [vmem:[%s25724_s0 + $0x128] ss:$24 sps:$4 sm:$0xff]  }
0x181d   : > { %v20797_v45 = vpop.f32.mrf.mxu1  ;;  %v8476_v44 = vand.u32 %v21103_v36, %v22999_v8  ;;  %v21189_v36 = vld [vmem:[%s25724_s0 + $0x14] ss:$24 sps:$4 sm:$0xff]  }
0x181e   : > { %v7256_v47 = vpop.f32.mrf.mxu0 }
0x181f   : > { %v7398_v48 = vpop.f32.mrf.mxu1  ;;  %v21108_v47 = vld [vmem:[%s25724_s0 + $0xfc] ss:$24 sps:$4 sm:$0xff]  }
0x1820   : > { %v7357_v50 = vpop.f32.mrf.mxu0  ;;  %v7406_v7 = vadd.f32 %v7398_v48, %v7300_v0  ;;  %v21111_v48 = vld [vmem:[%s25724_s0 + $0x3fc] ss:$24 sps:$4 sm:$0xff]  }
0x1821   : > { %v20802_v51 = vpop.f32.mrf.mxu1  ;;  %v7404_v11 = vadd.f32 %v7357_v50, %v7298_v5  ;;  %v21106_v50 = vld [vmem:[%s25724_s0 + $0xf8] ss:$24 sps:$4 sm:$0xff]   ;;  %v21135_v0 = vld [vmem:[%s25724_s0 + $0x33c] ss:$24 sps:$4 sm:$0xff]   ;;  %v21138_v5 = vld [vmem:[%s25724_s0 + $0xc] ss:$24 sps:$4 sm:$0xff]  }
0x1822   : > { %v7359_v52 = vpop.f32.mrf.mxu0  ;;  %v21109_v51 = vld [vmem:[%s25724_s0 + $0x3f8] ss:$24 sps:$4 sm:$0xff]  }
0x1823   : > { %v7401_v53 = vpop.f32.mrf.mxu1  ;;  %v7405_v15 = vadd.f32 %v7359_v52, %v7299_v10  ;;  %v21114_v52 = vld [vmem:[%s25724_s0 + $0xcc] ss:$24 sps:$4 sm:$0xff]   ;;  %v21144_v10 = vld [vmem:[%s25724_s0 + $0x2dc] ss:$24 sps:$4 sm:$0xff]  }
0x1824   : > { %v7361_v54 = vpop.f32.mrf.mxu0  ;;  %v21117_v53 = vld [vmem:[%s25724_s0 + $0x3cc] ss:$24 sps:$4 sm:$0xff]  }
0x1825   : > { %v20803_v55 = vpop.f32.mrf.mxu1  ;;  %v21112_v54 = vld [vmem:[%s25724_s0 + $0xc8] ss:$24 sps:$4 sm:$0xff]  }
0x1826   : > { %v7362_v56 = vpop.f32.mrf.mxu0  ;;  %v21115_v55 = vld [vmem:[%s25724_s0 + $0x3c8] ss:$24 sps:$4 sm:$0xff]  }
0x1827   : > { %v7504_v59 = vpop.f32.mrf.mxu1  ;;  %v21123_v56 = vld [vmem:[%s25724_s0 + $0x39c] ss:$24 sps:$4 sm:$0xff]  }
0x1828   : > { %v7463_v61 = vpop.f32.mrf.mxu0  ;;  %v7512_v13 = vadd.f32 %v7504_v59, %v7406_v7  ;;  %v21121_v59 = vld [vmem:[%s25724_s0 + $0x398] ss:$24 sps:$4 sm:$0xff]   ;;  %v21136_v7 = vld [vmem:[%s25724_s0 + $0x8] ss:$24 sps:$4 sm:$0xff]  }
0x1829   : > { %v20808_v63 = vpop.f32.mrf.mxu1  ;;  %v7510_v16 = vadd.f32 %v7463_v61, %v7404_v11  ;;  %v21129_v61 = vld [vmem:[%s25724_s0 + $0x36c] ss:$24 sps:$4 sm:$0xff]  }
0x182a   : > { %v7465_v3 = vpop.f32.mrf.mxu0  ;;  %v21132_v63 = vld [vmem:[%s25724_s0 + $0x3c] ss:$24 sps:$4 sm:$0xff]  }
0x182b   : > { %v7507_v6 = vpop.f32.mrf.mxu1  ;;  %v7511_v21 = vadd.f32 %v7465_v3, %v7405_v15  ;;  %v21130_v3 = vld [vmem:[%s25724_s0 + $0x38] ss:$24 sps:$4 sm:$0xff]   ;;  %v21147_v11 = vld [vmem:[%s25724_s0 + $0x164] ss:$24 sps:$4 sm:$0xff]   ;;  %v21153_v15 = vld [vmem:[%s25724_s0 + $0x134] ss:$24 sps:$4 sm:$0xff]  }
0x182c   : > { %v7467_v9 = vpop.f32.mrf.mxu0  ;;  %v21141_v6 = vld [vmem:[%s25724_s0 + $0x30c] ss:$24 sps:$4 sm:$0xff]  }
0x182d   : > { %v20809_v12 = vpop.f32.mrf.mxu1  ;;  %v21139_v9 = vld [vmem:[%s25724_s0 + $0x308] ss:$24 sps:$4 sm:$0xff]  }
0x182e   : > { %v7468_v14 = vpop.f32.mrf.mxu0  ;;  %v21142_v12 = vld [vmem:[%s25724_s0 + $0x2d8] ss:$24 sps:$4 sm:$0xff]  }
0x182f   : > { %v7610_v17 = vpop.f32.mrf.mxu1  ;;  %v21150_v14 = vld [vmem:[%s25724_s0 + $0x2ac] ss:$24 sps:$4 sm:$0xff]  }
0x1830   : > { %v7618_v18 = vadd.f32 %v7610_v17, %v7512_v13  ;;  %v7569_v19 = vpop.f32.mrf.mxu0  ;;  %v21145_v13 = vld [vmem:[%s25724_s0 + $0x160] ss:$24 sps:$4 sm:$0xff]   ;;  %v21151_v17 = vld [vmem:[%s25724_s0 + $0x130] ss:$24 sps:$4 sm:$0xff]  }
0x1831   : > { %v7616_v43 = vadd.f32 %v7569_v19, %v7510_v16  ;;  %v20814_v22 = vpop.f32.mrf.mxu1  ;;  %v21148_v16 = vld [vmem:[%s25724_s0 + $0x2a8] ss:$24 sps:$4 sm:$0xff]   ;;  %v21159_v19 = vld [vmem:[%s25724_s0 + $0x104] ss:$24 sps:$4 sm:$0xff]  }
0x1832   : > { %v7627_v23 = vmul.f32 %v7623_v20, %v7618_v18  ;;  %v7571_v24 = vpop.f32.mrf.mxu0  ;;  %v21156_v18 = vld [vmem:[%s25724_s0 + $0x27c] ss:$24 sps:$4 sm:$0xff]  }
0x1833   : > { %v7625_v26 = vmul.f32 %v7623_v20, %v7616_v43  ;;  %v7617_v27 = vadd.f32 %v7571_v24, %v7511_v21  ;;  %v7613_v28 = vpop.f32.mrf.mxu1  ;;  %v21157_v21 = vld [vmem:[%s25724_s0 + $0x100] ss:$24 sps:$4 sm:$0xff]   ;;  %v21162_v43 = vld [vmem:[%s25724_s0 + $0x24c] ss:$24 sps:$4 sm:$0xff]   ;;  %v21163_v24 = vld [vmem:[%s25724_s0 + $0xd0] ss:$24 sps:$4 sm:$0xff]  }
0x1834   : > { %v7636_v29 = vadd.f32 %v7632_v25, %v7627_v23  ;;  %v7573_v31 = vpop.f32.mrf.mxu0  ;;  %v21165_v22 = vld [vmem:[%s25724_s0 + $0xd4] ss:$24 sps:$4 sm:$0xff]   ;;  %v21160_v23 = vld [vmem:[%s25724_s0 + $0x248] ss:$24 sps:$4 sm:$0xff]  }
0x1835   : > { %v7634_v1 = vadd.f32 %v7632_v25, %v7625_v26  ;;  %v7626_v30 = vmul.f32 %v7623_v20, %v7617_v27  ;;  %v20815_v46 = vpop.f32.mrf.mxu1  ;;  %v21154_v20 = vld [vmem:[%s25724_s0 + $0x278] ss:$24 sps:$4 sm:$0xff]   ;;  %v21171_v26 = vld [vmem:[%s25724_s0 + $0xa4] ss:$24 sps:$4 sm:$0xff]   ;;  %v21177_v31 = vld [vmem:[%s25724_s0 + $0x74] ss:$24 sps:$4 sm:$0xff]  }
0x1836   : > { %v7639_v32 = vmax.f32 %v7636_v29, 0.0  ;;  %v7574_v33 = vpop.f32.mrf.mxu0  ;;  %v21166_v27 = vld [vmem:[%s25724_s0 + $0x218] ss:$24 sps:$4 sm:$0xff]   ;;  %v21174_v29 = vld [vmem:[%s25724_s0 + $0x1ec] ss:$24 sps:$4 sm:$0xff]  }
0x1837   : > { %v7635_v34 = vadd.f32 %v7632_v25, %v7626_v30  ;;  %v7637_v38 = vmax.f32 %v7634_v1, 0.0  ;;  %v21168_v25 = vld [vmem:[%s25724_s0 + $0x21c] ss:$24 sps:$4 sm:$0xff]   ;;  %v21169_v28 = vld [vmem:[%s25724_s0 + $0xa0] ss:$24 sps:$4 sm:$0xff]  }
0x1838   : > { %v23626_v37 = vpack.c.bf16 %v7639_v32, %v7639_v32  ;;  %v21172_v1 = vld [vmem:[%s25724_s0 + $0x1e8] ss:$24 sps:$4 sm:$0xff]   ;;  %v21180_v46 = vld [vmem:[%s25724_s0 + $0x1bc] ss:$24 sps:$4 sm:$0xff]   ;;  %v21178_v33 = vld [vmem:[%s25724_s0 + $0x1b8] ss:$24 sps:$4 sm:$0xff]  }
0x1839   : > { %v7638_v40 = vmax.f32 %v7635_v34, 0.0  ;;  %v23635_v45 = vpack.c.bf16 %v7637_v38, %v7637_v38  ;;  %v21175_v30 = vld [vmem:[%s25724_s0 + $0x70] ss:$24 sps:$4 sm:$0xff]   ;;  %v21183_v32 = vld [vmem:[%s25724_s0 + $0x44] ss:$24 sps:$4 sm:$0xff]  }
0x183a   : > { %19103 = vmatmul.mubr.msk.bf16.vlgmr.msra.gmra.mxu1 %vm8465_vm1, %v23626_v37  ;;  %v21181_v34 = vld [vmem:[%s25724_s0 + $0x40] ss:$24 sps:$4 sm:$0xff]   ;;  %v21195_v38 = vld [vmem:[%s25724_s0 + $0x434] ss:$24 sps:$4 sm:$0x3f]  }
0x183b   : > { %8570 = vmatpush1.bf16.msra.mxu1 %v21097_v35  ;;  %v23631_v41 = vpack.c.bf16 %v7638_v40, %v7638_v40  ;;  %v21186_v35 = vld [vmem:[%s25724_s0 + $0x18c] ss:$24 sps:$4 sm:$0xff]   ;;  %v21187_v40 = vld [vmem:[%s25724_s0 + $0x10] ss:$24 sps:$4 sm:$0xff]  }
0x183c   : > { %8571 = vmatprep.subr.bf16.mxu1 %v21102_v39  ;;  %v21184_v39 = vld [vmem:[%s25724_s0 + $0x188] ss:$24 sps:$4 sm:$0xff]  }
0x183d   : > { %8519 = vmatprep.mubr.bf16.mxu0 %v23631_v41  ;;  %8601 = vmatprep.mubr.bf16.mxu1 %v23631_v41 }
0x183e   : > { %8520 = vmatmul.mubr.bf16.vlgmr.msra.gmra.mxu0 %v23635_v45 }
0x183f   : > { %8572 = vmatpush1.bf16.msra.mxu1 %v21100_v42  ;;  %8613 = vmatpush1.bf16.msra.mxu0 %v8476_v44  ;;  %v21192_v42 = vld [vmem:[%s25724_s0 + $0x2e4] ss:$24 sps:$4 sm:$0xff]   ;;  %v8485_v44 = vand.u32 %v21195_v38, %v22999_v8 }
0x1840   : > { %8573 = vmatprep.subr.bf16.mxu1 %v21108_v47  ;;  %8614 = vmatprep.subr.bf16.mxu0 %v21111_v48  ;;  %v21190_v47 = vld [vmem:[%s25724_s0 + $0x2e0] ss:$24 sps:$4 sm:$0xff]  }
0x1841   : > { %8642 = vmatprep.mubr.bf16.mxu0 %v22555_v2 }
0x1843   : > { %8574 = vmatpush1.bf16.msra.mxu1 %v21106_v50  ;;  %8615 = vmatpush1.bf16.msra.mxu0 %v21109_v51  ;;  %v21198_v50 = vld [vmem:[%s25724_s0 + $0x2b4] ss:$24 sps:$4 sm:$0xff]   ;;  %v21201_v51 = vld [vmem:[%s25724_s0 + $0x404] ss:$24 sps:$4 sm:$0xff]  }
0x1844   : > { %8575 = vmatprep.subr.bf16.mxu1 %v21114_v52  ;;  %8616 = vmatprep.subr.bf16.mxu0 %v21117_v53  ;;  %v21196_v52 = vld [vmem:[%s25724_s0 + $0x2b0] ss:$24 sps:$4 sm:$0xff]   ;;  %v21199_v53 = vld [vmem:[%s25724_s0 + $0x400] ss:$24 sps:$4 sm:$0xff]  }
0x1847   : > { %8576 = vmatpush1.bf16.msra.mxu1 %v21112_v54  ;;  %8617 = vmatpush1.bf16.msra.mxu0 %v21115_v55  ;;  %v21204_v54 = vld [vmem:[%s25724_s0 + $0x284] ss:$24 sps:$4 sm:$0xff]   ;;  %v21202_v55 = vld [vmem:[%s25724_s0 + $0x280] ss:$24 sps:$4 sm:$0xff]  }
0x1848   : > { %8577 = vmatprep.subr.bf16.mxu1 %v21120_v49  ;;  %8618 = vmatprep.subr.bf16.mxu0 %v21123_v56  ;;  %v21205_v49 = vld [vmem:[%s25724_s0 + $0x3d0] ss:$24 sps:$4 sm:$0xff]   ;;  %v21210_v56 = vld [vmem:[%s25724_s0 + $0x254] ss:$24 sps:$4 sm:$0xff]  }
0x184b   : > { %8578 = vmatpush1.bf16.msra.mxu1 %v21118_v58  ;;  %8619 = vmatpush1.bf16.msra.mxu0 %v21121_v59  ;;  %v21213_v58 = vld [vmem:[%s25724_s0 + $0x3a4] ss:$24 sps:$4 sm:$0xff]   ;;  %v21208_v59 = vld [vmem:[%s25724_s0 + $0x250] ss:$24 sps:$4 sm:$0xff]  }
0x184c   : > { %8579 = vmatprep.subr.bf16.mxu1 %v21126_v60  ;;  %8620 = vmatprep.subr.bf16.mxu0 %v21129_v61  ;;  %v21211_v60 = vld [vmem:[%s25724_s0 + $0x3a0] ss:$24 sps:$4 sm:$0xff]   ;;  %v21216_v61 = vld [vmem:[%s25724_s0 + $0x224] ss:$24 sps:$4 sm:$0xff]  }
0x184f   : > { %8580 = vmatpush1.bf16.msra.mxu1 %v21124_v57  ;;  %8621 = vmatpush1.bf16.msra.mxu0 %v21127_v62  ;;  %v21219_v57 = vld [vmem:[%s25724_s0 + $0x374] ss:$24 sps:$4 sm:$0xff]   ;;  %v21214_v62 = vld [vmem:[%s25724_s0 + $0x220] ss:$24 sps:$4 sm:$0xff]  }
0x1850   : > { %8581 = vmatprep.subr.bf16.mxu1 %v21132_v63  ;;  %8622 = vmatprep.subr.bf16.mxu0 %v21135_v0  ;;  %v21217_v63 = vld [vmem:[%s25724_s0 + $0x370] ss:$24 sps:$4 sm:$0xff]   ;;  %v21222_v0 = vld [vmem:[%s25724_s0 + $0x1f4] ss:$24 sps:$4 sm:$0xff]  }
0x1853   : > { %8582 = vmatpush1.bf16.msra.mxu1 %v21130_v3  ;;  %8623 = vmatpush1.bf16.msra.mxu0 %v21133_v4  ;;  %v21225_v3 = vld [vmem:[%s25724_s0 + $0x344] ss:$24 sps:$4 sm:$0xff]   ;;  %v21220_v4 = vld [vmem:[%s25724_s0 + $0x1f0] ss:$24 sps:$4 sm:$0xff]  }
0x1854   : > { %8583 = vmatprep.subr.bf16.mxu1 %v21138_v5  ;;  %8624 = vmatprep.subr.bf16.mxu0 %v21141_v6  ;;  %v21223_v5 = vld [vmem:[%s25724_s0 + $0x340] ss:$24 sps:$4 sm:$0xff]   ;;  %v21228_v6 = vld [vmem:[%s25724_s0 + $0x1c4] ss:$24 sps:$4 sm:$0xff]  }
0x1857   : > { %8584 = vmatpush1.bf16.msra.mxu1 %v21136_v7  ;;  %8625 = vmatpush1.bf16.msra.mxu0 %v21139_v9  ;;  %v21231_v7 = vld [vmem:[%s25724_s0 + $0x314] ss:$24 sps:$4 sm:$0xff]   ;;  %v21226_v9 = vld [vmem:[%s25724_s0 + $0x1c0] ss:$24 sps:$4 sm:$0xff]  }
0x1858   : > { %8585 = vmatprep.subr.bf16.mxu1 %v21144_v10  ;;  %8651 = vmatprep.subr.bf16.mxu0 %v21147_v11  ;;  %v21229_v10 = vld [vmem:[%s25724_s0 + $0x310] ss:$24 sps:$4 sm:$0xff]   ;;  %v21234_v11 = vld [vmem:[%s25724_s0 + $0x194] ss:$24 sps:$4 sm:$0xff]  }
0x185a   : > { %19104 = vmatmul.mubr.msk.bf16.vlgmr.msra.gmra.mxu0 %vm8465_vm1, %v23626_v37 }
0x185b   : > { %8586 = vmatpush2.bf16.msra.mxu1 %v21142_v12  ;;  %8652 = vmatpush1.bf16.msra.mxu0 %v21145_v13  ;;  %v21232_v12 = vld [vmem:[%s25724_s0 + $0x190] ss:$24 sps:$4 sm:$0xff]  }
0x185c   : > { %8683 = vmatprep.mubr.bf16.mxu0 %v23631_v41  ;;  %8587 = vmatprep.subr.bf16.mxu1 %v21150_v14  ;;  %v21193_v41 = vld [vmem:[%s25724_s0 + $0x430] ss:$24 sps:$4 sm:$0x3f]  }
0x185d   : > { %8653 = vmatprep.subr.bf16.mxu0 %v21153_v15  ;;  %v8482_v48 = vand.u32 %v21193_v41, %v22999_v8  ;;  %v21207_v8 = vld [vmem:[%s25724_s0 + $0x3d4] ss:$24 sps:$4 sm:$0xff]   ;;  %s22564_s0 = smov 121  }
0x185f   : > { %8588 = vmatpush2.bf16.msra.mxu1 %v21148_v16  ;;  %8654 = vmatpush1.bf16.msra.mxu0 %v21151_v17 }
0x1860   : > { %8589 = vmatprep.subr.bf16.mxu1 %v21156_v18  ;;  %8655 = vmatprep.subr.bf16.mxu0 %v21159_v19 }
0x1863   : > { %8590 = vmatpush2.bf16.msra.mxu1 %v21154_v20  ;;  %8656 = vmatpush1.bf16.msra.mxu0 %v21157_v21 }
0x1864   : > { %8591 = vmatprep.subr.bf16.mxu1 %v21162_v43  ;;  %8657 = vmatprep.subr.bf16.mxu0 %v21165_v22 }
0x1867   : > { %8592 = vmatpush2.bf16.msra.mxu1 %v21160_v23  ;;  %8658 = vmatpush1.bf16.msra.mxu0 %v21163_v24 }
0x1868   : > { %8593 = vmatprep.subr.bf16.mxu1 %v21168_v25  ;;  %8659 = vmatprep.subr.bf16.mxu0 %v21171_v26 }
0x186b   : > { %8594 = vmatpush2.bf16.msra.mxu1 %v21166_v27  ;;  %8660 = vmatpush1.bf16.msra.mxu0 %v21169_v28 }
0x186c   : > { %8595 = vmatprep.subr.bf16.mxu1 %v21174_v29  ;;  %8661 = vmatprep.subr.bf16.mxu0 %v21177_v31 }
0x186f   : > { %8596 = vmatpush2.bf16.msra.mxu1 %v21172_v1  ;;  %8662 = vmatpush1.bf16.msra.mxu0 %v21175_v30 }
0x1870   : > { %8597 = vmatprep.subr.bf16.mxu1 %v21180_v46  ;;  %8663 = vmatprep.subr.bf16.mxu0 %v21183_v32 }
0x1873   : > { %8598 = vmatpush2.bf16.msra.mxu1 %v21178_v33  ;;  %8664 = vmatpush1.bf16.msra.mxu0 %v21181_v34 }
0x1874   : > { %8599 = vmatprep.subr.bf16.mxu1 %v21186_v35  ;;  %8665 = vmatprep.subr.bf16.mxu0 %v21189_v36 }
0x1877   : > { %8600 = vmatpush2.bf16.msra.mxu1 %v21184_v39  ;;  %8666 = vmatpush1.bf16.msra.mxu0 %v21187_v40 }
0x1878   : > { %8667 = vmatprep.subr.bf16.mxu0 %v21192_v42  ;;  %8694 = vmatprep.subr.bf16.mxu1 %v8485_v44 }
0x187a   : > { %8602 = vmatmul.mubr.bf16.vlgmr.msra.gmra.mxu1 %v23635_v45 }
0x187b   : > { %8668 = vmatpush2.bf16.msra.mxu0 %v21190_v47  ;;  %8695 = vmatpush1.bf16.msra.mxu1 %v8482_v48 }
0x187c   : > { %8669 = vmatprep.subr.bf16.mxu0 %v21198_v50  ;;  %8696 = vmatprep.subr.bf16.mxu1 %v21201_v51  ;;  %v23768_v50 = vld [vmem:[%s25725_s9] sm:$0x3] }
0x187d   : > { %8724 = vmatprep.mubr.bf16.mxu1 %v22555_v2 }
0x187f   : > { %8670 = vmatpush2.bf16.msra.mxu0 %v21196_v52  ;;  %8697 = vmatpush1.bf16.msra.mxu1 %v21199_v53 }
0x1880   : > { %8671 = vmatprep.subr.bf16.mxu0 %v21204_v54  ;;  %8698 = vmatprep.subr.bf16.mxu1 %v21207_v8 }
0x1883   : > { %8672 = vmatpush2.bf16.msra.mxu0 %v21202_v55  ;;  %8699 = vmatpush1.bf16.msra.mxu1 %v21205_v49  ;;  %v19106_v49 = vld [vmem:[%s25725_s9 + $0x2] sm:$0x3] }
0x1884   : > { %8673 = vmatprep.subr.bf16.mxu0 %v21210_v56  ;;  %8700 = vmatprep.subr.bf16.mxu1 %v21213_v58 }
0x1887   : > { %8674 = vmatpush2.bf16.msra.mxu0 %v21208_v59  ;;  %8701 = vmatpush1.bf16.msra.mxu1 %v21211_v60 }
0x1888   : > { %8675 = vmatprep.subr.bf16.mxu0 %v21216_v61  ;;  %8702 = vmatprep.subr.bf16.mxu1 %v21219_v57 }
0x188b   : > { %8676 = vmatpush2.bf16.msra.mxu0 %v21214_v62  ;;  %8703 = vmatpush1.bf16.msra.mxu1 %v21217_v63 }
0x188c   : > { %8677 = vmatprep.subr.bf16.mxu0 %v21222_v0  ;;  %8704 = vmatprep.subr.bf16.mxu1 %v21225_v3 }
0x188f   : > { %8678 = vmatpush2.bf16.msra.mxu0 %v21220_v4  ;;  %8705 = vmatpush1.bf16.msra.mxu1 %v21223_v5 }
0x1890   : > { %8679 = vmatprep.subr.bf16.mxu0 %v21228_v6  ;;  %8706 = vmatprep.subr.bf16.mxu1 %v21231_v7 }
0x1893   : > { %8680 = vmatpush2.bf16.msra.mxu0 %v21226_v9  ;;  %8707 = vmatpush1.bf16.msra.mxu1 %v21229_v10 }
0x1894   : > { %8681 = vmatprep.subr.bf16.mxu0 %v21234_v11 }
0x1896   : > { %19105 = vmatmul.mubr.msk.bf16.vlgmr.msra.gmra.mxu1 %vm8465_vm1, %v23626_v37 }
0x1897   : > { %8682 = vmatpush2.bf16.msra.mxu0 %v21232_v12  ;;  %8818 = vmatprep.mubr.bf16.mxu1 %v22555_v2  ;;  %v23876_v12 = vld [vmem:[%s25725_s9 + $0x4] sm:$0x3] }
0x189a   : > { %8684 = vmatmul.mubr.bf16.vlgmr.msra.gmra.mxu0 %v23635_v45 }
0x189b   : > { %9044 = vmatprep.mubr.bf16.mxu0 %v22555_v2 }
0x18fa   : > { %v8562_v13 = vpop.f32.mrf.mxu1 }
0x18fc   : > { %v8564_v14 = vpop.f32.mrf.mxu1 }
0x18fe   : > { %v8521_v15 = vpop.f32.mrf.mxu0  ;;  %v8566_v16 = vpop.f32.mrf.mxu1 }
0x18ff   : > { %v8563_v17 = vadd.f32 %v8562_v13, %v8521_v15 }
0x1900   : > { %v8523_v18 = vpop.f32.mrf.mxu0  ;;  %v8567_v19 = vpop.f32.mrf.mxu1 }
0x1901   : > { %v23739_v20 = vpack.c.bf16 %v8563_v17, %v8563_v17  ;;  %v8565_v21 = vadd.f32 %v8564_v14, %v8523_v18 }
0x1902   : > { %v8525_v43 = vpop.f32.mrf.mxu0 }
0x1903   : > { %v23741_v22 = vpack.c.bf16 %v8565_v21, %v8565_v21  ;;  %8748 = vrot.lane.b32.xlu1 %v23739_v20, %s25698_s1  ;;  %v8913_v15 = vsel %vm4241_vm2, %v23739_v20, 0  ;;  %v23892_v43 = vld [vmem:[%s25725_s9 + $0x6] sm:$0x3] }
0x1904   : > { %v8526_v37 = vpop.f32.mrf.mxu0 }
0x1905   : > { %8750 = vrot.lane.b32.xlu0 %v23741_v22, %s25698_s1 }
0x191a   : > { %v8644_v45 = vpop.f32.mrf.mxu0 }
0x191c   : > { %v8646_v23 = vpop.f32.mrf.mxu0 }
0x191e   : > { %v8648_v24 = vpop.f32.mrf.mxu0 }
0x1920   : > { %v8649_v25 = vpop.f32.mrf.mxu0 }
0x193a   : > { %v8603_v26 = vpop.f32.mrf.mxu1 }
0x193b   : > { %v8645_v27 = vadd.f32 %v8644_v45, %v8603_v26 }
0x193c   : > { %v8605_v28 = vpop.f32.mrf.mxu1 }
0x193d   : > { %v23747_v29 = vpack.c.bf16 %v8645_v27, %v8645_v27  ;;  %v8647_v31 = vadd.f32 %v8646_v23, %v8605_v28 }
0x193e   : > { %v8607_v1 = vpop.f32.mrf.mxu1 }
0x193f   : > { %v23749_v30 = vpack.c.bf16 %v8647_v31, %v8647_v31  ;;  %8752 = vrot.lane.b32.xlu1 %v23747_v29, %s25698_s1  ;;  %v8919_v37 = vsel %vm4241_vm2, %v23747_v29, 0 }
0x1940   : > { %v8608_v46 = vpop.f32.mrf.mxu1 }
0x1941   : > { %8754 = vrot.lane.b32.xlu0 %v23749_v30, %s25698_s1 }
0x1956   : > { %v8726_v32 = vpop.f32.mrf.mxu1 }
0x1958   : > { %v8728_v33 = vpop.f32.mrf.mxu1 }
0x195a   : > { %v8685_v34 = vpop.f32.mrf.mxu0  ;;  %v8730_v35 = vpop.f32.mrf.mxu1 }
0x195b   : > { %v8727_v36 = vadd.f32 %v8726_v32, %v8685_v34 }
0x195c   : > { %v8687_v38 = vpop.f32.mrf.mxu0  ;;  %v8731_v39 = vpop.f32.mrf.mxu1 }
0x195d   : > { %v23755_v40 = vpack.c.bf16 %v8727_v36, %v8727_v36  ;;  %v8729_v41 = vadd.f32 %v8728_v33, %v8687_v38  ;;  %v23922_v36 = vld [vmem:[%s25725_s9 + $0x8] sm:$0x3] }
0x195e   : > { %v8689_v42 = vpop.f32.mrf.mxu0 }
0x195f   : > { %v23757_v44 = vpack.c.bf16 %v8729_v41, %v8729_v41  ;;  %8756 = vrot.lane.b32.xlu1 %v23755_v40, %s25698_s1  ;;  %v8925_v48 = vsel %vm4241_vm2, %v23755_v40, 0 }
0x1960   : > { %v8690_v47 = vpop.f32.mrf.mxu0 }
0x1961   : > { %19117 = vmatprep.subr.msk.bf16.mxu0 %vm4241_vm2, %v23757_v44  ;;  %8758 = vrot.lane.b32.xlu0 %v23757_v44, %s25698_s1 }
0x1962   : > { %9027 = vmatpush1.bf16.msra.mxu0 %v8925_v48 }
0x1963   : > { %9059 = vrot.lane.b32.xlu1 %v23747_v29, %s25707_s11 }
0x1965   : > { %9061 = vrot.lane.b32.xlu0 %v23749_v30, %s25707_s11  ;;  %19118 = vmatmul.mubr.msk.bf16.vlgmr.msra.gmra.mxu0 %vm5206_vm8, %v23768_v50 }
0x1966   : > { %9166 = vmatprep.mubr.bf16.mxu0 %v22555_v2 }
0x1967   : > { %9063 = vrot.lane.b32.xlu1 %v23755_v40, %s25707_s11 }
0x1969   : > { %9055 = vrot.lane.b32.xlu0 %v23739_v20, %s25707_s11 }
0x196b   : > { %9057 = vrot.lane.b32.xlu1 %v23741_v22, %s25707_s11 }
0x196d   : > { %9224 = vrot.lane.b32.xlu0 %v23739_v20, %s25700_s3 }
0x196f   : > { %9226 = vrot.lane.b32.xlu1 %v23741_v22, %s25700_s3 }
0x1971   : > { %9228 = vrot.lane.b32.xlu0 %v23747_v29, %s25700_s3 }
0x1973   : > { %9065 = vrot.lane.b32.xlu1 %v23757_v44, %s25707_s11 }
0x1975   : > { %9232 = vrot.lane.b32.xlu0 %v23755_v40, %s25700_s3  ;;  %v8749_v51 = vpop.permute.xlu1 %8748 }
0x1977   : > { %9234 = vrot.lane.b32.xlu1 %v23757_v44, %s25700_s3  ;;  %v8751_v52 = vpop.permute.xlu0 %8750 }
0x1978   : > { %v8760_v53 = vsel %vm6140_vm10, %v8749_v51, %v8751_v52 }
0x1979   : > { %9230 = vrot.lane.b32.xlu0 %v23749_v30, %s25700_s3  ;;  %v8769_v55 = vsel %vm4241_vm2, %v8760_v53, 0 }
0x197b   : > { %9397 = vrot.lane.b32.xlu1 %v23747_v29, %s25699_s2 }
0x197d   : > { %9399 = vrot.lane.b32.xlu0 %v23749_v30, %s25699_s2 }
0x197f   : > { %9401 = vrot.lane.b32.xlu1 %v23755_v40, %s25699_s2 }
0x1981   : > { %9393 = vrot.lane.b32.xlu0 %v23739_v20, %s25699_s2 }
0x1983   : > { %9395 = vrot.lane.b32.xlu1 %v23741_v22, %s25699_s2 }
0x1985   : > { %9562 = vrot.lane.b32.xlu0 %v23739_v20, %s25702_s16 }
0x1987   : > { %9564 = vrot.lane.b32.xlu1 %v23741_v22, %s25702_s16 }
0x1989   : > { %9566 = vrot.lane.b32.xlu0 %v23747_v29, %s25702_s16 }
0x198b   : > { %9403 = vrot.lane.b32.xlu1 %v23757_v44, %s25699_s2 }
0x198d   : > { %9570 = vrot.lane.b32.xlu0 %v23755_v40, %s25702_s16 }
0x198f   : > { %9572 = vrot.lane.b32.xlu1 %v23757_v44, %s25702_s16 }
0x1991   : > { %9568 = vrot.lane.b32.xlu0 %v23749_v30, %s25702_s16  ;;  %s22565_s16 = smov 120  }
0x1993   : > { %9735 = vrot.lane.b32.xlu1 %v23747_v29, %s25701_s5 }
0x1995   : > { %9737 = vrot.lane.b32.xlu0 %v23749_v30, %s25701_s5 }
0x1997   : > { %9739 = vrot.lane.b32.xlu1 %v23755_v40, %s25701_s5 }
0x1999   : > { %9731 = vrot.lane.b32.xlu0 %v23739_v20, %s25701_s5 }
0x199b   : > { %9733 = vrot.lane.b32.xlu1 %v23741_v22, %s25701_s5 }
0x199d   : > { %9900 = vrot.lane.b32.xlu0 %v23739_v20, %s22564_s0 }
0x199f   : > { %9902 = vrot.lane.b32.xlu1 %v23741_v22, %s22564_s0 }
0x19a1   : > { %9904 = vrot.lane.b32.xlu0 %v23747_v29, %s22564_s0 }
0x19a3   : > { %9741 = vrot.lane.b32.xlu1 %v23757_v44, %s25701_s5  ;;  %s25726_s5 = sld [smem:[#allocation38_spill]] }
0x19a5   : > { %9908 = vrot.lane.b32.xlu0 %v23755_v40, %s22564_s0 }
0x19a7   : > { %9910 = vrot.lane.b32.xlu1 %v23757_v44, %s22564_s0 }
0x19a9   : > { %9906 = vrot.lane.b32.xlu0 %v23749_v30, %s22564_s0  ;;  %s25727_s0 = sld [smem:[#allocation39_spill]]  ;;  %v10408_v56 = vld [vmem:[%s25726_s5] sm:$0xf] }
0x19aa   : > { %s25730_s5 = sld [smem:[#allocation42_spill]] }
0x19ab   : > { %10074 = vrot.lane.b32.xlu1 %v23747_v29, %s22565_s16 }
0x19ad   : > { %10076 = vrot.lane.b32.xlu0 %v23749_v30, %s22565_s16 }
0x19af   : > { %10078 = vrot.lane.b32.xlu1 %v23755_v40, %s22565_s16  ;;  %v10420_v58 = vld [vmem:[%s25727_s0] sm:$0xf]  ;;  %s25731_s0 = sld [smem:[#allocation43_spill]] }
0x19b1   : > { %10070 = vrot.lane.b32.xlu0 %v23739_v20, %s22565_s16  ;;  %v8753_v54 = vpop.permute.xlu1 %8752 }
0x19b2   : > { %v8761_v8 = vsel %vm6140_vm10, %v8751_v52, %v8753_v54  ;;  %v23939_v52 = vld [vmem:[%s25725_s9 + $0xa] sm:$0x3] }
0x19b3   : > { %10072 = vrot.lane.b32.xlu1 %v23741_v22, %s22565_s16  ;;  %19107 = vmatprep.subr.msk.bf16.mxu1 %vm4241_vm2, %v8761_v8  ;;  %v8755_v59 = vpop.permute.xlu0 %8754 }
0x19b4   : > { %8801 = vmatpush1.bf16.msra.mxu1 %v8769_v55  ;;  %v8762_v60 = vsel %vm6140_vm10, %v8753_v54, %v8755_v59 }
0x19b5   : > { %10240 = vrot.lane.b32.xlu0 %v23739_v20, %s22566_s8  ;;  %v8775_v63 = vsel %vm4241_vm2, %v8762_v60, 0 }
0x19b7   : > { %10242 = vrot.lane.b32.xlu1 %v23741_v22, %s22566_s8  ;;  %19108 = vmatmul.mubr.msk.bf16.vlgmr.msra.gmra.mxu1 %vm5206_vm8, %v19106_v49 }
0x19b8   : > { %8859 = vmatprep.mubr.bf16.mxu1 %v22555_v2 }
0x19b9   : > { %10244 = vrot.lane.b32.xlu0 %v23747_v29, %s22566_s8 }
0x19bb   : > { %10080 = vrot.lane.b32.xlu1 %v23757_v44, %s22565_s16  ;;  %s25729_s16 = sld [smem:[#allocation41_spill]] }
0x19bd   : > { %10246 = vrot.lane.b32.xlu0 %v23749_v30, %s22566_s8 }
0x19bf   : > { %10248 = vrot.lane.b32.xlu1 %v23755_v40, %s22566_s8 }
0x19c1   : > { %10250 = vrot.lane.b32.xlu0 %v23757_v44, %s22566_s8  ;;  %s25728_s8 = sld [smem:[#allocation44_spill]] }
0x19c3   : > { %10411 = vperm.xlu1 %20895, %v10408_v56  }
0x19c5   : > { %10423 = vperm.xlu0 %20896, %v10420_v58  }
0x19d1   : > { %v8757_v61 = vpop.permute.xlu1 %8756 }
0x19d2   : > { %v8763_v57 = vsel %vm6140_vm10, %v8755_v59, %v8757_v61 }
0x19d3   : > { %v8759_v62 = vpop.permute.xlu0 %8758  ;;  %19109 = vmatprep.subr.msk.bf16.mxu1 %vm4241_vm2, %v8763_v57 }
0x19d4   : > { %v8764_v0 = vsel %vm6140_vm10, %v8757_v61, %v8759_v62  ;;  %8842 = vmatpush1.bf16.msra.mxu1 %v8775_v63 }
0x19d5   : > { %19111 = vmatprep.subr.msk.bf16.mxu1 %vm4241_vm2, %v8759_v62  ;;  %v9060_v3 = vpop.permute.xlu1 %9059  ;;  %v8781_v5 = vsel %vm4241_vm2, %v8764_v0, 0 }
0x19d7   : > { %v9062_v4 = vpop.permute.xlu0 %9061  ;;  %19110 = vmatmul.mubr.msk.bf16.vlgmr.msra.gmra.mxu1 %vm5206_vm8, %v19106_v49 }
0x19d8   : > { %v9069_v6 = vsel %vm6248_vm13, %v9060_v3, %v9062_v4  ;;  %8883 = vmatpush1.bf16.msra.mxu1 %v8781_v5  ;;  %8900 = vmatprep.mubr.bf16.mxu1 %v22555_v2 }
0x19d9   : > { %19113 = vmatprep.subr.msk.bf16.mxu1 %vm4241_vm2, %v23741_v22  ;;  %v9064_v7 = vpop.permute.xlu1 %9063  ;;  %v9082_v11 = vsel %vm4241_vm2, %v9069_v6, 0 }
0x19da   : > { %v9070_v9 = vsel %vm6248_vm13, %v9062_v4, %v9064_v7 }
0x19db   : > { %v9056_v10 = vpop.permute.xlu0 %9055  ;;  %19122 = vmatprep.subr.msk.bf16.mxu0 %vm4241_vm2, %v9070_v9 }
0x19dc   : > { %9149 = vmatpush1.bf16.msra.mxu0 %v9082_v11 }
0x19dd   : > { %v9058_v13 = vpop.permute.xlu1 %9057 }
0x19de   : > { %v9068_v45 = vsel %vm6248_vm13, %v9058_v13, %v9060_v3  ;;  %v9067_v27 = vsel %vm6248_vm13, %v9056_v10, %v9058_v13 }
0x19df   : > { %v9225_v14 = vpop.permute.xlu0 %9224  ;;  %19112 = vmatmul.mubr.msk.bf16.vlgmr.msra.gmra.mxu1 %vm5206_vm8, %v19106_v49  ;;  %19123 = vmatmul.mubr.msk.bf16.vlgmr.msra.gmra.mxu0 %vm5206_vm8, %v23876_v12  ;;  %v9076_v29 = vsel %vm4241_vm2, %v9067_v27, 0 }
0x19e0   : > { %8945 = vmatpush1.bf16.msra.mxu1 %v8913_v15  ;;  %8962 = vmatprep.mubr.bf16.mxu1 %v22555_v2 }
0x19e1   : > { %19115 = vmatprep.subr.msk.bf16.mxu1 %vm4241_vm2, %v23749_v30  ;;  %v9227_v16 = vpop.permute.xlu1 %9226  ;;  %9294 = vmatprep.mubr.bf16.mxu0 %v22555_v2 }
0x19e2   : > { %v9236_v17 = vsel %vm6308_vm12, %v9225_v14, %v9227_v16 }
0x19e3   : > { %v9229_v18 = vpop.permute.xlu0 %9228  ;;  %v9245_v21 = vsel %vm4241_vm2, %v9236_v17, 0 }
0x19e4   : > { %v9237_v19 = vsel %vm6308_vm12, %v9227_v16, %v9229_v18 }
0x19e5   : > { %19127 = vmatprep.subr.msk.bf16.mxu0 %vm4241_vm2, %v9237_v19  ;;  %v9066_v20 = vpop.permute.xlu1 %9065  ;;  %v23988_v19 = vld [vmem:[%s25725_s9 + $0xe] sm:$0x3] }
0x19e6   : > { %9277 = vmatpush1.bf16.msra.mxu0 %v9245_v21  ;;  %v9071_v34 = vsel %vm6248_vm13, %v9064_v7, %v9066_v20  ;;  %v23971_v7 = vld [vmem:[%s25725_s9 + $0xc] sm:$0x3] }
0x19e7   : > { %v9233_v22 = vpop.permute.xlu0 %9232  ;;  %19114 = vmatmul.mubr.msk.bf16.vlgmr.msra.gmra.mxu1 %vm5206_vm8, %v23768_v50  ;;  %v9088_v38 = vsel %vm4241_vm2, %v9071_v34, 0  ;;  %v19161_v34 = vld [vmem:[%s25725_s9 + $0x10] sm:$0x3] }
0x19e8   : > { %8986 = vmatpush1.bf16.msra.mxu1 %v8919_v37  ;;  %9003 = vmatprep.mubr.bf16.mxu1 %v22555_v2 }
0x19e9   : > { %19120 = vmatprep.subr.msk.bf16.mxu1 %vm4241_vm2, %v9068_v45  ;;  %v9235_v23 = vpop.permute.xlu1 %9234  ;;  %19128 = vmatmul.mubr.msk.bf16.vlgmr.msra.gmra.mxu0 %vm5206_vm8, %v23892_v43 }
0x19ea   : > { %v9240_v24 = vsel %vm6308_vm12, %v9233_v22, %v9235_v23  ;;  %19131 = vmatprep.subr.msk.bf16.mxu0 %vm4241_vm2, %v9235_v23  ;;  %9376 = vmatprep.mubr.bf16.mxu0 %v22555_v2 }
0x19eb   : > { %v9257_v25 = vsel %vm4241_vm2, %v9240_v24, 0  ;;  %v9231_v26 = vpop.permute.xlu0 %9230 }
0x19ec   : > { %9359 = vmatpush1.bf16.msra.mxu0 %v9257_v25  ;;  %v9239_v40 = vsel %vm6308_vm12, %v9231_v26, %v9233_v22  ;;  %v9238_v47 = vsel %vm6308_vm12, %v9229_v18, %v9231_v26 }
0x19ed   : > { %v9398_v28 = vpop.permute.xlu1 %9397  ;;  %v9251_v53 = vsel %vm4241_vm2, %v9238_v47, 0 }
0x19ef   : > { %v9400_v31 = vpop.permute.xlu0 %9399  ;;  %19116 = vmatmul.mubr.msk.bf16.vlgmr.msra.gmra.mxu1 %vm5206_vm8, %v23768_v50 }
0x19f0   : > { %v9407_v1 = vsel %vm6368_vm15, %v9398_v28, %v9400_v31  ;;  %9108 = vmatpush1.bf16.msra.mxu1 %v9076_v29  ;;  %9125 = vmatprep.mubr.bf16.mxu1 %v22555_v2 }
0x19f1   : > { %19124 = vmatprep.subr.msk.bf16.mxu1 %vm4241_vm2, %v9066_v20  ;;  %v9402_v30 = vpop.permute.xlu1 %9401  ;;  %19132 = vmatmul.mubr.msk.bf16.vlgmr.msra.gmra.mxu0 %vm5206_vm8, %v23892_v43  ;;  %v9420_v32 = vsel %vm4241_vm2, %v9407_v1, 0 }
0x19f2   : > { %v9408_v46 = vsel %vm6368_vm15, %v9400_v31, %v9402_v30  ;;  %9504 = vmatprep.mubr.bf16.mxu0 %v22555_v2 }
0x19f3   : > { %v9394_v33 = vpop.permute.xlu0 %9393  ;;  %19136 = vmatprep.subr.msk.bf16.mxu0 %vm4241_vm2, %v9408_v46 }
0x19f4   : > { %9487 = vmatpush1.bf16.msra.mxu0 %v9420_v32 }
0x19f5   : > { %v9396_v35 = vpop.permute.xlu1 %9395 }
0x19f6   : > { %v9406_v8 = vsel %vm6368_vm15, %v9396_v35, %v9398_v28  ;;  %v9405_v59 = vsel %vm6368_vm15, %v9394_v33, %v9396_v35 }
0x19f7   : > { %v9563_v39 = vpop.permute.xlu0 %9562  ;;  %19121 = vmatmul.mubr.msk.bf16.vlgmr.msra.gmra.mxu1 %vm5206_vm8, %v23876_v12  ;;  %v9414_v61 = vsel %vm4241_vm2, %v9405_v59, 0 }
0x19f8   : > { %9190 = vmatpush1.bf16.msra.mxu1 %v9088_v38  ;;  %9207 = vmatprep.mubr.bf16.mxu1 %v22555_v2 }
0x19f9   : > { %19129 = vmatprep.subr.msk.bf16.mxu1 %vm4241_vm2, %v9239_v40  ;;  %v9565_v41 = vpop.permute.xlu1 %9564  ;;  %19137 = vmatmul.mubr.msk.bf16.vlgmr.msra.gmra.mxu0 %vm5206_vm8, %v23922_v36 }
0x19fa   : > { %v9574_v42 = vsel %vm6428_vm14, %v9563_v39, %v9565_v41  ;;  %9632 = vmatprep.mubr.bf16.mxu0 %v22555_v2 }
0x19fb   : > { %v9567_v44 = vpop.permute.xlu0 %9566  ;;  %v9583_v50 = vsel %vm4241_vm2, %v9574_v42, 0 }
0x19fc   : > { %v9575_v48 = vsel %vm6428_vm14, %v9565_v41, %v9567_v44 }
0x19fd   : > { %19141 = vmatprep.subr.msk.bf16.mxu0 %vm4241_vm2, %v9575_v48  ;;  %v9404_v51 = vpop.permute.xlu1 %9403 }
0x19fe   : > { %9615 = vmatpush1.bf16.msra.mxu0 %v9583_v50  ;;  %v9409_v5 = vsel %vm6368_vm15, %v9402_v30, %v9404_v51 }
0x19ff   : > { %v9571_v54 = vpop.permute.xlu0 %9570  ;;  %19125 = vmatmul.mubr.msk.bf16.vlgmr.msra.gmra.mxu1 %vm5206_vm8, %v23876_v12  ;;  %v9426_v9 = vsel %vm4241_vm2, %v9409_v5, 0  ;;  %v21237_v5 = vld [vmem:[%s25728_s8 + $0x154] ss:$24 sps:$4 sm:$0xff]  }
0x1a00   : > { %9318 = vmatpush1.bf16.msra.mxu1 %v9251_v53  ;;  %9335 = vmatprep.mubr.bf16.mxu1 %v22555_v2  ;;  %v19168_v53 = vld [vmem:[%s25725_s9 + $0x12] sm:$0x3] }
0x1a01   : > { %19134 = vmatprep.subr.msk.bf16.mxu1 %vm4241_vm2, %v9406_v8  ;;  %v9573_v55 = vpop.permute.xlu1 %9572  ;;  %19142 = vmatmul.mubr.msk.bf16.vlgmr.msra.gmra.mxu0 %vm5206_vm8, %v23939_v52 }
0x1a02   : > { %v9578_v49 = vsel %vm6428_vm14, %v9571_v54, %v9573_v55  ;;  %19145 = vmatprep.subr.msk.bf16.mxu0 %vm4241_vm2, %v9573_v55  ;;  %9714 = vmatprep.mubr.bf16.mxu0 %v22555_v2 }
0x1a03   : > { %v9595_v56 = vsel %vm4241_vm2, %v9578_v49, 0  ;;  %v9569_v58 = vpop.permute.xlu0 %9568 }
0x1a04   : > { %9697 = vmatpush1.bf16.msra.mxu0 %v9595_v56  ;;  %v9577_v11 = vsel %vm6428_vm14, %v9569_v58, %v9571_v54  ;;  %v9576_v15 = vsel %vm6428_vm14, %v9567_v44, %v9569_v58 }
0x1a05   : > { %v9736_v60 = vpop.permute.xlu1 %9735  ;;  %v9589_v21 = vsel %vm4241_vm2, %v9576_v15, 0  ;;  %v21250_v15 = vld [vmem:[%s25728_s8 + $0x90] ss:$24 sps:$4 sm:$0xff]  }
0x1a07   : > { %v9738_v57 = vpop.permute.xlu0 %9737  ;;  %19130 = vmatmul.mubr.msk.bf16.vlgmr.msra.gmra.mxu1 %vm5206_vm8, %v23892_v43 }
0x1a08   : > { %v9745_v62 = vsel %vm6488_vm5, %v9736_v60, %v9738_v57  ;;  %9446 = vmatpush1.bf16.msra.mxu1 %v9414_v61  ;;  %9463 = vmatprep.mubr.bf16.mxu1 %v22555_v2 }
0x1a09   : > { %19138 = vmatprep.subr.msk.bf16.mxu1 %vm4241_vm2, %v9404_v51  ;;  %v23960_v63 = vpop.permute.xlu1 %9739  ;;  %19146 = vmatmul.mubr.msk.bf16.vlgmr.msra.gmra.mxu0 %vm5206_vm8, %v23939_v52  ;;  %v9758_v3 = vsel %vm4241_vm2, %v9745_v62, 0 }
0x1a0a   : > { %v9746_v0 = vsel %vm6488_vm5, %v9738_v57, %v23960_v63  ;;  %9842 = vmatprep.mubr.bf16.mxu0 %v22555_v2 }
0x1a0b   : > { %v9732_v4 = vpop.permute.xlu0 %9731  ;;  %19150 = vmatprep.subr.msk.bf16.mxu0 %vm4241_vm2, %v9746_v0 }
0x1a0c   : > { %9825 = vmatpush1.bf16.msra.mxu0 %v9758_v3 }
0x1a0d   : > { %v9734_v6 = vpop.permute.xlu1 %9733 }
0x1a0e   : > { %v9744_v43 = vsel %vm6488_vm5, %v9734_v6, %v9736_v60  ;;  %v9743_v24 = vsel %vm6488_vm5, %v9732_v4, %v9734_v6  ;;  %v21235_v4 = vld [vmem:[%s25728_s8 + $0x150] ss:$24 sps:$4 sm:$0xff]   ;;  %v21240_v6 = vld [vmem:[%s25728_s8 + $0x124] ss:$24 sps:$4 sm:$0xff]  }
0x1a0f   : > { %v9901_v10 = vpop.permute.xlu0 %9900  ;;  %19135 = vmatmul.mubr.msk.bf16.vlgmr.msra.gmra.mxu1 %vm5206_vm8, %v23922_v36  ;;  %v9752_v26 = vsel %vm4241_vm2, %v9743_v24, 0  ;;  %v21270_v24 = vld [vmem:[%s25728_s8 + $0x4] ss:$24 sps:$4 sm:$0xff]  }
0x1a10   : > { %9528 = vmatpush1.bf16.msra.mxu1 %v9426_v9  ;;  %9545 = vmatprep.mubr.bf16.mxu1 %v22555_v2  ;;  %v21241_v9 = vld [vmem:[%s25728_s8 + $0xf0] ss:$24 sps:$4 sm:$0xff]  }
0x1a11   : > { %19143 = vmatprep.subr.msk.bf16.mxu1 %vm4241_vm2, %v9577_v11  ;;  %v9903_v12 = vpop.permute.xlu1 %9902  ;;  %19151 = vmatmul.mubr.msk.bf16.vlgmr.msra.gmra.mxu0 %vm5206_vm8, %v23971_v7  ;;  %v21246_v11 = vld [vmem:[%s25728_s8 + $0xc4] ss:$24 sps:$4 sm:$0xff]  }
0x1a12   : > { %v9913_v13 = vsel %vm9912_vm3, %v9901_v10, %v9903_v12  ;;  %9971 = vmatprep.mubr.bf16.mxu0 %v22555_v2  ;;  %v21243_v10 = vld [vmem:[%s25728_s8 + $0xf4] ss:$24 sps:$4 sm:$0xff]  }
0x1a13   : > { %v9905_v14 = vpop.permute.xlu0 %9904  ;;  %v9922_v17 = vsel %vm4241_vm2, %v9913_v13, 0  ;;  %v21247_v13 = vld [vmem:[%s25728_s8 + $0x450] ss:$24 sps:$4 sm:$0xff]  }
0x1a14   : > { %v9914_v16 = vsel %vm9912_vm3, %v9903_v12, %v9905_v14  ;;  %v21244_v12 = vld [vmem:[%s25728_s8 + $0xc0] ss:$24 sps:$4 sm:$0xff]  }
0x1a15   : > { %19155 = vmatprep.subr.msk.bf16.mxu0 %vm4241_vm2, %v9914_v16  ;;  %v9742_v18 = vpop.permute.xlu1 %9741  ;;  %v21252_v16 = vld [vmem:[%s25728_s8 + $0x94] ss:$24 sps:$4 sm:$0xff]  }
0x1a16   : > { %9954 = vmatpush1.bf16.msra.mxu0 %v9922_v17  ;;  %v9747_v46 = vsel %vm6488_vm5, %v23960_v63, %v9742_v18  ;;  %v21255_v17 = vld [vmem:[%s25728_s8 + $0x424] ss:$24 sps:$4 sm:$0xff]  }
0x1a17   : > { %v9909_v20 = vpop.permute.xlu0 %9908  ;;  %19139 = vmatmul.mubr.msk.bf16.vlgmr.msra.gmra.mxu1 %vm5206_vm8, %v23922_v36  ;;  %v9764_v35 = vsel %vm4241_vm2, %v9747_v46, 0  ;;  %v21280_v46 = vld [vmem:[%s25728_s8 + $0x2a0] ss:$24 sps:$4 sm:$0xff]  }
0x1a18   : > { %9656 = vmatpush1.bf16.msra.mxu1 %v9589_v21  ;;  %9673 = vmatprep.mubr.bf16.mxu1 %v22555_v2  ;;  %v21256_v21 = vld [vmem:[%s25728_s8 + $0x60] ss:$24 sps:$4 sm:$0xff]  }
0x1a19   : > { %19148 = vmatprep.subr.msk.bf16.mxu1 %vm4241_vm2, %v9744_v43  ;;  %v9911_v22 = vpop.permute.xlu1 %9910  ;;  %19156 = vmatmul.mubr.msk.bf16.vlgmr.msra.gmra.mxu0 %vm5206_vm8, %v23988_v19  ;;  %v21261_v43 = vld [vmem:[%s25728_s8 + $0x3f4] ss:$24 sps:$4 sm:$0xff]  }
0x1a1a   : > { %v9917_v37 = vsel %vm9912_vm3, %v9909_v20, %v9911_v22  ;;  %19159 = vmatprep.subr.msk.bf16.mxu0 %vm4241_vm2, %v9911_v22  ;;  %10053 = vmatprep.mubr.bf16.mxu0 %v22555_v2  ;;  %v21262_v22 = vld [vmem:[%s25728_s8 + $0x30] ss:$24 sps:$4 sm:$0xff]  }
0x1a1b   : > { %v9934_v45 = vsel %vm4241_vm2, %v9917_v37, 0  ;;  %v9907_v23 = vpop.permute.xlu0 %9906  ;;  %v21264_v37 = vld [vmem:[%s25728_s8 + $0x34] ss:$24 sps:$4 sm:$0xff]  }
0x1a1c   : > { %10036 = vmatpush1.bf16.msra.mxu0 %v9934_v45  ;;  %v9916_v39 = vsel %vm9912_vm3, %v9907_v23, %v9909_v20  ;;  %v9915_v48 = vsel %vm9912_vm3, %v9905_v14, %v9907_v23  ;;  %v21249_v14 = vld [vmem:[%s25728_s8 + $0x454] ss:$24 sps:$4 sm:$0xff]   ;;  %v21259_v20 = vld [vmem:[%s25728_s8 + $0x3f0] ss:$24 sps:$4 sm:$0xff]   ;;  %v21267_v45 = vld [vmem:[%s25728_s8 + $0x3c4] ss:$24 sps:$4 sm:$0xff]  }
0x1a1d   : > { %v10075_v25 = vpop.permute.xlu1 %10074  ;;  %v9928_v54 = vsel %vm4241_vm2, %v9915_v48, 0  ;;  %v21265_v23 = vld [vmem:[%s25728_s8 + $0x3c0] ss:$24 sps:$4 sm:$0xff]  }
0x1a1f   : > { %v10077_v27 = vpop.permute.xlu0 %10076  ;;  %19144 = vmatmul.mubr.msk.bf16.vlgmr.msra.gmra.mxu1 %vm5206_vm8, %v23939_v52 }
0x1a20   : > { %v10085_v28 = vsel %vm10082_vm7, %v10075_v25, %v10077_v27  ;;  %9784 = vmatpush1.bf16.msra.mxu1 %v9752_v26  ;;  %9801 = vmatprep.mubr.bf16.mxu1 %v22555_v2  ;;  %v21271_v26 = vld [vmem:[%s25728_s8 + $0x390] ss:$24 sps:$4 sm:$0xff]  }
0x1a21   : > { %19152 = vmatprep.subr.msk.bf16.mxu1 %vm4241_vm2, %v9742_v18  ;;  %v10079_v29 = vpop.permute.xlu1 %10078  ;;  %19160 = vmatmul.mubr.msk.bf16.vlgmr.msra.gmra.mxu0 %vm5206_vm8, %v23988_v19  ;;  %v10098_v1 = vsel %vm4241_vm2, %v10085_v28, 0  ;;  %v21253_v18 = vld [vmem:[%s25728_s8 + $0x420] ss:$24 sps:$4 sm:$0xff]   ;;  %v21274_v28 = vld [vmem:[%s25728_s8 + $0x2d0] ss:$24 sps:$4 sm:$0xff]  }
0x1a22   : > { %v10086_v31 = vsel %vm10082_vm7, %v10077_v27, %v10079_v29  ;;  %10182 = vmatprep.mubr.bf16.mxu0 %v22555_v2  ;;  %v21273_v27 = vld [vmem:[%s25728_s8 + $0x394] ss:$24 sps:$4 sm:$0xff]  }
0x1a23   : > { %v10071_v30 = vpop.permute.xlu0 %10070  ;;  %19164 = vmatprep.subr.msk.bf16.mxu0 %vm4241_vm2, %v10086_v31  ;;  %v21279_v31 = vld [vmem:[%s25728_s8 + $0x364] ss:$24 sps:$4 sm:$0xff]  }
0x1a24   : > { %10165 = vmatpush1.bf16.msra.mxu0 %v10098_v1  ;;  %v21277_v1 = vld [vmem:[%s25728_s8 + $0x360] ss:$24 sps:$4 sm:$0xff]  }
0x1a25   : > { %v10073_v32 = vpop.permute.xlu1 %10072  ;;  %v24017_v33 = vpop.f32.mrf.mxu0 }
0x1a26   : > { %v10084_v55 = vsel %vm10082_vm7, %v10073_v32, %v10075_v25  ;;  %v10083_v58 = vsel %vm10082_vm7, %v10071_v30, %v10073_v32  ;;  %v21268_v25 = vld [vmem:[%s25728_s8] ss:$24 sps:$4 sm:$0xff]   ;;  %v21282_v30 = vld [vmem:[%s25728_s8 + $0x2a4] ss:$24 sps:$4 sm:$0xff]   ;;  %v21283_v32 = vld [vmem:[%s25728_s8 + $0x330] ss:$24 sps:$4 sm:$0xff]  }
0x1a27   : > { %v10241_v36 = vpop.permute.xlu0 %10240  ;;  %19149 = vmatmul.mubr.msk.bf16.vlgmr.msra.gmra.mxu1 %vm5206_vm8, %v23971_v7  ;;  %v24023_v38 = vpop.f32.mrf.mxu0  ;;  %v10092_v61 = vsel %vm4241_vm2, %v10083_v58, 0  ;;  %v21309_v58 = vld [vmem:[%s25728_s8 + $0x574] ss:$24 sps:$4 sm:$0xff]  }
0x1a28   : > { %9866 = vmatpush1.bf16.msra.mxu1 %v9764_v35  ;;  %9883 = vmatprep.mubr.bf16.mxu1 %v22555_v2  ;;  %v21286_v35 = vld [vmem:[%s25728_s8 + $0x270] ss:$24 sps:$4 sm:$0xff]  }
0x1a29   : > { %19157 = vmatprep.subr.msk.bf16.mxu1 %vm4241_vm2, %v9916_v39  ;;  %v10243_v40 = vpop.permute.xlu1 %10242  ;;  %19165 = vmatmul.mubr.msk.bf16.vlgmr.msra.gmra.mxu0 %vm5206_vm8, %v19161_v34  ;;  %v9050_v41 = vpop.f32.mrf.mxu0 }
0x1a2a   : > { %v10253_v42 = vsel %vm10252_vm9, %v10241_v36, %v10243_v40  ;;  %10311 = vmatprep.mubr.bf16.mxu0 %v22555_v2  ;;  %v21288_v36 = vld [vmem:[%s25728_s8 + $0x274] ss:$24 sps:$4 sm:$0xff]   ;;  %v21289_v41 = vld [vmem:[%s25728_s8 + $0x300] ss:$24 sps:$4 sm:$0xff]  }
0x1a2b   : > { %v10245_v44 = vpop.permute.xlu0 %10244  ;;  %v9051_v47 = vpop.f32.mrf.mxu0  ;;  %v10262_v51 = vsel %vm4241_vm2, %v10253_v42, 0 }
0x1a2c   : > { %v10254_v50 = vsel %vm10252_vm9, %v10243_v40, %v10245_v44  ;;  %v21291_v40 = vld [vmem:[%s25728_s8 + $0x304] ss:$24 sps:$4 sm:$0xff]   ;;  %v21292_v47 = vld [vmem:[%s25728_s8 + $0x240] ss:$24 sps:$4 sm:$0xff]  }
0x1a2d   : > { %19169 = vmatprep.subr.msk.bf16.mxu0 %vm4241_vm2, %v10254_v50  ;;  %v10081_v52 = vpop.permute.xlu1 %10080  ;;  %v21295_v50 = vld [vmem:[%s25728_s8 + $0x5d0] ss:$24 sps:$4 sm:$0xff]  }
0x1a2e   : > { %10294 = vmatpush1.bf16.msra.mxu0 %v10262_v51  ;;  %v10087_v57 = vsel %vm10082_vm7, %v10079_v29, %v10081_v52  ;;  %v21276_v29 = vld [vmem:[%s25728_s8 + $0x2d4] ss:$24 sps:$4 sm:$0xff]  }
0x1a2f   : > { %v10247_v8 = vpop.permute.xlu0 %10246  ;;  %19153 = vmatmul.mubr.msk.bf16.vlgmr.msra.gmra.mxu1 %vm5206_vm8, %v23971_v7  ;;  %v10104_v62 = vsel %vm4241_vm2, %v10087_v57, 0  ;;  %v21238_v7 = vld [vmem:[%s25728_s8 + $0x120] ss:$24 sps:$4 sm:$0xff]   ;;  %v21297_v51 = vld [vmem:[%s25728_s8 + $0x5d4] ss:$24 sps:$4 sm:$0xff]  }
0x1a30   : > { %9995 = vmatpush1.bf16.msra.mxu1 %v9928_v54  ;;  %10012 = vmatprep.mubr.bf16.mxu1 %v22555_v2  ;;  %v10255_v0 = vsel %vm10252_vm9, %v10245_v44, %v10247_v8  ;;  %v21294_v44 = vld [vmem:[%s25728_s8 + $0x244] ss:$24 sps:$4 sm:$0xff]   ;;  %v21300_v54 = vld [vmem:[%s25728_s8 + $0x214] ss:$24 sps:$4 sm:$0xff]  }
0x1a31   : > { %19162 = vmatprep.subr.msk.bf16.mxu1 %vm4241_vm2, %v10084_v55  ;;  %19170 = vmatmul.mubr.msk.bf16.vlgmr.msra.gmra.mxu0 %vm5206_vm8, %v19168_v53  ;;  %v10249_v49 = vpop.permute.xlu1 %10248  ;;  %v10268_v3 = vsel %vm4241_vm2, %v10255_v0, 0  ;;  %v21301_v55 = vld [vmem:[%s25728_s8 + $0x5a0] ss:$24 sps:$4 sm:$0xff]   ;;  %v21315_v57 = vld [vmem:[%s25728_s8 + $0x544] ss:$24 sps:$4 sm:$0xff]  }
0x1a32   : > { %10393 = vmatprep.mubr.bf16.mxu0 %v22555_v2  ;;  %v10256_v63 = vsel %vm10252_vm9, %v10247_v8, %v10249_v49  ;;  %v21303_v8 = vld [vmem:[%s25728_s8 + $0x5a4] ss:$24 sps:$4 sm:$0xff]   ;;  %v21316_v0 = vld [vmem:[%s25728_s8 + $0x180] ss:$24 sps:$4 sm:$0xff]  }
0x1a33   : > { %v10251_v56 = vpop.permute.xlu0 %10250 }
0x1a34   : > { %v10257_v59 = vsel %vm10252_vm9, %v10249_v49, %v10251_v56  ;;  %19173 = vmatprep.subr.msk.bf16.mxu0 %vm4241_vm2, %v10251_v56  ;;  %v21306_v49 = vld [vmem:[%s25728_s8 + $0x1e4] ss:$24 sps:$4 sm:$0xff]   ;;  %v21304_v56 = vld [vmem:[%s25728_s8 + $0x1e0] ss:$24 sps:$4 sm:$0xff]  }
0x1a35   : > { %v10274_v60 = vsel %vm4241_vm2, %v10257_v59, 0  ;;  %v21307_v59 = vld [vmem:[%s25728_s8 + $0x570] ss:$24 sps:$4 sm:$0xff]  }
0x1a36   : > { %10376 = vmatpush1.bf16.msra.mxu0 %v10274_v60  ;;  %v21312_v60 = vld [vmem:[%s25728_s8 + $0x1b4] ss:$24 sps:$4 sm:$0xff]  }
0x1a37   : > { %19158 = vmatmul.mubr.msk.bf16.vlgmr.msra.gmra.mxu1 %vm5206_vm8, %v23988_v19  ;;  %12157 = vmatprep.subr.bf16.mxu0 %v21249_v14  ;;  %v21258_v19 = vld [vmem:[%s25728_s8 + $0x64] ss:$24 sps:$4 sm:$0xff]  }
0x1a38   : > { %10124 = vmatpush1.bf16.msra.mxu1 %v10092_v61  ;;  %10141 = vmatprep.mubr.bf16.mxu1 %v22555_v2  ;;  %v21310_v61 = vld [vmem:[%s25728_s8 + $0x1b0] ss:$24 sps:$4 sm:$0xff]  }
0x1a39   : > { %19166 = vmatprep.subr.msk.bf16.mxu1 %vm4241_vm2, %v10081_v52  ;;  %19174 = vmatmul.mubr.msk.bf16.vlgmr.msra.gmra.mxu0 %vm5206_vm8, %v19168_v53 }
0x1a3a   : > { %12158 = vmatpush1.bf16.msra.mxu0 %v21247_v13  ;;  %v21337_v13 = vld [vmem:[%s25728_s8 + $0x480] ss:$24 sps:$4 sm:$0xff]  }
0x1a3b   : > { %12159 = vmatprep.subr.bf16.mxu0 %v21255_v17 }
0x1a3e   : > { %12160 = vmatpush1.bf16.msra.mxu0 %v21253_v18 }
0x1a3f   : > { %19163 = vmatmul.mubr.msk.bf16.vlgmr.msra.gmra.mxu1 %vm5206_vm8, %v19161_v34  ;;  %12161 = vmatprep.subr.bf16.mxu0 %v21261_v43 }
0x1a40   : > { %10206 = vmatpush1.bf16.msra.mxu1 %v10104_v62  ;;  %10223 = vmatprep.mubr.bf16.mxu1 %v22555_v2  ;;  %v21313_v62 = vld [vmem:[%s25728_s8 + $0x540] ss:$24 sps:$4 sm:$0xff]  }
0x1a41   : > { %19171 = vmatprep.subr.msk.bf16.mxu1 %vm4241_vm2, %v10256_v63  ;;  %v21318_v63 = vld [vmem:[%s25728_s8 + $0x184] ss:$24 sps:$4 sm:$0xff]   ;;  %vm12094_vm2 = vcmask 769024  }
0x1a42   : > { %12162 = vmatpush1.bf16.msra.mxu0 %v21259_v20 }
0x1a43   : > { %12163 = vmatprep.subr.bf16.mxu0 %v21267_v45 }
0x1a46   : > { %12164 = vmatpush1.bf16.msra.mxu0 %v21265_v23 }
0x1a47   : > { %19167 = vmatmul.mubr.msk.bf16.vlgmr.msra.gmra.mxu1 %vm5206_vm8, %v19161_v34  ;;  %12165 = vmatprep.subr.bf16.mxu0 %v21273_v27  ;;  %v21285_v34 = vld [vmem:[%s25728_s8 + $0x334] ss:$24 sps:$4 sm:$0xff]  }
0x1a48   : > { %10335 = vmatpush1.bf16.msra.mxu1 %v10268_v3  ;;  %10352 = vmatprep.mubr.bf16.mxu1 %v22555_v2  ;;  %v21321_v3 = vld [vmem:[%s25728_s8 + $0x514] ss:$24 sps:$4 sm:$0xff]  }
0x1a49   : > { %12116 = vmatprep.subr.bf16.mxu1 %v21237_v5  ;;  %v21324_v5 = vld [vmem:[%s25728_s8 + $0x754] ss:$24 sps:$4 sm:$0xff]  }
0x1a4a   : > { %12166 = vmatpush1.bf16.msra.mxu0 %v21271_v26 }
0x1a4b   : > { %12167 = vmatprep.subr.bf16.mxu0 %v21279_v31 }
0x1a4e   : > { %12168 = vmatpush1.bf16.msra.mxu0 %v21277_v1 }
0x1a4f   : > { %19172 = vmatmul.mubr.msk.bf16.vlgmr.msra.gmra.mxu1 %vm5206_vm8, %v19168_v53  ;;  %12169 = vmatprep.subr.bf16.mxu0 %v21285_v34  ;;  %v21298_v53 = vld [vmem:[%s25728_s8 + $0x210] ss:$24 sps:$4 sm:$0xff]   ;;  %vm16697_vm8 = vcmask 801792  }
0x1a50   : > { %12117 = vmatpush1.bf16.msra.mxu1 %v21235_v4  ;;  %v21319_v4 = vld [vmem:[%s25728_s8 + $0x510] ss:$24 sps:$4 sm:$0xff]  }
0x1a51   : > { %12118 = vmatprep.subr.bf16.mxu1 %v21240_v6  ;;  %v21327_v6 = vld [vmem:[%s25728_s8 + $0x4e4] ss:$24 sps:$4 sm:$0xff]  }
0x1a52   : > { %12170 = vmatpush1.bf16.msra.mxu0 %v21283_v32 }
0x1a53   : > { %12171 = vmatprep.subr.bf16.mxu0 %v21291_v40 }
0x1a54   : > { %12119 = vmatpush1.bf16.msra.mxu1 %v21238_v7  ;;  %v21325_v7 = vld [vmem:[%s25728_s8 + $0x4e0] ss:$24 sps:$4 sm:$0xff]  }
0x1a55   : > { %12120 = vmatprep.subr.bf16.mxu1 %v21243_v10  ;;  %v21331_v10 = vld [vmem:[%s25728_s8 + $0x4b0] ss:$24 sps:$4 sm:$0xff]  }
0x1a56   : > { %12172 = vmatpush1.bf16.msra.mxu0 %v21289_v41 }
0x1a57   : > { %12173 = vmatprep.subr.bf16.mxu0 %v21297_v51 }
0x1a58   : > { %12121 = vmatpush1.bf16.msra.mxu1 %v21241_v9  ;;  %v21333_v9 = vld [vmem:[%s25728_s8 + $0x4b4] ss:$24 sps:$4 sm:$0xff]  }
0x1a59   : > { %12122 = vmatprep.subr.bf16.mxu1 %v21246_v11 }
0x1a5a   : > { %12174 = vmatpush2.bf16.msra.mxu0 %v21295_v50 }
0x1a5b   : > { %12175 = vmatprep.subr.bf16.mxu0 %v21303_v8 }
0x1a5c   : > { %12123 = vmatpush1.bf16.msra.mxu1 %v21244_v12  ;;  %v21339_v12 = vld [vmem:[%s25728_s8 + $0x484] ss:$24 sps:$4 sm:$0xff]  }
0x1a5d   : > { %12124 = vmatprep.subr.bf16.mxu1 %v21252_v16  ;;  %v21345_v16 = vld [vmem:[%s25728_s8 + $0x15c] ss:$24 sps:$4 sm:$0xff]  }
0x1a5e   : > { %12176 = vmatpush2.bf16.msra.mxu0 %v21301_v55 }
0x1a5f   : > { %12177 = vmatprep.subr.bf16.mxu0 %v21309_v58 }
0x1a60   : > { %12125 = vmatpush1.bf16.msra.mxu1 %v21250_v15 }
0x1a61   : > { %12126 = vmatprep.subr.bf16.mxu1 %v21258_v19 }
0x1a62   : > { %12178 = vmatpush2.bf16.msra.mxu0 %v21307_v59 }
0x1a63   : > { %12179 = vmatprep.subr.bf16.mxu0 %v21315_v57 }
0x1a64   : > { %12127 = vmatpush1.bf16.msra.mxu1 %v21256_v21 }
0x1a65   : > { %12128 = vmatprep.subr.bf16.mxu1 %v21264_v37 }
0x1a66   : > { %12180 = vmatpush2.bf16.msra.mxu0 %v21313_v62 }
0x1a67   : > { %12181 = vmatprep.subr.bf16.mxu0 %v21321_v3 }
0x1a68   : > { %12129 = vmatpush1.bf16.msra.mxu1 %v21262_v22 }
0x1a69   : > { %12130 = vmatprep.subr.bf16.mxu1 %v21270_v24 }
0x1a6a   : > { %12182 = vmatpush2.bf16.msra.mxu0 %v21319_v4 }
0x1a6b   : > { %12183 = vmatprep.subr.bf16.mxu0 %v21327_v6 }
0x1a6c   : > { %12131 = vmatpush1.bf16.msra.mxu1 %v21268_v25 }
0x1a6d   : > { %12132 = vmatprep.subr.bf16.mxu1 %v21276_v29 }
0x1a6e   : > { %12184 = vmatpush2.bf16.msra.mxu0 %v21325_v7 }
0x1a6f   : > { %12185 = vmatprep.subr.bf16.mxu0 %v21333_v9 }
0x1a70   : > { %12133 = vmatpush2.bf16.msra.mxu1 %v21274_v28 }
0x1a71   : > { %12134 = vmatprep.subr.bf16.mxu1 %v21282_v30 }
0x1a72   : > { %12186 = vmatpush2.bf16.msra.mxu0 %v21331_v10 }
0x1a73   : > { %12187 = vmatprep.subr.bf16.mxu0 %v21339_v12 }
0x1a74   : > { %12135 = vmatpush2.bf16.msra.mxu1 %v21280_v46 }
0x1a75   : > { %12136 = vmatprep.subr.bf16.mxu1 %v21288_v36 }
0x1a76   : > { %12188 = vmatpush2.bf16.msra.mxu0 %v21337_v13 }
0x1a77   : > { %v24101_v39 = vpop.f32.mrf.mxu1  ;;  %12239 = vmatprep.subr.bf16.mxu0 %v21345_v16 }
0x1a78   : > { %12137 = vmatpush2.bf16.msra.mxu1 %v21286_v35 }
0x1a79   : > { %v24105_v42 = vpop.f32.mrf.mxu1  ;;  %12138 = vmatprep.subr.bf16.mxu1 %v21294_v44 }
0x1a7b   : > { %v8824_v48 = vpop.f32.mrf.mxu1 }
0x1a7c   : > { %12139 = vmatpush2.bf16.msra.mxu1 %v21292_v47 }
0x1a7d   : > { %v8825_v52 = vpop.f32.mrf.mxu1  ;;  %12140 = vmatprep.subr.bf16.mxu1 %v21300_v54 }
0x1a80   : > { %12141 = vmatpush2.bf16.msra.mxu1 %v21298_v53 }
0x1a81   : > { %12142 = vmatprep.subr.bf16.mxu1 %v21306_v49 }
0x1a84   : > { %12143 = vmatpush2.bf16.msra.mxu1 %v21304_v56 }
0x1a85   : > { %12144 = vmatprep.subr.bf16.mxu1 %v21312_v60 }
0x1a88   : > { %12145 = vmatpush2.bf16.msra.mxu1 %v21310_v61 }
0x1a89   : > { %12146 = vmatprep.subr.bf16.mxu1 %v21318_v63 }
0x1a8c   : > { %12147 = vmatpush2.bf16.msra.mxu1 %v21316_v0 }
0x1a8d   : > { %12198 = vmatprep.subr.bf16.mxu1 %v21324_v5 }
0x1a97   : > { %v8861_v11 = vpop.f32.mrf.mxu1 }
0x1a99   : > { %v8863_v14 = vpop.f32.mrf.mxu1 }
0x1a9b   : > { %v8865_v15 = vpop.f32.mrf.mxu1 }
0x1a9d   : > { %v8866_v17 = vpop.f32.mrf.mxu1 }
0x1a9f   : > { %v8902_v18 = vpop.f32.mrf.mxu1  ;;  %v9168_v19 = vpop.f32.mrf.mxu0 }
0x1aa0   : > { %v9047_v60 = vadd.f32 %v24017_v33, %v8902_v18 }
0x1aa1   : > { %v8904_v21 = vpop.f32.mrf.mxu1  ;;  %v9170_v20 = vpop.f32.mrf.mxu0 }
0x1aa2   : > { %v9049_v62 = vadd.f32 %v24023_v38, %v8904_v21 }
0x1aa3   : > { %v8906_v43 = vpop.f32.mrf.mxu1  ;;  %v9172_v22 = vpop.f32.mrf.mxu0 }
0x1aa5   : > { %v8907_v37 = vpop.f32.mrf.mxu1  ;;  %v9173_v45 = vpop.f32.mrf.mxu0 }
0x1aa7   : > { %v8964_v23 = vpop.f32.mrf.mxu1 }
0x1aa8   : > { %v8965_v24 = vadd.f32 %v8964_v23, %v24101_v39 }
0x1aa9   : > { %v8966_v25 = vpop.f32.mrf.mxu1  ;;  %v9296_v26 = vpop.f32.mrf.mxu0 }
0x1aaa   : > { %v8967_v27 = vadd.f32 %v8966_v25, %v24105_v42 }
0x1aab   : > { %v8968_v28 = vpop.f32.mrf.mxu1  ;;  %v9298_v29 = vpop.f32.mrf.mxu0 }
0x1aad   : > { %v8969_v31 = vpop.f32.mrf.mxu1  ;;  %v9300_v1 = vpop.f32.mrf.mxu0 }
0x1aaf   : > { %v9005_v30 = vpop.f32.mrf.mxu1  ;;  %v9301_v46 = vpop.f32.mrf.mxu0 }
0x1ab0   : > { %v9006_v32 = vadd.f32 %v9005_v30, %v8861_v11 }
0x1ab1   : > { %v9007_v34 = vpop.f32.mrf.mxu1  ;;  %v9378_v35 = vpop.f32.mrf.mxu0 }
0x1ab2   : > { %v9008_v36 = vadd.f32 %v9007_v34, %v8863_v14  ;;  %v9218_v40 = vadd.f32 %v9168_v19, %v9006_v32 }
0x1ab3   : > { %v9009_v41 = vpop.f32.mrf.mxu1  ;;  %v9380_v44 = vpop.f32.mrf.mxu0 }
0x1ab4   : > { %v9219_v47 = vadd.f32 %v9170_v20, %v9008_v36 }
0x1ab5   : > { %v9010_v48 = vpop.f32.mrf.mxu1  ;;  %v9382_v39 = vpop.f32.mrf.mxu0 }
0x1ab7   : > { %v9127_v50 = vpop.f32.mrf.mxu1  ;;  %v9383_v51 = vpop.f32.mrf.mxu0 }
0x1ab8   : > { %v9216_v52 = vadd.f32 %v9127_v50, %v8965_v24 }
0x1ab9   : > { %v9129_v42 = vpop.f32.mrf.mxu1  ;;  %v9506_v53 = vpop.f32.mrf.mxu0 }
0x1aba   : > { %v9217_v54 = vadd.f32 %v9129_v42, %v8967_v27  ;;  %v24137_v8 = vadd.f32 %v9296_v26, %v9216_v52 }
0x1abb   : > { %v9131_v55 = vpop.f32.mrf.mxu1  ;;  %v9508_v49 = vpop.f32.mrf.mxu0 }
0x1abc   : > { %v24139_v56 = vadd.f32 %v9298_v29, %v9217_v54 }
0x1abd   : > { %v9132_v58 = vpop.f32.mrf.mxu1  ;;  %v9510_v59 = vpop.f32.mrf.mxu0 }
0x1abf   : > { %v9209_v61 = vpop.f32.mrf.mxu1  ;;  %v9511_v57 = vpop.f32.mrf.mxu0 }
0x1ac0   : > { %v9220_v63 = vadd.f32 %v9209_v61, %v9047_v60 }
0x1ac1   : > { %v9211_v0 = vpop.f32.mrf.mxu1  ;;  %v24143_v3 = vpop.f32.mrf.mxu0 }
0x1ac2   : > { %v9221_v4 = vadd.f32 %v9211_v0, %v9049_v62  ;;  %v9389_v5 = vadd.f32 %v9378_v35, %v9220_v63 }
0x1ac3   : > { %v9213_v6 = vpop.f32.mrf.mxu1  ;;  %v24145_v7 = vpop.f32.mrf.mxu0 }
0x1ac4   : > { %v24147_v9 = vadd.f32 %v9380_v44, %v9221_v4 }
0x1ac5   : > { %v9214_v10 = vpop.f32.mrf.mxu1  ;;  %v9638_v11 = vpop.f32.mrf.mxu0 }
0x1ac7   : > { %v9337_v12 = vpop.f32.mrf.mxu1  ;;  %v9639_v13 = vpop.f32.mrf.mxu0 }
0x1ac8   : > { %v9387_v33 = vadd.f32 %v9337_v12, %v9218_v40 }
0x1ac9   : > { %v9339_v14 = vpop.f32.mrf.mxu1  ;;  %v9716_v15 = vpop.f32.mrf.mxu0 }
0x1aca   : > { %v9388_v16 = vadd.f32 %v9339_v14, %v9219_v47  ;;  %v24149_v38 = vadd.f32 %v9506_v53, %v9387_v33 }
0x1acb   : > { %v9341_v17 = vpop.f32.mrf.mxu1  ;;  %v24151_v18 = vpop.f32.mrf.mxu0 }
0x1acc   : > { %v24153_v19 = vadd.f32 %v9508_v49, %v9388_v16 }
0x1acd   : > { %v9342_v21 = vpop.f32.mrf.mxu1  ;;  %v9720_v20 = vpop.f32.mrf.mxu0 }
0x1acf   : > { %v9465_v43 = vpop.f32.mrf.mxu1  ;;  %v9721_v22 = vpop.f32.mrf.mxu0 }
0x1ad1   : > { %v9467_v37 = vpop.f32.mrf.mxu1  ;;  %v24155_v45 = vpop.f32.mrf.mxu0 }
0x1ad2   : > { %v9555_v11 = vadd.f32 %v9467_v37, %v24139_v56 }
0x1ad3   : > { %v9469_v23 = vpop.f32.mrf.mxu1  ;;  %v24157_v24 = vpop.f32.mrf.mxu0 }
0x1ad4   : > { %v9724_v17 = vadd.f32 %v24145_v7, %v9555_v11 }
0x1ad5   : > { %v9470_v25 = vpop.f32.mrf.mxu1  ;;  %v9848_v26 = vpop.f32.mrf.mxu0 }
0x1ad7   : > { %v9547_v27 = vpop.f32.mrf.mxu1  ;;  %v9849_v28 = vpop.f32.mrf.mxu0 }
0x1ad8   : > { %v9558_v29 = vadd.f32 %v9547_v27, %v9389_v5  ;;  %v9554_v5 = vadd.f32 %v9465_v43, %v24137_v8 }
0x1ad9   : > { %v9549_v31 = vpop.f32.mrf.mxu1  ;;  %v9973_v1 = vpop.f32.mrf.mxu0 }
0x1ada   : > { %v9727_v30 = vadd.f32 %v9716_v15, %v9558_v29  ;;  %v9723_v33 = vadd.f32 %v24143_v3, %v9554_v5  ;;  %v9559_v8 = vadd.f32 %v9549_v31, %v24147_v9  ;;  %v24173_v9 = vpop.permute.xlu0 %10423 }
0x1adb   : > { %v9551_v46 = vpop.f32.mrf.mxu1  ;;  %v9975_v32 = vpop.f32.mrf.mxu0 }
0x1adc   : > { %v9728_v3 = vadd.f32 %v24151_v18, %v9559_v8  ;;  %v24169_v46 = vpop.permute.xlu1 %10411 }
0x1add   : > { %v9552_v34 = vpop.f32.mrf.mxu1  ;;  %v9977_v35 = vpop.f32.mrf.mxu0 }
0x1adf   : > { %v9675_v36 = vpop.f32.mrf.mxu1  ;;  %v9978_v40 = vpop.f32.mrf.mxu0 }
0x1ae0   : > { %v9725_v34 = vadd.f32 %v9675_v36, %v24149_v38 }
0x1ae1   : > { %v9677_v41 = vpop.f32.mrf.mxu1  ;;  %v10055_v44 = vpop.f32.mrf.mxu0 }
0x1ae2   : > { %v9726_v31 = vadd.f32 %v9677_v41, %v24153_v19 }
0x1ae3   : > { %v9679_v47 = vpop.f32.mrf.mxu1  ;;  %v10057_v48 = vpop.f32.mrf.mxu0 }
0x1ae4   : > { %v9895_v36 = vadd.f32 %v24157_v24, %v9726_v31  ;;  %v21366_v31 = vld [vmem:[%s25728_s8 + $0x604] ss:$24 sps:$4 sm:$0xff]  }
0x1ae5   : > { %v9680_v39 = vpop.f32.mrf.mxu1  ;;  %v10059_v50 = vpop.f32.mrf.mxu0 }
0x1ae6   : > { %v9894_v39 = vadd.f32 %v24155_v45, %v9725_v34  ;;  %v21322_v45 = vld [vmem:[%s25728_s8 + $0x750] ss:$24 sps:$4 sm:$0xff]   ;;  %v21360_v34 = vld [vmem:[%s25728_s8 + $0x634] ss:$24 sps:$4 sm:$0xff]  }
0x1ae7   : > { %v9803_v51 = vpop.f32.mrf.mxu1  ;;  %v10060_v52 = vpop.f32.mrf.mxu0 }
0x1ae8   : > { %v9892_v16 = vadd.f32 %v9803_v51, %v9723_v33 }
0x1ae9   : > { %v9805_v42 = vpop.f32.mrf.mxu1  ;;  %v24159_v53 = vpop.f32.mrf.mxu0 }
0x1aea   : > { %v9893_v22 = vadd.f32 %v9805_v42, %v9724_v17  ;;  %v10062_v43 = vadd.f32 %v9973_v1, %v9892_v16  ;;  %v21334_v17 = vld [vmem:[%s25728_s8 + $0x6f0] ss:$24 sps:$4 sm:$0xff]  }
0x1aeb   : > { %v9807_v54 = vpop.f32.mrf.mxu1  ;;  %v24161_v55 = vpop.f32.mrf.mxu0 }
0x1aec   : > { %v10063_v37 = vadd.f32 %v9975_v32, %v9893_v22 }
0x1aed   : > { %v9808_v49 = vpop.f32.mrf.mxu1  ;;  %v10188_v58 = vpop.f32.mrf.mxu0 }
0x1aef   : > { %v9885_v59 = vpop.f32.mrf.mxu1  ;;  %v10189_v60 = vpop.f32.mrf.mxu0 }
0x1af0   : > { %v9896_v61 = vadd.f32 %v9885_v59, %v9727_v30 }
0x1af1   : > { %v9887_v57 = vpop.f32.mrf.mxu1  ;;  %v10313_v62 = vpop.f32.mrf.mxu0 }
0x1af2   : > { %v10066_v63 = vadd.f32 %v10055_v44, %v9896_v61  ;;  %v9897_v35 = vadd.f32 %v9887_v57, %v9728_v3  ;;  %v21354_v3 = vld [vmem:[%s25728_s8 + $0x664] ss:$24 sps:$4 sm:$0xff]  }
0x1af3   : > { %v9889_v0 = vpop.f32.mrf.mxu1  ;;  %v10315_v4 = vpop.f32.mrf.mxu0 }
0x1af4   : > { %v10067_v51 = vadd.f32 %v10057_v48, %v9897_v35  ;;  %v21355_v35 = vld [vmem:[%s25728_s8 + $0xf8] ss:$24 sps:$4 sm:$0xff]  }
0x1af5   : > { %v9890_v6 = vpop.f32.mrf.mxu1  ;;  %v10317_v10 = vpop.f32.mrf.mxu0 }
0x1af6   : > { %v21328_v10 = vld [vmem:[%s25728_s8 + $0x720] ss:$24 sps:$4 sm:$0xff]  }
0x1af7   : > { %v10014_v12 = vpop.f32.mrf.mxu1  ;;  %v10318_v13 = vpop.f32.mrf.mxu0 }
0x1af8   : > { %v10064_v54 = vadd.f32 %v10014_v12, %v9894_v39  ;;  %v21336_v12 = vld [vmem:[%s25728_s8 + $0x6f4] ss:$24 sps:$4 sm:$0xff]   ;;  %v21372_v39 = vld [vmem:[%s25728_s8 + $0x870] ss:$24 sps:$4 sm:$0x7f]  }
0x1af9   : > { %v10016_v14 = vpop.f32.mrf.mxu1  ;;  %v10395_v15 = vpop.f32.mrf.mxu0 }
0x1afa   : > { %v10065_v59 = vadd.f32 %v10016_v14, %v9895_v36  ;;  %v21378_v36 = vld [vmem:[%s25728_s8 + $0x844] ss:$24 sps:$4 sm:$0xff]  }
0x1afb   : > { %v10018_v21 = vpop.f32.mrf.mxu1  ;;  %v10397_v20 = vpop.f32.mrf.mxu0 }
0x1afc   : > { %v10235_v6 = vadd.f32 %v24161_v55, %v10065_v59  ;;  %v21342_v21 = vld [vmem:[%s25728_s8 + $0x6c4] ss:$24 sps:$4 sm:$0xff]   ;;  %v21382_v59 = vld [vmem:[%s25728_s8 + $0x810] ss:$24 sps:$4 sm:$0xff]  }
0x1afd   : > { %v10019_v23 = vpop.f32.mrf.mxu1  ;;  %v10399_v25 = vpop.f32.mrf.mxu0 }
0x1afe   : > { %v21340_v25 = vld [vmem:[%s25728_s8 + $0x6c0] ss:$24 sps:$4 sm:$0xff]  }
0x1aff   : > { %v10143_v26 = vpop.f32.mrf.mxu1  ;;  %v10400_v27 = vpop.f32.mrf.mxu0 }
0x1b00   : > { %v10232_v56 = vadd.f32 %v10143_v26, %v10062_v43  ;;  %v21348_v43 = vld [vmem:[%s25728_s8 + $0x694] ss:$24 sps:$4 sm:$0xff]   ;;  %v21343_v27 = vld [vmem:[%s25728_s8 + $0x158] ss:$24 sps:$4 sm:$0xff]  }
0x1b01   : > { %v10145_v28 = vpop.f32.mrf.mxu1 }
0x1b02   : > { %v10402_v29 = vadd.f32 %v10313_v62, %v10232_v56  ;;  %v10233_v30 = vadd.f32 %v10145_v28, %v10063_v37  ;;  %v21330_v62 = vld [vmem:[%s25728_s8 + $0x724] ss:$24 sps:$4 sm:$0xff]   ;;  %v21346_v28 = vld [vmem:[%s25728_s8 + $0x690] ss:$24 sps:$4 sm:$0xff]  }
0x1b03   : > { %v10147_v7 = vpop.f32.mrf.mxu1  ;;  %v21351_v37 = vld [vmem:[%s25728_s8 + $0x12c] ss:$24 sps:$4 sm:$0xff]  }
0x1b04   : > { %v10414_v40 = vmul.f32 %v24169_v46, %v10402_v29  ;;  %v10403_v44 = vadd.f32 %v10315_v4, %v10233_v30  ;;  %v21349_v29 = vld [vmem:[%s25728_s8 + $0x128] ss:$24 sps:$4 sm:$0xff]   ;;  %v21357_v30 = vld [vmem:[%s25728_s8 + $0xfc] ss:$24 sps:$4 sm:$0xff]  }
0x1b05   : > { %v10148_v1 = vpop.f32.mrf.mxu1  ;;  %v21352_v7 = vld [vmem:[%s25728_s8 + $0x660] ss:$24 sps:$4 sm:$0xff]  }
0x1b06   : > { %v10426_v32 = vadd.f32 %v24173_v9, %v10414_v40  ;;  %v10415_v18 = vmul.f32 %v24169_v46, %v10403_v44  ;;  %v21363_v40 = vld [vmem:[%s25728_s8 + $0xcc] ss:$24 sps:$4 sm:$0xff]   ;;  %v21358_v44 = vld [vmem:[%s25728_s8 + $0x630] ss:$24 sps:$4 sm:$0xff]  }
0x1b07   : > { %v10225_v47 = vpop.f32.mrf.mxu1  ;;  %v21361_v1 = vld [vmem:[%s25728_s8 + $0xc8] ss:$24 sps:$4 sm:$0xff]  }
0x1b08   : > { %v10236_v50 = vadd.f32 %v10225_v47, %v10066_v63  ;;  %v10427_v38 = vadd.f32 %v24173_v9, %v10415_v18  ;;  %v10432_v52 = vmax.f32 %v10426_v32, 0.0  ;;  %v10234_v63 = vadd.f32 %v24159_v53, %v10064_v54  ;;  %v21369_v32 = vld [vmem:[%s25728_s8 + $0x9c] ss:$24 sps:$4 sm:$0xff]   ;;  %v21364_v18 = vld [vmem:[%s25728_s8 + $0x600] ss:$24 sps:$4 sm:$0xff]  }
0x1b09   : > { %v10227_v42 = vpop.f32.mrf.mxu1  ;;  %v21370_v47 = vld [vmem:[%s25728_s8 + $0x874] ss:$24 sps:$4 sm:$0x7f]   ;;  %v21376_v54 = vld [vmem:[%s25728_s8 + $0x840] ss:$24 sps:$4 sm:$0xff]  }
0x1b0a   : > { %v10237_v19 = vadd.f32 %v10227_v42, %v10067_v51  ;;  %v24181_v41 = vadd.f32 %v10395_v15, %v10236_v50  ;;  %v10433_v49 = vmax.f32 %v10427_v38, 0.0  ;;  %v24186_v48 = vpack.c.bf16 %v10432_v52, %v10432_v52  ;;  %v21367_v50 = vld [vmem:[%s25728_s8 + $0x98] ss:$24 sps:$4 sm:$0xff]   ;;  %v21375_v51 = vld [vmem:[%s25728_s8 + $0x6c] ss:$24 sps:$4 sm:$0xff]  }
0x1b0b   : > { %v10229_v58 = vpop.f32.mrf.mxu1  ;;  %v12099_v38 = vsel %vm3474_vm11, %v21372_v39, 0  ;;  %v21373_v52 = vld [vmem:[%s25728_s8 + $0x68] ss:$24 sps:$4 sm:$0xff]   ;;  %v21381_v42 = vld [vmem:[%s25728_s8 + $0x3c] ss:$24 sps:$4 sm:$0xff]  }
0x1b0c   : > { %v10407_v60 = vadd.f32 %v10397_v20, %v10237_v19  ;;  %v24183_v61 = vpack.c.bf16 %v10433_v49, %v10433_v49  ;;  %v21384_v19 = vld [vmem:[%s25728_s8 + $0x814] ss:$24 sps:$4 sm:$0xff]   ;;  %v21379_v49 = vld [vmem:[%s25728_s8 + $0x38] ss:$24 sps:$4 sm:$0xff]  }
0x1b0d   : > { %v10230_v57 = vpop.f32.mrf.mxu1  ;;  %v21387_v58 = vld [vmem:[%s25728_s8 + $0xc] ss:$24 sps:$4 sm:$0xff]   ;;  %v21453_v39 = vld [vmem:[%s25728_s8 + $0x6fc] ss:$24 sps:$4 sm:$0xff]  }
0x1b0e   : > { %v10419_v24 = vmul.f32 %v24169_v46, %v10407_v60  ;;  %12148 = vmatprep.mubr.bf16.mxu1 %v24183_v61  ;;  %v21390_v60 = vld [vmem:[%s25728_s8 + $0x7e4] ss:$24 sps:$4 sm:$0xff]  }
0x1b0f   : > { %v10354_v0 = vpop.f32.mrf.mxu1  ;;  %12149 = vmatmul.mubr.bf16.vlgmr.msra.gmra.mxu1 %v24186_v48  ;;  %v21393_v57 = vld [vmem:[%s25728_s8 + $0x2dc] ss:$24 sps:$4 sm:$0xff]  }
0x1b10   : > { %v10431_v4 = vadd.f32 %v24173_v9, %v10419_v24  ;;  %v10404_v5 = vadd.f32 %v10354_v0, %v10234_v63  ;;  %12199 = vmatpush1.bf16.msra.mxu1 %v21322_v45  ;;  %v21385_v45 = vld [vmem:[%s25728_s8 + $0x8] ss:$24 sps:$4 sm:$0xff]   ;;  %v10418_v24 = vmul.f32 %v24169_v46, %v24181_v41  ;;  %v21396_v63 = vld [vmem:[%s25728_s8 + $0x7b4] ss:$24 sps:$4 sm:$0xff]   ;;  %v21391_v0 = vld [vmem:[%s25728_s8 + $0x2d8] ss:$24 sps:$4 sm:$0xff]  }
0x1b11   : > { %v10356_v11 = vpop.f32.mrf.mxu1  ;;  %12200 = vmatprep.subr.bf16.mxu1 %v21330_v62  ;;  %v21388_v62 = vld [vmem:[%s25728_s8 + $0x7e0] ss:$24 sps:$4 sm:$0xff]  }
0x1b12   : > { %v10437_v13 = vmax.f32 %v10431_v4, 0.0  ;;  %v10416_v33 = vmul.f32 %v24169_v46, %v10404_v5  ;;  %v10405_v53 = vadd.f32 %v10356_v11, %v10235_v6  ;;  %v21399_v4 = vld [vmem:[%s25728_s8 + $0x2ac] ss:$24 sps:$4 sm:$0xff]   ;;  %v21394_v5 = vld [vmem:[%s25728_s8 + $0x7b0] ss:$24 sps:$4 sm:$0xff]   ;;  %v10430_v6 = vadd.f32 %v24173_v9, %v10418_v24 }
0x1b13   : > { %v10358_v14 = vpop.f32.mrf.mxu1  ;;  %v21397_v11 = vld [vmem:[%s25728_s8 + $0x2a8] ss:$24 sps:$4 sm:$0xff]   ;;  %v21477_v24 = vld [vmem:[%s25728_s8 + $0x63c] ss:$24 sps:$4 sm:$0xff]  }
0x1b14   : > { %v24198_v15 = vpack.c.bf16 %v10437_v13, %v10437_v13  ;;  %v10428_v16 = vadd.f32 %v24173_v9, %v10416_v33  ;;  %v10417_v55 = vmul.f32 %v24169_v46, %v10405_v53  ;;  %12201 = vmatpush1.bf16.msra.mxu1 %v21328_v10  ;;  %v21402_v10 = vld [vmem:[%s25728_s8 + $0x784] ss:$24 sps:$4 sm:$0xff]   ;;  %v21400_v41 = vld [vmem:[%s25728_s8 + $0x780] ss:$24 sps:$4 sm:$0xff]  }
0x1b15   : > { %12202 = vmatprep.subr.bf16.mxu1 %v21336_v12  ;;  %v10359_v20 = vpop.f32.mrf.mxu1  ;;  %v21405_v46 = vld [vmem:[%s25728_s8 + $0x27c] ss:$24 sps:$4 sm:$0xff]   ;;  %v10436_v12 = vmax.f32 %v10430_v6, 0.0  ;;  %v21403_v33 = vld [vmem:[%s25728_s8 + $0x278] ss:$24 sps:$4 sm:$0xff]  }
0x1b16   : > { %v10429_v22 = vadd.f32 %v24173_v9, %v10417_v55  ;;  %19452 = vmatprep.mubr.msk.bf16.mxu1 %vm12094_vm2, %v24198_v15  ;;  %v10434_v23 = vmax.f32 %v10428_v16, 0.0  ;;  %v21408_v13 = vld [vmem:[%s25728_s8 + $0x45c] ss:$24 sps:$4 sm:$0xff]   ;;  %v21411_v9 = vld [vmem:[%s25728_s8 + $0x24c] ss:$24 sps:$4 sm:$0xff]  }
0x1b17   : > { %v21406_v53 = vld [vmem:[%s25728_s8 + $0x458] ss:$24 sps:$4 sm:$0xff]   ;;  %v24264_v14 = vpack.c.bf16 %v10436_v12, %v10436_v12  ;;  %v21414_v16 = vld [vmem:[%s25728_s8 + $0x42c] ss:$24 sps:$4 sm:$0xff]   ;;  %v21409_v55 = vld [vmem:[%s25728_s8 + $0x248] ss:$24 sps:$4 sm:$0xff]  }
0x1b18   : > { %12203 = vmatpush1.bf16.msra.mxu1 %v21334_v17  ;;  %v10435_v8 = vmax.f32 %v10429_v22, 0.0  ;;  %v24212_v56 = vpack.c.bf16 %v10434_v23, %v10434_v23  ;;  %v21417_v17 = vld [vmem:[%s25728_s8 + $0x21c] ss:$24 sps:$4 sm:$0xff]   ;;  %v21415_v22 = vld [vmem:[%s25728_s8 + $0x218] ss:$24 sps:$4 sm:$0xff]  }
0x1b19   : > { %12204 = vmatprep.subr.bf16.mxu1 %v21342_v21  ;;  %v21412_v21 = vld [vmem:[%s25728_s8 + $0x428] ss:$24 sps:$4 sm:$0xff]   ;;  %v21420_v20 = vld [vmem:[%s25728_s8 + $0x3fc] ss:$24 sps:$4 sm:$0xff]   ;;  %v21423_v23 = vld [vmem:[%s25728_s8 + $0x1ec] ss:$24 sps:$4 sm:$0xff]  }
0x1b1a   : > { %v24209_v26 = vpack.c.bf16 %v10435_v8, %v10435_v8  ;;  %v21426_v8 = vld [vmem:[%s25728_s8 + $0x3cc] ss:$24 sps:$4 sm:$0xff]   ;;  %v21478_v6 = vld [vmem:[%s25728_s8 + $0x518] ss:$24 sps:$4 sm:$0xff]   ;;  %v21484_v12 = vld [vmem:[%s25728_s8 + $0x4e8] ss:$24 sps:$4 sm:$0xff]  }
0x1b1c   : > { %12205 = vmatpush1.bf16.msra.mxu1 %v21340_v25  ;;  %12189 = vmatprep.mubr.bf16.mxu0 %v24209_v26  ;;  %v21418_v25 = vld [vmem:[%s25728_s8 + $0x3f8] ss:$24 sps:$4 sm:$0xff]  }
0x1b1d   : > { %12190 = vmatmul.mubr.bf16.vlgmr.msra.gmra.mxu0 %v24212_v56  ;;  %12206 = vmatprep.subr.bf16.mxu1 %v21348_v43  ;;  %v21421_v43 = vld [vmem:[%s25728_s8 + $0x1e8] ss:$24 sps:$4 sm:$0xff]  }
0x1b1e   : > { %12240 = vmatpush1.bf16.msra.mxu0 %v21343_v27  ;;  %12271 = vmatprep.mubr.bf16.mxu0 %v24183_v61  ;;  %v21429_v27 = vld [vmem:[%s25728_s8 + $0x1bc] ss:$24 sps:$4 sm:$0xff]  }
0x1b1f   : > { %12241 = vmatprep.subr.bf16.mxu0 %v21351_v37  ;;  %v21424_v37 = vld [vmem:[%s25728_s8 + $0x3c8] ss:$24 sps:$4 sm:$0xff]  }
0x1b20   : > { %12207 = vmatpush1.bf16.msra.mxu1 %v21346_v28  ;;  %v21432_v28 = vld [vmem:[%s25728_s8 + $0x39c] ss:$24 sps:$4 sm:$0xff]  }
0x1b21   : > { %12208 = vmatprep.subr.bf16.mxu1 %v21354_v3  ;;  %v21427_v3 = vld [vmem:[%s25728_s8 + $0x1b8] ss:$24 sps:$4 sm:$0xff]  }
0x1b22   : > { %12242 = vmatpush1.bf16.msra.mxu0 %v21349_v29  ;;  %v21435_v29 = vld [vmem:[%s25728_s8 + $0x18c] ss:$24 sps:$4 sm:$0xff]  }
0x1b23   : > { %12243 = vmatprep.subr.bf16.mxu0 %v21357_v30  ;;  %v21430_v30 = vld [vmem:[%s25728_s8 + $0x398] ss:$24 sps:$4 sm:$0xff]  }
0x1b24   : > { %12209 = vmatpush1.bf16.msra.mxu1 %v21352_v7  ;;  %v21438_v7 = vld [vmem:[%s25728_s8 + $0x36c] ss:$24 sps:$4 sm:$0xff]  }
0x1b25   : > { %12210 = vmatprep.subr.bf16.mxu1 %v21360_v34  ;;  %v21433_v34 = vld [vmem:[%s25728_s8 + $0x188] ss:$24 sps:$4 sm:$0xff]  }
0x1b26   : > { %12244 = vmatpush1.bf16.msra.mxu0 %v21355_v35  ;;  %v21441_v35 = vld [vmem:[%s25728_s8 + $0x75c] ss:$24 sps:$4 sm:$0xff]  }
0x1b27   : > { %12245 = vmatprep.subr.bf16.mxu0 %v21363_v40  ;;  %v21436_v40 = vld [vmem:[%s25728_s8 + $0x368] ss:$24 sps:$4 sm:$0xff]  }
0x1b28   : > { %12211 = vmatpush1.bf16.msra.mxu1 %v21358_v44  ;;  %v21444_v44 = vld [vmem:[%s25728_s8 + $0x33c] ss:$24 sps:$4 sm:$0xff]  }
0x1b29   : > { %12212 = vmatprep.subr.bf16.mxu1 %v21366_v31  ;;  %v21439_v31 = vld [vmem:[%s25728_s8 + $0x758] ss:$24 sps:$4 sm:$0xff]  }
0x1b2a   : > { %12246 = vmatpush1.bf16.msra.mxu0 %v21361_v1  ;;  %v21447_v1 = vld [vmem:[%s25728_s8 + $0x72c] ss:$24 sps:$4 sm:$0xff]  }
0x1b2b   : > { %12247 = vmatprep.subr.bf16.mxu0 %v21369_v32  ;;  %v21442_v32 = vld [vmem:[%s25728_s8 + $0x338] ss:$24 sps:$4 sm:$0xff]  }
0x1b2c   : > { %12213 = vmatpush1.bf16.msra.mxu1 %v21364_v18  ;;  %v21450_v18 = vld [vmem:[%s25728_s8 + $0x30c] ss:$24 sps:$4 sm:$0xff]  }
0x1b2d   : > { %19451 = vmatprep.subr.msk.bf16.mxu1 %vm3474_vm11, %v21370_v47  ;;  %v21445_v47 = vld [vmem:[%s25728_s8 + $0x728] ss:$24 sps:$4 sm:$0xff]  }
0x1b2e   : > { %12248 = vmatpush1.bf16.msra.mxu0 %v21367_v50  ;;  %v21448_v50 = vld [vmem:[%s25728_s8 + $0x308] ss:$24 sps:$4 sm:$0xff]  }
0x1b2f   : > { %12249 = vmatprep.subr.bf16.mxu0 %v21375_v51  ;;  %v21456_v51 = vld [vmem:[%s25728_s8 + $0x5dc] ss:$24 sps:$4 sm:$0xff]  }
0x1b30   : > { %12219 = vmatpush2.bf16.msra.mxu1 %v12099_v38  ;;  %v21451_v38 = vld [vmem:[%s25728_s8 + $0x6f8] ss:$24 sps:$4 sm:$0xff]  }
0x1b31   : > { %12220 = vmatprep.subr.bf16.mxu1 %v21378_v36  ;;  %v21459_v36 = vld [vmem:[%s25728_s8 + $0x6cc] ss:$24 sps:$4 sm:$0xff]  }
0x1b32   : > { %12250 = vmatpush1.bf16.msra.mxu0 %v21373_v52  ;;  %v21454_v52 = vld [vmem:[%s25728_s8 + $0x5d8] ss:$24 sps:$4 sm:$0xff]  }
0x1b33   : > { %12251 = vmatprep.subr.bf16.mxu0 %v21381_v42  ;;  %v21462_v42 = vld [vmem:[%s25728_s8 + $0x5ac] ss:$24 sps:$4 sm:$0xff]  }
0x1b34   : > { %12221 = vmatpush2.bf16.msra.mxu1 %v21376_v54  ;;  %v21457_v54 = vld [vmem:[%s25728_s8 + $0x6c8] ss:$24 sps:$4 sm:$0xff]  }
0x1b35   : > { %12222 = vmatprep.subr.bf16.mxu1 %v21384_v19  ;;  %v21465_v19 = vld [vmem:[%s25728_s8 + $0x69c] ss:$24 sps:$4 sm:$0xff]  }
0x1b36   : > { %12252 = vmatpush1.bf16.msra.mxu0 %v21379_v49  ;;  %v21460_v49 = vld [vmem:[%s25728_s8 + $0x5a8] ss:$24 sps:$4 sm:$0xff]  }
0x1b37   : > { %12253 = vmatprep.subr.bf16.mxu0 %v21387_v58  ;;  %v21468_v58 = vld [vmem:[%s25728_s8 + $0x57c] ss:$24 sps:$4 sm:$0xff]  }
0x1b38   : > { %12223 = vmatpush2.bf16.msra.mxu1 %v21382_v59  ;;  %v21463_v59 = vld [vmem:[%s25728_s8 + $0x698] ss:$24 sps:$4 sm:$0xff]  }
0x1b39   : > { %12224 = vmatprep.subr.bf16.mxu1 %v21390_v60  ;;  %v21471_v60 = vld [vmem:[%s25728_s8 + $0x66c] ss:$24 sps:$4 sm:$0xff]  }
0x1b3a   : > { %12254 = vmatpush1.bf16.msra.mxu0 %v21385_v45  ;;  %v21466_v45 = vld [vmem:[%s25728_s8 + $0x578] ss:$24 sps:$4 sm:$0xff]  }
0x1b3b   : > { %12255 = vmatprep.subr.bf16.mxu0 %v21393_v57  ;;  %v21474_v57 = vld [vmem:[%s25728_s8 + $0x54c] ss:$24 sps:$4 sm:$0xff]  }
0x1b3c   : > { %12225 = vmatpush2.bf16.msra.mxu1 %v21388_v62  ;;  %v21469_v62 = vld [vmem:[%s25728_s8 + $0x668] ss:$24 sps:$4 sm:$0xff]  }
0x1b3d   : > { %12226 = vmatprep.subr.bf16.mxu1 %v21396_v63  ;;  %v21472_v63 = vld [vmem:[%s25728_s8 + $0x548] ss:$24 sps:$4 sm:$0xff]  }
0x1b3e   : > { %12256 = vmatpush2.bf16.msra.mxu0 %v21391_v0  ;;  %v21480_v0 = vld [vmem:[%s25728_s8 + $0x51c] ss:$24 sps:$4 sm:$0xff]  }
0x1b3f   : > { %12257 = vmatprep.subr.bf16.mxu0 %v21399_v4  ;;  %v21475_v4 = vld [vmem:[%s25728_s8 + $0x638] ss:$24 sps:$4 sm:$0xff]  }
0x1b40   : > { %12227 = vmatpush2.bf16.msra.mxu1 %v21394_v5  ;;  %v21483_v5 = vld [vmem:[%s25728_s8 + $0x60c] ss:$24 sps:$4 sm:$0xff]  }
0x1b41   : > { %12228 = vmatprep.subr.bf16.mxu1 %v21402_v10  ;;  %v21486_v10 = vld [vmem:[%s25728_s8 + $0x4ec] ss:$24 sps:$4 sm:$0xff]  }
0x1b42   : > { %12258 = vmatpush2.bf16.msra.mxu0 %v21397_v11  ;;  %v21481_v11 = vld [vmem:[%s25728_s8 + $0x608] ss:$24 sps:$4 sm:$0xff]  }
0x1b43   : > { %12259 = vmatprep.subr.bf16.mxu0 %v21405_v46  ;;  %v21487_v46 = vld [vmem:[%s25728_s8 + $0x87c] ss:$24 sps:$4 sm:$0x7f]  }
0x1b44   : > { %12229 = vmatpush2.bf16.msra.mxu1 %v21400_v41  ;;  %v21489_v41 = vld [vmem:[%s25728_s8 + $0x878] ss:$24 sps:$4 sm:$0x7f]  }
0x1b45   : > { %12280 = vmatprep.subr.bf16.mxu1 %v21408_v13  ;;  %v21492_v13 = vld [vmem:[%s25728_s8 + $0x4bc] ss:$24 sps:$4 sm:$0xff]  }
0x1b46   : > { %12260 = vmatpush2.bf16.msra.mxu0 %v21403_v33  ;;  %v12105_v33 = vsel %vm3474_vm11, %v21489_v41, 0  ;;  %v21571_v41 = vld [vmem:[%s25728_s8 + $0x5e0] ss:$24 sps:$4 sm:$0xff]  }
0x1b47   : > { %12231 = vmatmul.mubr.bf16.vlgmr.msra.gmra.mxu1 %v24264_v14  ;;  %12261 = vmatprep.subr.bf16.mxu0 %v21411_v9  ;;  %v21495_v9 = vld [vmem:[%s25728_s8 + $0x84c] ss:$24 sps:$4 sm:$0xff]  }
0x1b48   : > { %12281 = vmatpush1.bf16.msra.mxu1 %v21406_v53  ;;  %12312 = vmatprep.mubr.bf16.mxu1 %v24209_v26  ;;  %v21490_v53 = vld [vmem:[%s25728_s8 + $0x4b8] ss:$24 sps:$4 sm:$0xff]  }
0x1b49   : > { %12282 = vmatprep.subr.bf16.mxu1 %v21414_v16  ;;  %v21498_v16 = vld [vmem:[%s25728_s8 + $0x48c] ss:$24 sps:$4 sm:$0xff]  }
0x1b4a   : > { %12262 = vmatpush2.bf16.msra.mxu0 %v21409_v55  ;;  %v21493_v55 = vld [vmem:[%s25728_s8 + $0x848] ss:$24 sps:$4 sm:$0xff]  }
0x1b4b   : > { %12263 = vmatprep.subr.bf16.mxu0 %v21417_v17  ;;  %v21501_v17 = vld [vmem:[%s25728_s8 + $0x81c] ss:$24 sps:$4 sm:$0xff]  }
0x1b4c   : > { %12283 = vmatpush1.bf16.msra.mxu1 %v21412_v21  ;;  %v21496_v21 = vld [vmem:[%s25728_s8 + $0x488] ss:$24 sps:$4 sm:$0xff]  }
0x1b4d   : > { %12284 = vmatprep.subr.bf16.mxu1 %v21420_v20  ;;  %v21504_v20 = vld [vmem:[%s25728_s8 + $0x164] ss:$24 sps:$4 sm:$0xff]  }
0x1b4e   : > { %12264 = vmatpush2.bf16.msra.mxu0 %v21415_v22  ;;  %v21499_v22 = vld [vmem:[%s25728_s8 + $0x818] ss:$24 sps:$4 sm:$0xff]  }
0x1b4f   : > { %12265 = vmatprep.subr.bf16.mxu0 %v21423_v23  ;;  %v21507_v23 = vld [vmem:[%s25728_s8 + $0x7ec] ss:$24 sps:$4 sm:$0xff]  }
0x1b50   : > { %12285 = vmatpush1.bf16.msra.mxu1 %v21418_v25  ;;  %v21502_v25 = vld [vmem:[%s25728_s8 + $0x160] ss:$24 sps:$4 sm:$0xff]  }
0x1b51   : > { %12286 = vmatprep.subr.bf16.mxu1 %v21426_v8  ;;  %v21510_v8 = vld [vmem:[%s25728_s8 + $0x134] ss:$24 sps:$4 sm:$0xff]  }
0x1b52   : > { %12266 = vmatpush2.bf16.msra.mxu0 %v21421_v43  ;;  %v21505_v43 = vld [vmem:[%s25728_s8 + $0x7e8] ss:$24 sps:$4 sm:$0xff]  }
0x1b53   : > { %12267 = vmatprep.subr.bf16.mxu0 %v21429_v27  ;;  %v21513_v27 = vld [vmem:[%s25728_s8 + $0x7bc] ss:$24 sps:$4 sm:$0xff]  }
0x1b54   : > { %12287 = vmatpush1.bf16.msra.mxu1 %v21424_v37  ;;  %v21508_v37 = vld [vmem:[%s25728_s8 + $0x130] ss:$24 sps:$4 sm:$0xff]  }
0x1b55   : > { %12288 = vmatprep.subr.bf16.mxu1 %v21432_v28  ;;  %v21516_v28 = vld [vmem:[%s25728_s8 + $0x104] ss:$24 sps:$4 sm:$0xff]  }
0x1b56   : > { %12268 = vmatpush2.bf16.msra.mxu0 %v21427_v3  ;;  %v21511_v3 = vld [vmem:[%s25728_s8 + $0x7b8] ss:$24 sps:$4 sm:$0xff]  }
0x1b57   : > { %12269 = vmatprep.subr.bf16.mxu0 %v21435_v29  ;;  %v21519_v29 = vld [vmem:[%s25728_s8 + $0x78c] ss:$24 sps:$4 sm:$0xff]  }
0x1b58   : > { %12289 = vmatpush1.bf16.msra.mxu1 %v21430_v30  ;;  %v21514_v30 = vld [vmem:[%s25728_s8 + $0x100] ss:$24 sps:$4 sm:$0xff]  }
0x1b59   : > { %12290 = vmatprep.subr.bf16.mxu1 %v21438_v7  ;;  %v21522_v7 = vld [vmem:[%s25728_s8 + $0xd4] ss:$24 sps:$4 sm:$0xff]  }
0x1b5a   : > { %12270 = vmatpush2.bf16.msra.mxu0 %v21433_v34  ;;  %v21517_v34 = vld [vmem:[%s25728_s8 + $0x788] ss:$24 sps:$4 sm:$0xff]  }
0x1b5b   : > { %12321 = vmatprep.subr.bf16.mxu0 %v21441_v35  ;;  %v21520_v35 = vld [vmem:[%s25728_s8 + $0xd0] ss:$24 sps:$4 sm:$0xff]  }
0x1b5c   : > { %12291 = vmatpush1.bf16.msra.mxu1 %v21436_v40  ;;  %v21528_v40 = vld [vmem:[%s25728_s8 + $0xa4] ss:$24 sps:$4 sm:$0xff]  }
0x1b5d   : > { %12272 = vmatmul.mubr.bf16.vlgmr.msra.gmra.mxu0 %v24186_v48  ;;  %12292 = vmatprep.subr.bf16.mxu1 %v21444_v44  ;;  %v21523_v44 = vld [vmem:[%s25728_s8 + $0x460] ss:$24 sps:$4 sm:$0xff]  }
0x1b5e   : > { %12322 = vmatpush1.bf16.msra.mxu0 %v21439_v31  ;;  %19454 = vmatprep.mubr.msk.bf16.mxu0 %vm12094_vm2, %v24198_v15  ;;  %v21531_v31 = vld [vmem:[%s25728_s8 + $0x434] ss:$24 sps:$4 sm:$0xff]  }
0x1b5f   : > { %12323 = vmatprep.subr.bf16.mxu0 %v21447_v1  ;;  %v21526_v1 = vld [vmem:[%s25728_s8 + $0xa0] ss:$24 sps:$4 sm:$0xff]  }
0x1b60   : > { %12293 = vmatpush1.bf16.msra.mxu1 %v21442_v32  ;;  %v21534_v32 = vld [vmem:[%s25728_s8 + $0x74] ss:$24 sps:$4 sm:$0xff]  }
0x1b61   : > { %12294 = vmatprep.subr.bf16.mxu1 %v21450_v18  ;;  %v21529_v18 = vld [vmem:[%s25728_s8 + $0x430] ss:$24 sps:$4 sm:$0xff]  }
0x1b62   : > { %12324 = vmatpush1.bf16.msra.mxu0 %v21445_v47  ;;  %v21537_v47 = vld [vmem:[%s25728_s8 + $0x404] ss:$24 sps:$4 sm:$0xff]  }
0x1b63   : > { %12325 = vmatprep.subr.bf16.mxu0 %v21453_v39  ;;  %v21532_v39 = vld [vmem:[%s25728_s8 + $0x70] ss:$24 sps:$4 sm:$0xff]  }
0x1b64   : > { %12295 = vmatpush1.bf16.msra.mxu1 %v21448_v50  ;;  %v21540_v50 = vld [vmem:[%s25728_s8 + $0x44] ss:$24 sps:$4 sm:$0xff]  }
0x1b65   : > { %12296 = vmatprep.subr.bf16.mxu1 %v21456_v51  ;;  %v21535_v51 = vld [vmem:[%s25728_s8 + $0x400] ss:$24 sps:$4 sm:$0xff]  }
0x1b66   : > { %12326 = vmatpush1.bf16.msra.mxu0 %v21451_v38  ;;  %v21543_v38 = vld [vmem:[%s25728_s8 + $0x3d4] ss:$24 sps:$4 sm:$0xff]  }
0x1b67   : > { %12327 = vmatprep.subr.bf16.mxu0 %v21459_v36  ;;  %v21538_v36 = vld [vmem:[%s25728_s8 + $0x40] ss:$24 sps:$4 sm:$0xff]  }
0x1b68   : > { %12297 = vmatpush2.bf16.msra.mxu1 %v21454_v52  ;;  %v21541_v52 = vld [vmem:[%s25728_s8 + $0x3d0] ss:$24 sps:$4 sm:$0xff]  }
0x1b69   : > { %12298 = vmatprep.subr.bf16.mxu1 %v21462_v42  ;;  %v21549_v42 = vld [vmem:[%s25728_s8 + $0x3a4] ss:$24 sps:$4 sm:$0xff]  }
0x1b6a   : > { %12328 = vmatpush1.bf16.msra.mxu0 %v21457_v54  ;;  %v21544_v54 = vld [vmem:[%s25728_s8 + $0x10] ss:$24 sps:$4 sm:$0xff]  }
0x1b6b   : > { %12329 = vmatprep.subr.bf16.mxu0 %v21465_v19  ;;  %v21552_v19 = vld [vmem:[%s25728_s8 + $0x2e4] ss:$24 sps:$4 sm:$0xff]  }
0x1b6c   : > { %12299 = vmatpush2.bf16.msra.mxu1 %v21460_v49  ;;  %v21547_v49 = vld [vmem:[%s25728_s8 + $0x3a0] ss:$24 sps:$4 sm:$0xff]  }
0x1b6d   : > { %12300 = vmatprep.subr.bf16.mxu1 %v21468_v58  ;;  %v21555_v58 = vld [vmem:[%s25728_s8 + $0x374] ss:$24 sps:$4 sm:$0xff]  }
0x1b6e   : > { %12330 = vmatpush1.bf16.msra.mxu0 %v21463_v59  ;;  %v21550_v59 = vld [vmem:[%s25728_s8 + $0x2e0] ss:$24 sps:$4 sm:$0xff]  }
0x1b6f   : > { %12331 = vmatprep.subr.bf16.mxu0 %v21471_v60  ;;  %v21558_v60 = vld [vmem:[%s25728_s8 + $0x2b4] ss:$24 sps:$4 sm:$0xff]  }
0x1b70   : > { %12301 = vmatpush2.bf16.msra.mxu1 %v21466_v45  ;;  %v21553_v45 = vld [vmem:[%s25728_s8 + $0x370] ss:$24 sps:$4 sm:$0xff]  }
0x1b71   : > { %12302 = vmatprep.subr.bf16.mxu1 %v21474_v57  ;;  %v21561_v57 = vld [vmem:[%s25728_s8 + $0x344] ss:$24 sps:$4 sm:$0xff]  }
0x1b72   : > { %12332 = vmatpush1.bf16.msra.mxu0 %v21469_v62  ;;  %v21556_v62 = vld [vmem:[%s25728_s8 + $0x2b0] ss:$24 sps:$4 sm:$0xff]  }
0x1b73   : > { %12333 = vmatprep.subr.bf16.mxu0 %v21477_v24  ;;  %v21564_v24 = vld [vmem:[%s25728_s8 + $0x284] ss:$24 sps:$4 sm:$0xff]  }
0x1b74   : > { %12303 = vmatpush2.bf16.msra.mxu1 %v21472_v63  ;;  %v21559_v63 = vld [vmem:[%s25728_s8 + $0x340] ss:$24 sps:$4 sm:$0xff]  }
0x1b75   : > { %12304 = vmatprep.subr.bf16.mxu1 %v21480_v0  ;;  %v21567_v0 = vld [vmem:[%s25728_s8 + $0x314] ss:$24 sps:$4 sm:$0xff]  }
0x1b76   : > { %12334 = vmatpush1.bf16.msra.mxu0 %v21475_v4  ;;  %v21562_v4 = vld [vmem:[%s25728_s8 + $0x280] ss:$24 sps:$4 sm:$0xff]  }
0x1b77   : > { %12335 = vmatprep.subr.bf16.mxu0 %v21483_v5  ;;  %v21570_v5 = vld [vmem:[%s25728_s8 + $0x254] ss:$24 sps:$4 sm:$0xff]  }
0x1b78   : > { %12305 = vmatpush2.bf16.msra.mxu1 %v21478_v6  ;;  %v21565_v6 = vld [vmem:[%s25728_s8 + $0x310] ss:$24 sps:$4 sm:$0xff]  }
0x1b79   : > { %12306 = vmatprep.subr.bf16.mxu1 %v21486_v10  ;;  %v21573_v10 = vld [vmem:[%s25728_s8 + $0x5e4] ss:$24 sps:$4 sm:$0xff]  }
0x1b7a   : > { %12336 = vmatpush1.bf16.msra.mxu0 %v21481_v11  ;;  %v21568_v11 = vld [vmem:[%s25728_s8 + $0x250] ss:$24 sps:$4 sm:$0xff]  }
0x1b7b   : > { %19453 = vmatprep.subr.msk.bf16.mxu0 %vm3474_vm11, %v21487_v46  ;;  %v21576_v46 = vld [vmem:[%s25728_s8 + $0x224] ss:$24 sps:$4 sm:$0xff]  }
0x1b7c   : > { %12307 = vmatpush2.bf16.msra.mxu1 %v21484_v12  ;;  %v21579_v12 = vld [vmem:[%s25728_s8 + $0x5b4] ss:$24 sps:$4 sm:$0xff]  }
0x1b7d   : > { %12308 = vmatprep.subr.bf16.mxu1 %v21492_v13  ;;  %v21574_v13 = vld [vmem:[%s25728_s8 + $0x220] ss:$24 sps:$4 sm:$0xff]  }
0x1b7e   : > { %12342 = vmatpush2.bf16.msra.mxu0 %v12105_v33  ;;  %v21582_v33 = vld [vmem:[%s25728_s8 + $0x1f4] ss:$24 sps:$4 sm:$0xff]  }
0x1b7f   : > { %12343 = vmatprep.subr.bf16.mxu0 %v21495_v9  ;;  %v21577_v9 = vld [vmem:[%s25728_s8 + $0x5b0] ss:$24 sps:$4 sm:$0xff]  }
0x1b80   : > { %12309 = vmatpush2.bf16.msra.mxu1 %v21490_v53  ;;  %v21585_v53 = vld [vmem:[%s25728_s8 + $0x584] ss:$24 sps:$4 sm:$0xff]  }
0x1b81   : > { %12310 = vmatprep.subr.bf16.mxu1 %v21498_v16  ;;  %v21580_v16 = vld [vmem:[%s25728_s8 + $0x1f0] ss:$24 sps:$4 sm:$0xff]  }
0x1b82   : > { %12344 = vmatpush2.bf16.msra.mxu0 %v21493_v55  ;;  %v21588_v55 = vld [vmem:[%s25728_s8 + $0x1c4] ss:$24 sps:$4 sm:$0xff]  }
0x1b83   : > { %12345 = vmatprep.subr.bf16.mxu0 %v21501_v17  ;;  %v21583_v17 = vld [vmem:[%s25728_s8 + $0x580] ss:$24 sps:$4 sm:$0xff]  }
0x1b84   : > { %12311 = vmatpush2.bf16.msra.mxu1 %v21496_v21  ;;  %v21591_v21 = vld [vmem:[%s25728_s8 + $0x554] ss:$24 sps:$4 sm:$0xff]  }
0x1b85   : > { %12362 = vmatprep.subr.bf16.mxu1 %v21504_v20  ;;  %v21586_v20 = vld [vmem:[%s25728_s8 + $0x1c0] ss:$24 sps:$4 sm:$0xff]  }
0x1b86   : > { %12346 = vmatpush2.bf16.msra.mxu0 %v21499_v22  ;;  %v21594_v22 = vld [vmem:[%s25728_s8 + $0x194] ss:$24 sps:$4 sm:$0xff]  }
0x1b87   : > { %12313 = vmatmul.mubr.bf16.vlgmr.msra.gmra.mxu1 %v24212_v56  ;;  %12347 = vmatprep.subr.bf16.mxu0 %v21507_v23  ;;  %v21589_v23 = vld [vmem:[%s25728_s8 + $0x550] ss:$24 sps:$4 sm:$0xff]  }
0x1b88   : > { %12363 = vmatpush1.bf16.msra.mxu1 %v21502_v25  ;;  %12394 = vmatprep.mubr.bf16.mxu1 %v24183_v61  ;;  %v21525_v61 = vld [vmem:[%s25728_s8 + $0x464] ss:$24 sps:$4 sm:$0xff]  }
0x1b89   : > { %12364 = vmatprep.subr.bf16.mxu1 %v21510_v8  ;;  %v21597_v25 = vld [vmem:[%s25728_s8 + $0x524] ss:$24 sps:$4 sm:$0xff]   ;;  %v21592_v8 = vld [vmem:[%s25728_s8 + $0x190] ss:$24 sps:$4 sm:$0xff]  }
0x1b8a   : > { %12348 = vmatpush2.bf16.msra.mxu0 %v21505_v43  ;;  %v21600_v43 = vld [vmem:[%s25728_s8 + $0x764] ss:$24 sps:$4 sm:$0xff]  }
0x1b8b   : > { %12349 = vmatprep.subr.bf16.mxu0 %v21513_v27  ;;  %v21595_v27 = vld [vmem:[%s25728_s8 + $0x520] ss:$24 sps:$4 sm:$0xff]  }
0x1b8c   : > { %12365 = vmatpush1.bf16.msra.mxu1 %v21508_v37  ;;  %v21603_v37 = vld [vmem:[%s25728_s8 + $0x4f4] ss:$24 sps:$4 sm:$0xff]  }
0x1b8d   : > { %12366 = vmatprep.subr.bf16.mxu1 %v21516_v28  ;;  %v21598_v28 = vld [vmem:[%s25728_s8 + $0x760] ss:$24 sps:$4 sm:$0xff]  }
0x1b8e   : > { %12350 = vmatpush2.bf16.msra.mxu0 %v21511_v3  ;;  %v21606_v3 = vld [vmem:[%s25728_s8 + $0x734] ss:$24 sps:$4 sm:$0xff]  }
0x1b8f   : > { %12351 = vmatprep.subr.bf16.mxu0 %v21519_v29  ;;  %v21601_v29 = vld [vmem:[%s25728_s8 + $0x4f0] ss:$24 sps:$4 sm:$0xff]  }
0x1b90   : > { %12367 = vmatpush1.bf16.msra.mxu1 %v21514_v30  ;;  %v21609_v30 = vld [vmem:[%s25728_s8 + $0x4c4] ss:$24 sps:$4 sm:$0xff]  }
0x1b91   : > { %12368 = vmatprep.subr.bf16.mxu1 %v21522_v7  ;;  %v21604_v7 = vld [vmem:[%s25728_s8 + $0x730] ss:$24 sps:$4 sm:$0xff]  }
0x1b92   : > { %12352 = vmatpush2.bf16.msra.mxu0 %v21517_v34  ;;  %v21612_v34 = vld [vmem:[%s25728_s8 + $0x704] ss:$24 sps:$4 sm:$0xff]  }
0x1b93   : > { %12403 = vmatprep.subr.bf16.mxu0 %v21525_v61  ;;  %v21607_v61 = vld [vmem:[%s25728_s8 + $0x4c0] ss:$24 sps:$4 sm:$0xff]  }
0x1b94   : > { %12369 = vmatpush1.bf16.msra.mxu1 %v21520_v35  ;;  %v21615_v35 = vld [vmem:[%s25728_s8 + $0x494] ss:$24 sps:$4 sm:$0xff]  }
0x1b95   : > { %12354 = vmatmul.mubr.bf16.vlgmr.msra.gmra.mxu0 %v24264_v14  ;;  %12370 = vmatprep.subr.bf16.mxu1 %v21528_v40  ;;  %v21610_v40 = vld [vmem:[%s25728_s8 + $0x700] ss:$24 sps:$4 sm:$0xff]  }
0x1b96   : > { %12404 = vmatpush1.bf16.msra.mxu0 %v21523_v44  ;;  %12435 = vmatprep.mubr.bf16.mxu0 %v24209_v26  ;;  %v21546_v26 = vld [vmem:[%s25728_s8 + $0x14] ss:$24 sps:$4 sm:$0xff]   ;;  %v21613_v44 = vld [vmem:[%s25728_s8 + $0x490] ss:$24 sps:$4 sm:$0xff]  }
0x1b97   : > { %12405 = vmatprep.subr.bf16.mxu0 %v21531_v31 }
0x1b98   : > { %12371 = vmatpush1.bf16.msra.mxu1 %v21526_v1 }
0x1b99   : > { %12372 = vmatprep.subr.bf16.mxu1 %v21534_v32  ;;  %v21621_v32 = vld [vmem:[%s25728_s8 + $0x6a4] ss:$24 sps:$4 sm:$0xff]  }
0x1b9a   : > { %12406 = vmatpush1.bf16.msra.mxu0 %v21529_v18 }
0x1b9b   : > { %12407 = vmatprep.subr.bf16.mxu0 %v21537_v47  ;;  %v21619_v47 = vld [vmem:[%s25728_s8 + $0x6a0] ss:$24 sps:$4 sm:$0xff]  }
0x1b9c   : > { %12373 = vmatpush1.bf16.msra.mxu1 %v21532_v39 }
0x1b9d   : > { %12374 = vmatprep.subr.bf16.mxu1 %v21540_v50  ;;  %v21624_v50 = vld [vmem:[%s25728_s8 + $0x674] ss:$24 sps:$4 sm:$0xff]  }
0x1b9e   : > { %12408 = vmatpush1.bf16.msra.mxu0 %v21535_v51  ;;  %v21622_v51 = vld [vmem:[%s25728_s8 + $0x670] ss:$24 sps:$4 sm:$0xff]  }
0x1b9f   : > { %12409 = vmatprep.subr.bf16.mxu0 %v21543_v38  ;;  %v21627_v38 = vld [vmem:[%s25728_s8 + $0x644] ss:$24 sps:$4 sm:$0xff]  }
0x1ba0   : > { %12375 = vmatpush1.bf16.msra.mxu1 %v21538_v36  ;;  %v21625_v36 = vld [vmem:[%s25728_s8 + $0x640] ss:$24 sps:$4 sm:$0xff]  }
0x1ba1   : > { %12376 = vmatprep.subr.bf16.mxu1 %v21546_v26 }
0x1ba2   : > { %12410 = vmatpush1.bf16.msra.mxu0 %v21541_v52  ;;  %v21630_v52 = vld [vmem:[%s25728_s8 + $0x614] ss:$24 sps:$4 sm:$0xff]  }
0x1ba3   : > { %12411 = vmatprep.subr.bf16.mxu0 %v21549_v42  ;;  %v21628_v42 = vld [vmem:[%s25728_s8 + $0x610] ss:$24 sps:$4 sm:$0xff]  }
0x1ba4   : > { %12377 = vmatpush1.bf16.msra.mxu1 %v21544_v54 }
0x1ba5   : > { %12378 = vmatprep.subr.bf16.mxu1 %v21552_v19  ;;  %v21631_v19 = vld [vmem:[%s25728_s8 + $0x884] ss:$24 sps:$4 sm:$0x7f]  }
0x1ba6   : > { %12412 = vmatpush1.bf16.msra.mxu0 %v21547_v49  ;;  %v21633_v49 = vld [vmem:[%s25728_s8 + $0x880] ss:$24 sps:$4 sm:$0x7f]  }
0x1ba7   : > { %12413 = vmatprep.subr.bf16.mxu0 %v21555_v58 }
0x1ba8   : > { %12379 = vmatpush2.bf16.msra.mxu1 %v21550_v59  ;;  %v12111_v59 = vsel %vm3474_vm11, %v21633_v49, 0 }
0x1ba9   : > { %12380 = vmatprep.subr.bf16.mxu1 %v21558_v60  ;;  %v21636_v60 = vld [vmem:[%s25728_s8 + $0x854] ss:$24 sps:$4 sm:$0xff]  }
0x1baa   : > { %12414 = vmatpush1.bf16.msra.mxu0 %v21553_v45  ;;  %v21634_v45 = vld [vmem:[%s25728_s8 + $0x850] ss:$24 sps:$4 sm:$0xff]  }
0x1bab   : > { %12415 = vmatprep.subr.bf16.mxu0 %v21561_v57  ;;  %v21639_v57 = vld [vmem:[%s25728_s8 + $0x824] ss:$24 sps:$4 sm:$0xff]  }
0x1bac   : > { %12381 = vmatpush2.bf16.msra.mxu1 %v21556_v62  ;;  %v21637_v62 = vld [vmem:[%s25728_s8 + $0x820] ss:$24 sps:$4 sm:$0xff]  }
0x1bad   : > { %12382 = vmatprep.subr.bf16.mxu1 %v21564_v24  ;;  %v21642_v24 = vld [vmem:[%s25728_s8 + $0x7f4] ss:$24 sps:$4 sm:$0xff]  }
0x1bae   : > { %12416 = vmatpush1.bf16.msra.mxu0 %v21559_v63  ;;  %v21640_v63 = vld [vmem:[%s25728_s8 + $0x7f0] ss:$24 sps:$4 sm:$0xff]  }
0x1baf   : > { %12417 = vmatprep.subr.bf16.mxu0 %v21567_v0  ;;  %v21645_v0 = vld [vmem:[%s25728_s8 + $0x7c4] ss:$24 sps:$4 sm:$0xff]  }
0x1bb0   : > { %12383 = vmatpush2.bf16.msra.mxu1 %v21562_v4  ;;  %v21643_v4 = vld [vmem:[%s25728_s8 + $0x7c0] ss:$24 sps:$4 sm:$0xff]  }
0x1bb1   : > { %12384 = vmatprep.subr.bf16.mxu1 %v21570_v5  ;;  %v21648_v5 = vld [vmem:[%s25728_s8 + $0x794] ss:$24 sps:$4 sm:$0xff]  }
0x1bb2   : > { %12418 = vmatpush1.bf16.msra.mxu0 %v21565_v6  ;;  %v21646_v6 = vld [vmem:[%s25728_s8 + $0x790] ss:$24 sps:$4 sm:$0xff]  }
0x1bb3   : > { %12419 = vmatprep.subr.bf16.mxu0 %v21573_v10 }
0x1bb4   : > { %12385 = vmatpush2.bf16.msra.mxu1 %v21568_v11 }
0x1bb5   : > { %12386 = vmatprep.subr.bf16.mxu1 %v21576_v46 }
0x1bb6   : > { %12420 = vmatpush2.bf16.msra.mxu0 %v21571_v41 }
0x1bb7   : > { %12421 = vmatprep.subr.bf16.mxu0 %v21579_v12 }
0x1bb8   : > { %12387 = vmatpush2.bf16.msra.mxu1 %v21574_v13 }
0x1bb9   : > { %12388 = vmatprep.subr.bf16.mxu1 %v21582_v33 }
0x1bba   : > { %12422 = vmatpush2.bf16.msra.mxu0 %v21577_v9 }
0x1bbb   : > { %12423 = vmatprep.subr.bf16.mxu0 %v21585_v53 }
0x1bbc   : > { %12389 = vmatpush2.bf16.msra.mxu1 %v21580_v16 }
0x1bbd   : > { %12390 = vmatprep.subr.bf16.mxu1 %v21588_v55 }
0x1bbe   : > { %12424 = vmatpush2.bf16.msra.mxu0 %v21583_v17 }
0x1bbf   : > { %12425 = vmatprep.subr.bf16.mxu0 %v21591_v21 }
0x1bc0   : > { %12391 = vmatpush2.bf16.msra.mxu1 %v21586_v20 }
0x1bc1   : > { %12392 = vmatprep.subr.bf16.mxu1 %v21594_v22 }
0x1bc2   : > { %12426 = vmatpush2.bf16.msra.mxu0 %v21589_v23 }
0x1bc3   : > { %12427 = vmatprep.subr.bf16.mxu0 %v21597_v25 }
0x1bc4   : > { %12393 = vmatpush2.bf16.msra.mxu1 %v21592_v8 }
0x1bc5   : > { %12444 = vmatprep.subr.bf16.mxu1 %v21600_v43 }
0x1bc6   : > { %12428 = vmatpush2.bf16.msra.mxu0 %v21595_v27 }
0x1bc7   : > { %12395 = vmatmul.mubr.bf16.vlgmr.msra.gmra.mxu1 %v24186_v48  ;;  %12429 = vmatprep.subr.bf16.mxu0 %v21603_v37  ;;  %v21618_v48 = vld [vmem:[%s25728_s8 + $0x6d4] ss:$24 sps:$4 sm:$0xff]  }
0x1bc8   : > { %12445 = vmatpush1.bf16.msra.mxu1 %v21598_v28  ;;  %19456 = vmatprep.mubr.msk.bf16.mxu1 %vm12094_vm2, %v24198_v15  ;;  %v21616_v15 = vld [vmem:[%s25728_s8 + $0x6d0] ss:$24 sps:$4 sm:$0xff]  }
0x1bc9   : > { %12446 = vmatprep.subr.bf16.mxu1 %v21606_v3 }
0x1bca   : > { %12430 = vmatpush2.bf16.msra.mxu0 %v21601_v29 }
0x1bcb   : > { %12431 = vmatprep.subr.bf16.mxu0 %v21609_v30 }
0x1bcc   : > { %12447 = vmatpush1.bf16.msra.mxu1 %v21604_v7 }
0x1bcd   : > { %12448 = vmatprep.subr.bf16.mxu1 %v21612_v34 }
0x1bce   : > { %12432 = vmatpush2.bf16.msra.mxu0 %v21607_v61 }
0x1bcf   : > { %v12150_v31 = vpop.f32.mrf.mxu1  ;;  %12433 = vmatprep.subr.bf16.mxu0 %v21615_v35 }
0x1bd0   : > { %12449 = vmatpush1.bf16.msra.mxu1 %v21610_v40 }
0x1bd1   : > { %v12152_v1 = vpop.f32.mrf.mxu1  ;;  %12450 = vmatprep.subr.bf16.mxu1 %v21618_v48 }
0x1bd2   : > { %12434 = vmatpush2.bf16.msra.mxu0 %v21613_v44 }
0x1bd3   : > { %v12154_v18 = vpop.f32.mrf.mxu1 }
0x1bd4   : > { %12451 = vmatpush1.bf16.msra.mxu1 %v21616_v15 }
0x1bd5   : > { %12436 = vmatmul.mubr.bf16.vlgmr.msra.gmra.mxu0 %v24212_v56  ;;  %v12155_v39 = vpop.f32.mrf.mxu1  ;;  %12452 = vmatprep.subr.bf16.mxu1 %v21621_v32 }
0x1bd6   : > { %12571 = vmatprep.mubr.bf16.mxu0 %v22555_v2 }
0x1bd8   : > { %12453 = vmatpush1.bf16.msra.mxu1 %v21619_v47 }
0x1bd9   : > { %12454 = vmatprep.subr.bf16.mxu1 %v21624_v50 }
0x1bdc   : > { %12455 = vmatpush1.bf16.msra.mxu1 %v21622_v51 }
0x1bdd   : > { %v12191_v26 = vpop.f32.mrf.mxu0  ;;  %12456 = vmatprep.subr.bf16.mxu1 %v21627_v38 }
0x1bde   : > { %v12192_v10 = vadd.f32 %v12191_v26, %v12150_v31 }
0x1bdf   : > { %v12193_v56 = vpop.f32.mrf.mxu0 }
0x1be0   : > { %12457 = vmatpush1.bf16.msra.mxu1 %v21625_v36  ;;  %v12194_v46 = vadd.f32 %v12193_v56, %v12152_v1 }
0x1be1   : > { %v12195_v54 = vpop.f32.mrf.mxu0  ;;  %12458 = vmatprep.subr.bf16.mxu1 %v21630_v52 }
0x1be3   : > { %v12196_v58 = vpop.f32.mrf.mxu0 }
0x1be4   : > { %12459 = vmatpush1.bf16.msra.mxu1 %v21628_v42 }
0x1be5   : > { %19455 = vmatprep.subr.msk.bf16.mxu1 %vm3474_vm11, %v21631_v19  ;;  %vm12517_vm11 = vcmask 31744  }
0x1be8   : > { %12465 = vmatpush2.bf16.msra.mxu1 %v12111_v59  ;;  %v19457_v59 = vld [vmem:[%s25729_s16 + $0x2] sm:$0x3] }
0x1be9   : > { %12466 = vmatprep.subr.bf16.mxu1 %v21636_v60  ;;  %v13313_v60 = vld [vmem:[%s25730_s5] sm:$0xf] }
0x1bec   : > { %12467 = vmatpush2.bf16.msra.mxu1 %v21634_v45  ;;  %v13325_v45 = vld [vmem:[%s25731_s0] sm:$0xf] }
0x1bed   : > { %12468 = vmatprep.subr.bf16.mxu1 %v21639_v57 }
0x1bf0   : > { %12469 = vmatpush2.bf16.msra.mxu1 %v21637_v62 }
0x1bf1   : > { %12470 = vmatprep.subr.bf16.mxu1 %v21642_v24 }
0x1bf4   : > { %12471 = vmatpush2.bf16.msra.mxu1 %v21640_v63 }
0x1bf5   : > { %12472 = vmatprep.subr.bf16.mxu1 %v21645_v0 }
0x1bf8   : > { %12473 = vmatpush2.bf16.msra.mxu1 %v21643_v4 }
0x1bf9   : > { %12474 = vmatprep.subr.bf16.mxu1 %v21648_v5 }
0x1bfc   : > { %12475 = vmatpush2.bf16.msra.mxu1 %v21646_v6 }
0x1bff   : > { %12477 = vmatmul.mubr.bf16.vlgmr.msra.gmra.mxu1 %v24264_v14 }
0x1c00   : > { %12919 = vmatprep.mubr.bf16.mxu1 %v22555_v2 }
0x1c07   : > { %v12232_v11 = vpop.f32.mrf.mxu1 }
0x1c08   : > { %v12233_v41 = vadd.f32 %v12232_v11, %v12192_v10 }
0x1c09   : > { %v12234_v12 = vpop.f32.mrf.mxu1 }
0x1c0a   : > { %v24445_v13 = vpack.c.bf16 %v12233_v41, %v12233_v41  ;;  %v12235_v33 = vadd.f32 %v12234_v12, %v12194_v46 }
0x1c0b   : > { %v12236_v9 = vpop.f32.mrf.mxu1 }
0x1c0c   : > { %v24447_v53 = vpack.c.bf16 %v12235_v33, %v12235_v33  ;;  %12500 = vrot.lane.b32.xlu1 %v24445_v13, %s25698_s1 }
0x1c0d   : > { %v12237_v16 = vpop.f32.mrf.mxu1 }
0x1c0e   : > { %12502 = vrot.lane.b32.xlu0 %v24447_v53, %s25698_s1 }
0x1c1d   : > { %v12273_v14 = vpop.f32.mrf.mxu0 }
0x1c1f   : > { %v12275_v55 = vpop.f32.mrf.mxu0 }
0x1c21   : > { %v12277_v17 = vpop.f32.mrf.mxu0 }
0x1c23   : > { %v12278_v21 = vpop.f32.mrf.mxu0 }
0x1c47   : > { %v12314_v20 = vpop.f32.mrf.mxu1 }
0x1c48   : > { %v12315_v8 = vadd.f32 %v12314_v20, %v12273_v14 }
0x1c49   : > { %v12316_v22 = vpop.f32.mrf.mxu1 }
0x1c4a   : > { %v12317_v27 = vadd.f32 %v12316_v22, %v12275_v55  ;;  %v12666_v55 = vsel %vm2215_vm4, %v24445_v13, 0 }
0x1c4b   : > { %v12318_v23 = vpop.f32.mrf.mxu1 }
0x1c4d   : > { %v12319_v25 = vpop.f32.mrf.mxu1 }
0x1c55   : > { %v12355_v43 = vpop.f32.mrf.mxu0 }
0x1c56   : > { %v12356_v37 = vadd.f32 %v12355_v43, %v12315_v8 }
0x1c57   : > { %v12357_v28 = vpop.f32.mrf.mxu0 }
0x1c58   : > { %v24453_v3 = vpack.c.bf16 %v12356_v37, %v12356_v37  ;;  %v12358_v29 = vadd.f32 %v12357_v28, %v12317_v27  ;;  %v19477_v27 = vld [vmem:[%s25729_s16 + $0x6] sm:$0x3] }
0x1c59   : > { %v12359_v30 = vpop.f32.mrf.mxu0 }
0x1c5a   : > { %v24455_v7 = vpack.c.bf16 %v12358_v29, %v12358_v29  ;;  %12504 = vrot.lane.b32.xlu1 %v24453_v3, %s25698_s1  ;;  %v12672_v43 = vsel %vm2215_vm4, %v24453_v3, 0 }
0x1c5b   : > { %v12360_v34 = vpop.f32.mrf.mxu0 }
0x1c5c   : > { %12506 = vrot.lane.b32.xlu0 %v24455_v7, %s25698_s1 }
0x1c7e   : > { %v12501_v56 = vpop.permute.xlu1 %12500 }
0x1c80   : > { %v12503_v42 = vpop.permute.xlu0 %12502 }
0x1c81   : > { %v12512_v54 = vsel %vm6140_vm10, %v12501_v56, %v12503_v42 }
0x1c82   : > { %v12522_v58 = vsel %vm2215_vm4, %v12512_v54, 0 }
0x1c87   : > { %v12396_v61 = vpop.f32.mrf.mxu1 }
0x1c89   : > { %v12398_v35 = vpop.f32.mrf.mxu1 }
0x1c8b   : > { %v12400_v40 = vpop.f32.mrf.mxu1 }
0x1c8d   : > { %v12401_v48 = vpop.f32.mrf.mxu1 }
0x1c95   : > { %v12437_v44 = vpop.f32.mrf.mxu0 }
0x1c96   : > { %v12438_v32 = vadd.f32 %v12437_v44, %v12396_v61 }
0x1c97   : > { %v12439_v31 = vpop.f32.mrf.mxu0 }
0x1c98   : > { %v12440_v47 = vadd.f32 %v12439_v31, %v12398_v35 }
0x1c99   : > { %v12441_v15 = vpop.f32.mrf.mxu0 }
0x1c9b   : > { %v12442_v1 = vpop.f32.mrf.mxu0 }
0x1cbf   : > { %v12478_v18 = vpop.f32.mrf.mxu1 }
0x1cc0   : > { %v12479_v39 = vadd.f32 %v12478_v18, %v12438_v32  ;;  %v19484_v18 = vld [vmem:[%s25729_s16 + $0x8] sm:$0x3] }
0x1cc1   : > { %v12480_v50 = vpop.f32.mrf.mxu1 }
0x1cc2   : > { %v24461_v51 = vpack.c.bf16 %v12479_v39, %v12479_v39  ;;  %v12481_v38 = vadd.f32 %v12480_v50, %v12440_v47 }
0x1cc3   : > { %v12482_v36 = vpop.f32.mrf.mxu1 }
0x1cc4   : > { %v24463_v26 = vpack.c.bf16 %v12481_v38, %v12481_v38  ;;  %12508 = vrot.lane.b32.xlu1 %v24461_v51, %s25698_s1  ;;  %v12678_v34 = vsel %vm2215_vm4, %v24461_v51, 0 }
0x1cc5   : > { %v12483_v52 = vpop.f32.mrf.mxu1 }
0x1cc6   : > { %12510 = vrot.lane.b32.xlu0 %v24463_v26, %s25698_s1 }
0x1cc8   : > { %12808 = vrot.lane.b32.xlu1 %v24445_v13, %s25707_s11 }
0x1cca   : > { %12810 = vrot.lane.b32.xlu0 %v24447_v53, %s25707_s11 }
0x1ccc   : > { %12812 = vrot.lane.b32.xlu1 %v24453_v3, %s25707_s11  ;;  %v12505_v19 = vpop.permute.xlu1 %12504 }
0x1ccd   : > { %v12513_v49 = vsel %vm6140_vm10, %v12503_v42, %v12505_v19 }
0x1cce   : > { %12814 = vrot.lane.b32.xlu0 %v24455_v7, %s25707_s11  ;;  %19458 = vmatprep.subr.msk.bf16.mxu0 %vm2215_vm4, %v12513_v49  ;;  %v12507_v57 = vpop.permute.xlu0 %12506  ;;  %v21651_v49 = vld [vmem:[%s22855_s6 + $0x8a4] ss:$48 sps:$4 sm:$0xff]  }
0x1ccf   : > { %12554 = vmatpush1.bf16.msra.mxu0 %v12522_v58  ;;  %v12514_v62 = vsel %vm6140_vm10, %v12505_v19, %v12507_v57  ;;  %v21649_v19 = vld [vmem:[%s22855_s6 + $0x8a0] ss:$48 sps:$4 sm:$0xff]  }
0x1cd0   : > { %12816 = vrot.lane.b32.xlu1 %v24461_v51, %s25707_s11  ;;  %v12528_v0 = vsel %vm2215_vm4, %v12514_v62, 0  ;;  %v21652_v58 = vld [vmem:[%s22855_s6 + $0x840] ss:$48 sps:$4 sm:$0xff]   ;;  %v21660_v62 = vld [vmem:[%s22855_s6 + $0x7e4] ss:$48 sps:$4 sm:$0xff]  }
0x1cd2   : > { %12818 = vrot.lane.b32.xlu0 %v24463_v26, %s25707_s11  ;;  %19459 = vmatmul.mubr.msk.bf16.vlgmr.msra.gmra.mxu0 %vm12517_vm11, %v19457_v59 }
0x1cd3   : > { %12612 = vmatprep.mubr.bf16.mxu0 %v22555_v2 }
0x1cd4   : > { %12977 = vrot.lane.b32.xlu1 %v24445_v13, %s25700_s3 }
0x1cd6   : > { %12979 = vrot.lane.b32.xlu0 %v24447_v53, %s25700_s3 }
0x1cd8   : > { %12981 = vrot.lane.b32.xlu1 %v24453_v3, %s25700_s3 }
0x1cda   : > { %12983 = vrot.lane.b32.xlu0 %v24455_v7, %s25700_s3 }
0x1cdc   : > { %12985 = vrot.lane.b32.xlu1 %v24461_v51, %s25700_s3 }
0x1cde   : > { %12987 = vrot.lane.b32.xlu0 %v24463_v26, %s25700_s3  ;;  %s25732_s3 = sld [smem:[#allocation45_spill]] }
0x1ce0   : > { %13146 = vrot.lane.b32.xlu1 %v24445_v13, %s25699_s2  ;;  %v12491_v13 = vld [vmem:[%s25729_s16] sm:$0x3] }
0x1ce2   : > { %13148 = vrot.lane.b32.xlu0 %v24447_v53, %s25699_s2 }
0x1ce4   : > { %13150 = vrot.lane.b32.xlu1 %v24453_v3, %s25699_s2 }
0x1ce6   : > { %13152 = vrot.lane.b32.xlu0 %v24455_v7, %s25699_s2 }
0x1ce8   : > { %13154 = vrot.lane.b32.xlu1 %v24461_v51, %s25699_s2 }
0x1cea   : > { %13156 = vrot.lane.b32.xlu0 %v24463_v26, %s25699_s2 }
0x1cec   : > { %13316 = vperm.xlu1 %20895, %v13313_v60   ;;  %v21655_v60 = vld [vmem:[%s22855_s6 + $0x2a0] ss:$48 sps:$4 sm:$0xff]  }
0x1cee   : > { %13328 = vperm.xlu0 %20896, %v13325_v45   ;;  %v21657_v45 = vld [vmem:[%s22855_s6 + $0x2a4] ss:$48 sps:$4 sm:$0xff]  }
0x1d36   : > { %v12509_v24 = vpop.permute.xlu1 %12508 }
0x1d37   : > { %v12515_v63 = vsel %vm6140_vm10, %v12507_v57, %v12509_v24  ;;  %v21658_v57 = vld [vmem:[%s22855_s6 + $0x7e0] ss:$48 sps:$4 sm:$0xff]  }
0x1d38   : > { %v12511_v4 = vpop.permute.xlu0 %12510  ;;  %19460 = vmatprep.subr.msk.bf16.mxu0 %vm2215_vm4, %v12515_v63  ;;  %v21661_v63 = vld [vmem:[%s22855_s6 + $0x240] ss:$48 sps:$4 sm:$0xff]  }
0x1d39   : > { %v12516_v5 = vsel %vm6140_vm10, %v12509_v24, %v12511_v4  ;;  %12595 = vmatpush1.bf16.msra.mxu0 %v12528_v0  ;;  %v21663_v24 = vld [vmem:[%s22855_s6 + $0x244] ss:$48 sps:$4 sm:$0xff]  }
0x1d3a   : > { %19462 = vmatprep.subr.msk.bf16.mxu0 %vm2215_vm4, %v12511_v4  ;;  %v12809_v6 = vpop.permute.xlu1 %12808  ;;  %v12534_v10 = vsel %vm2215_vm4, %v12516_v5, 0  ;;  %v21666_v0 = vld [vmem:[%s22855_s6 + $0x784] ss:$48 sps:$4 sm:$0xff]   ;;  %v21664_v4 = vld [vmem:[%s22855_s6 + $0x780] ss:$48 sps:$4 sm:$0xff]  }
0x1d3b   : > { %v21667_v5 = vld [vmem:[%s22855_s6 + $0x1e0] ss:$48 sps:$4 sm:$0xff]  }
0x1d3c   : > { %v12811_v11 = vpop.permute.xlu0 %12810  ;;  %19461 = vmatmul.mubr.msk.bf16.vlgmr.msra.gmra.mxu0 %vm12517_vm11, %v19457_v59 }
0x1d3d   : > { %12636 = vmatpush1.bf16.msra.mxu0 %v12534_v10  ;;  %12653 = vmatprep.mubr.bf16.mxu0 %v22555_v2  ;;  %v12820_v48 = vsel %vm6248_vm13, %v12809_v6, %v12811_v11  ;;  %v21669_v6 = vld [vmem:[%s22855_s6 + $0x1e4] ss:$48 sps:$4 sm:$0xff]  }
0x1d3e   : > { %19464 = vmatprep.subr.msk.bf16.mxu0 %vm2215_vm4, %v24447_v53  ;;  %v12813_v46 = vpop.permute.xlu1 %12812  ;;  %v24536_v53 = vld [vmem:[%s25729_s16 + $0x4] sm:$0x3]  ;;  %v12829_v1 = vsel %vm2215_vm4, %v12820_v48, 0  ;;  %v21709_v48 = vld [vmem:[%s22855_s6 + $0x540] ss:$48 sps:$4 sm:$0xff]  }
0x1d3f   : > { %v12821_v61 = vsel %vm6248_vm13, %v12811_v11, %v12813_v46  ;;  %v21670_v11 = vld [vmem:[%s22855_s6 + $0x720] ss:$48 sps:$4 sm:$0xff]  }
0x1d40   : > { %v12815_v41 = vpop.permute.xlu0 %12814 }
0x1d41   : > { %v12822_v12 = vsel %vm6248_vm13, %v12813_v46, %v12815_v41  ;;  %v21672_v46 = vld [vmem:[%s22855_s6 + $0x724] ss:$48 sps:$4 sm:$0xff]  }
0x1d42   : > { %v24526_v33 = vpop.permute.xlu1 %12816  ;;  %v12835_v16 = vsel %vm2215_vm4, %v12822_v12, 0  ;;  %v21675_v12 = vld [vmem:[%s22855_s6 + $0x184] ss:$48 sps:$4 sm:$0xff]  }
0x1d43   : > { %v12823_v9 = vsel %vm6248_vm13, %v12815_v41, %v24526_v33 }
0x1d44   : > { %v12819_v14 = vpop.permute.xlu0 %12818  ;;  %19463 = vmatmul.mubr.msk.bf16.vlgmr.msra.gmra.mxu0 %vm12517_vm11, %v19457_v59  ;;  %19473 = vmatprep.subr.msk.bf16.mxu1 %vm2215_vm4, %v12823_v9  ;;  %v21654_v59 = vld [vmem:[%s22855_s6 + $0x844] ss:$48 sps:$4 sm:$0xff]  }
0x1d45   : > { %12698 = vmatpush1.bf16.msra.mxu0 %v12666_v55  ;;  %12902 = vmatpush1.bf16.msra.mxu1 %v12835_v16  ;;  %v12824_v47 = vsel %vm6248_vm13, %v24526_v33, %v12819_v14  ;;  %v21673_v33 = vld [vmem:[%s22855_s6 + $0x180] ss:$48 sps:$4 sm:$0xff]   ;;  %v21678_v16 = vld [vmem:[%s22855_s6 + $0x6c4] ss:$48 sps:$4 sm:$0xff]  }
0x1d46   : > { %19466 = vmatprep.subr.msk.bf16.mxu0 %vm2215_vm4, %v24455_v7  ;;  %v12978_v17 = vpop.permute.xlu1 %12977  ;;  %12715 = vmatprep.mubr.bf16.mxu0 %v22555_v2  ;;  %v12841_v39 = vsel %vm2215_vm4, %v12824_v47, 0  ;;  %v21723_v47 = vld [vmem:[%s22855_s6 + $0x484] ss:$48 sps:$4 sm:$0xff]  }
0x1d48   : > { %v12980_v21 = vpop.permute.xlu0 %12979  ;;  %19474 = vmatmul.mubr.msk.bf16.vlgmr.msra.gmra.mxu1 %vm12517_vm11, %v24536_v53 }
0x1d49   : > { %v12989_v20 = vsel %vm6308_vm12, %v12978_v17, %v12980_v21  ;;  %13047 = vmatprep.mubr.bf16.mxu1 %v22555_v2  ;;  %v21679_v17 = vld [vmem:[%s22855_s6 + $0x120] ss:$48 sps:$4 sm:$0xff]  }
0x1d4a   : > { %v12982_v22 = vpop.permute.xlu1 %12981  ;;  %v12998_v25 = vsel %vm2215_vm4, %v12989_v20, 0  ;;  %v21684_v20 = vld [vmem:[%s22855_s6 + $0x664] ss:$48 sps:$4 sm:$0xff]  }
0x1d4b   : > { %v12990_v23 = vsel %vm6308_vm12, %v12980_v21, %v12982_v22  ;;  %v21682_v21 = vld [vmem:[%s22855_s6 + $0x660] ss:$48 sps:$4 sm:$0xff]  }
0x1d4c   : > { %v12984_v8 = vpop.permute.xlu0 %12983  ;;  %19465 = vmatmul.mubr.msk.bf16.vlgmr.msra.gmra.mxu0 %vm12517_vm11, %v12491_v13  ;;  %19478 = vmatprep.subr.msk.bf16.mxu1 %vm2215_vm4, %v12990_v23  ;;  %v21690_v23 = vld [vmem:[%s22855_s6 + $0x604] ss:$48 sps:$4 sm:$0xff]  }
0x1d4d   : > { %12739 = vmatpush1.bf16.msra.mxu0 %v12672_v43  ;;  %13030 = vmatpush1.bf16.msra.mxu1 %v12998_v25  ;;  %v12991_v51 = vsel %vm6308_vm12, %v12982_v22, %v12984_v8  ;;  %v21685_v22 = vld [vmem:[%s22855_s6 + $0xc0] ss:$48 sps:$4 sm:$0xff]   ;;  %v21693_v43 = vld [vmem:[%s22855_s6 + $0x64] ss:$48 sps:$4 sm:$0xff]  }
0x1d4e   : > { %19468 = vmatprep.subr.msk.bf16.mxu0 %vm2215_vm4, %v24463_v26  ;;  %v12986_v37 = vpop.permute.xlu1 %12985  ;;  %12756 = vmatprep.mubr.bf16.mxu0 %v22555_v2  ;;  %v13004_v38 = vsel %vm2215_vm4, %v12991_v51, 0  ;;  %v21688_v25 = vld [vmem:[%s22855_s6 + $0x600] ss:$48 sps:$4 sm:$0xff]  }
0x1d4f   : > { %v12992_v50 = vsel %vm6308_vm12, %v12984_v8, %v12986_v37  ;;  %v21691_v8 = vld [vmem:[%s22855_s6 + $0x60] ss:$48 sps:$4 sm:$0xff]  }
0x1d50   : > { %v12988_v28 = vpop.permute.xlu0 %12987  ;;  %19479 = vmatmul.mubr.msk.bf16.vlgmr.msra.gmra.mxu1 %vm12517_vm11, %v19477_v27  ;;  %v21724_v51 = vld [vmem:[%s22855_s6 + $0x9c0] ss:$48 sps:$4 sm:$0xff]  }
0x1d51   : > { %v12993_v29 = vsel %vm6308_vm12, %v12986_v37, %v12988_v28  ;;  %19482 = vmatprep.subr.msk.bf16.mxu1 %vm2215_vm4, %v12988_v28  ;;  %13129 = vmatprep.mubr.bf16.mxu1 %v22555_v2  ;;  %v21696_v37 = vld [vmem:[%s22855_s6 + $0xba4] ss:$48 sps:$4 sm:$0xff]  }
0x1d52   : > { %v13010_v3 = vsel %vm2215_vm4, %v12993_v29, 0  ;;  %v13147_v30 = vpop.permute.xlu1 %13146  ;;  %v21699_v28 = vld [vmem:[%s22855_s6 + $0x4] ss:$48 sps:$4 sm:$0xff]   ;;  %v21697_v29 = vld [vmem:[%s22855_s6] ss:$48 sps:$4 sm:$0xff]  }
0x1d53   : > { %13112 = vmatpush1.bf16.msra.mxu1 %v13010_v3  ;;  %v21702_v3 = vld [vmem:[%s22855_s6 + $0xb44] ss:$48 sps:$4 sm:$0xff]  }
0x1d54   : > { %v13149_v7 = vpop.permute.xlu0 %13148  ;;  %19467 = vmatmul.mubr.msk.bf16.vlgmr.msra.gmra.mxu0 %vm12517_vm11, %v12491_v13 }
0x1d55   : > { %12780 = vmatpush1.bf16.msra.mxu0 %v12678_v34  ;;  %12797 = vmatprep.mubr.bf16.mxu0 %v22555_v2  ;;  %v13158_v26 = vsel %vm6368_vm15, %v13147_v30, %v13149_v7  ;;  %v21700_v30 = vld [vmem:[%s22855_s6 + $0xb40] ss:$48 sps:$4 sm:$0xff]  }
0x1d56   : > { %19471 = vmatprep.subr.msk.bf16.mxu0 %vm2215_vm4, %v12821_v61  ;;  %v13151_v35 = vpop.permute.xlu1 %13150  ;;  %v13167_v52 = vsel %vm2215_vm4, %v13158_v26, 0  ;;  %v21703_v34 = vld [vmem:[%s22855_s6 + $0x5a0] ss:$48 sps:$4 sm:$0xff]   ;;  %v21732_v26 = vld [vmem:[%s22855_s6 + $0x964] ss:$48 sps:$4 sm:$0xff]  }
0x1d57   : > { %v13159_v36 = vsel %vm6368_vm15, %v13149_v7, %v13151_v35  ;;  %v21705_v7 = vld [vmem:[%s22855_s6 + $0x5a4] ss:$48 sps:$4 sm:$0xff]   ;;  %v21706_v61 = vld [vmem:[%s22855_s6 + $0xae0] ss:$48 sps:$4 sm:$0xff]  }
0x1d58   : > { %v13153_v40 = vpop.permute.xlu0 %13152  ;;  %19483 = vmatmul.mubr.msk.bf16.vlgmr.msra.gmra.mxu1 %vm12517_vm11, %v19477_v27 }
0x1d59   : > { %v13160_v44 = vsel %vm6368_vm15, %v13151_v35, %v13153_v40  ;;  %13257 = vmatprep.mubr.bf16.mxu1 %v22555_v2  ;;  %v21708_v35 = vld [vmem:[%s22855_s6 + $0xae4] ss:$48 sps:$4 sm:$0xff]  }
0x1d5a   : > { %v13155_v31 = vpop.permute.xlu1 %13154  ;;  %v13173_v32 = vsel %vm2215_vm4, %v13160_v44, 0  ;;  %v21714_v44 = vld [vmem:[%s22855_s6 + $0xa84] ss:$48 sps:$4 sm:$0xff]  }
0x1d5b   : > { %v13161_v15 = vsel %vm6368_vm15, %v13153_v40, %v13155_v31  ;;  %v21711_v40 = vld [vmem:[%s22855_s6 + $0x544] ss:$48 sps:$4 sm:$0xff]  }
0x1d5c   : > { %19469 = vmatmul.mubr.msk.bf16.vlgmr.msra.gmra.mxu0 %vm12517_vm11, %v12491_v13  ;;  %19487 = vmatprep.subr.msk.bf16.mxu1 %vm2215_vm4, %v13161_v15  ;;  %v13157_v56 = vpop.permute.xlu0 %13156  ;;  %v21687_v13 = vld [vmem:[%s22855_s6 + $0xc4] ss:$48 sps:$4 sm:$0xff]  }
0x1d5d   : > { %12861 = vmatpush1.bf16.msra.mxu0 %v12829_v1  ;;  %13240 = vmatpush1.bf16.msra.mxu1 %v13173_v32  ;;  %v13162_v42 = vsel %vm6368_vm15, %v13155_v31, %v13157_v56  ;;  %v21712_v31 = vld [vmem:[%s22855_s6 + $0xa80] ss:$48 sps:$4 sm:$0xff]   ;;  %v21717_v15 = vld [vmem:[%s22855_s6 + $0x4e4] ss:$48 sps:$4 sm:$0xff]  }
0x1d5e   : > { %19475 = vmatprep.subr.msk.bf16.mxu0 %vm2215_vm4, %v12819_v14  ;;  %12878 = vmatprep.mubr.bf16.mxu0 %v22555_v2  ;;  %v13179_v54 = vsel %vm2215_vm4, %v13162_v42, 0  ;;  %v21676_v14 = vld [vmem:[%s22855_s6 + $0x6c0] ss:$48 sps:$4 sm:$0xff]  }
0x1d5f   : > { %16737 = vmatprep.subr.bf16.mxu1 %v21657_v45  ;;  %v21715_v1 = vld [vmem:[%s22855_s6 + $0x4e0] ss:$48 sps:$4 sm:$0xff]  }
0x1d60   : > { %19488 = vmatmul.mubr.msk.bf16.vlgmr.msra.gmra.mxu1 %vm12517_vm11, %v19484_v18  ;;  %v21718_v32 = vld [vmem:[%s22855_s6 + $0xa20] ss:$48 sps:$4 sm:$0xff]  }
0x1d61   : > { %16738 = vmatpush1.bf16.msra.mxu1 %v21655_v60  ;;  %v21733_v42 = vld [vmem:[%s22855_s6 + $0x3c0] ss:$48 sps:$4 sm:$0xff]   ;;  %v21747_v60 = vld [vmem:[%s22855_s6 + $0x304] ss:$48 sps:$4 sm:$0xff]  }
0x1d62   : > { %16739 = vmatprep.subr.bf16.mxu1 %v21663_v24  ;;  %v21745_v45 = vld [vmem:[%s22855_s6 + $0x300] ss:$48 sps:$4 sm:$0xff]  }
0x1d64   : > { %19472 = vmatmul.mubr.msk.bf16.vlgmr.msra.gmra.mxu0 %vm12517_vm11, %v24536_v53 }
0x1d65   : > { %12943 = vmatpush1.bf16.msra.mxu0 %v12841_v39  ;;  %12960 = vmatprep.mubr.bf16.mxu0 %v22555_v2  ;;  %v21721_v39 = vld [vmem:[%s22855_s6 + $0x480] ss:$48 sps:$4 sm:$0xff]  }
0x1d66   : > { %19480 = vmatprep.subr.msk.bf16.mxu0 %vm2215_vm4, %v12992_v50  ;;  %16740 = vmatpush1.bf16.msra.mxu1 %v21661_v63  ;;  %v21726_v50 = vld [vmem:[%s22855_s6 + $0x9c4] ss:$48 sps:$4 sm:$0xff]  }
0x1d67   : > { %16741 = vmatprep.subr.bf16.mxu1 %v21669_v6 }
0x1d6a   : > { %16742 = vmatpush1.bf16.msra.mxu1 %v21667_v5 }
0x1d6b   : > { %16743 = vmatprep.subr.bf16.mxu1 %v21675_v12 }
0x1d6c   : > { %19476 = vmatmul.mubr.msk.bf16.vlgmr.msra.gmra.mxu0 %vm12517_vm11, %v24536_v53  ;;  %v21681_v53 = vld [vmem:[%s22855_s6 + $0x124] ss:$48 sps:$4 sm:$0xff]  }
0x1d6d   : > { %13071 = vmatpush1.bf16.msra.mxu0 %v13004_v38  ;;  %13088 = vmatprep.mubr.bf16.mxu0 %v22555_v2  ;;  %v21729_v38 = vld [vmem:[%s22855_s6 + $0x424] ss:$48 sps:$4 sm:$0xff]  }
0x1d6e   : > { %19485 = vmatprep.subr.msk.bf16.mxu0 %vm2215_vm4, %v13159_v36  ;;  %16744 = vmatpush1.bf16.msra.mxu1 %v21673_v33  ;;  %v21727_v36 = vld [vmem:[%s22855_s6 + $0x420] ss:$48 sps:$4 sm:$0xff]  }
0x1d6f   : > { %16745 = vmatprep.subr.bf16.mxu1 %v21681_v53 }
0x1d72   : > { %16746 = vmatpush1.bf16.msra.mxu1 %v21679_v17 }
0x1d73   : > { %16747 = vmatprep.subr.bf16.mxu1 %v21687_v13 }
0x1d74   : > { %19481 = vmatmul.mubr.msk.bf16.vlgmr.msra.gmra.mxu0 %vm12517_vm11, %v19477_v27  ;;  %v21694_v27 = vld [vmem:[%s22855_s6 + $0xba0] ss:$48 sps:$4 sm:$0xff]  }
0x1d75   : > { %13199 = vmatpush1.bf16.msra.mxu0 %v13167_v52  ;;  %13216 = vmatprep.mubr.bf16.mxu0 %v22555_v2  ;;  %v21730_v52 = vld [vmem:[%s22855_s6 + $0x960] ss:$48 sps:$4 sm:$0xff]  }
0x1d76   : > { %19489 = vmatprep.subr.msk.bf16.mxu0 %vm2215_vm4, %v13157_v56  ;;  %16748 = vmatpush1.bf16.msra.mxu1 %v21685_v22  ;;  %v21735_v56 = vld [vmem:[%s22855_s6 + $0x3c4] ss:$48 sps:$4 sm:$0xff]  }
0x1d77   : > { %16749 = vmatprep.subr.bf16.mxu1 %v21693_v43 }
0x1d7a   : > { %16750 = vmatpush1.bf16.msra.mxu1 %v21691_v8 }
0x1d7b   : > { %16751 = vmatprep.subr.bf16.mxu1 %v21699_v28 }
0x1d7c   : > { %19486 = vmatmul.mubr.msk.bf16.vlgmr.msra.gmra.mxu0 %vm12517_vm11, %v19484_v18 }
0x1d7d   : > { %13281 = vmatpush1.bf16.msra.mxu0 %v13179_v54  ;;  %13298 = vmatprep.mubr.bf16.mxu0 %v22555_v2  ;;  %v21738_v54 = vld [vmem:[%s22855_s6 + $0x904] ss:$48 sps:$4 sm:$0xff]  }
0x1d7e   : > { %16778 = vmatprep.subr.bf16.mxu0 %v21651_v49  ;;  %16752 = vmatpush1.bf16.msra.mxu1 %v21697_v29  ;;  %v21741_v49 = vld [vmem:[%s22855_s6 + $0x364] ss:$48 sps:$4 sm:$0xff]  }
0x1d7f   : > { %16753 = vmatprep.subr.bf16.mxu1 %v21705_v7 }
0x1d82   : > { %16754 = vmatpush2.bf16.msra.mxu1 %v21703_v34 }
0x1d83   : > { %16755 = vmatprep.subr.bf16.mxu1 %v21711_v40 }
0x1d84   : > { %19490 = vmatmul.mubr.msk.bf16.vlgmr.msra.gmra.mxu0 %vm12517_vm11, %v19484_v18  ;;  %v21720_v18 = vld [vmem:[%s22855_s6 + $0xa24] ss:$48 sps:$4 sm:$0xff]  }
0x1d85   : > { %16779 = vmatpush1.bf16.msra.mxu0 %v21649_v19  ;;  %v21736_v19 = vld [vmem:[%s22855_s6 + $0x900] ss:$48 sps:$4 sm:$0xff]  }
0x1d86   : > { %16780 = vmatprep.subr.bf16.mxu0 %v21654_v59  ;;  %16756 = vmatpush2.bf16.msra.mxu1 %v21709_v48  ;;  %v21744_v59 = vld [vmem:[%s22855_s6 + $0x2ac] ss:$48 sps:$4 sm:$0xff]  }
0x1d87   : > { %16757 = vmatprep.subr.bf16.mxu1 %v21717_v15 }
0x1d89   : > { %16781 = vmatpush1.bf16.msra.mxu0 %v21652_v58  ;;  %v21739_v58 = vld [vmem:[%s22855_s6 + $0x360] ss:$48 sps:$4 sm:$0xff]  }
0x1d8a   : > { %16782 = vmatprep.subr.bf16.mxu0 %v21660_v62  ;;  %16758 = vmatpush2.bf16.msra.mxu1 %v21715_v1 }
0x1d8b   : > { %16759 = vmatprep.subr.bf16.mxu1 %v21723_v47 }
0x1d8d   : > { %16783 = vmatpush1.bf16.msra.mxu0 %v21658_v57  ;;  %v21753_v57 = vld [vmem:[%s22855_s6 + $0xea4] ss:$48 sps:$4 sm:$0xff]  }
0x1d8e   : > { %16784 = vmatprep.subr.bf16.mxu0 %v21666_v0  ;;  %16760 = vmatpush2.bf16.msra.mxu1 %v21721_v39 }
0x1d8f   : > { %16761 = vmatprep.subr.bf16.mxu1 %v21729_v38 }
0x1d91   : > { %16785 = vmatpush1.bf16.msra.mxu0 %v21664_v4 }
0x1d92   : > { %v24619_v10 = vpop.f32.mrf.mxu0  ;;  %16786 = vmatprep.subr.bf16.mxu0 %v21672_v46  ;;  %16762 = vmatpush2.bf16.msra.mxu1 %v21727_v36 }
0x1d93   : > { %16763 = vmatprep.subr.bf16.mxu1 %v21735_v56 }
0x1d94   : > { %v24623_v41 = vpop.f32.mrf.mxu0 }
0x1d95   : > { %16787 = vmatpush1.bf16.msra.mxu0 %v21670_v11 }
0x1d96   : > { %v12577_v9 = vpop.f32.mrf.mxu0  ;;  %16788 = vmatprep.subr.bf16.mxu0 %v21678_v16  ;;  %16764 = vmatpush2.bf16.msra.mxu1 %v21733_v42 }
0x1d97   : > { %16765 = vmatprep.subr.bf16.mxu1 %v21741_v49 }
0x1d98   : > { %v12578_v55 = vpop.f32.mrf.mxu0 }
0x1d99   : > { %16789 = vmatpush1.bf16.msra.mxu0 %v21676_v14 }
0x1d9a   : > { %16790 = vmatprep.subr.bf16.mxu0 %v21684_v20  ;;  %16766 = vmatpush2.bf16.msra.mxu1 %v21739_v58 }
0x1d9b   : > { %16767 = vmatprep.subr.bf16.mxu1 %v21747_v60 }
0x1d9d   : > { %16791 = vmatpush1.bf16.msra.mxu0 %v21682_v21 }
0x1d9e   : > { %16792 = vmatprep.subr.bf16.mxu0 %v21690_v23  ;;  %16768 = vmatpush2.bf16.msra.mxu1 %v21745_v45  ;;  %v24683_v45 = vpop.permute.xlu1 %13316 }
0x1d9f   : > { %16819 = vmatprep.subr.bf16.mxu1 %v21753_v57 }
0x1da1   : > { %16793 = vmatpush1.bf16.msra.mxu0 %v21688_v25 }
0x1da2   : > { %16794 = vmatprep.subr.bf16.mxu0 %v21696_v37 }
0x1da5   : > { %16795 = vmatpush2.bf16.msra.mxu0 %v21694_v27 }
0x1da6   : > { %16796 = vmatprep.subr.bf16.mxu0 %v21702_v3 }
0x1da9   : > { %16797 = vmatpush2.bf16.msra.mxu0 %v21700_v30 }
0x1daa   : > { %16798 = vmatprep.subr.bf16.mxu0 %v21708_v35 }
0x1dad   : > { %16799 = vmatpush2.bf16.msra.mxu0 %v21706_v61 }
0x1dae   : > { %16800 = vmatprep.subr.bf16.mxu0 %v21714_v44 }
0x1db1   : > { %16801 = vmatpush2.bf16.msra.mxu0 %v21712_v31 }
0x1db2   : > { %16802 = vmatprep.subr.bf16.mxu0 %v21720_v18 }
0x1db5   : > { %16803 = vmatpush2.bf16.msra.mxu0 %v21718_v32 }
0x1db6   : > { %16804 = vmatprep.subr.bf16.mxu0 %v21726_v50 }
0x1db9   : > { %16805 = vmatpush2.bf16.msra.mxu0 %v21724_v51 }
0x1dba   : > { %16806 = vmatprep.subr.bf16.mxu0 %v21732_v26 }
0x1dbd   : > { %16807 = vmatpush2.bf16.msra.mxu0 %v21730_v52 }
0x1dbe   : > { %16808 = vmatprep.subr.bf16.mxu0 %v21738_v54 }
0x1dc1   : > { %16809 = vmatpush2.bf16.msra.mxu0 %v21736_v19 }
0x1dc2   : > { %16860 = vmatprep.subr.bf16.mxu0 %v21744_v59 }
0x1dfc   : > { %v12614_v62 = vpop.f32.mrf.mxu0 }
0x1dfe   : > { %v12616_v24 = vpop.f32.mrf.mxu0 }
0x1e00   : > { %v12618_v63 = vpop.f32.mrf.mxu0 }
0x1e02   : > { %v12619_v0 = vpop.f32.mrf.mxu0 }
0x1e03   : > { %v24686_v0 = vpop.permute.xlu0 %13328 }
0x1e04   : > { %v12655_v4 = vpop.f32.mrf.mxu0 }
0x1e06   : > { %v24675_v5 = vpop.f32.mrf.mxu0 }
0x1e08   : > { %v12659_v6 = vpop.f32.mrf.mxu0  ;;  %v12921_v11 = vpop.f32.mrf.mxu1 }
0x1e0a   : > { %v12660_v46 = vpop.f32.mrf.mxu0  ;;  %v12923_v12 = vpop.f32.mrf.mxu1 }
0x1e0c   : > { %v12717_v33 = vpop.f32.mrf.mxu0  ;;  %v12925_v9 = vpop.f32.mrf.mxu1 }
0x1e0d   : > { %v12718_v56 = vadd.f32 %v12717_v33, %v24619_v10 }
0x1e0e   : > { %v12719_v16 = vpop.f32.mrf.mxu0  ;;  %v12926_v14 = vpop.f32.mrf.mxu1 }
0x1e0f   : > { %v12720_v49 = vadd.f32 %v12719_v16, %v24623_v41 }
0x1e10   : > { %v12721_v55 = vpop.f32.mrf.mxu0  ;;  %v13049_v53 = vpop.f32.mrf.mxu1 }
0x1e12   : > { %v12722_v17 = vpop.f32.mrf.mxu0  ;;  %v13051_v21 = vpop.f32.mrf.mxu1 }
0x1e14   : > { %v12758_v20 = vpop.f32.mrf.mxu0  ;;  %v13053_v13 = vpop.f32.mrf.mxu1 }
0x1e15   : > { %v12759_v39 = vadd.f32 %v12758_v20, %v12614_v62 }
0x1e16   : > { %v12760_v22 = vpop.f32.mrf.mxu0  ;;  %v13054_v23 = vpop.f32.mrf.mxu1 }
0x1e17   : > { %v12761_v38 = vadd.f32 %v12760_v22, %v12616_v24  ;;  %v12971_v26 = vadd.f32 %v12921_v11, %v12759_v39  ;;  %v21757_v39 = vld [vmem:[%s22855_s6 + $0xe40] ss:$48 sps:$4 sm:$0xff]  }
0x1e18   : > { %v12762_v25 = vpop.f32.mrf.mxu0  ;;  %v13131_v8 = vpop.f32.mrf.mxu1 }
0x1e19   : > { %v12972_v42 = vadd.f32 %v12923_v12, %v12761_v38  ;;  %v21742_v25 = vld [vmem:[%s22855_s6 + $0x2a8] ss:$48 sps:$4 sm:$0xff]  }
0x1e1a   : > { %v12763_v43 = vpop.f32.mrf.mxu0  ;;  %v24677_v27 = vpop.f32.mrf.mxu1 }
0x1e1c   : > { %v12799_v37 = vpop.f32.mrf.mxu0  ;;  %v13135_v28 = vpop.f32.mrf.mxu1 }
0x1e1d   : > { %v12800_v29 = vadd.f32 %v12799_v37, %v12655_v4 }
0x1e1e   : > { %v12801_v3 = vpop.f32.mrf.mxu0  ;;  %v13136_v30 = vpop.f32.mrf.mxu1 }
0x1e1f   : > { %v12802_v14 = vadd.f32 %v12801_v3, %v24675_v5  ;;  %v21750_v5 = vld [vmem:[%s22855_s6 + $0x24c] ss:$48 sps:$4 sm:$0xff]  }
0x1e20   : > { %v12803_v7 = vpop.f32.mrf.mxu0  ;;  %v13259_v34 = vpop.f32.mrf.mxu1 }
0x1e21   : > { %v21748_v7 = vld [vmem:[%s22855_s6 + $0x248] ss:$48 sps:$4 sm:$0xff]  }
0x1e22   : > { %v12804_v61 = vpop.f32.mrf.mxu0  ;;  %v13261_v35 = vpop.f32.mrf.mxu1 }
0x1e24   : > { %v12880_v40 = vpop.f32.mrf.mxu0  ;;  %v13263_v48 = vpop.f32.mrf.mxu1 }
0x1e25   : > { %v12969_v58 = vadd.f32 %v12880_v40, %v12718_v56  ;;  %v21751_v40 = vld [vmem:[%s22855_s6 + $0xea0] ss:$48 sps:$4 sm:$0xff]   ;;  %v21756_v48 = vld [vmem:[%s22855_s6 + $0x1ec] ss:$48 sps:$4 sm:$0xff]  }
0x1e26   : > { %v12882_v44 = vpop.f32.mrf.mxu0  ;;  %v13264_v31 = vpop.f32.mrf.mxu1  ;;  %v21763_v56 = vld [vmem:[%s22855_s6 + $0xde0] ss:$48 sps:$4 sm:$0xff]  }
0x1e27   : > { %v12970_v62 = vadd.f32 %v12882_v44, %v12720_v49  ;;  %v13138_v6 = vadd.f32 %v13049_v53, %v12969_v58  ;;  %v21759_v31 = vld [vmem:[%s22855_s6 + $0xe44] ss:$48 sps:$4 sm:$0xff]   ;;  %v21769_v49 = vld [vmem:[%s22855_s6 + $0xd80] ss:$48 sps:$4 sm:$0xff]  }
0x1e28   : > { %v12884_v15 = vpop.f32.mrf.mxu0  ;;  %v21777_v58 = vld [vmem:[%s22855_s6 + $0xd24] ss:$48 sps:$4 sm:$0xff]  }
0x1e29   : > { %v13139_v46 = vadd.f32 %v13051_v21, %v12970_v62  ;;  %v21783_v62 = vld [vmem:[%s22855_s6 + $0xcc4] ss:$48 sps:$4 sm:$0xff]  }
0x1e2a   : > { %v12885_v1 = vpop.f32.mrf.mxu0 }
0x1e2b   : > { %v21754_v1 = vld [vmem:[%s22855_s6 + $0x1e8] ss:$48 sps:$4 sm:$0xff]  }
0x1e2c   : > { %v12962_v32 = vpop.f32.mrf.mxu0 }
0x1e2d   : > { %v12973_v18 = vadd.f32 %v12962_v32, %v12800_v29  ;;  %v21762_v32 = vld [vmem:[%s22855_s6 + $0x18c] ss:$48 sps:$4 sm:$0xff]  }
0x1e2e   : > { %v12964_v47 = vpop.f32.mrf.mxu0 }
0x1e2f   : > { %v24679_v50 = vadd.f32 %v13131_v8, %v12973_v18  ;;  %v12974_v13 = vadd.f32 %v12964_v47, %v12802_v14 }
0x1e30   : > { %v12966_v51 = vpop.f32.mrf.mxu0 }
0x1e31   : > { %v13143_v3 = vadd.f32 %v24677_v27, %v12974_v13  ;;  %v21765_v51 = vld [vmem:[%s22855_s6 + $0xde4] ss:$48 sps:$4 sm:$0xff]  }
0x1e32   : > { %v12967_v36 = vpop.f32.mrf.mxu0  ;;  %v21806_v13 = vld [vmem:[%s22855_s6 + $0x10e4] ss:$48 sps:$4 sm:$0xff]  }
0x1e33   : > { %v21760_v36 = vld [vmem:[%s22855_s6 + $0x188] ss:$48 sps:$4 sm:$0xff]  }
0x1e34   : > { %v13090_v52 = vpop.f32.mrf.mxu0 }
0x1e35   : > { %v13140_v54 = vadd.f32 %v13090_v52, %v12971_v26  ;;  %v21768_v26 = vld [vmem:[%s22855_s6 + $0x12c] ss:$48 sps:$4 sm:$0xff]  }
0x1e36   : > { %v13092_v19 = vpop.f32.mrf.mxu0 }
0x1e37   : > { %v13141_v59 = vadd.f32 %v13092_v19, %v12972_v42  ;;  %v13309_v60 = vadd.f32 %v13259_v34, %v13140_v54  ;;  %v21771_v42 = vld [vmem:[%s22855_s6 + $0xd84] ss:$48 sps:$4 sm:$0xff]   ;;  %v21766_v54 = vld [vmem:[%s22855_s6 + $0x128] ss:$48 sps:$4 sm:$0xff]   ;;  %v21774_v19 = vld [vmem:[%s22855_s6 + $0xcc] ss:$48 sps:$4 sm:$0xff]  }
0x1e38   : > { %v13094_v57 = vpop.f32.mrf.mxu0 }
0x1e39   : > { %v13321_v63 = vmul.f32 %v24683_v45, %v13309_v60  ;;  %v13310_v24 = vadd.f32 %v13261_v35, %v13141_v59  ;;  %v21772_v59 = vld [vmem:[%s22855_s6 + $0xc8] ss:$48 sps:$4 sm:$0xff]   ;;  %v21780_v60 = vld [vmem:[%s22855_s6 + $0x6c] ss:$48 sps:$4 sm:$0xff]   ;;  %v21775_v57 = vld [vmem:[%s22855_s6 + $0xd20] ss:$48 sps:$4 sm:$0xff]  }
0x1e3a   : > { %v13095_v4 = vpop.f32.mrf.mxu0 }
0x1e3b   : > { %v13333_v10 = vadd.f32 %v24686_v0, %v13321_v63  ;;  %v13322_v11 = vmul.f32 %v24683_v45, %v13310_v24  ;;  %v21778_v63 = vld [vmem:[%s22855_s6 + $0x68] ss:$48 sps:$4 sm:$0xff]   ;;  %v21786_v24 = vld [vmem:[%s22855_s6 + $0xc] ss:$48 sps:$4 sm:$0xff]   ;;  %v21781_v4 = vld [vmem:[%s22855_s6 + $0xcc0] ss:$48 sps:$4 sm:$0xff]  }
0x1e3c   : > { %v13218_v41 = vpop.f32.mrf.mxu0 }
0x1e3d   : > { %v13334_v12 = vadd.f32 %v24686_v0, %v13322_v11  ;;  %v13307_v33 = vadd.f32 %v13218_v41, %v13138_v6  ;;  %v13339_v9 = vmax.f32 %v13333_v10, 0.0  ;;  %v21789_v6 = vld [vmem:[%s22855_s6 + $0xc64] ss:$48 sps:$4 sm:$0xff]   ;;  %v21784_v10 = vld [vmem:[%s22855_s6 + $0x8] ss:$48 sps:$4 sm:$0xff]  }
0x1e3e   : > { %v13220_v16 = vpop.f32.mrf.mxu0  ;;  %v21792_v11 = vld [vmem:[%s22855_s6 + $0x5ac] ss:$48 sps:$4 sm:$0xff]   ;;  %v21787_v41 = vld [vmem:[%s22855_s6 + $0xc60] ss:$48 sps:$4 sm:$0xff]  }
0x1e3f   : > { %v13340_v55 = vmax.f32 %v13334_v12, 0.0  ;;  %v13319_v17 = vmul.f32 %v24683_v45, %v13307_v33  ;;  %v13308_v20 = vadd.f32 %v13220_v16, %v13139_v46  ;;  %v24698_v8 = vpack.c.bf16 %v13339_v9, %v13339_v9  ;;  %v21795_v46 = vld [vmem:[%s22855_s6 + $0xc04] ss:$48 sps:$4 sm:$0xff]   ;;  %v21790_v12 = vld [vmem:[%s22855_s6 + $0x5a8] ss:$48 sps:$4 sm:$0xff]  }
0x1e40   : > { %v13222_v53 = vpop.f32.mrf.mxu0  ;;  %v13901_v33 = vld [vmem:[%s22855_s6 + $0x1140] sm:$0x11]  ;;  %v21798_v9 = vld [vmem:[%s22855_s6 + $0x54c] ss:$48 sps:$4 sm:$0xff]  }
0x1e41   : > { %v24693_v22 = vpack.c.bf16 %v13340_v55, %v13340_v55  ;;  %v13331_v23 = vadd.f32 %v24686_v0, %v13319_v17  ;;  %v13320_v21 = vmul.f32 %v24683_v45, %v13308_v20  ;;  %v21793_v16 = vld [vmem:[%s22855_s6 + $0xc00] ss:$48 sps:$4 sm:$0xff]   ;;  %v20044_v14 = vcombine.high %v13901_v33, %v13901_v33  ;;  %v21796_v17 = vld [vmem:[%s22855_s6 + $0x548] ss:$48 sps:$4 sm:$0xff]   ;;  %v21803_v20 = vld [vmem:[%s22855_s6 + $0x4ec] ss:$48 sps:$4 sm:$0xff]  }
0x1e42   : > { %v13223_v43 = vpop.f32.mrf.mxu0  ;;  %v20043_v55 = vcombine.low %v13901_v33, %v13901_v33  ;;  %v21867_v33 = vld [vmem:[%s22855_s6 + $0xcc8] ss:$48 sps:$4 sm:$0xff]  }
0x1e43   : > { %v13332_v37 = vadd.f32 %v24686_v0, %v13320_v21  ;;  %16810 = vmatprep.mubr.bf16.mxu0 %v24693_v22  ;;  %v13337_v28 = vmax.f32 %v13331_v23, 0.0  ;;  %v21801_v23 = vld [vmem:[%s22855_s6 + $0x4e8] ss:$48 sps:$4 sm:$0xff]   ;;  %v21809_v21 = vld [vmem:[%s22855_s6 + $0x48c] ss:$48 sps:$4 sm:$0xff]  }
0x1e44   : > { %v24703_v29 = vpop.f32.mrf.mxu0  ;;  %16811 = vmatmul.mubr.bf16.vlgmr.msra.gmra.mxu0 %v24698_v8  ;;  %v16702_v53 = vsel %vm1696_vm0, %v20043_v55, 0  ;;  %v21812_v43 = vld [vmem:[%s22855_s6 + $0x1084] ss:$48 sps:$4 sm:$0xff]   ;;  %v21873_v55 = vld [vmem:[%s22855_s6 + $0xc68] ss:$48 sps:$4 sm:$0xff]  }
0x1e45   : > { %v13338_v30 = vmax.f32 %v13332_v37, 0.0  ;;  %16861 = vmatpush1.bf16.msra.mxu0 %v21742_v25  ;;  %v24712_v44 = vpack.c.bf16 %v13337_v28, %v13337_v28  ;;  %v21804_v25 = vld [vmem:[%s22855_s6 + $0x10e0] ss:$48 sps:$4 sm:$0xff]   ;;  %v21815_v37 = vld [vmem:[%s22855_s6 + $0x42c] ss:$48 sps:$4 sm:$0xff]  }
0x1e46   : > { %v13302_v34 = vpop.f32.mrf.mxu0  ;;  %16862 = vmatprep.subr.bf16.mxu0 %v21750_v5  ;;  %v21807_v5 = vld [vmem:[%s22855_s6 + $0x488] ss:$48 sps:$4 sm:$0xff]   ;;  %v21810_v28 = vld [vmem:[%s22855_s6 + $0x1080] ss:$48 sps:$4 sm:$0xff]  }
0x1e47   : > { %v24708_v61 = vpack.c.bf16 %v13338_v30, %v13338_v30  ;;  %v13312_v35 = vadd.f32 %v13302_v34, %v13143_v3  ;;  %v21818_v3 = vld [vmem:[%s22855_s6 + $0x1024] ss:$48 sps:$4 sm:$0xff]   ;;  %v21813_v30 = vld [vmem:[%s22855_s6 + $0x428] ss:$48 sps:$4 sm:$0xff]   ;;  %v21816_v34 = vld [vmem:[%s22855_s6 + $0x1020] ss:$48 sps:$4 sm:$0xff]  }
0x1e48   : > { %v13304_v15 = vpop.f32.mrf.mxu0 }
0x1e49   : > { %v13324_v27 = vmul.f32 %v24683_v45, %v13312_v35  ;;  %16863 = vmatpush1.bf16.msra.mxu0 %v21748_v7  ;;  %16769 = vmatprep.mubr.bf16.mxu1 %v24708_v61  ;;  %v21821_v7 = vld [vmem:[%s22855_s6 + $0x3cc] ss:$48 sps:$4 sm:$0xff]   ;;  %v13311_v35 = vadd.f32 %v24703_v29, %v24679_v50  ;;  %v21822_v15 = vld [vmem:[%s22855_s6 + $0xfc0] ss:$48 sps:$4 sm:$0xff]  }
0x1e4a   : > { %16892 = vmatprep.mubr.bf16.mxu0 %v24708_v61  ;;  %16770 = vmatmul.mubr.bf16.vlgmr.msra.gmra.mxu1 %v24712_v44  ;;  %v13305_v18 = vpop.f32.mrf.mxu0  ;;  %v21833_v50 = vld [vmem:[%s22855_s6 + $0x30c] ss:$48 sps:$4 sm:$0xff]   ;;  %v21828_v29 = vld [vmem:[%s22855_s6 + $0xf60] ss:$48 sps:$4 sm:$0xff]  }
0x1e4b   : > { %v13336_v47 = vadd.f32 %v24686_v0, %v13324_v27  ;;  %16820 = vmatpush1.bf16.msra.mxu1 %v21751_v40  ;;  %16864 = vmatprep.subr.bf16.mxu0 %v21756_v48  ;;  %v21824_v40 = vld [vmem:[%s22855_s6 + $0xfc4] ss:$48 sps:$4 sm:$0xff]   ;;  %v21819_v48 = vld [vmem:[%s22855_s6 + $0x3c8] ss:$48 sps:$4 sm:$0xff]   ;;  %v13323_v27 = vmul.f32 %v24683_v45, %v13311_v35  ;;  %v21839_v45 = vld [vmem:[%s22855_s6 + $0xeac] ss:$48 sps:$4 sm:$0xff]  }
0x1e4c   : > { %16821 = vmatprep.subr.bf16.mxu1 %v21759_v31  ;;  %v21827_v31 = vld [vmem:[%s22855_s6 + $0x36c] ss:$48 sps:$4 sm:$0xff]   ;;  %v21893_v35 = vld [vmem:[%s22855_s6 + $0xb48] ss:$48 sps:$4 sm:$0xff]  }
0x1e4d   : > { %v13342_v38 = vmax.f32 %v13336_v47, 0.0  ;;  %16865 = vmatpush1.bf16.msra.mxu0 %v21754_v1  ;;  %v21830_v1 = vld [vmem:[%s22855_s6 + $0xf64] ss:$48 sps:$4 sm:$0xff]   ;;  %v13335_v18 = vadd.f32 %v24686_v0, %v13323_v27  ;;  %v21845_v0 = vld [vmem:[%s22855_s6 + $0xe4c] ss:$48 sps:$4 sm:$0xff]  }
0x1e4e   : > { %16866 = vmatprep.subr.bf16.mxu0 %v21762_v32  ;;  %v21825_v32 = vld [vmem:[%s22855_s6 + $0x368] ss:$48 sps:$4 sm:$0xff]   ;;  %v21836_v47 = vld [vmem:[%s22855_s6 + $0xf04] ss:$48 sps:$4 sm:$0xff]   ;;  %v21907_v27 = vld [vmem:[%s22855_s6 + $0xa8c] ss:$48 sps:$4 sm:$0xff]  }
0x1e4f   : > { %v24726_v52 = vpack.c.bf16 %v13342_v38, %v13342_v38  ;;  %16822 = vmatpush1.bf16.msra.mxu1 %v21757_v39  ;;  %v21831_v39 = vld [vmem:[%s22855_s6 + $0x308] ss:$48 sps:$4 sm:$0xff]   ;;  %v13341_v38 = vmax.f32 %v13335_v18, 0.0 }
0x1e50   : > { %16823 = vmatprep.subr.bf16.mxu1 %v21765_v51  ;;  %v21834_v51 = vld [vmem:[%s22855_s6 + $0xf00] ss:$48 sps:$4 sm:$0xff]   ;;  %v21908_v18 = vld [vmem:[%s22855_s6 + $0xfc8] ss:$48 sps:$4 sm:$0xff]  }
0x1e51   : > { %16867 = vmatpush1.bf16.msra.mxu0 %v21760_v36  ;;  %20056 = vmatprep.mubr.msk.bf16.mxu1 %vm16697_vm8, %v24726_v52  ;;  %v21842_v36 = vld [vmem:[%s22855_s6 + $0x8ac] ss:$48 sps:$4 sm:$0xff]  }
0x1e52   : > { %16868 = vmatprep.subr.bf16.mxu0 %v21768_v26  ;;  %v21837_v26 = vld [vmem:[%s22855_s6 + $0xea8] ss:$48 sps:$4 sm:$0xff]  }
0x1e53   : > { %16824 = vmatpush1.bf16.msra.mxu1 %v21763_v56  ;;  %v21840_v56 = vld [vmem:[%s22855_s6 + $0x8a8] ss:$48 sps:$4 sm:$0xff]  }
0x1e54   : > { %16825 = vmatprep.subr.bf16.mxu1 %v21771_v42  ;;  %v24788_v42 = vpack.c.bf16 %v13341_v38, %v13341_v38  ;;  %v21922_v38 = vld [vmem:[%s22855_s6 + $0xf0c] ss:$48 sps:$4 sm:$0xff]  }
0x1e55   : > { %16869 = vmatpush1.bf16.msra.mxu0 %v21766_v54  ;;  %v21848_v54 = vld [vmem:[%s22855_s6 + $0x84c] ss:$48 sps:$4 sm:$0xff]  }
0x1e56   : > { %16870 = vmatprep.subr.bf16.mxu0 %v21774_v19  ;;  %v21843_v19 = vld [vmem:[%s22855_s6 + $0xe48] ss:$48 sps:$4 sm:$0xff]  }
0x1e57   : > { %16826 = vmatpush1.bf16.msra.mxu1 %v21769_v49  ;;  %v21851_v49 = vld [vmem:[%s22855_s6 + $0xdec] ss:$48 sps:$4 sm:$0xff]  }
0x1e58   : > { %16827 = vmatprep.subr.bf16.mxu1 %v21777_v58  ;;  %v21846_v58 = vld [vmem:[%s22855_s6 + $0x848] ss:$48 sps:$4 sm:$0xff]  }
0x1e59   : > { %16871 = vmatpush1.bf16.msra.mxu0 %v21772_v59  ;;  %v21854_v59 = vld [vmem:[%s22855_s6 + $0x7ec] ss:$48 sps:$4 sm:$0xff]  }
0x1e5a   : > { %16872 = vmatprep.subr.bf16.mxu0 %v21780_v60  ;;  %v21849_v60 = vld [vmem:[%s22855_s6 + $0xde8] ss:$48 sps:$4 sm:$0xff]  }
0x1e5b   : > { %16828 = vmatpush1.bf16.msra.mxu1 %v21775_v57  ;;  %v21857_v57 = vld [vmem:[%s22855_s6 + $0xd8c] ss:$48 sps:$4 sm:$0xff]  }
0x1e5c   : > { %16829 = vmatprep.subr.bf16.mxu1 %v21783_v62  ;;  %v21852_v62 = vld [vmem:[%s22855_s6 + $0x7e8] ss:$48 sps:$4 sm:$0xff]  }
0x1e5d   : > { %16873 = vmatpush1.bf16.msra.mxu0 %v21778_v63  ;;  %v21860_v63 = vld [vmem:[%s22855_s6 + $0x78c] ss:$48 sps:$4 sm:$0xff]  }
0x1e5e   : > { %16874 = vmatprep.subr.bf16.mxu0 %v21786_v24  ;;  %v21855_v24 = vld [vmem:[%s22855_s6 + $0xd88] ss:$48 sps:$4 sm:$0xff]  }
0x1e5f   : > { %16830 = vmatpush1.bf16.msra.mxu1 %v21781_v4  ;;  %v21863_v4 = vld [vmem:[%s22855_s6 + $0xd2c] ss:$48 sps:$4 sm:$0xff]  }
0x1e60   : > { %16831 = vmatprep.subr.bf16.mxu1 %v21789_v6  ;;  %v21858_v6 = vld [vmem:[%s22855_s6 + $0x788] ss:$48 sps:$4 sm:$0xff]  }
0x1e61   : > { %16875 = vmatpush1.bf16.msra.mxu0 %v21784_v10  ;;  %v21866_v10 = vld [vmem:[%s22855_s6 + $0x72c] ss:$48 sps:$4 sm:$0xff]  }
0x1e62   : > { %16876 = vmatprep.subr.bf16.mxu0 %v21792_v11  ;;  %v21861_v11 = vld [vmem:[%s22855_s6 + $0xd28] ss:$48 sps:$4 sm:$0xff]  }
0x1e63   : > { %16832 = vmatpush1.bf16.msra.mxu1 %v21787_v41  ;;  %v21869_v41 = vld [vmem:[%s22855_s6 + $0xccc] ss:$48 sps:$4 sm:$0xff]  }
0x1e64   : > { %16833 = vmatprep.subr.bf16.mxu1 %v21795_v46  ;;  %v21864_v46 = vld [vmem:[%s22855_s6 + $0x728] ss:$48 sps:$4 sm:$0xff]  }
0x1e65   : > { %16877 = vmatpush2.bf16.msra.mxu0 %v21790_v12  ;;  %v21872_v12 = vld [vmem:[%s22855_s6 + $0x6cc] ss:$48 sps:$4 sm:$0xff]  }
0x1e66   : > { %16878 = vmatprep.subr.bf16.mxu0 %v21798_v9  ;;  %v21875_v9 = vld [vmem:[%s22855_s6 + $0xc6c] ss:$48 sps:$4 sm:$0xff]  }
0x1e67   : > { %16834 = vmatpush1.bf16.msra.mxu1 %v21793_v16  ;;  %v21870_v16 = vld [vmem:[%s22855_s6 + $0x6c8] ss:$48 sps:$4 sm:$0xff]  }
0x1e68   : > { %20055 = vmatprep.subr.msk.bf16.mxu1 %vm1696_vm0, %v20044_v14  ;;  %v21878_v14 = vld [vmem:[%s22855_s6 + $0x66c] ss:$48 sps:$4 sm:$0xff]  }
0x1e69   : > { %16879 = vmatpush2.bf16.msra.mxu0 %v21796_v17  ;;  %v21881_v17 = vld [vmem:[%s22855_s6 + $0xc0c] ss:$48 sps:$4 sm:$0xff]  }
0x1e6a   : > { %16880 = vmatprep.subr.bf16.mxu0 %v21803_v20  ;;  %v21876_v20 = vld [vmem:[%s22855_s6 + $0x668] ss:$48 sps:$4 sm:$0xff]  }
0x1e6b   : > { %16838 = vmatpush2.bf16.msra.mxu1 %v16702_v53  ;;  %v13902_v53 = vld [vmem:[%s22855_s6 + $0x1148] sm:$0x11] }
0x1e6c   : > { %16839 = vmatprep.subr.bf16.mxu1 %v21806_v13  ;;  %v21884_v13 = vld [vmem:[%s22855_s6 + $0x60c] ss:$48 sps:$4 sm:$0xff]  }
0x1e6d   : > { %16881 = vmatpush2.bf16.msra.mxu0 %v21801_v23  ;;  %v21879_v23 = vld [vmem:[%s22855_s6 + $0xc08] ss:$48 sps:$4 sm:$0xff]  }
0x1e6e   : > { %16882 = vmatprep.subr.bf16.mxu0 %v21809_v21  ;;  %v20046_v21 = vcombine.high %v13902_v53, %v13902_v53 }
0x1e6f   : > { %16840 = vmatpush2.bf16.msra.mxu1 %v21804_v25  ;;  %v20045_v25 = vcombine.low %v13902_v53, %v13902_v53  ;;  %v21959_v53 = vld [vmem:[%s22855_s6 + $0x130] ss:$48 sps:$4 sm:$0xff]  }
0x1e70   : > { %16841 = vmatprep.subr.bf16.mxu1 %v21812_v43  ;;  %v21882_v43 = vld [vmem:[%s22855_s6 + $0x608] ss:$48 sps:$4 sm:$0xff]  }
0x1e71   : > { %16883 = vmatpush2.bf16.msra.mxu0 %v21807_v5  ;;  %v21889_v5 = vld [vmem:[%s22855_s6 + $0xbac] ss:$48 sps:$4 sm:$0xff]  }
0x1e72   : > { %16884 = vmatprep.subr.bf16.mxu0 %v21815_v37  ;;  %v16708_v37 = vsel %vm1696_vm0, %v20045_v25, 0  ;;  %v21965_v25 = vld [vmem:[%s22855_s6 + $0xd0] ss:$48 sps:$4 sm:$0xff]  }
0x1e73   : > { %16842 = vmatpush2.bf16.msra.mxu1 %v21810_v28  ;;  %v21892_v28 = vld [vmem:[%s22855_s6 + $0x10ec] ss:$48 sps:$4 sm:$0xff]  }
0x1e74   : > { %16843 = vmatprep.subr.bf16.mxu1 %v21818_v3  ;;  %v21887_v3 = vld [vmem:[%s22855_s6 + $0xba8] ss:$48 sps:$4 sm:$0xff]  }
0x1e75   : > { %16885 = vmatpush2.bf16.msra.mxu0 %v21813_v30  ;;  %v21895_v30 = vld [vmem:[%s22855_s6 + $0xb4c] ss:$48 sps:$4 sm:$0xff]  }
0x1e76   : > { %16886 = vmatprep.subr.bf16.mxu0 %v21821_v7  ;;  %v21890_v7 = vld [vmem:[%s22855_s6 + $0x10e8] ss:$48 sps:$4 sm:$0xff]  }
0x1e77   : > { %16844 = vmatpush2.bf16.msra.mxu1 %v21816_v34  ;;  %v21898_v34 = vld [vmem:[%s22855_s6 + $0x108c] ss:$48 sps:$4 sm:$0xff]  }
0x1e78   : > { %16845 = vmatprep.subr.bf16.mxu1 %v21824_v40  ;;  %v21901_v40 = vld [vmem:[%s22855_s6 + $0xaec] ss:$48 sps:$4 sm:$0xff]  }
0x1e79   : > { %16887 = vmatpush2.bf16.msra.mxu0 %v21819_v48  ;;  %v21896_v48 = vld [vmem:[%s22855_s6 + $0x1088] ss:$48 sps:$4 sm:$0xff]  }
0x1e7a   : > { %16888 = vmatprep.subr.bf16.mxu0 %v21827_v31  ;;  %v21904_v31 = vld [vmem:[%s22855_s6 + $0x102c] ss:$48 sps:$4 sm:$0xff]  }
0x1e7b   : > { %16846 = vmatpush2.bf16.msra.mxu1 %v21822_v15  ;;  %v21899_v15 = vld [vmem:[%s22855_s6 + $0xae8] ss:$48 sps:$4 sm:$0xff]  }
0x1e7c   : > { %16847 = vmatprep.subr.bf16.mxu1 %v21830_v1  ;;  %v21902_v1 = vld [vmem:[%s22855_s6 + $0x1028] ss:$48 sps:$4 sm:$0xff]  }
0x1e7d   : > { %16889 = vmatpush2.bf16.msra.mxu0 %v21825_v32  ;;  %v21910_v32 = vld [vmem:[%s22855_s6 + $0xfcc] ss:$48 sps:$4 sm:$0xff]  }
0x1e7e   : > { %16890 = vmatprep.subr.bf16.mxu0 %v21833_v50  ;;  %v21905_v50 = vld [vmem:[%s22855_s6 + $0xa88] ss:$48 sps:$4 sm:$0xff]  }
0x1e7f   : > { %16848 = vmatpush2.bf16.msra.mxu1 %v21828_v29  ;;  %v21913_v29 = vld [vmem:[%s22855_s6 + $0xa2c] ss:$48 sps:$4 sm:$0xff]  }
0x1e80   : > { %16849 = vmatprep.subr.bf16.mxu1 %v21836_v47  ;;  %v21916_v47 = vld [vmem:[%s22855_s6 + $0xf6c] ss:$48 sps:$4 sm:$0xff]  }
0x1e81   : > { %16891 = vmatpush2.bf16.msra.mxu0 %v21831_v39  ;;  %v21911_v39 = vld [vmem:[%s22855_s6 + $0xa28] ss:$48 sps:$4 sm:$0xff]  }
0x1e82   : > { %16942 = vmatprep.subr.bf16.mxu0 %v21839_v45  ;;  %v21919_v45 = vld [vmem:[%s22855_s6 + $0x9cc] ss:$48 sps:$4 sm:$0xff]  }
0x1e83   : > { %16850 = vmatpush2.bf16.msra.mxu1 %v21834_v51  ;;  %v21914_v51 = vld [vmem:[%s22855_s6 + $0xf68] ss:$48 sps:$4 sm:$0xff]  }
0x1e84   : > { %16893 = vmatmul.mubr.bf16.vlgmr.msra.gmra.mxu0 %v24712_v44  ;;  %16901 = vmatprep.subr.bf16.mxu1 %v21842_v36  ;;  %v21917_v36 = vld [vmem:[%s22855_s6 + $0x9c8] ss:$48 sps:$4 sm:$0xff]  }
0x1e85   : > { %16943 = vmatpush1.bf16.msra.mxu0 %v21837_v26  ;;  %20058 = vmatprep.mubr.msk.bf16.mxu0 %vm16697_vm8, %v24726_v52  ;;  %v21925_v26 = vld [vmem:[%s22855_s6 + $0x96c] ss:$48 sps:$4 sm:$0xff]  }
0x1e86   : > { %16852 = vmatmul.mubr.bf16.vlgmr.msra.gmra.mxu1 %v24788_v42  ;;  %16944 = vmatprep.subr.bf16.mxu0 %v21845_v0  ;;  %v21920_v0 = vld [vmem:[%s22855_s6 + $0xf08] ss:$48 sps:$4 sm:$0xff]  }
0x1e87   : > { %16902 = vmatpush1.bf16.msra.mxu1 %v21840_v56  ;;  %16933 = vmatprep.mubr.bf16.mxu1 %v24693_v22  ;;  %v21928_v56 = vld [vmem:[%s22855_s6 + $0x8b4] ss:$48 sps:$4 sm:$0xff]  }
0x1e88   : > { %16903 = vmatprep.subr.bf16.mxu1 %v21848_v54  ;;  %v21923_v54 = vld [vmem:[%s22855_s6 + $0x968] ss:$48 sps:$4 sm:$0xff]  }
0x1e89   : > { %16945 = vmatpush1.bf16.msra.mxu0 %v21843_v19  ;;  %v21931_v19 = vld [vmem:[%s22855_s6 + $0x90c] ss:$48 sps:$4 sm:$0xff]  }
0x1e8a   : > { %16946 = vmatprep.subr.bf16.mxu0 %v21851_v49  ;;  %v21926_v49 = vld [vmem:[%s22855_s6 + $0x8b0] ss:$48 sps:$4 sm:$0xff]  }
0x1e8b   : > { %16904 = vmatpush1.bf16.msra.mxu1 %v21846_v58  ;;  %v21934_v58 = vld [vmem:[%s22855_s6 + $0x854] ss:$48 sps:$4 sm:$0xff]  }
0x1e8c   : > { %16905 = vmatprep.subr.bf16.mxu1 %v21854_v59  ;;  %v21929_v59 = vld [vmem:[%s22855_s6 + $0x908] ss:$48 sps:$4 sm:$0xff]  }
0x1e8d   : > { %16947 = vmatpush1.bf16.msra.mxu0 %v21849_v60  ;;  %v21937_v60 = vld [vmem:[%s22855_s6 + $0x2b4] ss:$48 sps:$4 sm:$0xff]  }
0x1e8e   : > { %16948 = vmatprep.subr.bf16.mxu0 %v21857_v57  ;;  %v21932_v57 = vld [vmem:[%s22855_s6 + $0x850] ss:$48 sps:$4 sm:$0xff]  }
0x1e8f   : > { %16906 = vmatpush1.bf16.msra.mxu1 %v21852_v62  ;;  %v21940_v62 = vld [vmem:[%s22855_s6 + $0x7f4] ss:$48 sps:$4 sm:$0xff]  }
0x1e90   : > { %16907 = vmatprep.subr.bf16.mxu1 %v21860_v63  ;;  %v21935_v63 = vld [vmem:[%s22855_s6 + $0x2b0] ss:$48 sps:$4 sm:$0xff]  }
0x1e91   : > { %16949 = vmatpush1.bf16.msra.mxu0 %v21855_v24  ;;  %v21943_v24 = vld [vmem:[%s22855_s6 + $0x254] ss:$48 sps:$4 sm:$0xff]  }
0x1e92   : > { %16950 = vmatprep.subr.bf16.mxu0 %v21863_v4  ;;  %v21938_v4 = vld [vmem:[%s22855_s6 + $0x7f0] ss:$48 sps:$4 sm:$0xff]  }
0x1e93   : > { %16908 = vmatpush1.bf16.msra.mxu1 %v21858_v6  ;;  %v21946_v6 = vld [vmem:[%s22855_s6 + $0x794] ss:$48 sps:$4 sm:$0xff]  }
0x1e94   : > { %16909 = vmatprep.subr.bf16.mxu1 %v21866_v10  ;;  %v21941_v10 = vld [vmem:[%s22855_s6 + $0x250] ss:$48 sps:$4 sm:$0xff]  }
0x1e95   : > { %16951 = vmatpush1.bf16.msra.mxu0 %v21861_v11  ;;  %v21949_v11 = vld [vmem:[%s22855_s6 + $0x1f4] ss:$48 sps:$4 sm:$0xff]  }
0x1e96   : > { %16952 = vmatprep.subr.bf16.mxu0 %v21869_v41  ;;  %v21944_v41 = vld [vmem:[%s22855_s6 + $0x790] ss:$48 sps:$4 sm:$0xff]  }
0x1e97   : > { %16910 = vmatpush1.bf16.msra.mxu1 %v21864_v46  ;;  %v21952_v46 = vld [vmem:[%s22855_s6 + $0x734] ss:$48 sps:$4 sm:$0xff]  }
0x1e98   : > { %16911 = vmatprep.subr.bf16.mxu1 %v21872_v12  ;;  %v21947_v12 = vld [vmem:[%s22855_s6 + $0x1f0] ss:$48 sps:$4 sm:$0xff]  }
0x1e99   : > { %16953 = vmatpush1.bf16.msra.mxu0 %v21867_v33  ;;  %v21955_v33 = vld [vmem:[%s22855_s6 + $0x194] ss:$48 sps:$4 sm:$0xff]  }
0x1e9a   : > { %16954 = vmatprep.subr.bf16.mxu0 %v21875_v9  ;;  %v21950_v9 = vld [vmem:[%s22855_s6 + $0x730] ss:$48 sps:$4 sm:$0xff]  }
0x1e9b   : > { %16912 = vmatpush1.bf16.msra.mxu1 %v21870_v16  ;;  %v21958_v16 = vld [vmem:[%s22855_s6 + $0x6d4] ss:$48 sps:$4 sm:$0xff]  }
0x1e9c   : > { %16913 = vmatprep.subr.bf16.mxu1 %v21878_v14  ;;  %v21953_v14 = vld [vmem:[%s22855_s6 + $0x190] ss:$48 sps:$4 sm:$0xff]  }
0x1e9d   : > { %16955 = vmatpush1.bf16.msra.mxu0 %v21873_v55  ;;  %v21961_v55 = vld [vmem:[%s22855_s6 + $0x134] ss:$48 sps:$4 sm:$0xff]  }
0x1e9e   : > { %16956 = vmatprep.subr.bf16.mxu0 %v21881_v17  ;;  %v21956_v17 = vld [vmem:[%s22855_s6 + $0x6d0] ss:$48 sps:$4 sm:$0xff]  }
0x1e9f   : > { %16914 = vmatpush1.bf16.msra.mxu1 %v21876_v20  ;;  %v21964_v20 = vld [vmem:[%s22855_s6 + $0x674] ss:$48 sps:$4 sm:$0xff]  }
0x1ea0   : > { %16915 = vmatprep.subr.bf16.mxu1 %v21884_v13  ;;  %v21967_v13 = vld [vmem:[%s22855_s6 + $0xd4] ss:$48 sps:$4 sm:$0xff]  }
0x1ea1   : > { %16957 = vmatpush1.bf16.msra.mxu0 %v21879_v23  ;;  %v21962_v23 = vld [vmem:[%s22855_s6 + $0x670] ss:$48 sps:$4 sm:$0xff]  }
0x1ea2   : > { %20057 = vmatprep.subr.msk.bf16.mxu0 %vm1696_vm0, %v20046_v21  ;;  %v21970_v21 = vld [vmem:[%s22855_s6 + $0x614] ss:$48 sps:$4 sm:$0xff]  }
0x1ea3   : > { %16916 = vmatpush1.bf16.msra.mxu1 %v21882_v43  ;;  %v21973_v43 = vld [vmem:[%s22855_s6 + $0x74] ss:$48 sps:$4 sm:$0xff]  }
0x1ea4   : > { %16917 = vmatprep.subr.bf16.mxu1 %v21889_v5  ;;  %v21968_v5 = vld [vmem:[%s22855_s6 + $0x610] ss:$48 sps:$4 sm:$0xff]  }
0x1ea5   : > { %16961 = vmatpush2.bf16.msra.mxu0 %v16708_v37  ;;  %v21976_v37 = vld [vmem:[%s22855_s6 + $0xbb4] ss:$48 sps:$4 sm:$0xff]  }
0x1ea6   : > { %16962 = vmatprep.subr.bf16.mxu0 %v21892_v28  ;;  %v21971_v28 = vld [vmem:[%s22855_s6 + $0x70] ss:$48 sps:$4 sm:$0xff]  }
0x1ea7   : > { %16918 = vmatpush2.bf16.msra.mxu1 %v21887_v3  ;;  %v21979_v3 = vld [vmem:[%s22855_s6 + $0x14] ss:$48 sps:$4 sm:$0xff]  }
0x1ea8   : > { %16919 = vmatprep.subr.bf16.mxu1 %v21895_v30  ;;  %v21974_v30 = vld [vmem:[%s22855_s6 + $0xbb0] ss:$48 sps:$4 sm:$0xff]  }
0x1ea9   : > { %16963 = vmatpush2.bf16.msra.mxu0 %v21890_v7  ;;  %v21982_v7 = vld [vmem:[%s22855_s6 + $0xb54] ss:$48 sps:$4 sm:$0xff]  }
0x1eaa   : > { %16964 = vmatprep.subr.bf16.mxu0 %v21898_v34  ;;  %v21977_v34 = vld [vmem:[%s22855_s6 + $0x10] ss:$48 sps:$4 sm:$0xff]  }
0x1eab   : > { %16920 = vmatpush2.bf16.msra.mxu1 %v21893_v35  ;;  %v21985_v35 = vld [vmem:[%s22855_s6 + $0x5b4] ss:$48 sps:$4 sm:$0xff]  }
0x1eac   : > { %16921 = vmatprep.subr.bf16.mxu1 %v21901_v40  ;;  %v21980_v40 = vld [vmem:[%s22855_s6 + $0xb50] ss:$48 sps:$4 sm:$0xff]  }
0x1ead   : > { %16965 = vmatpush2.bf16.msra.mxu0 %v21896_v48  ;;  %v21988_v48 = vld [vmem:[%s22855_s6 + $0xaf4] ss:$48 sps:$4 sm:$0xff]  }
0x1eae   : > { %16966 = vmatprep.subr.bf16.mxu0 %v21904_v31  ;;  %v21983_v31 = vld [vmem:[%s22855_s6 + $0x5b0] ss:$48 sps:$4 sm:$0xff]  }
0x1eaf   : > { %16922 = vmatpush2.bf16.msra.mxu1 %v21899_v15  ;;  %v21991_v15 = vld [vmem:[%s22855_s6 + $0x554] ss:$48 sps:$4 sm:$0xff]  }
0x1eb0   : > { %16923 = vmatprep.subr.bf16.mxu1 %v21907_v27  ;;  %v21986_v27 = vld [vmem:[%s22855_s6 + $0xaf0] ss:$48 sps:$4 sm:$0xff]  }
0x1eb1   : > { %16967 = vmatpush2.bf16.msra.mxu0 %v21902_v1  ;;  %v21994_v1 = vld [vmem:[%s22855_s6 + $0xa94] ss:$48 sps:$4 sm:$0xff]  }
0x1eb2   : > { %16968 = vmatprep.subr.bf16.mxu0 %v21910_v32  ;;  %v21989_v32 = vld [vmem:[%s22855_s6 + $0x550] ss:$48 sps:$4 sm:$0xff]  }
0x1eb3   : > { %16924 = vmatpush2.bf16.msra.mxu1 %v21905_v50  ;;  %v21997_v50 = vld [vmem:[%s22855_s6 + $0x4f4] ss:$48 sps:$4 sm:$0xff]  }
0x1eb4   : > { %16925 = vmatprep.subr.bf16.mxu1 %v21913_v29  ;;  %v21992_v29 = vld [vmem:[%s22855_s6 + $0xa90] ss:$48 sps:$4 sm:$0xff]  }
0x1eb5   : > { %16969 = vmatpush2.bf16.msra.mxu0 %v21908_v18  ;;  %v22000_v18 = vld [vmem:[%s22855_s6 + $0xa34] ss:$48 sps:$4 sm:$0xff]  }
0x1eb6   : > { %16970 = vmatprep.subr.bf16.mxu0 %v21916_v47  ;;  %v21995_v47 = vld [vmem:[%s22855_s6 + $0x4f0] ss:$48 sps:$4 sm:$0xff]  }
0x1eb7   : > { %16926 = vmatpush2.bf16.msra.mxu1 %v21911_v39  ;;  %v22003_v39 = vld [vmem:[%s22855_s6 + $0x494] ss:$48 sps:$4 sm:$0xff]  }
0x1eb8   : > { %16927 = vmatprep.subr.bf16.mxu1 %v21919_v45  ;;  %v21998_v45 = vld [vmem:[%s22855_s6 + $0xa30] ss:$48 sps:$4 sm:$0xff]  }
0x1eb9   : > { %16971 = vmatpush2.bf16.msra.mxu0 %v21914_v51  ;;  %v22006_v51 = vld [vmem:[%s22855_s6 + $0x9d4] ss:$48 sps:$4 sm:$0xff]  }
0x1eba   : > { %16972 = vmatprep.subr.bf16.mxu0 %v21922_v38  ;;  %v22001_v38 = vld [vmem:[%s22855_s6 + $0x490] ss:$48 sps:$4 sm:$0xff]  }
0x1ebb   : > { %16928 = vmatpush2.bf16.msra.mxu1 %v21917_v36  ;;  %v22009_v36 = vld [vmem:[%s22855_s6 + $0x434] ss:$48 sps:$4 sm:$0xff]  }
0x1ebc   : > { %16929 = vmatprep.subr.bf16.mxu1 %v21925_v26  ;;  %v22004_v26 = vld [vmem:[%s22855_s6 + $0x9d0] ss:$48 sps:$4 sm:$0xff]  }
0x1ebd   : > { %16973 = vmatpush2.bf16.msra.mxu0 %v21920_v0  ;;  %v22012_v0 = vld [vmem:[%s22855_s6 + $0x974] ss:$48 sps:$4 sm:$0xff]  }
0x1ebe   : > { %17024 = vmatprep.subr.bf16.mxu0 %v21928_v56  ;;  %v22007_v56 = vld [vmem:[%s22855_s6 + $0x430] ss:$48 sps:$4 sm:$0xff]  }
0x1ebf   : > { %16930 = vmatpush2.bf16.msra.mxu1 %v21923_v54  ;;  %v22015_v54 = vld [vmem:[%s22855_s6 + $0x3d4] ss:$48 sps:$4 sm:$0xff]  }
0x1ec0   : > { %16975 = vmatmul.mubr.bf16.vlgmr.msra.gmra.mxu0 %v24788_v42  ;;  %16931 = vmatprep.subr.bf16.mxu1 %v21931_v19  ;;  %v22010_v19 = vld [vmem:[%s22855_s6 + $0x970] ss:$48 sps:$4 sm:$0xff]  }
0x1ec1   : > { %17025 = vmatpush1.bf16.msra.mxu0 %v21926_v49  ;;  %17056 = vmatprep.mubr.bf16.mxu0 %v24693_v22  ;;  %v22018_v49 = vld [vmem:[%s22855_s6 + $0x914] ss:$48 sps:$4 sm:$0xff]  }
0x1ec2   : > { %17026 = vmatprep.subr.bf16.mxu0 %v21934_v58  ;;  %v22013_v58 = vld [vmem:[%s22855_s6 + $0x3d0] ss:$48 sps:$4 sm:$0xff]  }
0x1ec3   : > { %16932 = vmatpush2.bf16.msra.mxu1 %v21929_v59  ;;  %v22021_v59 = vld [vmem:[%s22855_s6 + $0x374] ss:$48 sps:$4 sm:$0xff]  }
0x1ec4   : > { %16983 = vmatprep.subr.bf16.mxu1 %v21937_v60  ;;  %v22016_v60 = vld [vmem:[%s22855_s6 + $0x910] ss:$48 sps:$4 sm:$0xff]  }
0x1ec5   : > { %17027 = vmatpush1.bf16.msra.mxu0 %v21932_v57  ;;  %v22024_v57 = vld [vmem:[%s22855_s6 + $0x2bc] ss:$48 sps:$4 sm:$0xff]  }
0x1ec6   : > { %16934 = vmatmul.mubr.bf16.vlgmr.msra.gmra.mxu1 %v24698_v8  ;;  %17028 = vmatprep.subr.bf16.mxu0 %v21940_v62  ;;  %v22019_v62 = vld [vmem:[%s22855_s6 + $0x370] ss:$48 sps:$4 sm:$0xff]  }
0x1ec7   : > { %16984 = vmatpush1.bf16.msra.mxu1 %v21935_v63  ;;  %17015 = vmatprep.mubr.bf16.mxu1 %v24708_v61  ;;  %v22027_v63 = vld [vmem:[%s22855_s6 + $0x314] ss:$48 sps:$4 sm:$0xff]  }
0x1ec8   : > { %16985 = vmatprep.subr.bf16.mxu1 %v21943_v24  ;;  %v22022_v24 = vld [vmem:[%s22855_s6 + $0x2b8] ss:$48 sps:$4 sm:$0xff]  }
0x1ec9   : > { %17029 = vmatpush1.bf16.msra.mxu0 %v21938_v4  ;;  %v22030_v4 = vld [vmem:[%s22855_s6 + $0x25c] ss:$48 sps:$4 sm:$0xff]  }
0x1eca   : > { %17030 = vmatprep.subr.bf16.mxu0 %v21946_v6  ;;  %v22025_v6 = vld [vmem:[%s22855_s6 + $0x310] ss:$48 sps:$4 sm:$0xff]  }
0x1ecb   : > { %16986 = vmatpush1.bf16.msra.mxu1 %v21941_v10  ;;  %v22033_v10 = vld [vmem:[%s22855_s6 + $0xeb4] ss:$48 sps:$4 sm:$0xff]  }
0x1ecc   : > { %16987 = vmatprep.subr.bf16.mxu1 %v21949_v11  ;;  %v22028_v11 = vld [vmem:[%s22855_s6 + $0x258] ss:$48 sps:$4 sm:$0xff]  }
0x1ecd   : > { %17031 = vmatpush1.bf16.msra.mxu0 %v21944_v41  ;;  %v22036_v41 = vld [vmem:[%s22855_s6 + $0x1fc] ss:$48 sps:$4 sm:$0xff]  }
0x1ece   : > { %17032 = vmatprep.subr.bf16.mxu0 %v21952_v46  ;;  %v22031_v46 = vld [vmem:[%s22855_s6 + $0xeb0] ss:$48 sps:$4 sm:$0xff]  }
0x1ecf   : > { %16988 = vmatpush1.bf16.msra.mxu1 %v21947_v12 }
0x1ed0   : > { %16989 = vmatprep.subr.bf16.mxu1 %v21955_v33  ;;  %v22039_v33 = vld [vmem:[%s22855_s6 + $0xe54] ss:$48 sps:$4 sm:$0xff]  }
0x1ed1   : > { %17033 = vmatpush1.bf16.msra.mxu0 %v21950_v9  ;;  %v22034_v9 = vld [vmem:[%s22855_s6 + $0x1f8] ss:$48 sps:$4 sm:$0xff]  }
0x1ed2   : > { %17034 = vmatprep.subr.bf16.mxu0 %v21958_v16 }
0x1ed3   : > { %16990 = vmatpush1.bf16.msra.mxu1 %v21953_v14  ;;  %v22042_v14 = vld [vmem:[%s22855_s6 + $0x19c] ss:$48 sps:$4 sm:$0xff]  }
0x1ed4   : > { %16991 = vmatprep.subr.bf16.mxu1 %v21961_v55  ;;  %v22037_v55 = vld [vmem:[%s22855_s6 + $0xe50] ss:$48 sps:$4 sm:$0xff]  }
0x1ed5   : > { %17035 = vmatpush1.bf16.msra.mxu0 %v21956_v17 }
0x1ed6   : > { %17036 = vmatprep.subr.bf16.mxu0 %v21964_v20  ;;  %v22045_v20 = vld [vmem:[%s22855_s6 + $0xdf4] ss:$48 sps:$4 sm:$0xff]  }
0x1ed7   : > { %16992 = vmatpush1.bf16.msra.mxu1 %v21959_v53  ;;  %v22040_v53 = vld [vmem:[%s22855_s6 + $0x198] ss:$48 sps:$4 sm:$0xff]  }
0x1ed8   : > { %16993 = vmatprep.subr.bf16.mxu1 %v21967_v13 }
0x1ed9   : > { %17037 = vmatpush1.bf16.msra.mxu0 %v21962_v23 }
0x1eda   : > { %17038 = vmatprep.subr.bf16.mxu0 %v21970_v21  ;;  %v22048_v21 = vld [vmem:[%s22855_s6 + $0x13c] ss:$48 sps:$4 sm:$0xff]  }
0x1edb   : > { %16994 = vmatpush1.bf16.msra.mxu1 %v21965_v25  ;;  %v22043_v25 = vld [vmem:[%s22855_s6 + $0xdf0] ss:$48 sps:$4 sm:$0xff]  }
0x1edc   : > { %16995 = vmatprep.subr.bf16.mxu1 %v21973_v43 }
0x1edd   : > { %17039 = vmatpush1.bf16.msra.mxu0 %v21968_v5  ;;  %v22051_v5 = vld [vmem:[%s22855_s6 + $0xd94] ss:$48 sps:$4 sm:$0xff]  }
0x1ede   : > { %17040 = vmatprep.subr.bf16.mxu0 %v21976_v37  ;;  %v22046_v37 = vld [vmem:[%s22855_s6 + $0x138] ss:$48 sps:$4 sm:$0xff]  }
0x1edf   : > { %16996 = vmatpush1.bf16.msra.mxu1 %v21971_v28 }
0x1ee0   : > { %16997 = vmatprep.subr.bf16.mxu1 %v21979_v3  ;;  %v22054_v3 = vld [vmem:[%s22855_s6 + $0xdc] ss:$48 sps:$4 sm:$0xff]  }
0x1ee1   : > { %17041 = vmatpush2.bf16.msra.mxu0 %v21974_v30  ;;  %v22049_v30 = vld [vmem:[%s22855_s6 + $0xd90] ss:$48 sps:$4 sm:$0xff]  }
0x1ee2   : > { %17042 = vmatprep.subr.bf16.mxu0 %v21982_v7 }
0x1ee3   : > { %16998 = vmatpush1.bf16.msra.mxu1 %v21977_v34  ;;  %v22057_v34 = vld [vmem:[%s22855_s6 + $0xd34] ss:$48 sps:$4 sm:$0xff]  }
0x1ee4   : > { %16999 = vmatprep.subr.bf16.mxu1 %v21985_v35  ;;  %v22052_v35 = vld [vmem:[%s22855_s6 + $0xd8] ss:$48 sps:$4 sm:$0xff]  }
0x1ee5   : > { %17043 = vmatpush2.bf16.msra.mxu0 %v21980_v40  ;;  %v22060_v40 = vld [vmem:[%s22855_s6 + $0x7c] ss:$48 sps:$4 sm:$0xff]  }
0x1ee6   : > { %17044 = vmatprep.subr.bf16.mxu0 %v21988_v48  ;;  %v22055_v48 = vld [vmem:[%s22855_s6 + $0xd30] ss:$48 sps:$4 sm:$0xff]  }
0x1ee7   : > { %17000 = vmatpush2.bf16.msra.mxu1 %v21983_v31  ;;  %v22063_v31 = vld [vmem:[%s22855_s6 + $0xcd4] ss:$48 sps:$4 sm:$0xff]  }
0x1ee8   : > { %17001 = vmatprep.subr.bf16.mxu1 %v21991_v15  ;;  %v22058_v15 = vld [vmem:[%s22855_s6 + $0x78] ss:$48 sps:$4 sm:$0xff]  }
0x1ee9   : > { %17045 = vmatpush2.bf16.msra.mxu0 %v21986_v27  ;;  %v22066_v27 = vld [vmem:[%s22855_s6 + $0x1c] ss:$48 sps:$4 sm:$0xff]  }
0x1eea   : > { %17046 = vmatprep.subr.bf16.mxu0 %v21994_v1  ;;  %v22061_v1 = vld [vmem:[%s22855_s6 + $0xcd0] ss:$48 sps:$4 sm:$0xff]  }
0x1eeb   : > { %17002 = vmatpush2.bf16.msra.mxu1 %v21989_v32  ;;  %v22069_v32 = vld [vmem:[%s22855_s6 + $0xc74] ss:$48 sps:$4 sm:$0xff]  }
0x1eec   : > { %17003 = vmatprep.subr.bf16.mxu1 %v21997_v50  ;;  %v22064_v50 = vld [vmem:[%s22855_s6 + $0x18] ss:$48 sps:$4 sm:$0xff]  }
0x1eed   : > { %17047 = vmatpush2.bf16.msra.mxu0 %v21992_v29  ;;  %v22072_v29 = vld [vmem:[%s22855_s6 + $0x5bc] ss:$48 sps:$4 sm:$0xff]  }
0x1eee   : > { %17048 = vmatprep.subr.bf16.mxu0 %v22000_v18  ;;  %v22067_v18 = vld [vmem:[%s22855_s6 + $0xc70] ss:$48 sps:$4 sm:$0xff]  }
0x1eef   : > { %17004 = vmatpush2.bf16.msra.mxu1 %v21995_v47  ;;  %v22075_v47 = vld [vmem:[%s22855_s6 + $0xc14] ss:$48 sps:$4 sm:$0xff]  }
0x1ef0   : > { %17005 = vmatprep.subr.bf16.mxu1 %v22003_v39  ;;  %v22070_v39 = vld [vmem:[%s22855_s6 + $0x5b8] ss:$48 sps:$4 sm:$0xff]  }
0x1ef1   : > { %17049 = vmatpush2.bf16.msra.mxu0 %v21998_v45  ;;  %v13903_v45 = vld [vmem:[%s22855_s6 + $0x1150] sm:$0x11] }
0x1ef2   : > { %17050 = vmatprep.subr.bf16.mxu0 %v22006_v51  ;;  %v22078_v51 = vld [vmem:[%s22855_s6 + $0x55c] ss:$48 sps:$4 sm:$0xff]  }
0x1ef3   : > { %17006 = vmatpush2.bf16.msra.mxu1 %v22001_v38  ;;  %v22073_v38 = vld [vmem:[%s22855_s6 + $0xc10] ss:$48 sps:$4 sm:$0xff]  }
0x1ef4   : > { %17007 = vmatprep.subr.bf16.mxu1 %v22009_v36  ;;  %v20048_v36 = vcombine.high %v13903_v45, %v13903_v45 }
0x1ef5   : > { %17051 = vmatpush2.bf16.msra.mxu0 %v22004_v26  ;;  %v20047_v26 = vcombine.low %v13903_v45, %v13903_v45  ;;  %v22135_v45 = vld [vmem:[%s22855_s6 + $0xd98] ss:$48 sps:$4 sm:$0xff]  }
0x1ef6   : > { %17052 = vmatprep.subr.bf16.mxu0 %v22012_v0  ;;  %v22076_v0 = vld [vmem:[%s22855_s6 + $0x558] ss:$48 sps:$4 sm:$0xff]  }
0x1ef7   : > { %17008 = vmatpush2.bf16.msra.mxu1 %v22007_v56  ;;  %v22083_v56 = vld [vmem:[%s22855_s6 + $0x4fc] ss:$48 sps:$4 sm:$0xff]  }
0x1ef8   : > { %17009 = vmatprep.subr.bf16.mxu1 %v22015_v54  ;;  %v16714_v54 = vsel %vm1696_vm0, %v20047_v26, 0 }
0x1ef9   : > { %17053 = vmatpush2.bf16.msra.mxu0 %v22010_v19  ;;  %v22086_v19 = vld [vmem:[%s22855_s6 + $0x10f4] ss:$48 sps:$4 sm:$0xff]  }
0x1efa   : > { %17054 = vmatprep.subr.bf16.mxu0 %v22018_v49  ;;  %v22081_v49 = vld [vmem:[%s22855_s6 + $0x4f8] ss:$48 sps:$4 sm:$0xff]  }
0x1efb   : > { %17010 = vmatpush2.bf16.msra.mxu1 %v22013_v58  ;;  %v22089_v58 = vld [vmem:[%s22855_s6 + $0x49c] ss:$48 sps:$4 sm:$0xff]  }
0x1efc   : > { %17011 = vmatprep.subr.bf16.mxu1 %v22021_v59  ;;  %v22084_v59 = vld [vmem:[%s22855_s6 + $0x10f0] ss:$48 sps:$4 sm:$0xff]  }
0x1efd   : > { %17055 = vmatpush2.bf16.msra.mxu0 %v22016_v60  ;;  %v22092_v60 = vld [vmem:[%s22855_s6 + $0x1094] ss:$48 sps:$4 sm:$0xff]  }
0x1efe   : > { %17106 = vmatprep.subr.bf16.mxu0 %v22024_v57  ;;  %v22087_v57 = vld [vmem:[%s22855_s6 + $0x498] ss:$48 sps:$4 sm:$0xff]  }
0x1eff   : > { %17012 = vmatpush2.bf16.msra.mxu1 %v22019_v62  ;;  %v22095_v62 = vld [vmem:[%s22855_s6 + $0x43c] ss:$48 sps:$4 sm:$0xff]  }
0x1f00   : > { %17057 = vmatmul.mubr.bf16.vlgmr.msra.gmra.mxu0 %v24698_v8  ;;  %17013 = vmatprep.subr.bf16.mxu1 %v22027_v63  ;;  %v22090_v63 = vld [vmem:[%s22855_s6 + $0x1090] ss:$48 sps:$4 sm:$0xff]  }
0x1f01   : > { %17107 = vmatpush1.bf16.msra.mxu0 %v22022_v24  ;;  %17138 = vmatprep.mubr.bf16.mxu0 %v24708_v61  ;;  %v22098_v24 = vld [vmem:[%s22855_s6 + $0x1034] ss:$48 sps:$4 sm:$0xff]  }
0x1f02   : > { %17108 = vmatprep.subr.bf16.mxu0 %v22030_v4  ;;  %v22093_v4 = vld [vmem:[%s22855_s6 + $0x438] ss:$48 sps:$4 sm:$0xff]  }
0x1f03   : > { %17014 = vmatpush2.bf16.msra.mxu1 %v22025_v6  ;;  %v22101_v6 = vld [vmem:[%s22855_s6 + $0x3dc] ss:$48 sps:$4 sm:$0xff]  }
0x1f04   : > { %v24930_v12 = vpop.f32.mrf.mxu0  ;;  %17065 = vmatprep.subr.bf16.mxu1 %v22033_v10  ;;  %v22096_v10 = vld [vmem:[%s22855_s6 + $0x1030] ss:$48 sps:$4 sm:$0xff]  }
0x1f05   : > { %17109 = vmatpush1.bf16.msra.mxu0 %v22028_v11  ;;  %v22104_v11 = vld [vmem:[%s22855_s6 + $0xfd4] ss:$48 sps:$4 sm:$0xff]  }
0x1f06   : > { %17016 = vmatmul.mubr.bf16.vlgmr.msra.gmra.mxu1 %v24712_v44  ;;  %v24935_v16 = vpop.f32.mrf.mxu0  ;;  %17110 = vmatprep.subr.bf16.mxu0 %v22036_v41  ;;  %v22099_v41 = vld [vmem:[%s22855_s6 + $0x3d8] ss:$48 sps:$4 sm:$0xff]  }
0x1f07   : > { %17066 = vmatpush1.bf16.msra.mxu1 %v22031_v46  ;;  %20060 = vmatprep.mubr.msk.bf16.mxu1 %vm16697_vm8, %v24726_v52  ;;  %v22107_v46 = vld [vmem:[%s22855_s6 + $0x37c] ss:$48 sps:$4 sm:$0xff]  }
0x1f08   : > { %v16816_v17 = vpop.f32.mrf.mxu0  ;;  %17067 = vmatprep.subr.bf16.mxu1 %v22039_v33  ;;  %v22102_v33 = vld [vmem:[%s22855_s6 + $0xfd0] ss:$48 sps:$4 sm:$0xff]  }
0x1f09   : > { %17111 = vmatpush1.bf16.msra.mxu0 %v22034_v9  ;;  %v22110_v9 = vld [vmem:[%s22855_s6 + $0xf74] ss:$48 sps:$4 sm:$0xff]   ;;  %v22108_v17 = vld [vmem:[%s22855_s6 + $0xf70] ss:$48 sps:$4 sm:$0xff]  }
0x1f0a   : > { %v24943_v13 = vpop.f32.mrf.mxu1  ;;  %v16817_v23 = vpop.f32.mrf.mxu0  ;;  %17112 = vmatprep.subr.bf16.mxu0 %v22042_v14  ;;  %v22105_v14 = vld [vmem:[%s22855_s6 + $0x378] ss:$48 sps:$4 sm:$0xff]  }
0x1f0b   : > { %17068 = vmatpush1.bf16.msra.mxu1 %v22037_v55  ;;  %v22113_v55 = vld [vmem:[%s22855_s6 + $0x31c] ss:$48 sps:$4 sm:$0xff]  }
0x1f0c   : > { %v24947_v43 = vpop.f32.mrf.mxu1  ;;  %17069 = vmatprep.subr.bf16.mxu1 %v22045_v20  ;;  %v22116_v20 = vld [vmem:[%s22855_s6 + $0xf14] ss:$48 sps:$4 sm:$0xff]   ;;  %v22119_v23 = vld [vmem:[%s22855_s6 + $0xebc] ss:$48 sps:$4 sm:$0xff]  }
0x1f0d   : > { %17113 = vmatpush1.bf16.msra.mxu0 %v22040_v53  ;;  %v22111_v53 = vld [vmem:[%s22855_s6 + $0x318] ss:$48 sps:$4 sm:$0xff]  }
0x1f0e   : > { %v16775_v28 = vpop.f32.mrf.mxu1  ;;  %17114 = vmatprep.subr.bf16.mxu0 %v22048_v21  ;;  %v22114_v21 = vld [vmem:[%s22855_s6 + $0xf10] ss:$48 sps:$4 sm:$0xff]  }
0x1f0f   : > { %17070 = vmatpush1.bf16.msra.mxu1 %v22043_v25  ;;  %v22122_v25 = vld [vmem:[%s22855_s6 + $0x8bc] ss:$48 sps:$4 sm:$0xff]   ;;  %v22120_v28 = vld [vmem:[%s22855_s6 + $0x8b8] ss:$48 sps:$4 sm:$0xff]  }
0x1f10   : > { %v16776_v7 = vpop.f32.mrf.mxu1  ;;  %17071 = vmatprep.subr.bf16.mxu1 %v22051_v5  ;;  %v22117_v5 = vld [vmem:[%s22855_s6 + $0xeb8] ss:$48 sps:$4 sm:$0xff]  }
0x1f11   : > { %17115 = vmatpush1.bf16.msra.mxu0 %v22046_v37  ;;  %v22125_v37 = vld [vmem:[%s22855_s6 + $0xe5c] ss:$48 sps:$4 sm:$0xff]  }
0x1f12   : > { %17116 = vmatprep.subr.bf16.mxu0 %v22054_v3  ;;  %v22128_v3 = vld [vmem:[%s22855_s6 + $0x85c] ss:$48 sps:$4 sm:$0xff]  }
0x1f13   : > { %17072 = vmatpush1.bf16.msra.mxu1 %v22049_v30  ;;  %v22123_v30 = vld [vmem:[%s22855_s6 + $0xe58] ss:$48 sps:$4 sm:$0xff]   ;;  %v22131_v7 = vld [vmem:[%s22855_s6 + $0xdfc] ss:$48 sps:$4 sm:$0xff]  }
0x1f14   : > { %17073 = vmatprep.subr.bf16.mxu1 %v22057_v34  ;;  %v22126_v34 = vld [vmem:[%s22855_s6 + $0x858] ss:$48 sps:$4 sm:$0xff]  }
0x1f15   : > { %17117 = vmatpush1.bf16.msra.mxu0 %v22052_v35 }
0x1f16   : > { %17118 = vmatprep.subr.bf16.mxu0 %v22060_v40  ;;  %v22134_v40 = vld [vmem:[%s22855_s6 + $0x7fc] ss:$48 sps:$4 sm:$0xff]  }
0x1f17   : > { %17074 = vmatpush1.bf16.msra.mxu1 %v22055_v48  ;;  %v16813_v48 = vadd.f32 %v24930_v12, %v24943_v13  ;;  %v22140_v12 = vld [vmem:[%s22855_s6 + $0x79c] ss:$48 sps:$4 sm:$0xff]  }
0x1f18   : > { %17075 = vmatprep.subr.bf16.mxu1 %v22063_v31  ;;  %v22129_v31 = vld [vmem:[%s22855_s6 + $0xdf8] ss:$48 sps:$4 sm:$0xff]  }
0x1f19   : > { %17119 = vmatpush1.bf16.msra.mxu0 %v22058_v15 }
0x1f1a   : > { %17120 = vmatprep.subr.bf16.mxu0 %v22066_v27 }
0x1f1b   : > { %17076 = vmatpush1.bf16.msra.mxu1 %v22061_v1  ;;  %v22137_v1 = vld [vmem:[%s22855_s6 + $0xd9c] ss:$48 sps:$4 sm:$0xff]  }
0x1f1c   : > { %17077 = vmatprep.subr.bf16.mxu1 %v22069_v32  ;;  %v16815_v32 = vadd.f32 %v24935_v16, %v24947_v43  ;;  %v22143_v16 = vld [vmem:[%s22855_s6 + $0xd3c] ss:$48 sps:$4 sm:$0xff]  }
0x1f1d   : > { %17121 = vmatpush1.bf16.msra.mxu0 %v22064_v50 }
0x1f1e   : > { %17122 = vmatprep.subr.bf16.mxu0 %v22072_v29  ;;  %v22132_v29 = vld [vmem:[%s22855_s6 + $0x7f8] ss:$48 sps:$4 sm:$0xff]  }
0x1f1f   : > { %17078 = vmatpush1.bf16.msra.mxu1 %v22067_v18 }
0x1f20   : > { %17079 = vmatprep.subr.bf16.mxu1 %v22075_v47 }
0x1f21   : > { %17123 = vmatpush2.bf16.msra.mxu0 %v22070_v39 }
0x1f22   : > { %17124 = vmatprep.subr.bf16.mxu0 %v22078_v51 }
0x1f23   : > { %17080 = vmatpush1.bf16.msra.mxu1 %v22073_v38 }
0x1f24   : > { %20059 = vmatprep.subr.msk.bf16.mxu1 %vm1696_vm0, %v20048_v36  ;;  %v22138_v36 = vld [vmem:[%s22855_s6 + $0x798] ss:$48 sps:$4 sm:$0xff]  }
0x1f25   : > { %17125 = vmatpush2.bf16.msra.mxu0 %v22076_v0  ;;  %v22146_v0 = vld [vmem:[%s22855_s6 + $0x73c] ss:$48 sps:$4 sm:$0xff]  }
0x1f26   : > { %17126 = vmatprep.subr.bf16.mxu0 %v22083_v56  ;;  %v22141_v56 = vld [vmem:[%s22855_s6 + $0xd38] ss:$48 sps:$4 sm:$0xff]  }
0x1f27   : > { %17084 = vmatpush2.bf16.msra.mxu1 %v16714_v54  ;;  %v22149_v54 = vld [vmem:[%s22855_s6 + $0xcdc] ss:$48 sps:$4 sm:$0xff]  }
0x1f28   : > { %17085 = vmatprep.subr.bf16.mxu1 %v22086_v19  ;;  %v22144_v19 = vld [vmem:[%s22855_s6 + $0x738] ss:$48 sps:$4 sm:$0xff]  }
0x1f29   : > { %17127 = vmatpush2.bf16.msra.mxu0 %v22081_v49  ;;  %v22152_v49 = vld [vmem:[%s22855_s6 + $0x6dc] ss:$48 sps:$4 sm:$0xff]  }
0x1f2a   : > { %17128 = vmatprep.subr.bf16.mxu0 %v22089_v58  ;;  %v22147_v58 = vld [vmem:[%s22855_s6 + $0xcd8] ss:$48 sps:$4 sm:$0xff]  }
0x1f2b   : > { %17086 = vmatpush2.bf16.msra.mxu1 %v22084_v59  ;;  %v22155_v59 = vld [vmem:[%s22855_s6 + $0xc7c] ss:$48 sps:$4 sm:$0xff]  }
0x1f2c   : > { %17087 = vmatprep.subr.bf16.mxu1 %v22092_v60  ;;  %v22150_v60 = vld [vmem:[%s22855_s6 + $0x6d8] ss:$48 sps:$4 sm:$0xff]  }
0x1f2d   : > { %17129 = vmatpush2.bf16.msra.mxu0 %v22087_v57  ;;  %v22158_v57 = vld [vmem:[%s22855_s6 + $0x67c] ss:$48 sps:$4 sm:$0xff]  }
0x1f2e   : > { %17130 = vmatprep.subr.bf16.mxu0 %v22095_v62  ;;  %v22153_v62 = vld [vmem:[%s22855_s6 + $0xc78] ss:$48 sps:$4 sm:$0xff]  }
0x1f2f   : > { %17088 = vmatpush2.bf16.msra.mxu1 %v22090_v63  ;;  %v22161_v63 = vld [vmem:[%s22855_s6 + $0xc1c] ss:$48 sps:$4 sm:$0xff]  }
0x1f30   : > { %17089 = vmatprep.subr.bf16.mxu1 %v22098_v24  ;;  %v22156_v24 = vld [vmem:[%s22855_s6 + $0x678] ss:$48 sps:$4 sm:$0xff]  }
0x1f31   : > { %17131 = vmatpush2.bf16.msra.mxu0 %v22093_v4  ;;  %v13904_v4 = vld [vmem:[%s22855_s6 + $0x1158] sm:$0x11] }
0x1f32   : > { %17132 = vmatprep.subr.bf16.mxu0 %v22101_v6  ;;  %v22164_v6 = vld [vmem:[%s22855_s6 + $0x61c] ss:$48 sps:$4 sm:$0xff]  }
0x1f33   : > { %17090 = vmatpush2.bf16.msra.mxu1 %v22096_v10  ;;  %v22159_v10 = vld [vmem:[%s22855_s6 + $0xc18] ss:$48 sps:$4 sm:$0xff]  }
0x1f34   : > { %17091 = vmatprep.subr.bf16.mxu1 %v22104_v11  ;;  %v20050_v11 = vcombine.high %v13904_v4, %v13904_v4 }
0x1f35   : > { %17133 = vmatpush2.bf16.msra.mxu0 %v22099_v41  ;;  %v20049_v41 = vcombine.low %v13904_v4, %v13904_v4  ;;  %v22232_v4 = vld [vmem:[%s22855_s6 + $0x744] ss:$48 sps:$4 sm:$0xff]  }
0x1f36   : > { %17134 = vmatprep.subr.bf16.mxu0 %v22107_v46  ;;  %v22162_v46 = vld [vmem:[%s22855_s6 + $0x618] ss:$48 sps:$4 sm:$0xff]  }
0x1f37   : > { %17092 = vmatpush2.bf16.msra.mxu1 %v22102_v33  ;;  %v22169_v33 = vld [vmem:[%s22855_s6 + $0xbbc] ss:$48 sps:$4 sm:$0xff]  }
0x1f38   : > { %17093 = vmatprep.subr.bf16.mxu1 %v22110_v9  ;;  %v16720_v9 = vsel %vm1696_vm0, %v20049_v41, 0  ;;  %v22235_v41 = vld [vmem:[%s22855_s6 + $0x1a4] ss:$48 sps:$4 sm:$0xff]  }
0x1f39   : > { %17135 = vmatpush2.bf16.msra.mxu0 %v22105_v14  ;;  %v22172_v14 = vld [vmem:[%s22855_s6 + $0x10fc] ss:$48 sps:$4 sm:$0xff]  }
0x1f3a   : > { %17136 = vmatprep.subr.bf16.mxu0 %v22113_v55  ;;  %v22167_v55 = vld [vmem:[%s22855_s6 + $0xbb8] ss:$48 sps:$4 sm:$0xff]  }
0x1f3b   : > { %17094 = vmatpush2.bf16.msra.mxu1 %v22108_v17  ;;  %v22175_v17 = vld [vmem:[%s22855_s6 + $0xb5c] ss:$48 sps:$4 sm:$0xff]  }
0x1f3c   : > { %17095 = vmatprep.subr.bf16.mxu1 %v22116_v20  ;;  %v22170_v20 = vld [vmem:[%s22855_s6 + $0x10f8] ss:$48 sps:$4 sm:$0xff]  }
0x1f3d   : > { %17137 = vmatpush2.bf16.msra.mxu0 %v22111_v53  ;;  %v22178_v53 = vld [vmem:[%s22855_s6 + $0x109c] ss:$48 sps:$4 sm:$0xff]  }
0x1f3e   : > { %17188 = vmatprep.subr.bf16.mxu0 %v22119_v23  ;;  %v22173_v23 = vld [vmem:[%s22855_s6 + $0xb58] ss:$48 sps:$4 sm:$0xff]  }
0x1f3f   : > { %17096 = vmatpush2.bf16.msra.mxu1 %v22114_v21  ;;  %v22181_v21 = vld [vmem:[%s22855_s6 + $0xafc] ss:$48 sps:$4 sm:$0xff]  }
0x1f40   : > { %17139 = vmatmul.mubr.bf16.vlgmr.msra.gmra.mxu0 %v24712_v44  ;;  %17147 = vmatprep.subr.bf16.mxu1 %v22122_v25  ;;  %v22176_v25 = vld [vmem:[%s22855_s6 + $0x1098] ss:$48 sps:$4 sm:$0xff]  }
0x1f41   : > { %17189 = vmatpush1.bf16.msra.mxu0 %v22117_v5  ;;  %20062 = vmatprep.mubr.msk.bf16.mxu0 %vm16697_vm8, %v24726_v52  ;;  %v22184_v5 = vld [vmem:[%s22855_s6 + $0x103c] ss:$48 sps:$4 sm:$0xff]  }
0x1f42   : > { %17098 = vmatmul.mubr.bf16.vlgmr.msra.gmra.mxu1 %v24788_v42  ;;  %17190 = vmatprep.subr.bf16.mxu0 %v22125_v37  ;;  %v22179_v37 = vld [vmem:[%s22855_s6 + $0xaf8] ss:$48 sps:$4 sm:$0xff]  }
0x1f43   : > { %17148 = vmatpush1.bf16.msra.mxu1 %v22120_v28  ;;  %17179 = vmatprep.mubr.bf16.mxu1 %v24693_v22  ;;  %v22187_v28 = vld [vmem:[%s22855_s6 + $0xa9c] ss:$48 sps:$4 sm:$0xff]  }
0x1f44   : > { %v25011_v35 = vpop.f32.mrf.mxu0  ;;  %17149 = vmatprep.subr.bf16.mxu1 %v22128_v3  ;;  %v22182_v3 = vld [vmem:[%s22855_s6 + $0x1038] ss:$48 sps:$4 sm:$0xff]  }
0x1f45   : > { %17191 = vmatpush1.bf16.msra.mxu0 %v22123_v30  ;;  %v22190_v30 = vld [vmem:[%s22855_s6 + $0xfdc] ss:$48 sps:$4 sm:$0xff]  }
0x1f46   : > { %v16853_v15 = vpop.f32.mrf.mxu1  ;;  %v25017_v27 = vpop.f32.mrf.mxu0  ;;  %17192 = vmatprep.subr.bf16.mxu0 %v22131_v7  ;;  %v22185_v7 = vld [vmem:[%s22855_s6 + $0xa98] ss:$48 sps:$4 sm:$0xff]  }
0x1f47   : > { %v16854_v50 = vadd.f32 %v16853_v15, %v16813_v48  ;;  %17150 = vmatpush1.bf16.msra.mxu1 %v22126_v34  ;;  %v22193_v34 = vld [vmem:[%s22855_s6 + $0xa3c] ss:$48 sps:$4 sm:$0xff]  }
0x1f48   : > { %v16855_v18 = vpop.f32.mrf.mxu1  ;;  %v16898_v47 = vpop.f32.mrf.mxu0  ;;  %17151 = vmatprep.subr.bf16.mxu1 %v22134_v40  ;;  %v22188_v40 = vld [vmem:[%s22855_s6 + $0xfd8] ss:$48 sps:$4 sm:$0xff]   ;;  %v22196_v48 = vld [vmem:[%s22855_s6 + $0xf7c] ss:$48 sps:$4 sm:$0xff]  }
0x1f49   : > { %v25024_v13 = vpack.c.bf16 %v16854_v50, %v16854_v50  ;;  %v16856_v39 = vadd.f32 %v16855_v18, %v16815_v32  ;;  %17193 = vmatpush1.bf16.msra.mxu0 %v22129_v31  ;;  %v22191_v31 = vld [vmem:[%s22855_s6 + $0xa38] ss:$48 sps:$4 sm:$0xff]   ;;  %v22199_v15 = vld [vmem:[%s22855_s6 + $0x9dc] ss:$48 sps:$4 sm:$0xff]   ;;  %v22208_v47 = vld [vmem:[%s22855_s6 + $0x8c4] ss:$48 sps:$4 sm:$0xff]  }
0x1f4a   : > { %v16857_v51 = vpop.f32.mrf.mxu1  ;;  %v16899_v38 = vpop.f32.mrf.mxu0  ;;  %17194 = vmatprep.subr.bf16.mxu0 %v22137_v1  ;;  %v22194_v1 = vld [vmem:[%s22855_s6 + $0xf78] ss:$48 sps:$4 sm:$0xff]   ;;  %v22202_v32 = vld [vmem:[%s22855_s6 + $0xf1c] ss:$48 sps:$4 sm:$0xff]  }
0x1f4b   : > { %v25028_v43 = vpack.c.bf16 %v16856_v39, %v16856_v39  ;;  %17152 = vmatpush1.bf16.msra.mxu1 %v22132_v29  ;;  %17502 = vrot.lane.b32.xlu1 %v25024_v13, %s25698_s1  ;;  %v22197_v50 = vld [vmem:[%s22855_s6 + $0x9d8] ss:$48 sps:$4 sm:$0xff]   ;;  %v22205_v29 = vld [vmem:[%s22855_s6 + $0x97c] ss:$48 sps:$4 sm:$0xff]   ;;  %v22214_v51 = vld [vmem:[%s22855_s6 + $0x864] ss:$48 sps:$4 sm:$0xff]  }
0x1f4c   : > { %v16858_v26 = vpop.f32.mrf.mxu1  ;;  %17153 = vmatprep.subr.bf16.mxu1 %v22140_v12  ;;  %v22200_v18 = vld [vmem:[%s22855_s6 + $0xf18] ss:$48 sps:$4 sm:$0xff]   ;;  %v22211_v39 = vld [vmem:[%s22855_s6 + $0x91c] ss:$48 sps:$4 sm:$0xff]  }
0x1f4d   : > { %17195 = vmatpush1.bf16.msra.mxu0 %v22135_v45  ;;  %17504 = vrot.lane.b32.xlu0 %v25028_v43, %s25698_s1  ;;  %v22203_v12 = vld [vmem:[%s22855_s6 + $0x978] ss:$48 sps:$4 sm:$0xff]   ;;  %v22206_v45 = vld [vmem:[%s22855_s6 + $0x8c0] ss:$48 sps:$4 sm:$0xff]   ;;  %v22220_v26 = vld [vmem:[%s22855_s6 + $0x804] ss:$48 sps:$4 sm:$0xff]  }
0x1f4e   : > { %17196 = vmatprep.subr.bf16.mxu0 %v22143_v16  ;;  %v22209_v38 = vld [vmem:[%s22855_s6 + $0x918] ss:$48 sps:$4 sm:$0xff]   ;;  %v22217_v16 = vld [vmem:[%s22855_s6 + $0x2c4] ss:$48 sps:$4 sm:$0xff]  }
0x1f4f   : > { %17154 = vmatpush1.bf16.msra.mxu1 %v22138_v36  ;;  %v22212_v36 = vld [vmem:[%s22855_s6 + $0x860] ss:$48 sps:$4 sm:$0xff]  }
0x1f50   : > { %17155 = vmatprep.subr.bf16.mxu1 %v22146_v0  ;;  %v22215_v0 = vld [vmem:[%s22855_s6 + $0x2c0] ss:$48 sps:$4 sm:$0xff]  }
0x1f51   : > { %17197 = vmatpush1.bf16.msra.mxu0 %v22141_v56 }
0x1f52   : > { %17198 = vmatprep.subr.bf16.mxu0 %v22149_v54  ;;  %v22223_v54 = vld [vmem:[%s22855_s6 + $0x264] ss:$48 sps:$4 sm:$0xff]  }
0x1f53   : > { %17156 = vmatpush1.bf16.msra.mxu1 %v22144_v19  ;;  %v22218_v19 = vld [vmem:[%s22855_s6 + $0x800] ss:$48 sps:$4 sm:$0xff]  }
0x1f54   : > { %17157 = vmatprep.subr.bf16.mxu1 %v22152_v49 }
0x1f55   : > { %17199 = vmatpush1.bf16.msra.mxu0 %v22147_v58  ;;  %v22226_v58 = vld [vmem:[%s22855_s6 + $0x7a4] ss:$48 sps:$4 sm:$0xff]  }
0x1f56   : > { %17200 = vmatprep.subr.bf16.mxu0 %v22155_v59  ;;  %v22221_v59 = vld [vmem:[%s22855_s6 + $0x260] ss:$48 sps:$4 sm:$0xff]  }
0x1f57   : > { %17158 = vmatpush1.bf16.msra.mxu1 %v22150_v60 }
0x1f58   : > { %17159 = vmatprep.subr.bf16.mxu1 %v22158_v57  ;;  %v22229_v57 = vld [vmem:[%s22855_s6 + $0x204] ss:$48 sps:$4 sm:$0xff]  }
0x1f59   : > { %17201 = vmatpush1.bf16.msra.mxu0 %v22153_v62  ;;  %v22224_v62 = vld [vmem:[%s22855_s6 + $0x7a0] ss:$48 sps:$4 sm:$0xff]  }
0x1f5a   : > { %17202 = vmatprep.subr.bf16.mxu0 %v22161_v63 }
0x1f5b   : > { %17160 = vmatpush1.bf16.msra.mxu1 %v22156_v24 }
0x1f5c   : > { %17161 = vmatprep.subr.bf16.mxu1 %v22164_v6 }
0x1f5d   : > { %17203 = vmatpush1.bf16.msra.mxu0 %v22159_v10  ;;  %v22227_v10 = vld [vmem:[%s22855_s6 + $0x200] ss:$48 sps:$4 sm:$0xff]  }
0x1f5e   : > { %20061 = vmatprep.subr.msk.bf16.mxu0 %vm1696_vm0, %v20050_v11 }
0x1f5f   : > { %17162 = vmatpush1.bf16.msra.mxu1 %v22162_v46 }
0x1f60   : > { %17163 = vmatprep.subr.bf16.mxu1 %v22169_v33 }
0x1f61   : > { %17207 = vmatpush2.bf16.msra.mxu0 %v16720_v9  ;;  %v22230_v9 = vld [vmem:[%s22855_s6 + $0x740] ss:$48 sps:$4 sm:$0xff]  }
0x1f62   : > { %17208 = vmatprep.subr.bf16.mxu0 %v22172_v14 }
0x1f63   : > { %17164 = vmatpush2.bf16.msra.mxu1 %v22167_v55  ;;  %v22238_v55 = vld [vmem:[%s22855_s6 + $0x6e4] ss:$48 sps:$4 sm:$0xff]  }
0x1f64   : > { %17165 = vmatprep.subr.bf16.mxu1 %v22175_v17 }
0x1f65   : > { %17209 = vmatpush2.bf16.msra.mxu0 %v22170_v20  ;;  %v22233_v20 = vld [vmem:[%s22855_s6 + $0x1a0] ss:$48 sps:$4 sm:$0xff]  }
0x1f66   : > { %17210 = vmatprep.subr.bf16.mxu0 %v22178_v53 }
0x1f67   : > { %17166 = vmatpush2.bf16.msra.mxu1 %v22173_v23  ;;  %v22241_v23 = vld [vmem:[%s22855_s6 + $0x144] ss:$48 sps:$4 sm:$0xff]  }
0x1f68   : > { %17167 = vmatprep.subr.bf16.mxu1 %v22181_v21  ;;  %v22236_v21 = vld [vmem:[%s22855_s6 + $0x6e0] ss:$48 sps:$4 sm:$0xff]  }
0x1f69   : > { %17211 = vmatpush2.bf16.msra.mxu0 %v22176_v25  ;;  %v22244_v25 = vld [vmem:[%s22855_s6 + $0x684] ss:$48 sps:$4 sm:$0xff]  }
0x1f6a   : > { %17212 = vmatprep.subr.bf16.mxu0 %v22184_v5  ;;  %v22239_v5 = vld [vmem:[%s22855_s6 + $0x140] ss:$48 sps:$4 sm:$0xff]  }
0x1f6b   : > { %17168 = vmatpush2.bf16.msra.mxu1 %v22179_v37  ;;  %v22247_v37 = vld [vmem:[%s22855_s6 + $0xe4] ss:$48 sps:$4 sm:$0xff]  }
0x1f6c   : > { %17169 = vmatprep.subr.bf16.mxu1 %v22187_v28  ;;  %v22242_v28 = vld [vmem:[%s22855_s6 + $0x680] ss:$48 sps:$4 sm:$0xff]  }
0x1f6d   : > { %17213 = vmatpush2.bf16.msra.mxu0 %v22182_v3  ;;  %v22250_v3 = vld [vmem:[%s22855_s6 + $0x624] ss:$48 sps:$4 sm:$0xff]  }
0x1f6e   : > { %17214 = vmatprep.subr.bf16.mxu0 %v22190_v30  ;;  %v22245_v30 = vld [vmem:[%s22855_s6 + $0xe0] ss:$48 sps:$4 sm:$0xff]  }
0x1f6f   : > { %17170 = vmatpush2.bf16.msra.mxu1 %v22185_v7  ;;  %v22253_v7 = vld [vmem:[%s22855_s6 + $0x84] ss:$48 sps:$4 sm:$0xff]  }
0x1f70   : > { %17171 = vmatprep.subr.bf16.mxu1 %v22193_v34  ;;  %v22248_v34 = vld [vmem:[%s22855_s6 + $0x620] ss:$48 sps:$4 sm:$0xff]  }
0x1f71   : > { %17215 = vmatpush2.bf16.msra.mxu0 %v22188_v40  ;;  %v22256_v40 = vld [vmem:[%s22855_s6 + $0xbc4] ss:$48 sps:$4 sm:$0xff]  }
0x1f72   : > { %17216 = vmatprep.subr.bf16.mxu0 %v22196_v48  ;;  %v22251_v48 = vld [vmem:[%s22855_s6 + $0x80] ss:$48 sps:$4 sm:$0xff]  }
0x1f73   : > { %17172 = vmatpush2.bf16.msra.mxu1 %v22191_v31  ;;  %v22259_v31 = vld [vmem:[%s22855_s6 + $0x24] ss:$48 sps:$4 sm:$0xff]  }
0x1f74   : > { %17173 = vmatprep.subr.bf16.mxu1 %v22199_v15  ;;  %v22254_v15 = vld [vmem:[%s22855_s6 + $0xbc0] ss:$48 sps:$4 sm:$0xff]  }
0x1f75   : > { %17217 = vmatpush2.bf16.msra.mxu0 %v22194_v1  ;;  %v22262_v1 = vld [vmem:[%s22855_s6 + $0xb64] ss:$48 sps:$4 sm:$0xff]  }
0x1f76   : > { %17218 = vmatprep.subr.bf16.mxu0 %v22202_v32  ;;  %v22257_v32 = vld [vmem:[%s22855_s6 + $0x20] ss:$48 sps:$4 sm:$0xff]  }
0x1f77   : > { %17174 = vmatpush2.bf16.msra.mxu1 %v22197_v50  ;;  %v22265_v50 = vld [vmem:[%s22855_s6 + $0x5c4] ss:$48 sps:$4 sm:$0xff]  }
0x1f78   : > { %17175 = vmatprep.subr.bf16.mxu1 %v22205_v29  ;;  %v22260_v29 = vld [vmem:[%s22855_s6 + $0xb60] ss:$48 sps:$4 sm:$0xff]  }
0x1f79   : > { %17219 = vmatpush2.bf16.msra.mxu0 %v22200_v18  ;;  %v22268_v18 = vld [vmem:[%s22855_s6 + $0xb04] ss:$48 sps:$4 sm:$0xff]  }
0x1f7a   : > { %17270 = vmatprep.subr.bf16.mxu0 %v22208_v47  ;;  %v22263_v47 = vld [vmem:[%s22855_s6 + $0x5c0] ss:$48 sps:$4 sm:$0xff]  }
0x1f7b   : > { %17176 = vmatpush2.bf16.msra.mxu1 %v22203_v12  ;;  %v22271_v12 = vld [vmem:[%s22855_s6 + $0x564] ss:$48 sps:$4 sm:$0xff]  }
0x1f7c   : > { %17221 = vmatmul.mubr.bf16.vlgmr.msra.gmra.mxu0 %v24788_v42  ;;  %17177 = vmatprep.subr.bf16.mxu1 %v22211_v39  ;;  %v22266_v39 = vld [vmem:[%s22855_s6 + $0xb00] ss:$48 sps:$4 sm:$0xff]  }
0x1f7d   : > { %17271 = vmatpush1.bf16.msra.mxu0 %v22206_v45  ;;  %17302 = vmatprep.mubr.bf16.mxu0 %v24693_v22  ;;  %v22274_v45 = vld [vmem:[%s22855_s6 + $0xaa4] ss:$48 sps:$4 sm:$0xff]  }
0x1f7e   : > { %17272 = vmatprep.subr.bf16.mxu0 %v22214_v51  ;;  %v22269_v51 = vld [vmem:[%s22855_s6 + $0x560] ss:$48 sps:$4 sm:$0xff]  }
0x1f7f   : > { %17178 = vmatpush2.bf16.msra.mxu1 %v22209_v38  ;;  %v22277_v38 = vld [vmem:[%s22855_s6 + $0x504] ss:$48 sps:$4 sm:$0xff]  }
0x1f80   : > { %v16976_v56 = vpop.f32.mrf.mxu0  ;;  %17229 = vmatprep.subr.bf16.mxu1 %v22217_v16  ;;  %v22272_v16 = vld [vmem:[%s22855_s6 + $0xaa0] ss:$48 sps:$4 sm:$0xff]  }
0x1f81   : > { %17273 = vmatpush1.bf16.msra.mxu0 %v22212_v36  ;;  %v22280_v36 = vld [vmem:[%s22855_s6 + $0xa44] ss:$48 sps:$4 sm:$0xff]  }
0x1f82   : > { %v16978_v49 = vpop.f32.mrf.mxu0  ;;  %17180 = vmatmul.mubr.bf16.vlgmr.msra.gmra.mxu1 %v24698_v8  ;;  %17274 = vmatprep.subr.bf16.mxu0 %v22220_v26  ;;  %v22275_v26 = vld [vmem:[%s22855_s6 + $0x500] ss:$48 sps:$4 sm:$0xff]  }
0x1f83   : > { %17230 = vmatpush1.bf16.msra.mxu1 %v22215_v0  ;;  %17261 = vmatprep.mubr.bf16.mxu1 %v24708_v61  ;;  %v22283_v0 = vld [vmem:[%s22855_s6 + $0x4a4] ss:$48 sps:$4 sm:$0xff]  }
0x1f84   : > { %v16980_v60 = vpop.f32.mrf.mxu0  ;;  %17231 = vmatprep.subr.bf16.mxu1 %v22223_v54  ;;  %v22286_v54 = vld [vmem:[%s22855_s6 + $0x9e4] ss:$48 sps:$4 sm:$0xff]  }
0x1f85   : > { %17275 = vmatpush1.bf16.msra.mxu0 %v22218_v19  ;;  %v22281_v19 = vld [vmem:[%s22855_s6 + $0x4a0] ss:$48 sps:$4 sm:$0xff]  }
0x1f86   : > { %v16935_v63 = vpop.f32.mrf.mxu1  ;;  %v16981_v24 = vpop.f32.mrf.mxu0  ;;  %17276 = vmatprep.subr.bf16.mxu0 %v22226_v58  ;;  %v22284_v58 = vld [vmem:[%s22855_s6 + $0x9e0] ss:$48 sps:$4 sm:$0xff]  }
0x1f87   : > { %v16936_v6 = vadd.f32 %v16935_v63, %v25011_v35  ;;  %17232 = vmatpush1.bf16.msra.mxu1 %v22221_v59  ;;  %v22292_v59 = vld [vmem:[%s22855_s6 + $0x984] ss:$48 sps:$4 sm:$0xff]   ;;  %v22287_v60 = vld [vmem:[%s22855_s6 + $0x440] ss:$48 sps:$4 sm:$0xff]  }
0x1f88   : > { %v16937_v11 = vpop.f32.mrf.mxu1  ;;  %17233 = vmatprep.subr.bf16.mxu1 %v22229_v57  ;;  %v22295_v57 = vld [vmem:[%s22855_s6 + $0x3e4] ss:$48 sps:$4 sm:$0xff]   ;;  %v22293_v24 = vld [vmem:[%s22855_s6 + $0x3e0] ss:$48 sps:$4 sm:$0xff]  }
0x1f89   : > { %v16977_v46 = vadd.f32 %v16976_v56, %v16936_v6  ;;  %v16938_v33 = vadd.f32 %v16937_v11, %v25017_v27  ;;  %17277 = vmatpush1.bf16.msra.mxu0 %v22224_v62  ;;  %v22278_v56 = vld [vmem:[%s22855_s6 + $0xa40] ss:$48 sps:$4 sm:$0xff]   ;;  %v22298_v63 = vld [vmem:[%s22855_s6 + $0x924] ss:$48 sps:$4 sm:$0xff]  }
0x1f8a   : > { %v16939_v14 = vpop.f32.mrf.mxu1  ;;  %17278 = vmatprep.subr.bf16.mxu0 %v22232_v4  ;;  %v22290_v62 = vld [vmem:[%s22855_s6 + $0x980] ss:$48 sps:$4 sm:$0xff]   ;;  %v22301_v4 = vld [vmem:[%s22855_s6 + $0x384] ss:$48 sps:$4 sm:$0xff]  }
0x1f8b   : > { %v25105_v17 = vpack.c.bf16 %v16977_v46, %v16977_v46  ;;  %v16979_v35 = vadd.f32 %v16978_v49, %v16938_v33  ;;  %17234 = vmatpush1.bf16.msra.mxu1 %v22227_v10  ;;  %v22289_v49 = vld [vmem:[%s22855_s6 + $0x444] ss:$48 sps:$4 sm:$0xff]   ;;  %v22296_v6 = vld [vmem:[%s22855_s6 + $0x920] ss:$48 sps:$4 sm:$0xff]   ;;  %v22304_v10 = vld [vmem:[%s22855_s6 + $0x2cc] ss:$48 sps:$4 sm:$0xff]  }
0x1f8c   : > { %v16940_v53 = vpop.f32.mrf.mxu1  ;;  %17235 = vmatprep.subr.bf16.mxu1 %v22235_v41  ;;  %v22299_v11 = vld [vmem:[%s22855_s6 + $0x380] ss:$48 sps:$4 sm:$0xff]   ;;  %v22307_v41 = vld [vmem:[%s22855_s6 + $0x324] ss:$48 sps:$4 sm:$0xff]   ;;  %v22302_v46 = vld [vmem:[%s22855_s6 + $0x2c8] ss:$48 sps:$4 sm:$0xff]  }
0x1f8d   : > { %v25109_v27 = vpack.c.bf16 %v16979_v35, %v16979_v35  ;;  %17279 = vmatpush1.bf16.msra.mxu0 %v22230_v9  ;;  %17506 = vrot.lane.b32.xlu1 %v25105_v17, %s25698_s1  ;;  %v22310_v33 = vld [vmem:[%s22855_s6 + $0x26c] ss:$48 sps:$4 sm:$0xff]   ;;  %v22305_v9 = vld [vmem:[%s22855_s6 + $0x320] ss:$48 sps:$4 sm:$0xff]   ;;  %v22313_v14 = vld [vmem:[%s22855_s6 + $0xec4] ss:$48 sps:$4 sm:$0xff]  }
0x1f8e   : > { %17280 = vmatprep.subr.bf16.mxu0 %v22238_v55  ;;  %v22308_v55 = vld [vmem:[%s22855_s6 + $0x268] ss:$48 sps:$4 sm:$0xff]   ;;  %v22316_v35 = vld [vmem:[%s22855_s6 + $0x20c] ss:$48 sps:$4 sm:$0xff]  }
0x1f8f   : > { %17236 = vmatpush1.bf16.msra.mxu1 %v22233_v20  ;;  %17508 = vrot.lane.b32.xlu0 %v25109_v27, %s25698_s1  ;;  %v22311_v20 = vld [vmem:[%s22855_s6 + $0xec0] ss:$48 sps:$4 sm:$0xff]  }
0x1f90   : > { %17237 = vmatprep.subr.bf16.mxu1 %v22241_v23  ;;  %v22319_v23 = vld [vmem:[%s22855_s6 + $0xe64] ss:$48 sps:$4 sm:$0xff]  }
0x1f91   : > { %17281 = vmatpush1.bf16.msra.mxu0 %v22236_v21  ;;  %v22314_v21 = vld [vmem:[%s22855_s6 + $0x208] ss:$48 sps:$4 sm:$0xff]  }
0x1f92   : > { %17282 = vmatprep.subr.bf16.mxu0 %v22244_v25 }
0x1f93   : > { %17238 = vmatpush1.bf16.msra.mxu1 %v22239_v5  ;;  %v22317_v5 = vld [vmem:[%s22855_s6 + $0xe60] ss:$48 sps:$4 sm:$0xff]  }
0x1f94   : > { %17239 = vmatprep.subr.bf16.mxu1 %v22247_v37 }
0x1f95   : > { %17283 = vmatpush1.bf16.msra.mxu0 %v22242_v28  ;;  %v22325_v28 = vld [vmem:[%s22855_s6 + $0xe04] ss:$48 sps:$4 sm:$0xff]  }
0x1f96   : > { %17284 = vmatprep.subr.bf16.mxu0 %v22250_v3  ;;  %v22320_v3 = vld [vmem:[%s22855_s6 + $0x1a8] ss:$48 sps:$4 sm:$0xff]  }
0x1f97   : > { %17240 = vmatpush1.bf16.msra.mxu1 %v22245_v30 }
0x1f98   : > { %17241 = vmatprep.subr.bf16.mxu1 %v22253_v7 }
0x1f99   : > { %17285 = vmatpush1.bf16.msra.mxu0 %v22248_v34  ;;  %v22328_v34 = vld [vmem:[%s22855_s6 + $0x14c] ss:$48 sps:$4 sm:$0xff]  }
0x1f9a   : > { %17286 = vmatprep.subr.bf16.mxu0 %v22256_v40  ;;  %v22323_v40 = vld [vmem:[%s22855_s6 + $0xe00] ss:$48 sps:$4 sm:$0xff]  }
0x1f9b   : > { %17242 = vmatpush1.bf16.msra.mxu1 %v22251_v48 }
0x1f9c   : > { %17243 = vmatprep.subr.bf16.mxu1 %v22259_v31  ;;  %v22331_v31 = vld [vmem:[%s22855_s6 + $0xda4] ss:$48 sps:$4 sm:$0xff]  }
0x1f9d   : > { %17287 = vmatpush2.bf16.msra.mxu0 %v22254_v15  ;;  %v22326_v15 = vld [vmem:[%s22855_s6 + $0x148] ss:$48 sps:$4 sm:$0xff]  }
0x1f9e   : > { %17288 = vmatprep.subr.bf16.mxu0 %v22262_v1 }
0x1f9f   : > { %17244 = vmatpush1.bf16.msra.mxu1 %v22257_v32  ;;  %v22334_v32 = vld [vmem:[%s22855_s6 + $0xec] ss:$48 sps:$4 sm:$0xff]  }
0x1fa0   : > { %17245 = vmatprep.subr.bf16.mxu1 %v22265_v50  ;;  %v22329_v50 = vld [vmem:[%s22855_s6 + $0xda0] ss:$48 sps:$4 sm:$0xff]  }
0x1fa1   : > { %17289 = vmatpush2.bf16.msra.mxu0 %v22260_v29 }
0x1fa2   : > { %17290 = vmatprep.subr.bf16.mxu0 %v22268_v18  ;;  %v22337_v18 = vld [vmem:[%s22855_s6 + $0xd44] ss:$48 sps:$4 sm:$0xff]  }
0x1fa3   : > { %17246 = vmatpush2.bf16.msra.mxu1 %v22263_v47  ;;  %v22332_v47 = vld [vmem:[%s22855_s6 + $0xe8] ss:$48 sps:$4 sm:$0xff]  }
0x1fa4   : > { %17247 = vmatprep.subr.bf16.mxu1 %v22271_v12  ;;  %v22340_v12 = vld [vmem:[%s22855_s6 + $0x8c] ss:$48 sps:$4 sm:$0xff]  }
0x1fa5   : > { %17291 = vmatpush2.bf16.msra.mxu0 %v22266_v39  ;;  %v22335_v39 = vld [vmem:[%s22855_s6 + $0xd40] ss:$48 sps:$4 sm:$0xff]  }
0x1fa6   : > { %17292 = vmatprep.subr.bf16.mxu0 %v22274_v45  ;;  %v22343_v45 = vld [vmem:[%s22855_s6 + $0xce4] ss:$48 sps:$4 sm:$0xff]  }
0x1fa7   : > { %17248 = vmatpush2.bf16.msra.mxu1 %v22269_v51  ;;  %v22338_v51 = vld [vmem:[%s22855_s6 + $0x88] ss:$48 sps:$4 sm:$0xff]  }
0x1fa8   : > { %17249 = vmatprep.subr.bf16.mxu1 %v22277_v38  ;;  %v22346_v38 = vld [vmem:[%s22855_s6 + $0x2c] ss:$48 sps:$4 sm:$0xff]  }
0x1fa9   : > { %17293 = vmatpush2.bf16.msra.mxu0 %v22272_v16  ;;  %v22341_v16 = vld [vmem:[%s22855_s6 + $0xce0] ss:$48 sps:$4 sm:$0xff]  }
0x1faa   : > { %17294 = vmatprep.subr.bf16.mxu0 %v22280_v36  ;;  %v22349_v36 = vld [vmem:[%s22855_s6 + $0xc84] ss:$48 sps:$4 sm:$0xff]  }
0x1fab   : > { %17250 = vmatpush2.bf16.msra.mxu1 %v22275_v26  ;;  %v22344_v26 = vld [vmem:[%s22855_s6 + $0x28] ss:$48 sps:$4 sm:$0xff]  }
0x1fac   : > { %17251 = vmatprep.subr.bf16.mxu1 %v22283_v0  ;;  %v22352_v0 = vld [vmem:[%s22855_s6 + $0x5cc] ss:$48 sps:$4 sm:$0xff]  }
0x1fad   : > { %17295 = vmatpush2.bf16.msra.mxu0 %v22278_v56  ;;  %v22347_v56 = vld [vmem:[%s22855_s6 + $0xc80] ss:$48 sps:$4 sm:$0xff]  }
0x1fae   : > { %17296 = vmatprep.subr.bf16.mxu0 %v22286_v54  ;;  %v22355_v54 = vld [vmem:[%s22855_s6 + $0xc24] ss:$48 sps:$4 sm:$0xff]  }
0x1faf   : > { %17252 = vmatpush2.bf16.msra.mxu1 %v22281_v19  ;;  %v22350_v19 = vld [vmem:[%s22855_s6 + $0x5c8] ss:$48 sps:$4 sm:$0xff]  }
0x1fb0   : > { %17253 = vmatprep.subr.bf16.mxu1 %v22289_v49  ;;  %v13905_v49 = vld [vmem:[%s22855_s6 + $0x1160] sm:$0x11] }
0x1fb1   : > { %17297 = vmatpush2.bf16.msra.mxu0 %v22284_v58  ;;  %v22358_v58 = vld [vmem:[%s22855_s6 + $0x56c] ss:$48 sps:$4 sm:$0xff]  }
0x1fb2   : > { %17298 = vmatprep.subr.bf16.mxu0 %v22292_v59  ;;  %v22353_v59 = vld [vmem:[%s22855_s6 + $0xc20] ss:$48 sps:$4 sm:$0xff]  }
0x1fb3   : > { %17254 = vmatpush2.bf16.msra.mxu1 %v22287_v60  ;;  %v20052_v60 = vcombine.high %v13905_v49, %v13905_v49 }
0x1fb4   : > { %17255 = vmatprep.subr.bf16.mxu1 %v22295_v57  ;;  %v20051_v57 = vcombine.low %v13905_v49, %v13905_v49  ;;  %v22415_v49 = vld [vmem:[%s22855_s6 + $0xda8] ss:$48 sps:$4 sm:$0xff]  }
0x1fb5   : > { %17299 = vmatpush2.bf16.msra.mxu0 %v22290_v62  ;;  %v22356_v62 = vld [vmem:[%s22855_s6 + $0x568] ss:$48 sps:$4 sm:$0xff]  }
0x1fb6   : > { %17300 = vmatprep.subr.bf16.mxu0 %v22298_v63  ;;  %v22363_v63 = vld [vmem:[%s22855_s6 + $0x50c] ss:$48 sps:$4 sm:$0xff]  }
0x1fb7   : > { %17256 = vmatpush2.bf16.msra.mxu1 %v22293_v24  ;;  %v16726_v24 = vsel %vm1696_vm0, %v20051_v57, 0 }
0x1fb8   : > { %17257 = vmatprep.subr.bf16.mxu1 %v22301_v4  ;;  %v22366_v4 = vld [vmem:[%s22855_s6 + $0x1104] ss:$48 sps:$4 sm:$0xff]  }
0x1fb9   : > { %17301 = vmatpush2.bf16.msra.mxu0 %v22296_v6  ;;  %v22361_v6 = vld [vmem:[%s22855_s6 + $0x508] ss:$48 sps:$4 sm:$0xff]  }
0x1fba   : > { %17352 = vmatprep.subr.bf16.mxu0 %v22304_v10  ;;  %v22369_v10 = vld [vmem:[%s22855_s6 + $0x4ac] ss:$48 sps:$4 sm:$0xff]  }
0x1fbb   : > { %17258 = vmatpush2.bf16.msra.mxu1 %v22299_v11  ;;  %v22364_v11 = vld [vmem:[%s22855_s6 + $0x1100] ss:$48 sps:$4 sm:$0xff]  }
0x1fbc   : > { %17303 = vmatmul.mubr.bf16.vlgmr.msra.gmra.mxu0 %v24698_v8  ;;  %17259 = vmatprep.subr.bf16.mxu1 %v22307_v41  ;;  %v22372_v41 = vld [vmem:[%s22855_s6 + $0x10a4] ss:$48 sps:$4 sm:$0xff]  }
0x1fbd   : > { %17353 = vmatpush1.bf16.msra.mxu0 %v22302_v46  ;;  %17384 = vmatprep.mubr.bf16.mxu0 %v24708_v61  ;;  %v22322_v61 = vld [vmem:[%s22855_s6 + $0x1ac] ss:$48 sps:$4 sm:$0xff]   ;;  %v22367_v46 = vld [vmem:[%s22855_s6 + $0x4a8] ss:$48 sps:$4 sm:$0xff]  }
0x1fbe   : > { %17354 = vmatprep.subr.bf16.mxu0 %v22310_v33  ;;  %v22375_v33 = vld [vmem:[%s22855_s6 + $0x44c] ss:$48 sps:$4 sm:$0xff]  }
0x1fbf   : > { %17260 = vmatpush2.bf16.msra.mxu1 %v22305_v9  ;;  %v22370_v9 = vld [vmem:[%s22855_s6 + $0x10a0] ss:$48 sps:$4 sm:$0xff]  }
0x1fc0   : > { %v25168_v53 = vpop.f32.mrf.mxu0  ;;  %17311 = vmatprep.subr.bf16.mxu1 %v22313_v14  ;;  %v22378_v14 = vld [vmem:[%s22855_s6 + $0x1044] ss:$48 sps:$4 sm:$0xff]  }
0x1fc1   : > { %17355 = vmatpush1.bf16.msra.mxu0 %v22308_v55  ;;  %v22373_v55 = vld [vmem:[%s22855_s6 + $0x448] ss:$48 sps:$4 sm:$0xff]  }
0x1fc2   : > { %v25172_v25 = vpop.f32.mrf.mxu0  ;;  %17262 = vmatmul.mubr.bf16.vlgmr.msra.gmra.mxu1 %v24712_v44  ;;  %17356 = vmatprep.subr.bf16.mxu0 %v22316_v35  ;;  %v22381_v35 = vld [vmem:[%s22855_s6 + $0x3ec] ss:$48 sps:$4 sm:$0xff]  }
0x1fc3   : > { %17312 = vmatpush1.bf16.msra.mxu1 %v22311_v20  ;;  %20064 = vmatprep.mubr.msk.bf16.mxu1 %vm16697_vm8, %v24726_v52  ;;  %v22376_v20 = vld [vmem:[%s22855_s6 + $0x1040] ss:$48 sps:$4 sm:$0xff]  }
0x1fc4   : > { %v17062_v37 = vpop.f32.mrf.mxu0  ;;  %17313 = vmatprep.subr.bf16.mxu1 %v22319_v23  ;;  %v22384_v23 = vld [vmem:[%s22855_s6 + $0xfe4] ss:$48 sps:$4 sm:$0xff]  }
0x1fc5   : > { %17357 = vmatpush1.bf16.msra.mxu0 %v22314_v21  ;;  %v22379_v21 = vld [vmem:[%s22855_s6 + $0x3e8] ss:$48 sps:$4 sm:$0xff]   ;;  %v22390_v37 = vld [vmem:[%s22855_s6 + $0xf84] ss:$48 sps:$4 sm:$0xff]  }
0x1fc6   : > { %v25181_v30 = vpop.f32.mrf.mxu1  ;;  %v17063_v7 = vpop.f32.mrf.mxu0  ;;  %17358 = vmatprep.subr.bf16.mxu0 %v22322_v61  ;;  %v22387_v61 = vld [vmem:[%s22855_s6 + $0x38c] ss:$48 sps:$4 sm:$0xff]  }
0x1fc7   : > { %17314 = vmatpush1.bf16.msra.mxu1 %v22317_v5  ;;  %v22382_v5 = vld [vmem:[%s22855_s6 + $0xfe0] ss:$48 sps:$4 sm:$0xff]  }
0x1fc8   : > { %v25185_v48 = vpop.f32.mrf.mxu1  ;;  %17315 = vmatprep.subr.bf16.mxu1 %v22325_v28  ;;  %v22385_v28 = vld [vmem:[%s22855_s6 + $0x388] ss:$48 sps:$4 sm:$0xff]   ;;  %v22388_v7 = vld [vmem:[%s22855_s6 + $0xf80] ss:$48 sps:$4 sm:$0xff]  }
0x1fc9   : > { %17359 = vmatpush1.bf16.msra.mxu0 %v22320_v3  ;;  %v22393_v3 = vld [vmem:[%s22855_s6 + $0x32c] ss:$48 sps:$4 sm:$0xff]  }
0x1fca   : > { %v17021_v1 = vpop.f32.mrf.mxu1  ;;  %17360 = vmatprep.subr.bf16.mxu0 %v22328_v34  ;;  %v22396_v34 = vld [vmem:[%s22855_s6 + $0xf24] ss:$48 sps:$4 sm:$0xff]  }
0x1fcb   : > { %17316 = vmatpush1.bf16.msra.mxu1 %v22323_v40  ;;  %v22391_v40 = vld [vmem:[%s22855_s6 + $0x328] ss:$48 sps:$4 sm:$0xff]   ;;  %v22402_v1 = vld [vmem:[%s22855_s6 + $0x8cc] ss:$48 sps:$4 sm:$0xff]  }
0x1fcc   : > { %v17022_v29 = vpop.f32.mrf.mxu1  ;;  %17317 = vmatprep.subr.bf16.mxu1 %v22331_v31  ;;  %v22399_v31 = vld [vmem:[%s22855_s6 + $0xecc] ss:$48 sps:$4 sm:$0xff]  }
0x1fcd   : > { %17361 = vmatpush1.bf16.msra.mxu0 %v22326_v15  ;;  %v22394_v15 = vld [vmem:[%s22855_s6 + $0xf20] ss:$48 sps:$4 sm:$0xff]   ;;  %v22400_v29 = vld [vmem:[%s22855_s6 + $0x8c8] ss:$48 sps:$4 sm:$0xff]  }
0x1fce   : > { %17362 = vmatprep.subr.bf16.mxu0 %v22334_v32  ;;  %v22397_v32 = vld [vmem:[%s22855_s6 + $0xec8] ss:$48 sps:$4 sm:$0xff]  }
0x1fcf   : > { %17318 = vmatpush1.bf16.msra.mxu1 %v22329_v50  ;;  %v22405_v50 = vld [vmem:[%s22855_s6 + $0xe6c] ss:$48 sps:$4 sm:$0xff]  }
0x1fd0   : > { %17319 = vmatprep.subr.bf16.mxu1 %v22337_v18  ;;  %v22408_v18 = vld [vmem:[%s22855_s6 + $0x86c] ss:$48 sps:$4 sm:$0xff]  }
0x1fd1   : > { %17363 = vmatpush1.bf16.msra.mxu0 %v22332_v47  ;;  %v22403_v47 = vld [vmem:[%s22855_s6 + $0xe68] ss:$48 sps:$4 sm:$0xff]  }
0x1fd2   : > { %17364 = vmatprep.subr.bf16.mxu0 %v22340_v12  ;;  %v22411_v12 = vld [vmem:[%s22855_s6 + $0xe0c] ss:$48 sps:$4 sm:$0xff]  }
0x1fd3   : > { %17320 = vmatpush1.bf16.msra.mxu1 %v22335_v39  ;;  %v22406_v39 = vld [vmem:[%s22855_s6 + $0x868] ss:$48 sps:$4 sm:$0xff]  }
0x1fd4   : > { %17321 = vmatprep.subr.bf16.mxu1 %v22343_v45 }
0x1fd5   : > { %17365 = vmatpush1.bf16.msra.mxu0 %v22338_v51  ;;  %v17059_v51 = vadd.f32 %v25168_v53, %v25181_v30  ;;  %v22420_v53 = vld [vmem:[%s22855_s6 + $0x7ac] ss:$48 sps:$4 sm:$0xff]  }
0x1fd6   : > { %17366 = vmatprep.subr.bf16.mxu0 %v22346_v38 }
0x1fd7   : > { %17322 = vmatpush1.bf16.msra.mxu1 %v22341_v16 }
0x1fd8   : > { %17323 = vmatprep.subr.bf16.mxu1 %v22349_v36  ;;  %v22417_v36 = vld [vmem:[%s22855_s6 + $0xdac] ss:$48 sps:$4 sm:$0xff]  }
0x1fd9   : > { %17367 = vmatpush1.bf16.msra.mxu0 %v22344_v26 }
0x1fda   : > { %17368 = vmatprep.subr.bf16.mxu0 %v22352_v0  ;;  %v22412_v0 = vld [vmem:[%s22855_s6 + $0x808] ss:$48 sps:$4 sm:$0xff]  }
0x1fdb   : > { %17324 = vmatpush1.bf16.msra.mxu1 %v22347_v56 }
0x1fdc   : > { %17325 = vmatprep.subr.bf16.mxu1 %v22355_v54 }
0x1fdd   : > { %17369 = vmatpush2.bf16.msra.mxu0 %v22350_v19 }
0x1fde   : > { %17370 = vmatprep.subr.bf16.mxu0 %v22358_v58 }
0x1fdf   : > { %17326 = vmatpush1.bf16.msra.mxu1 %v22353_v59 }
0x1fe0   : > { %20063 = vmatprep.subr.msk.bf16.mxu1 %vm1696_vm0, %v20052_v60  ;;  %v22418_v60 = vld [vmem:[%s22855_s6 + $0x7a8] ss:$48 sps:$4 sm:$0xff]  }
0x1fe1   : > { %17371 = vmatpush2.bf16.msra.mxu0 %v22356_v62  ;;  %v22426_v62 = vld [vmem:[%s22855_s6 + $0x74c] ss:$48 sps:$4 sm:$0xff]  }
0x1fe2   : > { %17372 = vmatprep.subr.bf16.mxu0 %v22363_v63  ;;  %v22421_v63 = vld [vmem:[%s22855_s6 + $0xd48] ss:$48 sps:$4 sm:$0xff]  }
0x1fe3   : > { %17330 = vmatpush2.bf16.msra.mxu1 %v16726_v24  ;;  %v22429_v24 = vld [vmem:[%s22855_s6 + $0xcec] ss:$48 sps:$4 sm:$0xff]  }
0x1fe4   : > { %17331 = vmatprep.subr.bf16.mxu1 %v22366_v4  ;;  %v22424_v4 = vld [vmem:[%s22855_s6 + $0x748] ss:$48 sps:$4 sm:$0xff]  }
0x1fe5   : > { %17373 = vmatpush2.bf16.msra.mxu0 %v22361_v6  ;;  %v22432_v6 = vld [vmem:[%s22855_s6 + $0x6ec] ss:$48 sps:$4 sm:$0xff]  }
0x1fe6   : > { %17374 = vmatprep.subr.bf16.mxu0 %v22369_v10  ;;  %v22427_v10 = vld [vmem:[%s22855_s6 + $0xce8] ss:$48 sps:$4 sm:$0xff]  }
0x1fe7   : > { %17332 = vmatpush2.bf16.msra.mxu1 %v22364_v11  ;;  %v22435_v11 = vld [vmem:[%s22855_s6 + $0xc8c] ss:$48 sps:$4 sm:$0xff]  }
0x1fe8   : > { %17333 = vmatprep.subr.bf16.mxu1 %v22372_v41  ;;  %v22430_v41 = vld [vmem:[%s22855_s6 + $0x6e8] ss:$48 sps:$4 sm:$0xff]  }
0x1fe9   : > { %17375 = vmatpush2.bf16.msra.mxu0 %v22367_v46  ;;  %v22438_v46 = vld [vmem:[%s22855_s6 + $0x68c] ss:$48 sps:$4 sm:$0xff]  }
0x1fea   : > { %17376 = vmatprep.subr.bf16.mxu0 %v22375_v33  ;;  %v22433_v33 = vld [vmem:[%s22855_s6 + $0xc88] ss:$48 sps:$4 sm:$0xff]  }
0x1feb   : > { %17334 = vmatpush2.bf16.msra.mxu1 %v22370_v9  ;;  %v22441_v9 = vld [vmem:[%s22855_s6 + $0xc2c] ss:$48 sps:$4 sm:$0xff]  }
0x1fec   : > { %17335 = vmatprep.subr.bf16.mxu1 %v22378_v14  ;;  %v22436_v14 = vld [vmem:[%s22855_s6 + $0x688] ss:$48 sps:$4 sm:$0xff]  }
0x1fed   : > { %17377 = vmatpush2.bf16.msra.mxu0 %v22373_v55  ;;  %v13906_v55 = vld [vmem:[%s22855_s6 + $0x1168] sm:$0x11] }
0x1fee   : > { %17378 = vmatprep.subr.bf16.mxu0 %v22381_v35  ;;  %v22444_v35 = vld [vmem:[%s22855_s6 + $0x62c] ss:$48 sps:$4 sm:$0xff]  }
0x1fef   : > { %17336 = vmatpush2.bf16.msra.mxu1 %v22376_v20  ;;  %v22439_v20 = vld [vmem:[%s22855_s6 + $0xc28] ss:$48 sps:$4 sm:$0xff]  }
0x1ff0   : > { %17337 = vmatprep.subr.bf16.mxu1 %v22384_v23  ;;  %v20054_v23 = vcombine.high %v13906_v55, %v13906_v55 }
0x1ff1   : > { %17379 = vmatpush2.bf16.msra.mxu0 %v22379_v21  ;;  %v20053_v21 = vcombine.low %v13906_v55, %v13906_v55 }
0x1ff2   : > { %17380 = vmatprep.subr.bf16.mxu0 %v22387_v61  ;;  %v22442_v61 = vld [vmem:[%s22855_s6 + $0x628] ss:$48 sps:$4 sm:$0xff]  }
0x1ff3   : > { %17338 = vmatpush2.bf16.msra.mxu1 %v22382_v5  ;;  %v22449_v5 = vld [vmem:[%s22855_s6 + $0xbcc] ss:$48 sps:$4 sm:$0xff]  }
0x1ff4   : > { %17339 = vmatprep.subr.bf16.mxu1 %v22390_v37  ;;  %v16732_v37 = vsel %vm1696_vm0, %v20053_v21, 0 }
0x1ff5   : > { %17381 = vmatpush2.bf16.msra.mxu0 %v22385_v28  ;;  %v22452_v28 = vld [vmem:[%s22855_s6 + $0x110c] ss:$48 sps:$4 sm:$0xff]  }
0x1ff6   : > { %17382 = vmatprep.subr.bf16.mxu0 %v22393_v3  ;;  %v22447_v3 = vld [vmem:[%s22855_s6 + $0xbc8] ss:$48 sps:$4 sm:$0xff]  }
0x1ff7   : > { %17340 = vmatpush2.bf16.msra.mxu1 %v22388_v7  ;;  %v22455_v7 = vld [vmem:[%s22855_s6 + $0xb6c] ss:$48 sps:$4 sm:$0xff]  }
0x1ff8   : > { %17341 = vmatprep.subr.bf16.mxu1 %v22396_v34  ;;  %v22450_v34 = vld [vmem:[%s22855_s6 + $0x1108] ss:$48 sps:$4 sm:$0xff]  }
0x1ff9   : > { %17383 = vmatpush2.bf16.msra.mxu0 %v22391_v40  ;;  %v22458_v40 = vld [vmem:[%s22855_s6 + $0x10ac] ss:$48 sps:$4 sm:$0xff]  }
0x1ffa   : > { %17434 = vmatprep.subr.bf16.mxu0 %v22399_v31  ;;  %v22453_v31 = vld [vmem:[%s22855_s6 + $0xb68] ss:$48 sps:$4 sm:$0xff]  }
0x1ffb   : > { %17342 = vmatpush2.bf16.msra.mxu1 %v22394_v15  ;;  %v22461_v15 = vld [vmem:[%s22855_s6 + $0xb0c] ss:$48 sps:$4 sm:$0xff]  }
0x1ffc   : > { %17385 = vmatmul.mubr.bf16.vlgmr.msra.gmra.mxu0 %v24712_v44  ;;  %17393 = vmatprep.subr.bf16.mxu1 %v22402_v1  ;;  %v22414_v44 = vld [vmem:[%s22855_s6 + $0x80c] ss:$48 sps:$4 sm:$0xff]   ;;  %v22456_v1 = vld [vmem:[%s22855_s6 + $0x10a8] ss:$48 sps:$4 sm:$0xff]  }
0x1ffd   : > { %17435 = vmatpush1.bf16.msra.mxu0 %v22397_v32  ;;  %20066 = vmatprep.mubr.msk.bf16.mxu0 %vm16697_vm8, %v24726_v52  ;;  %v22409_v52 = vld [vmem:[%s22855_s6 + $0xe08] ss:$48 sps:$4 sm:$0xff]   ;;  %v22464_v32 = vld [vmem:[%s22855_s6 + $0x104c] ss:$48 sps:$4 sm:$0xff]  }
0x1ffe   : > { %17344 = vmatmul.mubr.bf16.vlgmr.msra.gmra.mxu1 %v24788_v42  ;;  %17436 = vmatprep.subr.bf16.mxu0 %v22405_v50  ;;  %v22459_v50 = vld [vmem:[%s22855_s6 + $0xb08] ss:$48 sps:$4 sm:$0xff]  }
0x1fff   : > { %17394 = vmatpush1.bf16.msra.mxu1 %v22400_v29  ;;  %17425 = vmatprep.mubr.bf16.mxu1 %v24693_v22  ;;  %v17061_v22 = vadd.f32 %v25172_v25, %v25185_v48  ;;  %v22423_v25 = vld [vmem:[%s22855_s6 + $0xd4c] ss:$48 sps:$4 sm:$0xff]  }
0x2000   : > { %v25249_v45 = vpop.f32.mrf.mxu0  ;;  %17395 = vmatprep.subr.bf16.mxu1 %v22408_v18  ;;  %v22467_v29 = vld [vmem:[%s22855_s6 + $0xaac] ss:$48 sps:$4 sm:$0xff]   ;;  %v22462_v18 = vld [vmem:[%s22855_s6 + $0x1048] ss:$48 sps:$4 sm:$0xff]  }
0x2001   : > { %17437 = vmatpush1.bf16.msra.mxu0 %v22403_v47  ;;  %v22470_v47 = vld [vmem:[%s22855_s6 + $0xfec] ss:$48 sps:$4 sm:$0xff]  }
0x2002   : > { %v17099_v38 = vpop.f32.mrf.mxu1  ;;  %v25255_v16 = vpop.f32.mrf.mxu0  ;;  %17438 = vmatprep.subr.bf16.mxu0 %v22411_v12  ;;  %v22465_v12 = vld [vmem:[%s22855_s6 + $0xaa8] ss:$48 sps:$4 sm:$0xff]  }
0x2003   : > { %v17100_v26 = vadd.f32 %v17099_v38, %v17059_v51  ;;  %17396 = vmatpush1.bf16.msra.mxu1 %v22406_v39  ;;  %v22473_v39 = vld [vmem:[%s22855_s6 + $0xa4c] ss:$48 sps:$4 sm:$0xff]  }
0x2004   : > { %v17101_v56 = vpop.f32.mrf.mxu1  ;;  %v17144_v54 = vpop.f32.mrf.mxu0  ;;  %17397 = vmatprep.subr.bf16.mxu1 %v22414_v44  ;;  %v22468_v44 = vld [vmem:[%s22855_s6 + $0xfe8] ss:$48 sps:$4 sm:$0xff]   ;;  %v22476_v51 = vld [vmem:[%s22855_s6 + $0xf8c] ss:$48 sps:$4 sm:$0xff]  }
0x2005   : > { %v25262_v30 = vpack.c.bf16 %v17100_v26, %v17100_v26  ;;  %v17102_v19 = vadd.f32 %v17101_v56, %v17061_v22  ;;  %17439 = vmatpush1.bf16.msra.mxu0 %v22409_v52  ;;  %v22471_v52 = vld [vmem:[%s22855_s6 + $0xa48] ss:$48 sps:$4 sm:$0xff]   ;;  %v22479_v38 = vld [vmem:[%s22855_s6 + $0x9ec] ss:$48 sps:$4 sm:$0xff]  }
0x2006   : > { %v17103_v58 = vpop.f32.mrf.mxu1  ;;  %v17145_v59 = vpop.f32.mrf.mxu0  ;;  %17440 = vmatprep.subr.bf16.mxu0 %v22417_v36  ;;  %v22474_v36 = vld [vmem:[%s22855_s6 + $0xf88] ss:$48 sps:$4 sm:$0xff]   ;;  %v22482_v22 = vld [vmem:[%s22855_s6 + $0xf2c] ss:$48 sps:$4 sm:$0xff]  }
0x2007   : > { %v25266_v48 = vpack.c.bf16 %v17102_v19, %v17102_v19  ;;  %17398 = vmatpush1.bf16.msra.mxu1 %v22412_v0  ;;  %17510 = vrot.lane.b32.xlu1 %v25262_v30, %s25698_s1  ;;  %v22477_v26 = vld [vmem:[%s22855_s6 + $0x9e8] ss:$48 sps:$4 sm:$0xff]   ;;  %v22485_v0 = vld [vmem:[%s22855_s6 + $0x98c] ss:$48 sps:$4 sm:$0xff]   ;;  %v17505_v58 = vpop.permute.xlu0 %17504 }
0x2008   : > { %v17104_v57 = vpop.f32.mrf.mxu1  ;;  %17399 = vmatprep.subr.bf16.mxu1 %v22420_v53  ;;  %v22480_v56 = vld [vmem:[%s22855_s6 + $0xf28] ss:$48 sps:$4 sm:$0xff]   ;;  %v17503_v53 = vpop.permute.xlu1 %17502  ;;  %v22488_v19 = vld [vmem:[%s22855_s6 + $0x92c] ss:$48 sps:$4 sm:$0xff]  }
0x2009   : > { %17441 = vmatpush1.bf16.msra.mxu0 %v22415_v49  ;;  %17512 = vrot.lane.b32.xlu0 %v25266_v48, %s25698_s1  ;;  %v22483_v54 = vld [vmem:[%s22855_s6 + $0x988] ss:$48 sps:$4 sm:$0xff]  }
0x200a   : > { %17442 = vmatprep.subr.bf16.mxu0 %v22423_v25  ;;  %v22486_v49 = vld [vmem:[%s22855_s6 + $0x928] ss:$48 sps:$4 sm:$0xff]   ;;  %v17526_v25 = vsel %vm6140_vm10, %v17503_v53, %v17505_v58 }
0x200b   : > { %17400 = vmatpush1.bf16.msra.mxu1 %v22418_v60 }
0x200c   : > { %17401 = vmatprep.subr.bf16.mxu1 %v22426_v62  ;;  %v17507_v59 = vpop.permute.xlu1 %17506  ;;  %v17541_v62 = vsel %vm2215_vm4, %v17526_v25, 0 }
0x200d   : > { %17443 = vmatpush1.bf16.msra.mxu0 %v22421_v63  ;;  %v17527_v60 = vsel %vm6140_vm10, %v17505_v58, %v17507_v59 }
0x200e   : > { %17444 = vmatprep.subr.bf16.mxu0 %v22429_v24 }
0x200f   : > { %17402 = vmatpush1.bf16.msra.mxu1 %v22424_v4 }
0x2010   : > { %17403 = vmatprep.subr.bf16.mxu1 %v22432_v6 }
0x2011   : > { %17445 = vmatpush1.bf16.msra.mxu0 %v22427_v10  ;;  %v25329_v10 = vld [vmem:[%s25732_s3 + $0x4] sm:$0x7] }
0x2012   : > { %17446 = vmatprep.subr.bf16.mxu0 %v22435_v11 }
0x2013   : > { %17404 = vmatpush1.bf16.msra.mxu1 %v22430_v41 }
0x2014   : > { %17405 = vmatprep.subr.bf16.mxu1 %v22438_v46 }
0x2015   : > { %17447 = vmatpush1.bf16.msra.mxu0 %v22433_v33 }
0x2016   : > { %17448 = vmatprep.subr.bf16.mxu0 %v22441_v9 }
0x2017   : > { %17406 = vmatpush1.bf16.msra.mxu1 %v22436_v14 }
0x2018   : > { %17407 = vmatprep.subr.bf16.mxu1 %v22444_v35 }
0x2019   : > { %17449 = vmatpush1.bf16.msra.mxu0 %v22439_v20 }
0x201a   : > { %20065 = vmatprep.subr.msk.bf16.mxu0 %vm1696_vm0, %v20054_v23  ;;  %vm18488_vm0 = vcmask 562176  }
0x201b   : > { %17408 = vmatpush1.bf16.msra.mxu1 %v22442_v61 }
0x201c   : > { %17409 = vmatprep.subr.bf16.mxu1 %v22449_v5 }
0x201d   : > { %17453 = vmatpush2.bf16.msra.mxu0 %v16732_v37 }
0x201e   : > { %17454 = vmatprep.subr.bf16.mxu0 %v22452_v28 }
0x201f   : > { %17410 = vmatpush2.bf16.msra.mxu1 %v22447_v3 }
0x2020   : > { %17411 = vmatprep.subr.bf16.mxu1 %v22455_v7 }
0x2021   : > { %17455 = vmatpush2.bf16.msra.mxu0 %v22450_v34 }
0x2022   : > { %17456 = vmatprep.subr.bf16.mxu0 %v22458_v40 }
0x2023   : > { %17412 = vmatpush2.bf16.msra.mxu1 %v22453_v31 }
0x2024   : > { %17413 = vmatprep.subr.bf16.mxu1 %v22461_v15 }
0x2025   : > { %17457 = vmatpush2.bf16.msra.mxu0 %v22456_v1 }
0x2026   : > { %17458 = vmatprep.subr.bf16.mxu0 %v22464_v32 }
0x2027   : > { %17414 = vmatpush2.bf16.msra.mxu1 %v22459_v50 }
0x2028   : > { %17415 = vmatprep.subr.bf16.mxu1 %v22467_v29 }
0x2029   : > { %17459 = vmatpush2.bf16.msra.mxu0 %v22462_v18 }
0x202a   : > { %17460 = vmatprep.subr.bf16.mxu0 %v22470_v47 }
0x202b   : > { %17416 = vmatpush2.bf16.msra.mxu1 %v22465_v12 }
0x202c   : > { %17417 = vmatprep.subr.bf16.mxu1 %v22473_v39 }
0x202d   : > { %17461 = vmatpush2.bf16.msra.mxu0 %v22468_v44 }
0x202e   : > { %17462 = vmatprep.subr.bf16.mxu0 %v22476_v51 }
0x202f   : > { %17418 = vmatpush2.bf16.msra.mxu1 %v22471_v52 }
0x2030   : > { %17419 = vmatprep.subr.bf16.mxu1 %v22479_v38 }
0x2031   : > { %17463 = vmatpush2.bf16.msra.mxu0 %v22474_v36 }
0x2032   : > { %17464 = vmatprep.subr.bf16.mxu0 %v22482_v22 }
0x2033   : > { %17420 = vmatpush2.bf16.msra.mxu1 %v22477_v26 }
0x2034   : > { %17421 = vmatprep.subr.bf16.mxu1 %v22485_v0 }
0x2035   : > { %17465 = vmatpush2.bf16.msra.mxu0 %v22480_v56 }
0x2037   : > { %17422 = vmatpush2.bf16.msra.mxu1 %v22483_v54 }
0x2038   : > { %17467 = vmatmul.mubr.bf16.vlgmr.msra.gmra.mxu0 %v24788_v42  ;;  %17423 = vmatprep.subr.bf16.mxu1 %v22488_v19 }
0x2039   : > { %17649 = vmatprep.mubr.bf16.mxu0 %v22555_v2 }
0x203b   : > { %17424 = vmatpush2.bf16.msra.mxu1 %v22486_v49 }
0x203c   : > { %v17222_v57 = vpop.f32.mrf.mxu0  ;;  %20068 = vmatprep.subr.msk.bf16.mxu1 %vm2215_vm4, %v17527_v60 }
0x203e   : > { %v17224_v63 = vpop.f32.mrf.mxu0  ;;  %17426 = vmatmul.mubr.bf16.vlgmr.msra.gmra.mxu1 %v24698_v8 }
0x203f   : > { %17591 = vmatpush1.bf16.msra.mxu1 %v17541_v62  ;;  %17608 = vmatprep.mubr.bf16.mxu1 %v22555_v2 }
0x2040   : > { %v17226_v42 = vpop.f32.mrf.mxu0 }
0x2042   : > { %v17181_v24 = vpop.f32.mrf.mxu1  ;;  %v17227_v4 = vpop.f32.mrf.mxu0 }
0x2043   : > { %v17182_v6 = vadd.f32 %v17181_v24, %v25249_v45  ;;  %v17509_v45 = vpop.permute.xlu0 %17508  ;;  %v18441_v4 = vld [vmem:[%s22845_s12] sm:$0x3f] }
0x2044   : > { %v17183_v11 = vpop.f32.mrf.mxu1 }
0x2045   : > { %v17223_v41 = vadd.f32 %v17222_v57, %v17182_v6  ;;  %v17184_v46 = vadd.f32 %v17183_v11, %v25255_v16  ;;  %v17528_v16 = vsel %vm6140_vm10, %v17507_v59, %v17509_v45  ;;  %v18459_v6 = vld [vmem:[%s22850_s20] sm:$0x3f] }
0x2046   : > { %v17185_v33 = vpop.f32.mrf.mxu1  ;;  %20069 = vmatmul.mubr.msk.bf16.vlgmr.msra.gmra.mxu1 %vm12517_vm11, %v25329_v10  ;;  %v17547_v23 = vsel %vm2215_vm4, %v17528_v16, 0 }
0x2047   : > { %v25334_v9 = vpack.c.bf16 %v17223_v41, %v17223_v41  ;;  %v17225_v8 = vadd.f32 %v17224_v63, %v17184_v46  ;;  %17690 = vmatprep.mubr.bf16.mxu1 %v22555_v2 }
0x2048   : > { %v17186_v14 = vpop.f32.mrf.mxu1 }
0x2049   : > { %v25337_v55 = vpack.c.bf16 %v17225_v8, %v17225_v8  ;;  %17514 = vrot.lane.b32.xlu1 %v25334_v9, %s25698_s1 }
0x204b   : > { %17516 = vrot.lane.b32.xlu0 %v25337_v55, %s25698_s1 }
0x2079   : > { %v17511_v35 = vpop.permute.xlu1 %17510 }
0x207a   : > { %v17529_v20 = vsel %vm6140_vm10, %v17509_v45, %v17511_v35 }
0x207b   : > { %20070 = vmatprep.subr.msk.bf16.mxu0 %vm2215_vm4, %v17529_v20  ;;  %v17513_v40 = vpop.permute.xlu0 %17512 }
0x207c   : > { %v17304_v21 = vpop.f32.mrf.mxu0  ;;  %17632 = vmatpush1.bf16.msra.mxu0 %v17547_v23  ;;  %v17530_v31 = vsel %vm6140_vm10, %v17511_v35, %v17513_v40 }
0x207d   : > { %v17553_v50 = vsel %vm2215_vm4, %v17530_v31, 0 }
0x207e   : > { %v17306_v61 = vpop.f32.mrf.mxu0 }
0x207f   : > { %20071 = vmatmul.mubr.msk.bf16.vlgmr.msra.gmra.mxu0 %vm12517_vm11, %v25329_v10 }
0x2080   : > { %v17308_v5 = vpop.f32.mrf.mxu0  ;;  %17731 = vmatprep.mubr.bf16.mxu0 %v22555_v2 }
0x2082   : > { %v17263_v37 = vpop.f32.mrf.mxu1  ;;  %v17309_v28 = vpop.f32.mrf.mxu0 }
0x2083   : > { %v17305_v29 = vadd.f32 %v17304_v21, %v17263_v37 }
0x2084   : > { %v17265_v3 = vpop.f32.mrf.mxu1 }
0x2085   : > { %v17307_v12 = vadd.f32 %v17306_v61, %v17265_v3 }
0x2086   : > { %v17267_v7 = vpop.f32.mrf.mxu1 }
0x2088   : > { %v17268_v34 = vpop.f32.mrf.mxu1 }
0x20bb   : > { %v17515_v15 = vpop.permute.xlu1 %17514 }
0x20bc   : > { %v17531_v1 = vsel %vm6140_vm10, %v17513_v40, %v17515_v15  ;;  %v17386_v32 = vpop.f32.mrf.mxu0 }
0x20bd   : > { %20072 = vmatprep.subr.msk.bf16.mxu1 %vm2215_vm4, %v17531_v1  ;;  %v17517_v41 = vpop.permute.xlu0 %17516  ;;  %v17826_v1 = vsel %vm2215_vm4, %v25024_v13, 0 }
0x20be   : > { %v17345_v18 = vpop.f32.mrf.mxu1  ;;  %v17388_v47 = vpop.f32.mrf.mxu0  ;;  %17673 = vmatpush1.bf16.msra.mxu1 %v17553_v50  ;;  %v17532_v8 = vsel %vm6140_vm10, %v17515_v15, %v17517_v41 }
0x20bf   : > { %v17346_v39 = vadd.f32 %v17345_v18, %v17305_v29  ;;  %v17559_v35 = vsel %vm2215_vm4, %v17532_v8, 0 }
0x20c0   : > { %v17347_v44 = vpop.f32.mrf.mxu1  ;;  %v17390_v51 = vpop.f32.mrf.mxu0 }
0x20c1   : > { %v25354_v52 = vpack.c.bf16 %v17346_v39, %v17346_v39  ;;  %v17348_v38 = vadd.f32 %v17347_v44, %v17307_v12  ;;  %20073 = vmatmul.mubr.msk.bf16.vlgmr.msra.gmra.mxu1 %vm12517_vm11, %v25329_v10 }
0x20c2   : > { %v17349_v36 = vpop.f32.mrf.mxu1  ;;  %v17391_v22 = vpop.f32.mrf.mxu0  ;;  %17772 = vmatprep.mubr.bf16.mxu1 %v22555_v2 }
0x20c3   : > { %v25359_v26 = vpack.c.bf16 %v17348_v38, %v17348_v38  ;;  %17518 = vrot.lane.b32.xlu1 %v25354_v52, %s25698_s1 }
0x20c4   : > { %v17350_v0 = vpop.f32.mrf.mxu1 }
0x20c5   : > { %17520 = vrot.lane.b32.xlu0 %v25359_v26, %s25698_s1 }
0x20f8   : > { %v17468_v56 = vpop.f32.mrf.mxu0 }
0x20fa   : > { %v17470_v54 = vpop.f32.mrf.mxu0 }
0x20fc   : > { %v17472_v53 = vpop.f32.mrf.mxu0 }
0x20fe   : > { %v17427_v19 = vpop.f32.mrf.mxu1  ;;  %v17473_v49 = vpop.f32.mrf.mxu0 }
0x20ff   : > { %v17428_v58 = vadd.f32 %v17427_v19, %v17386_v32  ;;  %v17487_v32 = vld [vmem:[%s25732_s3] sm:$0x7]  ;;  %v20092_v49 = vld [vmem:[%s25732_s3 + $0x8] sm:$0x7] }
0x2100   : > { %v17429_v59 = vpop.f32.mrf.mxu1 }
0x2101   : > { %v17469_v25 = vadd.f32 %v17468_v56, %v17428_v58  ;;  %v17430_v60 = vadd.f32 %v17429_v59, %v17388_v47 }
0x2102   : > { %v17431_v57 = vpop.f32.mrf.mxu1 }
0x2103   : > { %v25365_v62 = vpack.c.bf16 %v17469_v25, %v17469_v25  ;;  %v17471_v63 = vadd.f32 %v17470_v54, %v17430_v60 }
0x2104   : > { %v17432_v42 = vpop.f32.mrf.mxu1 }
0x2105   : > { %v25367_v24 = vpack.c.bf16 %v17471_v63, %v17471_v63  ;;  %17522 = vrot.lane.b32.xlu1 %v25365_v62, %s25698_s1  ;;  %v17856_v44 = vsel %vm2215_vm4, %v25365_v62, 0 }
0x2106   : > { %v25399_v11 = vpop.f32.mrf.mxu1 }
0x2107   : > { %17524 = vrot.lane.b32.xlu0 %v25367_v24, %s25698_s1  ;;  %s20816_s1 = smul.u32 96, %s25734_s10 }
0x2108   : > { %v25401_v46 = vpop.f32.mrf.mxu1 }
0x2109   : > { %18109 = vrot.lane.b32.xlu1 %v25024_v13, %s25707_s11  ;;  %s25531_s10 = scalar_lea.vmem %s22860_s4, %s20816_s1 }
0x210a   : > { %v17614_v33 = vpop.f32.mrf.mxu1 }
0x210b   : > { %18111 = vrot.lane.b32.xlu0 %v25028_v43, %s25707_s11 }
0x210c   : > { %v17615_v45 = vpop.f32.mrf.mxu1 }
0x210d   : > { %18113 = vrot.lane.b32.xlu1 %v25105_v17, %s25707_s11 }
0x210f   : > { %18115 = vrot.lane.b32.xlu0 %v25109_v27, %s25707_s11 }
0x2111   : > { %18117 = vrot.lane.b32.xlu1 %v25262_v30, %s25707_s11 }
0x2113   : > { %18119 = vrot.lane.b32.xlu0 %v25266_v48, %s25707_s11 }
0x2115   : > { %18121 = vrot.lane.b32.xlu1 %v25334_v9, %s25707_s11 }
0x2117   : > { %18123 = vrot.lane.b32.xlu0 %v25337_v55, %s25707_s11 }
0x2119   : > { %18125 = vrot.lane.b32.xlu1 %v25354_v52, %s25707_s11 }
0x211b   : > { %18127 = vrot.lane.b32.xlu0 %v25359_v26, %s25707_s11 }
0x211d   : > { %18129 = vrot.lane.b32.xlu1 %v25365_v62, %s25707_s11 }
0x211f   : > { %18131 = vrot.lane.b32.xlu0 %v25367_v24, %s25707_s11 }
0x2121   : > { %18444 = vperm.xlu1 %20895, %v18441_v4  }
0x2123   : > { %18462 = vperm.xlu0 %20896, %v18459_v6  }
0x2135   : > { %v17519_v14 = vpop.permute.xlu1 %17518 }
0x2136   : > { %v17533_v16 = vsel %vm6140_vm10, %v17517_v41, %v17519_v14 }
0x2137   : > { %20074 = vmatprep.subr.msk.bf16.mxu0 %vm2215_vm4, %v17533_v16  ;;  %v17521_v5 = vpop.permute.xlu0 %17520 }
0x2138   : > { %17714 = vmatpush1.bf16.msra.mxu0 %v17559_v35  ;;  %v17534_v37 = vsel %vm6140_vm10, %v17519_v14, %v17521_v5 }
0x2139   : > { %v17565_v7 = vsel %vm2215_vm4, %v17534_v37, 0 }
0x213b   : > { %20075 = vmatmul.mubr.msk.bf16.vlgmr.msra.gmra.mxu0 %vm12517_vm11, %v25329_v10 }
0x213c   : > { %17813 = vmatprep.mubr.bf16.mxu0 %v22555_v2 }
0x213f   : > { %v25410_v20 = vpop.f32.mrf.mxu0 }
0x2141   : > { %v25412_v23 = vpop.f32.mrf.mxu0 }
0x2143   : > { %v17655_v21 = vpop.f32.mrf.mxu0 }
0x2145   : > { %v17656_v61 = vpop.f32.mrf.mxu0 }
0x2177   : > { %v17523_v28 = vpop.permute.xlu1 %17522 }
0x2178   : > { %v17535_v3 = vsel %vm6140_vm10, %v17521_v5, %v17523_v28 }
0x2179   : > { %v17525_v34 = vpop.permute.xlu0 %17524  ;;  %20076 = vmatprep.subr.msk.bf16.mxu1 %vm2215_vm4, %v17535_v3 }
0x217a   : > { %v17536_v40 = vsel %vm6140_vm10, %v17523_v28, %v17525_v34  ;;  %17755 = vmatpush1.bf16.msra.mxu1 %v17565_v7  ;;  %20078 = vmatprep.subr.msk.bf16.mxu0 %vm2215_vm4, %v17525_v34 }
0x217b   : > { %v17571_v31 = vsel %vm2215_vm4, %v17536_v40, 0  ;;  %20080 = vmatprep.subr.msk.bf16.mxu1 %vm2215_vm4, %v25028_v43  ;;  %v18110_v15 = vpop.permute.xlu1 %18109  ;;  %v17832_v43 = vsel %vm2215_vm4, %v25105_v17, 0  ;;  %v17844_v17 = vsel %vm2215_vm4, %v25334_v9, 0 }
0x217c   : > { %17796 = vmatpush1.bf16.msra.mxu0 %v17571_v31 }
0x217d   : > { %20077 = vmatmul.mubr.msk.bf16.vlgmr.msra.gmra.mxu1 %vm12517_vm11, %v25329_v10  ;;  %20082 = vmatprep.subr.msk.bf16.mxu0 %vm2215_vm4, %v25109_v27  ;;  %v18112_v13 = vpop.permute.xlu0 %18111 }
0x217e   : > { %17876 = vmatpush1.bf16.msra.mxu1 %v17826_v1  ;;  %17893 = vmatprep.mubr.bf16.mxu1 %v22555_v2 }
0x217f   : > { %20079 = vmatmul.mubr.msk.bf16.vlgmr.msra.gmra.mxu0 %vm12517_vm11, %v25329_v10  ;;  %20084 = vmatprep.subr.msk.bf16.mxu1 %vm2215_vm4, %v25266_v48  ;;  %v18114_v50 = vpop.permute.xlu1 %18113  ;;  %v17838_v48 = vsel %vm2215_vm4, %v25262_v30, 0  ;;  %v17850_v30 = vsel %vm2215_vm4, %v25354_v52, 0  ;;  %v18133_v52 = vsel %vm6248_vm13, %v18110_v15, %v18112_v13 }
0x2180   : > { %17917 = vmatpush1.bf16.msra.mxu0 %v17832_v43  ;;  %17934 = vmatprep.mubr.bf16.mxu0 %v22555_v2  ;;  %v18134_v12 = vsel %vm6248_vm13, %v18112_v13, %v18114_v50  ;;  %v18148_v22 = vsel %vm2215_vm4, %v18133_v52, 0 }
0x2181   : > { %20086 = vmatprep.subr.msk.bf16.mxu0 %vm2215_vm4, %v25337_v55  ;;  %v25439_v27 = vpop.f32.mrf.mxu1  ;;  %v18116_v18 = vpop.permute.xlu0 %18115 }
0x2182   : > { %v18135_v38 = vsel %vm6248_vm13, %v18114_v50, %v18116_v18 }
0x2183   : > { %v25442_v29 = vpop.f32.mrf.mxu1  ;;  %v18118_v47 = vpop.permute.xlu1 %18117  ;;  %v18154_v56 = vsel %vm2215_vm4, %v18135_v38, 0 }
0x2184   : > { %v18136_v51 = vsel %vm6248_vm13, %v18116_v18, %v18118_v47 }
0x2185   : > { %20081 = vmatmul.mubr.msk.bf16.vlgmr.msra.gmra.mxu1 %vm12517_vm11, %v17487_v32  ;;  %v17696_v10 = vpop.f32.mrf.mxu1  ;;  %v18120_v39 = vpop.permute.xlu0 %18119 }
0x2186   : > { %17958 = vmatpush1.bf16.msra.mxu1 %v17838_v48  ;;  %17975 = vmatprep.mubr.bf16.mxu1 %v22555_v2  ;;  %v18137_v53 = vsel %vm6248_vm13, %v18118_v47, %v18120_v39 }
0x2187   : > { %20088 = vmatprep.subr.msk.bf16.mxu1 %vm2215_vm4, %v25359_v26  ;;  %20083 = vmatmul.mubr.msk.bf16.vlgmr.msra.gmra.mxu0 %vm12517_vm11, %v17487_v32  ;;  %v17697_v55 = vpop.f32.mrf.mxu1  ;;  %v18122_v9 = vpop.permute.xlu1 %18121  ;;  %v18160_v25 = vsel %vm2215_vm4, %v18137_v53, 0 }
0x2188   : > { %17999 = vmatpush1.bf16.msra.mxu0 %v17844_v17  ;;  %18016 = vmatprep.mubr.bf16.mxu0 %v22555_v2  ;;  %v18138_v0 = vsel %vm6248_vm13, %v18120_v39, %v18122_v9 }
0x2189   : > { %20090 = vmatprep.subr.msk.bf16.mxu0 %vm2215_vm4, %v25367_v24  ;;  %v18124_v36 = vpop.permute.xlu0 %18123 }
0x218a   : > { %v18139_v59 = vsel %vm6248_vm13, %v18122_v9, %v18124_v36 }
0x218b   : > { %v18126_v26 = vpop.permute.xlu1 %18125  ;;  %v18166_v57 = vsel %vm2215_vm4, %v18139_v59, 0 }
0x218c   : > { %v18140_v54 = vsel %vm6248_vm13, %v18124_v36, %v18126_v26 }
0x218d   : > { %20085 = vmatmul.mubr.msk.bf16.vlgmr.msra.gmra.mxu1 %vm12517_vm11, %v17487_v32  ;;  %v18128_v19 = vpop.permute.xlu0 %18127 }
0x218e   : > { %18040 = vmatpush1.bf16.msra.mxu1 %v17850_v30  ;;  %18057 = vmatprep.mubr.bf16.mxu1 %v22555_v2  ;;  %v18141_v63 = vsel %vm6248_vm13, %v18126_v26, %v18128_v19 }
0x218f   : > { %20093 = vmatprep.subr.msk.bf16.mxu1 %vm2215_vm4, %v18134_v12  ;;  %20087 = vmatmul.mubr.msk.bf16.vlgmr.msra.gmra.mxu0 %vm12517_vm11, %v17487_v32  ;;  %v18130_v58 = vpop.permute.xlu1 %18129  ;;  %v18172_v24 = vsel %vm2215_vm4, %v18141_v63, 0 }
0x2190   : > { %18081 = vmatpush1.bf16.msra.mxu0 %v17856_v44  ;;  %18098 = vmatprep.mubr.bf16.mxu0 %v22555_v2  ;;  %v18142_v60 = vsel %vm6248_vm13, %v18128_v19, %v18130_v58 }
0x2191   : > { %20095 = vmatprep.subr.msk.bf16.mxu0 %vm2215_vm4, %v18136_v51  ;;  %v18132_v62 = vpop.permute.xlu0 %18131 }
0x2192   : > { %v18143_v42 = vsel %vm6248_vm13, %v18130_v58, %v18132_v62 }
0x2193   : > { %v18178_v4 = vsel %vm2215_vm4, %v18143_v42, 0 }
0x2195   : > { %20089 = vmatmul.mubr.msk.bf16.vlgmr.msra.gmra.mxu1 %vm12517_vm11, %v17487_v32 }
0x2196   : > { %18198 = vmatpush1.bf16.msra.mxu1 %v18148_v22  ;;  %18215 = vmatprep.mubr.bf16.mxu1 %v22555_v2 }
0x2197   : > { %20097 = vmatprep.subr.msk.bf16.mxu1 %vm2215_vm4, %v18138_v0  ;;  %20091 = vmatmul.mubr.msk.bf16.vlgmr.msra.gmra.mxu0 %vm12517_vm11, %v17487_v32 }
0x2198   : > { %18239 = vmatpush1.bf16.msra.mxu0 %v18154_v56  ;;  %18256 = vmatprep.mubr.bf16.mxu0 %v22555_v2 }
0x2199   : > { %20099 = vmatprep.subr.msk.bf16.mxu0 %vm2215_vm4, %v18140_v54 }
0x219c   : > { %v25522_v38 = vpop.permute.xlu1 %18444 }
0x219d   : > { %20094 = vmatmul.mubr.msk.bf16.vlgmr.msra.gmra.mxu1 %vm12517_vm11, %v20092_v49 }
0x219e   : > { %18280 = vmatpush1.bf16.msra.mxu1 %v18160_v25  ;;  %18297 = vmatprep.mubr.bf16.mxu1 %v22555_v2  ;;  %v25526_v54 = vpop.permute.xlu0 %18462 }
0x219f   : > { %20101 = vmatprep.subr.msk.bf16.mxu1 %vm2215_vm4, %v18142_v60  ;;  %20096 = vmatmul.mubr.msk.bf16.vlgmr.msra.gmra.mxu0 %vm12517_vm11, %v20092_v49 }
0x21a0   : > { %18321 = vmatpush1.bf16.msra.mxu0 %v18166_v57  ;;  %18338 = vmatprep.mubr.bf16.mxu0 %v22555_v2 }
0x21a1   : > { %20103 = vmatprep.subr.msk.bf16.mxu0 %vm2215_vm4, %v18132_v62 }
0x21a5   : > { %20098 = vmatmul.mubr.msk.bf16.vlgmr.msra.gmra.mxu1 %vm12517_vm11, %v20092_v49 }
0x21a6   : > { %18362 = vmatpush1.bf16.msra.mxu1 %v18172_v24  ;;  %18379 = vmatprep.mubr.bf16.mxu1 %v22555_v2 }
0x21a7   : > { %20100 = vmatmul.mubr.msk.bf16.vlgmr.msra.gmra.mxu0 %vm12517_vm11, %v20092_v49 }
0x21a8   : > { %18403 = vmatpush1.bf16.msra.mxu0 %v18178_v4  ;;  %18420 = vmatprep.mubr.bf16.mxu0 %v22555_v2 }
0x21ad   : > { %20102 = vmatmul.mubr.msk.bf16.vlgmr.msra.gmra.mxu1 %vm12517_vm11, %v20092_v49 }
0x21af   : > { %20104 = vmatmul.mubr.msk.bf16.vlgmr.msra.gmra.mxu0 %vm12517_vm11, %v20092_v49 }
0x21fb   : > { %v25502_v6 = vpop.f32.mrf.mxu0 }
0x21fd   : > { %v25504_v41 = vpop.f32.mrf.mxu0 }
0x21ff   : > { %v17737_v33 = vpop.f32.mrf.mxu0 }
0x2201   : > { %v17738_v8 = vpop.f32.mrf.mxu0 }
0x223d   : > { %v25506_v14 = vpop.f32.mrf.mxu1 }
0x223f   : > { %v25508_v45 = vpop.f32.mrf.mxu1  ;;  %v25510_v16 = vpop.f32.mrf.mxu0 }
0x2241   : > { %v17778_v35 = vpop.f32.mrf.mxu1  ;;  %v25512_v21 = vpop.f32.mrf.mxu0 }
0x2243   : > { %v17779_v2 = vpop.f32.mrf.mxu1  ;;  %v17819_v61 = vpop.f32.mrf.mxu0 }
0x2245   : > { %v17820_v5 = vpop.f32.mrf.mxu0  ;;  %v17895_v37 = vpop.f32.mrf.mxu1 }
0x2246   : > { %v17896_v44 = vadd.f32 %v17895_v37, %v25399_v11 }
0x2247   : > { %v17897_v28 = vpop.f32.mrf.mxu1  ;;  %v17936_v3 = vpop.f32.mrf.mxu0 }
0x2248   : > { %v17898_v36 = vadd.f32 %v17897_v28, %v25401_v46  ;;  %v17937_v22 = vadd.f32 %v17936_v3, %v25410_v20 }
0x2249   : > { %v17899_v7 = vpop.f32.mrf.mxu1  ;;  %v17938_v34 = vpop.f32.mrf.mxu0 }
0x224a   : > { %v17939_v53 = vadd.f32 %v17938_v34, %v25412_v23 }
0x224b   : > { %v17900_v40 = vpop.f32.mrf.mxu1  ;;  %v17940_v31 = vpop.f32.mrf.mxu0 }
0x224d   : > { %v17941_v15 = vpop.f32.mrf.mxu0  ;;  %v17977_v1 = vpop.f32.mrf.mxu1 }
0x224e   : > { %v17978_v62 = vadd.f32 %v17977_v1, %v25439_v27 }
0x224f   : > { %v17979_v43 = vpop.f32.mrf.mxu1  ;;  %v18018_v13 = vpop.f32.mrf.mxu0 }
0x2250   : > { %v17980_v8 = vadd.f32 %v17979_v43, %v25442_v29  ;;  %v18019_v35 = vadd.f32 %v18018_v13, %v25502_v6 }
0x2251   : > { %v17981_v32 = vpop.f32.mrf.mxu1  ;;  %v18020_v50 = vpop.f32.mrf.mxu0 }
0x2252   : > { %v18021_v37 = vadd.f32 %v18020_v50, %v25504_v41 }
0x2253   : > { %v17982_v48 = vpop.f32.mrf.mxu1  ;;  %v18022_v10 = vpop.f32.mrf.mxu0 }
0x2255   : > { %v18023_v17 = vpop.f32.mrf.mxu0  ;;  %v18059_v55 = vpop.f32.mrf.mxu1 }
0x2256   : > { %v18060_v41 = vadd.f32 %v18059_v55, %v25506_v14 }
0x2257   : > { %v25514_v18 = vpop.f32.mrf.mxu1  ;;  %v25516_v47 = vpop.f32.mrf.mxu0 }
0x2258   : > { %v18062_v17 = vadd.f32 %v25514_v18, %v25508_v45 }
0x2259   : > { %v18063_v30 = vpop.f32.mrf.mxu1  ;;  %v25518_v12 = vpop.f32.mrf.mxu0 }
0x225a   : > { %v18101_v30 = vadd.f32 %v25516_v47, %v25510_v16 }
0x225b   : > { %v18064_v39 = vpop.f32.mrf.mxu1  ;;  %v18104_v9 = vpop.f32.mrf.mxu0 }
0x225d   : > { %v18105_v51 = vpop.f32.mrf.mxu0  ;;  %v18217_v52 = vpop.f32.mrf.mxu1 }
0x225e   : > { %v18429_v26 = vadd.f32 %v18217_v52, %v17896_v44  ;;  %v18103_v44 = vadd.f32 %v25518_v12, %v25512_v21 }
0x225f   : > { %v18219_v0 = vpop.f32.mrf.mxu1  ;;  %v18258_v56 = vpop.f32.mrf.mxu0 }
0x2260   : > { %v18447_v19 = vmul.f32 %v25522_v38, %v18429_v26  ;;  %v18430_v49 = vadd.f32 %v18219_v0, %v17898_v36  ;;  %v18431_v11 = vadd.f32 %v18258_v56, %v17937_v22 }
0x2261   : > { %v18221_v58 = vpop.f32.mrf.mxu1  ;;  %v18260_v59 = vpop.f32.mrf.mxu0 }
0x2262   : > { %v18465_v46 = vadd.f32 %v25526_v54, %v18447_v19  ;;  %v18448_v20 = vmul.f32 %v25522_v38, %v18430_v49  ;;  %v18449_v25 = vmul.f32 %v25522_v38, %v18431_v11  ;;  %v18432_v60 = vadd.f32 %v18260_v59, %v17939_v53 }
0x2263   : > { %v18222_v57 = vpop.f32.mrf.mxu1  ;;  %v18262_v23 = vpop.f32.mrf.mxu0 }
0x2264   : > { %18477 = vst [vmem:[%s25531_s10] sm:$0x3f] %v18465_v46  ;;  %v18466_v63 = vadd.f32 %v25526_v54, %v18448_v20  ;;  %v18467_v42 = vadd.f32 %v25526_v54, %v18449_v25  ;;  %v18450_v24 = vmul.f32 %v25522_v38, %v18432_v60 }
0x2265   : > { %v18263_v4 = vpop.f32.mrf.mxu0  ;;  %v18299_v33 = vpop.f32.mrf.mxu1 }
0x2266   : > { %18478 = vst [vmem:[%s25531_s10 + $0x8] sm:$0x3f] %v18466_v63  ;;  %18479 = vst [vmem:[%s25531_s10 + $0x10] sm:$0x3f] %v18467_v42  ;;  %v18468_v2 = vadd.f32 %v25526_v54, %v18450_v24  ;;  %v18433_v61 = vadd.f32 %v18299_v33, %v17978_v62 }
0x2267   : > { %v18301_v27 = vpop.f32.mrf.mxu1  ;;  %v18340_v5 = vpop.f32.mrf.mxu0 }
0x2268   : > { %18480 = vst [vmem:[%s25531_s10 + $0x18] sm:$0x3f] %v18468_v2  ;;  %v18451_v28 = vmul.f32 %v25522_v38, %v18433_v61  ;;  %v18434_v3 = vadd.f32 %v18301_v27, %v17980_v8  ;;  %v18435_v7 = vadd.f32 %v18340_v5, %v18019_v35 }
0x2269   : > { %v18303_v34 = vpop.f32.mrf.mxu1  ;;  %v18342_v40 = vpop.f32.mrf.mxu0 }
0x226a   : > { %v18469_v29 = vadd.f32 %v25526_v54, %v18451_v28  ;;  %v18452_v6 = vmul.f32 %v25522_v38, %v18434_v3  ;;  %v18453_v31 = vmul.f32 %v25522_v38, %v18435_v7  ;;  %v18436_v15 = vadd.f32 %v18342_v40, %v18021_v37 }
0x226b   : > { %v18304_v1 = vpop.f32.mrf.mxu1  ;;  %v18344_v43 = vpop.f32.mrf.mxu0 }
0x226c   : > { %18481 = vst [vmem:[%s25531_s10 + $0x20] sm:$0x3f] %v18469_v29  ;;  %v18470_v13 = vadd.f32 %v25526_v54, %v18452_v6  ;;  %v18471_v32 = vadd.f32 %v25526_v54, %v18453_v31  ;;  %v18454_v50 = vmul.f32 %v25522_v38, %v18436_v15 }
0x226d   : > { %v18345_v48 = vpop.f32.mrf.mxu0  ;;  %v18381_v10 = vpop.f32.mrf.mxu1 }
0x226e   : > { %18482 = vst [vmem:[%s25531_s10 + $0x28] sm:$0x3f] %v18470_v13  ;;  %18483 = vst [vmem:[%s25531_s10 + $0x30] sm:$0x3f] %v18471_v32  ;;  %v18472_v14 = vadd.f32 %v25526_v54, %v18454_v50  ;;  %v18437_v55 = vadd.f32 %v18381_v10, %v18060_v41 }
0x226f   : > { %v18383_v39 = vpop.f32.mrf.mxu1  ;;  %v18422_v9 = vpop.f32.mrf.mxu0 }
0x2270   : > { %18484 = vst [vmem:[%s25531_s10 + $0x38] sm:$0x3f] %v18472_v14  ;;  %v18455_v51 = vmul.f32 %v25522_v38, %v18437_v55  ;;  %v18438_v52 = vadd.f32 %v18383_v39, %v18062_v17  ;;  %v18439_v45 = vadd.f32 %v18422_v9, %v18101_v30 }
0x2271   : > { %v18424_v18 = vpop.f32.mrf.mxu0  ;;  %v18385_v16 = vpop.f32.mrf.mxu1 }
0x2272   : > { %v18473_v47 = vadd.f32 %v25526_v54, %v18455_v51  ;;  %v18456_v36 = vmul.f32 %v25522_v38, %v18438_v52  ;;  %v18457_v22 = vmul.f32 %v25522_v38, %v18439_v45  ;;  %v18440_v26 = vadd.f32 %v18424_v18, %v18103_v44 }
0x2273   : > { %v18426_v0 = vpop.f32.mrf.mxu0  ;;  %v18386_v56 = vpop.f32.mrf.mxu1 }
0x2274   : > { %18485 = vst [vmem:[%s25531_s10 + $0x40] sm:$0x3f] %v18473_v47  ;;  %v18474_v21 = vadd.f32 %v25526_v54, %v18456_v36  ;;  %v18475_v12 = vadd.f32 %v25526_v54, %v18457_v22  ;;  %v18458_v53 = vmul.f32 %v25522_v38, %v18440_v26 }
0x2275   : > { %v18427_v19 = vpop.f32.mrf.mxu0 }
0x2276   : > { %18486 = vst [vmem:[%s25531_s10 + $0x48] sm:$0x3f] %v18474_v21  ;;  %18487 = vst [vmem:[%s25531_s10 + $0x50] sm:$0x3f] %v18475_v12  ;;  %v18476_v49 = vadd.f32 %v25526_v54, %v18458_v53 }
0x2278   : > { %18489 = vst.msk [vmem:[%s25531_s10 + $0x58] sm:$0x3f] %vm18488_vm0, %v18476_v49 }
0x2279 PF: > { %s125_s7 = sadd.s32 1, %s22495_s7  }
0x227a   : > { %p122_p4 = scmp.ge.s32.totalorder %s125_s7, 4  }
0x227c   :  { %124 = sbr.rel (!%p122_p4) target bundleno = 112 (0x70), region = 406 }

</bundles_post_ra>
